<compile_context>
chip_gen: v7x
topology: tpu7x:2x2x1
jax: 0.10.0
libtpu: 0.0.40
codegen_flags: <defaults>
</compile_context>

<pallas_src>
import functools
import math

import jax
import jax.numpy as jnp
from jax.experimental import pallas as pl
from jax.experimental.pallas import tpu as pltpu

NHEAD = 12
_TILE_M = 512


def _pick_vmem_limit():
    # v5e/v6e have 128 MiB physical VMEM per core, v7x has 64 MiB; leave
    # headroom for Mosaic internal scratch.  Fall back to a safe constant.
    try:
        info = pltpu.get_tpu_info()
        cap = getattr(info, "vmem_capacity_bytes", None)
        if cap:
            return int(min(int(cap) - (12 << 20), 100 << 20))
    except Exception:
        pass
    return 48 << 20


_VMEM_LIMIT = _pick_vmem_limit()


# --------------------------------------------------------------------------
# In-kernel helpers (traced inside Pallas kernels)
# --------------------------------------------------------------------------
def _mm(a, b):
    """a @ b with bf16 MXU operands (no-op cast if already bf16), f32 accum."""
    return jnp.dot(a.astype(jnp.bfloat16), b.astype(jnp.bfloat16),
                   preferred_element_type=jnp.float32)


def _mm_nt(a, b):
    """a @ b.T (contract last dims) without materializing the transpose."""
    return jax.lax.dot_general(
        a.astype(jnp.bfloat16), b.astype(jnp.bfloat16),
        (((1,), (1,)), ((), ())),
        preferred_element_type=jnp.float32)


def _layer_norm(x, g, b, eps=1e-5):
    mean = jnp.mean(x, axis=-1, keepdims=True)
    var = jnp.mean(jnp.square(x - mean), axis=-1, keepdims=True)
    return (x - mean) * jax.lax.rsqrt(var + eps) * g + b


def _softmax_rows(s):
    m = jnp.max(s, axis=-1, keepdims=True)
    p = jnp.exp(s - m)
    denom = jnp.sum(p, axis=-1, keepdims=True)
    return p * pl.reciprocal(denom, approx=True)


def _multi_head_attention(q, k, v, wo, bo, nhead):
    """q: (Lq, D) (already pre-scaled via weight folding), k/v: (Lk, D).

    Per-head context is pushed through the matching row-slice of wo and
    accumulated -> no lane-axis concat of head outputs.  Returns (Lq, D) f32.
    """
    D = q.shape[-1]
    dh = D // nhead
    out = jnp.zeros((q.shape[0], wo.shape[-1]), jnp.float32)
    for h in range(nhead):                        # static unroll
        sl = slice(h * dh, (h + 1) * dh)
        s = _mm_nt(q[:, sl], k[:, sl])            # (Lq, Lk), scale pre-folded
        p = _softmax_rows(s)
        ctx = _mm(p, v[:, sl])                    # (Lq, dh)
        out = out + _mm(ctx, wo[sl, :])           # accumulate through wo slice
    return out + bo


# --------------------------------------------------------------------------
# Fused transformer STACK kernels (all layers in one pallas_call)
# --------------------------------------------------------------------------
_ENC_KEYS = ("wqkv", "bqkv", "wo", "bo", "ln1_g", "ln1_b",
             "ff_w1", "ff_b1", "ff_w2", "ff_b2", "ln2_g", "ln2_b")

_DEC_KEYS = ("sa_wqkv", "sa_bqkv", "sa_wo", "sa_bo", "ln1_g", "ln1_b",
             "ca_wq", "ca_bq", "ca_wkv", "ca_bkv", "ca_wo", "ca_bo",
             "ln2_g", "ln2_b",
             "ff_w1", "ff_b1", "ff_w2", "ff_b2", "ln3_g", "ln3_b")


def _encoder_stack_kernel(x_ref,
                          wqkv_ref, bqkv_ref, wo_ref, bo_ref,
                          ln1g_ref, ln1b_ref,
                          ffw1_ref, ffb1_ref, ffw2_ref, ffb2_ref,
                          ln2g_ref, ln2b_ref,
                          o_ref, acc_ref, *, nhead):
    l = pl.program_id(1)

    @pl.when(l == 0)
    def _():
        acc_ref[...] = x_ref[0].astype(jnp.float32)

    x = acc_ref[...]                                       # (S, D) f32 resident
    D = x.shape[-1]

    # fused QKV projection + MHA + output projection (scale folded into Wq)
    qkv = _mm(x, wqkv_ref[0]) + bqkv_ref[0]                # (S, 3D)
    a = _multi_head_attention(qkv[:, :D], qkv[:, D:2 * D], qkv[:, 2 * D:],
                              wo_ref[0], bo_ref[0], nhead)
    x = _layer_norm(x + a, ln1g_ref[0], ln1b_ref[0])

    # FFN (tanh-GELU) + residual + LN
    h = jax.nn.gelu(_mm(x, ffw1_ref[0]) + ffb1_ref[0], approximate=True)
    f = _mm(h, ffw2_ref[0]) + ffb2_ref[0]
    x = _layer_norm(x + f, ln2g_ref[0], ln2b_ref[0])

    acc_ref[...] = x

    @pl.when(l == pl.num_programs(1) - 1)
    def _():
        o_ref[0] = x.astype(o_ref.dtype)


def _decoder_stack_kernel(x_ref, mem_ref,
                          sa_wqkv_ref, sa_bqkv_ref, sa_wo_ref, sa_bo_ref,
                          ln1g_ref, ln1b_ref,
                          ca_wq_ref, ca_bq_ref, ca_wkv_ref, ca_bkv_ref,
                          ca_wo_ref, ca_bo_ref,
                          ln2g_ref, ln2b_ref,
                          ffw1_ref, ffb1_ref, ffw2_ref, ffb2_ref,
                          ln3g_ref, ln3b_ref,
                          o_ref, acc_ref, *, nhead):
    l = pl.program_id(1)

    @pl.when(l == 0)
    def _():
        acc_ref[...] = x_ref[0].astype(jnp.float32)

    x = acc_ref[...]                                       # (Q, D) f32 resident
    mem = mem_ref[0]                                       # (S, D) bf16
    D = x.shape[-1]

    # self-attention (fused QKV, scale folded into Wq)
    qkv = _mm(x, sa_wqkv_ref[0]) + sa_bqkv_ref[0]
    a = _multi_head_attention(qkv[:, :D], qkv[:, D:2 * D], qkv[:, 2 * D:],
                              sa_wo_ref[0], sa_bo_ref[0], nhead)
    x = _layer_norm(x + a, ln1g_ref[0], ln1b_ref[0])

    # cross-attention (fused KV from memory, scale folded into Wq)
    q = _mm(x, ca_wq_ref[0]) + ca_bq_ref[0]
    kv = _mm(mem, ca_wkv_ref[0]) + ca_bkv_ref[0]
    c = _multi_head_attention(q, kv[:, :D], kv[:, D:],
                              ca_wo_ref[0], ca_bo_ref[0], nhead)
    x = _layer_norm(x + c, ln2g_ref[0], ln2b_ref[0])

    # FFN
    h = jax.nn.gelu(_mm(x, ffw1_ref[0]) + ffb1_ref[0], approximate=True)
    f = _mm(h, ffw2_ref[0]) + ffb2_ref[0]
    x = _layer_norm(x + f, ln3g_ref[0], ln3b_ref[0])

    acc_ref[...] = x

    @pl.when(l == pl.num_programs(1) - 1)
    def _():
        o_ref[0] = x.astype(o_ref.dtype)


def _weight_spec(w):
    # Per-layer stacked weight: block = one layer, last two dims = full extent.
    return pl.BlockSpec((1,) + w.shape[1:], lambda b, l: (l, 0, 0))


def encoder_stack(x, stk):
    B, S, D = x.shape
    weights = [stk[k] for k in _ENC_KEYS]
    L = weights[0].shape[0]
    return pl.pallas_call(
        functools.partial(_encoder_stack_kernel, nhead=NHEAD),
        out_shape=jax.ShapeDtypeStruct((B, S, D), jnp.bfloat16),
        grid=(B, L),
        in_specs=[pl.BlockSpec((1, S, D), lambda b, l: (b, 0, 0))]
                 + [_weight_spec(w) for w in weights],
        out_specs=pl.BlockSpec((1, S, D), lambda b, l: (b, 0, 0)),
        scratch_shapes=[pltpu.VMEM((S, D), jnp.float32)],
        compiler_params=pltpu.CompilerParams(
            dimension_semantics=("parallel", "arbitrary"),
            vmem_limit_bytes=_VMEM_LIMIT),
    )(x, *weights)


def decoder_stack(x, memory, stk):
    B, Q, D = x.shape
    S = memory.shape[1]
    weights = [stk[k] for k in _DEC_KEYS]
    L = weights[0].shape[0]
    return pl.pallas_call(
        functools.partial(_decoder_stack_kernel, nhead=NHEAD),
        out_shape=jax.ShapeDtypeStruct((B, Q, D), jnp.bfloat16),
        grid=(B, L),
        in_specs=[pl.BlockSpec((1, Q, D), lambda b, l: (b, 0, 0)),
                  pl.BlockSpec((1, S, D), lambda b, l: (b, 0, 0))]
                 + [_weight_spec(w) for w in weights],
        out_specs=pl.BlockSpec((1, Q, D), lambda b, l: (b, 0, 0)),
        scratch_shapes=[pltpu.VMEM((Q, D), jnp.float32)],
        compiler_params=pltpu.CompilerParams(
            dimension_semantics=("parallel", "arbitrary"),
            vmem_limit_bytes=_VMEM_LIMIT),
    )(x, memory, *weights)


# --------------------------------------------------------------------------
# Generic M-tiled dense and fused (lane-dense) RGB MLP kernels
# --------------------------------------------------------------------------
def _dense_kernel(x_ref, w_ref, b_ref, o_ref):
    y = _mm(x_ref[...], w_ref[...]) + b_ref[...]
    o_ref[...] = y.astype(o_ref.dtype)


def dense(x2d, w, b, out_dtype=jnp.float32):
    """y = x2d @ w + b; x2d: (M, K), w: (K, N) bf16, b: (1, N) f32."""
    M, K = x2d.shape
    N = w.shape[1]
    bm = M if M <= _TILE_M else _TILE_M
    return pl.pallas_call(
        _dense_kernel,
        out_shape=jax.ShapeDtypeStruct((M, N), out_dtype),
        grid=(pl.cdiv(M, bm),),
        in_specs=[
            pl.BlockSpec((bm, K), lambda i: (i, 0)),
            pl.BlockSpec((K, N), lambda i: (0, 0)),
            pl.BlockSpec((1, N), lambda i: (0, 0)),
        ],
        out_specs=pl.BlockSpec((bm, N), lambda i: (i, 0)),
        compiler_params=pltpu.CompilerParams(
            dimension_semantics=("parallel",),
            vmem_limit_bytes=_VMEM_LIMIT),
    )(x2d, w, b)


def _rgb_mlp_kernel(x_ref, w1_ref, b1_ref, w2_ref, b2_ref, w3_ref, b3_ref,
                    o_ref):
    h = jnp.maximum(_mm(x_ref[...], w1_ref[...]) + b1_ref[...], 0.0)
    h = jnp.maximum(_mm(h, w2_ref[...]) + b2_ref[...], 0.0)
    y = jax.nn.sigmoid(_mm(h, w3_ref[...]) + b3_ref[...])
    o_ref[...] = y.astype(o_ref.dtype)            # lane-dense (bm, 128) store


def rgb_mlp(x2d, p):
    """Fused D -> 256 -> relu -> 64 -> relu -> 3 -> sigmoid MLP.

    w3/b3 are zero-padded to 128 output lanes so the kernel stores a
    lane-dense (bm, 128) block; the real 3 channels are sliced outside.
    """
    M, D = x2d.shape
    bm = M if M <= _TILE_M else _TILE_M
    weights = [p["w1"], p["b1"], p["w2"], p["b2"], p["w3"], p["b3"]]
    npad = p["w3"].shape[1]                       # 128
    out = pl.pallas_call(
        _rgb_mlp_kernel,
        out_shape=jax.ShapeDtypeStruct((M, npad), jnp.float32),
        grid=(pl.cdiv(M, bm),),
        in_specs=[pl.BlockSpec((bm, D), lambda i: (i, 0))]
                 + [pl.BlockSpec(w.shape, lambda i: (0, 0)) for w in weights],
        out_specs=pl.BlockSpec((bm, npad), lambda i: (i, 0)),
        compiler_params=pltpu.CompilerParams(
            dimension_semantics=("parallel",),
            vmem_limit_bytes=_VMEM_LIMIT),
    )(x2d, *weights)
    return out[:, :3]


# --------------------------------------------------------------------------
# Ray / positional-encoding glue (plain JAX)
# --------------------------------------------------------------------------
def positional_encoding(rays, n_freqs, start_freq):
    """(origin, direction) rays (..., 6) -> plucker -> harmonic (..., 2*F*6)."""
    origin, direction = rays[..., :3], rays[..., 3:]
    direction = direction / (jnp.linalg.norm(direction, axis=-1, keepdims=True) + 1e-8)
    moment = jnp.cross(origin, direction)
    plucker = jnp.concatenate([direction, moment], axis=-1)          # (..., 6)
    freqs = 2.0 ** jnp.arange(start_freq, start_freq + n_freqs, dtype=jnp.float32)
    scaled = plucker[..., None, :] * freqs[:, None]                  # (..., F, 6)
    enc = jnp.concatenate([jnp.sin(scaled), jnp.cos(scaled)], axis=-1)
    return enc.reshape(*rays.shape[:-1], 2 * n_freqs * 6)


def id_harmonic(ids, n_freqs, start_freq):
    freqs = 2.0 ** jnp.arange(start_freq, start_freq + n_freqs, dtype=jnp.float32)
    scaled = ids[..., None] * freqs
    return jnp.concatenate([jnp.sin(scaled), jnp.cos(scaled)], axis=-1)


def get_patch_rays(b, n_views, npx, npy):
    # Identity-extrinsics FoVOrthographic cameras -> rays through patch
    # centers: origin = patch center in NDC plane, direction = +z.
    xs = jnp.linspace(-1.1, 1.1, npx + 1)
    ys = jnp.linspace(-1.1, 1.1, npy + 1)
    xc = (xs[:-1] + xs[1:]) * 0.5
    yc = (ys[:-1] + ys[1:]) * 0.5
    gx, gy = jnp.meshgrid(xc, yc, indexing="xy")
    origins = jnp.stack([gx, gy, jnp.zeros_like(gx)], axis=-1).reshape(-1, 3)
    dirs = jnp.broadcast_to(jnp.array([0.0, 0.0, 1.0], jnp.float32), origins.shape)
    rays = jnp.concatenate([origins, dirs], axis=-1)                 # (npx*npy, 6)
    return jnp.broadcast_to(rays, (b, n_views, npx * npy, 6))


# --------------------------------------------------------------------------
# Parameter construction (deterministic, synthetic) + TPU-friendly packing
# --------------------------------------------------------------------------
def _init_linear(key, din, dout):
    k1, k2 = jax.random.split(key)
    w = jax.random.normal(k1, (din, dout), jnp.float32) * 0.02
    b = jax.random.normal(k2, (dout,), jnp.float32) * 0.01
    return w, b


def _init_encoder_layer(key, d, dff):
    ks = jax.random.split(key, 4)
    p = {}
    p["wqkv"], p["bqkv"] = _init_linear(ks[0], d, 3 * d)      # fused Q/K/V
    p["wo"], p["bo"] = _init_linear(ks[1], d, d)
    p["ff_w1"], p["ff_b1"] = _init_linear(ks[2], d, dff)
    p["ff_w2"], p["ff_b2"] = _init_linear(ks[3], dff, d)
    for i in (1, 2):
        p[f"ln{i}_g"] = jnp.ones((d,), jnp.float32)
        p[f"ln{i}_b"] = jnp.zeros((d,), jnp.float32)
    return p


def _init_decoder_layer(key, d, dff):
    ks = jax.random.split(key, 7)
    p = {}
    p["sa_wqkv"], p["sa_bqkv"] = _init_linear(ks[0], d, 3 * d)
    p["sa_wo"], p["sa_bo"] = _init_linear(ks[1], d, d)
    p["ca_wq"], p["ca_bq"] = _init_linear(ks[2], d, d)
    p["ca_wkv"], p["ca_bkv"] = _init_linear(ks[3], d, 2 * d)   # fused K/V
    p["ca_wo"], p["ca_bo"] = _init_linear(ks[4], d, d)
    p["ff_w1"], p["ff_b1"] = _init_linear(ks[5], d, dff)
    p["ff_w2"], p["ff_b2"] = _init_linear(ks[6], dff, d)
    for i in (1, 2, 3):
        p[f"ln{i}_g"] = jnp.ones((d,), jnp.float32)
        p[f"ln{i}_b"] = jnp.zeros((d,), jnp.float32)
    return p


def _stack(layers, key):
    return jnp.stack([p[key] for p in layers], axis=0)


def _prep_encoder_stack(layers, d, nhead):
    """Stack per-layer params, fold attention scale into Wq, cast mats to bf16."""
    scale = 1.0 / math.sqrt(d // nhead)
    wqkv = _stack(layers, "wqkv").at[:, :, :d].multiply(scale)
    bqkv = _stack(layers, "bqkv").at[:, :d].multiply(scale)
    stk = {
        "wqkv": wqkv.astype(jnp.bfloat16),
        "bqkv": bqkv[:, None, :],
        "wo": _stack(layers, "wo").astype(jnp.bfloat16),
        "bo": _stack(layers, "bo")[:, None, :],
        "ff_w1": _stack(layers, "ff_w1").astype(jnp.bfloat16),
        "ff_b1": _stack(layers, "ff_b1")[:, None, :],
        "ff_w2": _stack(layers, "ff_w2").astype(jnp.bfloat16),
        "ff_b2": _stack(layers, "ff_b2")[:, None, :],
    }
    for i in (1, 2):
        stk[f"ln{i}_g"] = _stack(layers, f"ln{i}_g")[:, None, :]
        stk[f"ln{i}_b"] = _stack(layers, f"ln{i}_b")[:, None, :]
    return stk


def _prep_decoder_stack(layers, d, nhead):
    scale = 1.0 / math.sqrt(d // nhead)
    sa_wqkv = _stack(layers, "sa_wqkv").at[:, :, :d].multiply(scale)
    sa_bqkv = _stack(layers, "sa_bqkv").at[:, :d].multiply(scale)
    ca_wq = _stack(layers, "ca_wq") * scale
    ca_bq = _stack(layers, "ca_bq") * scale
    stk = {
        "sa_wqkv": sa_wqkv.astype(jnp.bfloat16),
        "sa_bqkv": sa_bqkv[:, None, :],
        "sa_wo": _stack(layers, "sa_wo").astype(jnp.bfloat16),
        "sa_bo": _stack(layers, "sa_bo")[:, None, :],
        "ca_wq": ca_wq.astype(jnp.bfloat16),
        "ca_bq": ca_bq[:, None, :],
        "ca_wkv": _stack(layers, "ca_wkv").astype(jnp.bfloat16),
        "ca_bkv": _stack(layers, "ca_bkv")[:, None, :],
        "ca_wo": _stack(layers, "ca_wo").astype(jnp.bfloat16),
        "ca_bo": _stack(layers, "ca_bo")[:, None, :],
        "ff_w1": _stack(layers, "ff_w1").astype(jnp.bfloat16),
        "ff_b1": _stack(layers, "ff_b1")[:, None, :],
        "ff_w2": _stack(layers, "ff_w2").astype(jnp.bfloat16),
        "ff_b2": _stack(layers, "ff_b2")[:, None, :],
    }
    for i in (1, 2, 3):
        stk[f"ln{i}_g"] = _stack(layers, f"ln{i}_g")[:, None, :]
        stk[f"ln{i}_b"] = _stack(layers, f"ln{i}_b")[:, None, :]
    return stk


def init_upsrt_params(key, cfg):
    D = cfg["transformer_dim"]
    assert D % NHEAD == 0, "transformer_dim must be divisible by 12 heads"
    F = cfg["num_freqs"]
    dff = cfg["dim_feedforward"]
    scene_in = cfg["image_feature_dim"] + 2 * F * 6 + 2 * F + 2 * F
    query_in = 2 * F * 6
    keys = jax.random.split(key, 8)
    params = {}

    w, b = _init_linear(keys[0], scene_in, D)
    params["linear_scene"] = {"w": w.astype(jnp.bfloat16), "b": b.reshape(1, -1)}
    w, b = _init_linear(keys[1], query_in, D)
    params["linear_query"] = {"w": w.astype(jnp.bfloat16), "b": b.reshape(1, -1)}

    enc_keys = jax.random.split(keys[2], cfg["num_encoder_layers"])
    enc_layers = [_init_encoder_layer(k, D, dff) for k in enc_keys]
    params["encoder_stack"] = _prep_encoder_stack(enc_layers, D, NHEAD)

    dec_keys = jax.random.split(keys[3], cfg["num_decoder_layers"])
    dec_layers = [_init_decoder_layer(k, D, dff) for k in dec_keys]
    params["decoder_stack"] = _prep_decoder_stack(dec_layers, D, NHEAD)

    rgb = {}
    w1, b1 = _init_linear(keys[4], D, 256)
    w2, b2 = _init_linear(keys[5], 256, 64)
    w3, b3 = _init_linear(keys[6], 64, 3)
    # zero-pad last layer to 128 output lanes -> lane-dense stores in-kernel
    w3p = jnp.zeros((64, 128), jnp.float32).at[:, :3].set(w3)
    b3p = jnp.zeros((128,), jnp.float32).at[:3].set(b3)
    rgb["w1"], rgb["b1"] = w1.astype(jnp.bfloat16), b1.reshape(1, -1)
    rgb["w2"], rgb["b2"] = w2.astype(jnp.bfloat16), b2.reshape(1, -1)
    rgb["w3"], rgb["b3"] = w3p.astype(jnp.bfloat16), b3p.reshape(1, -1)
    params["rgb"] = rgb
    return params


# --------------------------------------------------------------------------
# UpSRT forward
# --------------------------------------------------------------------------
def upsrt_forward(params, dino_features, query_pixel_rays, cfg):
    b, n, t, _ = dino_features.shape
    D = cfg["transformer_dim"]
    F = cfg["num_freqs"]
    sf = cfg["start_freq"]

    # ------------------ encode ------------------
    patch_rays = get_patch_rays(b, n, cfg["num_patches_x"], cfg["num_patches_y"])
    patch_rays_pe = positional_encoding(patch_rays, F, sf)            # (b,n,t,12F)
    patch_ids = jnp.broadcast_to(jnp.arange(t, dtype=jnp.float32), (b, n, t))
    patch_id_enc = id_harmonic(patch_ids, F, sf)                      # (b,n,t,2F)
    cam_ids = jnp.broadcast_to(
        jnp.arange(n, dtype=jnp.float32)[None, :, None], (b, n, t))
    cam_id_enc = id_harmonic(cam_ids, F, sf)                          # (b,n,t,2F)

    scene_features = jnp.concatenate(
        [dino_features, patch_rays_pe, patch_id_enc, cam_id_enc],
        axis=-1).astype(jnp.bfloat16)
    x = dense(scene_features.reshape(b * n * t, -1),
              params["linear_scene"]["w"], params["linear_scene"]["b"],
              out_dtype=jnp.bfloat16)
    x = x.reshape(b, n * t, D)
    # Scene encoding: PyTorch convention is (n*t, b, D); the decoder consumes
    # the (b, n*t, D) layout directly so no transpose is materialized.
    memory = encoder_stack(x, params["encoder_stack"])                # bf16

    # ------------------ decode ------------------
    # cfg.ray.view_space == False -> query rays used as-is (no transform_rays)
    q_pe = positional_encoding(query_pixel_rays, F, sf).astype(jnp.bfloat16)
    Q = q_pe.shape[1]
    q = dense(q_pe.reshape(b * Q, -1),
              params["linear_query"]["w"], params["linear_query"]["b"],
              out_dtype=jnp.bfloat16)
    q = q.reshape(b, Q, D)
    q = decoder_stack(q, memory, params["decoder_stack"])             # bf16

    # fused rgb mlp: D -> 256 -> relu -> 64 -> relu -> 3 -> sigmoid
    rgb = rgb_mlp(q.reshape(b * Q, D), params["rgb"])
    return rgb.reshape(b, Q, 3)


# --------------------------------------------------------------------------
if __name__ == "__main__":
    cfg = dict(
        transformer_dim=48,        # divisible by 12 heads (small demo shape)
        num_freqs=4,
        start_freq=0,
        image_feature_dim=24,
        num_patches_x=4,
        num_patches_y=4,
        num_encoder_layers=2,
        num_decoder_layers=2,
        num_pixel_queries=8,
        dim_feedforward=96,
    )

    key = jax.random.PRNGKey(0)
    k_param, k_feat, k_rays = jax.random.split(key, 3)

    B, N_VIEWS = 2, 2
    T = cfg["num_patches_x"] * cfg["num_patches_y"]

    dino_features = jax.random.normal(
        k_feat, (B, N_VIEWS, T, cfg["image_feature_dim"]), jnp.float32)
    query_pixel_rays = jax.random.normal(
        k_rays, (B, cfg["num_pixel_queries"], 6), jnp.float32)

    params = init_upsrt_params(k_param, cfg)

    forward = jax.jit(lambda p, f, r: upsrt_forward(p, f, r, cfg))
    pred_rgb = forward(params, dino_features, query_pixel_rays)
    pred_rgb = jax.block_until_ready(pred_rgb)

    assert pred_rgb.shape == (B, cfg["num_pixel_queries"], 3)
    assert bool(jnp.all(jnp.isfinite(pred_rgb)))
    assert bool(jnp.all((pred_rgb >= 0.0) & (pred_rgb <= 1.0)))
    print("KERNEL_OK")
</pallas_src>

<mosaic_0001>
module attributes {stable_mosaic.version = 11 : i64} {
  func.func @_dense_kernel(%arg0: i32, %arg1: memref<64x88xbf16, #tpu.memory_space<vmem>>, %arg2: memref<88x48xbf16, #tpu.memory_space<vmem>>, %arg3: memref<1x48xf32, #tpu.memory_space<vmem>>, %arg4: memref<64x48xbf16, #tpu.memory_space<vmem>>) attributes {dimension_semantics = [#tpu.dimension_semantics<parallel>], iteration_bounds = array<i64: 1>, scalar_prefetch = 0 : i64, scratch_operands = 0 : i64, tpu.core_type = #tpu.core_type<tc>, window_params = [{transform_indices = @transform_0, window_bounds = array<i64: 64, 88>}, {pipeline_mode = #tpu.pipeline_mode<synchronous>, transform_indices = @transform_1, window_bounds = array<i64: 88, 48>}, {pipeline_mode = #tpu.pipeline_mode<synchronous>, transform_indices = @transform_2, window_bounds = array<i64: 1, 48>}, {transform_indices = @transform_3, window_bounds = array<i64: 64, 48>}]} {
    %c0 = arith.constant 0 : index
    %c0_0 = arith.constant 0 : index
    %0 = vector.load %arg1[%c0, %c0_0] : memref<64x88xbf16, #tpu.memory_space<vmem>>, vector<64x88xbf16>
    %c0_1 = arith.constant 0 : index
    %c0_2 = arith.constant 0 : index
    %1 = vector.load %arg2[%c0_1, %c0_2] : memref<88x48xbf16, #tpu.memory_space<vmem>>, vector<88x48xbf16>
    %cst = arith.constant dense<0.000000e+00> : vector<64x48xf32>
    %2 = tpu.matmul %0, %1, %cst {dimension_numbers = #tpu.dot_dimension_numbers<[1], [0], [0], [1], [0, 0, 1, 1], [], []>} : vector<64x88xbf16>, vector<88x48xbf16>, vector<64x48xf32> -> vector<64x48xf32>
    %c0_3 = arith.constant 0 : index
    %c0_4 = arith.constant 0 : index
    %3 = vector.load %arg3[%c0_3, %c0_4] : memref<1x48xf32, #tpu.memory_space<vmem>>, vector<1x48xf32>
    %4 = vector.broadcast %3 : vector<1x48xf32> to vector<64x48xf32>
    %5 = arith.addf %2, %4 : vector<64x48xf32>
    %6 = arith.truncf %5 : vector<64x48xf32> to vector<64x48xbf16>
    %c0_5 = arith.constant 0 : index
    %c0_6 = arith.constant 0 : index
    %7 = vector.load %arg4[%c0_5, %c0_6] : memref<64x48xbf16, #tpu.memory_space<vmem>>, vector<64x48xbf16>
    tpu.vector_store %arg4[%c0_5, %c0_6], %6 {strides = array<i32>} : memref<64x48xbf16, #tpu.memory_space<vmem>>, vector<64x48xbf16>,
    return
  }
  func.func @transform_0(%arg0: i32) -> (i32, i32) {
    %c0_i32 = arith.constant 0 : i32
    %c0_i32_0 = arith.constant 0 : i32
    return %arg0, %c0_i32 : i32, i32
  }
  func.func @transform_1(%arg0: i32) -> (i32, i32) {
    %c0_i32 = arith.constant 0 : i32
    %c0_i32_0 = arith.constant 0 : i32
    %c0_i32_1 = arith.constant 0 : i32
    return %c0_i32, %c0_i32_0 : i32, i32
  }
  func.func @transform_2(%arg0: i32) -> (i32, i32) {
    %c0_i32 = arith.constant 0 : i32
    %c0_i32_0 = arith.constant 0 : i32
    %c0_i32_1 = arith.constant 0 : i32
    return %c0_i32, %c0_i32_0 : i32, i32
  }
  func.func @transform_3(%arg0: i32) -> (i32, i32) {
    %c0_i32 = arith.constant 0 : i32
    %c0_i32_0 = arith.constant 0 : i32
    return %arg0, %c0_i32 : i32, i32
  }
}

module attributes {stable_mosaic.version = 11 : i64} {
  func.func @_encoder_stack_kernel(%arg0: i32, %arg1: i32, %arg2: memref<1x32x48xbf16, #tpu.memory_space<vmem>>, %arg3: memref<1x48x144xbf16, #tpu.memory_space<vmem>>, %arg4: memref<1x1x144xf32, #tpu.memory_space<vmem>>, %arg5: memref<1x48x48xbf16, #tpu.memory_space<vmem>>, %arg6: memref<1x1x48xf32, #tpu.memory_space<vmem>>, %arg7: memref<1x1x48xf32, #tpu.memory_space<vmem>>, %arg8: memref<1x1x48xf32, #tpu.memory_space<vmem>>, %arg9: memref<1x48x96xbf16, #tpu.memory_space<vmem>>, %arg10: memref<1x1x96xf32, #tpu.memory_space<vmem>>, %arg11: memref<1x96x48xbf16, #tpu.memory_space<vmem>>, %arg12: memref<1x1x48xf32, #tpu.memory_space<vmem>>, %arg13: memref<1x1x48xf32, #tpu.memory_space<vmem>>, %arg14: memref<1x1x48xf32, #tpu.memory_space<vmem>>, %arg15: memref<1x32x48xbf16, #tpu.memory_space<vmem>>, %arg16: memref<32x48xf32, #tpu.memory_space<vmem>>) attributes {dimension_semantics = [#tpu.dimension_semantics<parallel>, #tpu.dimension_semantics<arbitrary>], iteration_bounds = array<i64: 2, 2>, scalar_prefetch = 0 : i64, scratch_operands = 1 : i64, tpu.core_type = #tpu.core_type<tc>, window_params = [{transform_indices = @transform_0, window_bounds = array<i64: 1, 32, 48>}, {transform_indices = @transform_1, window_bounds = array<i64: 1, 48, 144>}, {transform_indices = @transform_2, window_bounds = array<i64: 1, 1, 144>}, {transform_indices = @transform_3, window_bounds = array<i64: 1, 48, 48>}, {transform_indices = @transform_4, window_bounds = array<i64: 1, 1, 48>}, {transform_indices = @transform_5, window_bounds = array<i64: 1, 1, 48>}, {transform_indices = @transform_6, window_bounds = array<i64: 1, 1, 48>}, {transform_indices = @transform_7, window_bounds = array<i64: 1, 48, 96>}, {transform_indices = @transform_8, window_bounds = array<i64: 1, 1, 96>}, {transform_indices = @transform_9, window_bounds = array<i64: 1, 96, 48>}, {transform_indices = @transform_10, window_bounds = array<i64: 1, 1, 48>}, {transform_indices = @transform_11, window_bounds = array<i64: 1, 1, 48>}, {transform_indices = @transform_12, window_bounds = array<i64: 1, 1, 48>}, {transform_indices = @transform_13, window_bounds = array<i64: 1, 32, 48>}]} {
    %c0_i32 = arith.constant 0 : i32
    %0 = arith.cmpi eq, %arg1, %c0_i32 : i32
    %1 = arith.extui %0 : i1 to i32
    %c0_i32_0 = arith.constant 0 : i32
    %2 = arith.cmpi ne, %1, %c0_i32_0 : i32
    scf.if %2 {
      %c0_118 = arith.constant 0 : index
      %c0_119 = arith.constant 0 : index
      %c0_120 = arith.constant 0 : index
      %385 = vector.load %arg2[%c0_118, %c0_119, %c0_120] : memref<1x32x48xbf16, #tpu.memory_space<vmem>>, vector<1x32x48xbf16>
      %386 = vector.shape_cast %385 : vector<1x32x48xbf16> to vector<32x48xbf16>
      %387 = arith.extf %386 : vector<32x48xbf16> to vector<32x48xf32>
      %c0_121 = arith.constant 0 : index
      %c0_122 = arith.constant 0 : index
      %388 = vector.load %arg16[%c0_121, %c0_122] : memref<32x48xf32, #tpu.memory_space<vmem>>, vector<32x48xf32>
      tpu.vector_store %arg16[%c0_121, %c0_122], %387 {strides = array<i32>} : memref<32x48xf32, #tpu.memory_space<vmem>>, vector<32x48xf32>,
    } else {
    }
    %c0 = arith.constant 0 : index
    %c0_1 = arith.constant 0 : index
    %3 = vector.load %arg16[%c0, %c0_1] : memref<32x48xf32, #tpu.memory_space<vmem>>, vector<32x48xf32>
    %c0_2 = arith.constant 0 : index
    %c0_3 = arith.constant 0 : index
    %c0_4 = arith.constant 0 : index
    %4 = vector.load %arg3[%c0_2, %c0_3, %c0_4] : memref<1x48x144xbf16, #tpu.memory_space<vmem>>, vector<1x48x144xbf16>
    %5 = vector.shape_cast %4 : vector<1x48x144xbf16> to vector<48x144xbf16>
    %6 = arith.truncf %3 : vector<32x48xf32> to vector<32x48xbf16>
    %cst = arith.constant dense<0.000000e+00> : vector<32x144xf32>
    %7 = tpu.matmul %6, %5, %cst {dimension_numbers = #tpu.dot_dimension_numbers<[1], [0], [0], [1], [0, 0, 1, 1], [], []>} : vector<32x48xbf16>, vector<48x144xbf16>, vector<32x144xf32> -> vector<32x144xf32>
    %c0_5 = arith.constant 0 : index
    %c0_6 = arith.constant 0 : index
    %c0_7 = arith.constant 0 : index
    %8 = vector.load %arg4[%c0_5, %c0_6, %c0_7] : memref<1x1x144xf32, #tpu.memory_space<vmem>>, vector<1x1x144xf32>
    %9 = vector.shape_cast %8 : vector<1x1x144xf32> to vector<1x144xf32>
    %10 = vector.broadcast %9 : vector<1x144xf32> to vector<32x144xf32>
    %11 = arith.addf %7, %10 : vector<32x144xf32>
    %12 = vector.extract_strided_slice %11 {offsets = [0, 0], sizes = [32, 48], strides = [1, 1]} : vector<32x144xf32> to vector<32x48xf32>
    %13 = vector.extract_strided_slice %11 {offsets = [0, 48], sizes = [32, 48], strides = [1, 1]} : vector<32x144xf32> to vector<32x48xf32>
    %14 = vector.extract_strided_slice %11 {offsets = [0, 96], sizes = [32, 48], strides = [1, 1]} : vector<32x144xf32> to vector<32x48xf32>
    %c0_8 = arith.constant 0 : index
    %c0_9 = arith.constant 0 : index
    %c0_10 = arith.constant 0 : index
    %15 = vector.load %arg5[%c0_8, %c0_9, %c0_10] : memref<1x48x48xbf16, #tpu.memory_space<vmem>>, vector<1x48x48xbf16>
    %16 = vector.shape_cast %15 : vector<1x48x48xbf16> to vector<48x48xbf16>
    %c0_11 = arith.constant 0 : index
    %c0_12 = arith.constant 0 : index
    %c0_13 = arith.constant 0 : index
    %17 = vector.load %arg6[%c0_11, %c0_12, %c0_13] : memref<1x1x48xf32, #tpu.memory_space<vmem>>, vector<1x1x48xf32>
    %18 = vector.shape_cast %17 : vector<1x1x48xf32> to vector<1x48xf32>
    %cst_14 = arith.constant 0.000000e+00 : f32
    %19 = vector.broadcast %cst_14 : f32 to vector<32x48xf32>
    %20 = vector.extract_strided_slice %12 {offsets = [0, 0], sizes = [32, 4], strides = [1, 1]} : vector<32x48xf32> to vector<32x4xf32>
    %21 = vector.extract_strided_slice %13 {offsets = [0, 0], sizes = [32, 4], strides = [1, 1]} : vector<32x48xf32> to vector<32x4xf32>
    %22 = arith.truncf %20 : vector<32x4xf32> to vector<32x4xbf16>
    %23 = arith.truncf %21 : vector<32x4xf32> to vector<32x4xbf16>
    %cst_15 = arith.constant dense<0.000000e+00> : vector<32x32xf32>
    %24 = tpu.matmul %22, %23, %cst_15 {dimension_numbers = #tpu.dot_dimension_numbers<[1], [1], [0], [0], [0, 0, 1, 0], [], []>} : vector<32x4xbf16>, vector<32x4xbf16>, vector<32x32xf32> -> vector<32x32xf32>
    %cst_16 = arith.constant dense<0xFF800000> : vector<32xf32>
    %25 = vector.multi_reduction <maximumf>, %24, %cst_16 [1] : vector<32x32xf32> to vector<32xf32>
    %26 = vector.shape_cast %25 : vector<32xf32> to vector<32x1xf32>
    %27 = vector.broadcast %26 : vector<32x1xf32> to vector<32x32xf32>
    %28 = arith.subf %24, %27 : vector<32x32xf32>
    %29 = math.exp %28 : vector<32x32xf32>
    %cst_17 = arith.constant dense<0.000000e+00> : vector<32xf32>
    %30 = vector.multi_reduction <add>, %29, %cst_17 [1] : vector<32x32xf32> to vector<32xf32>
    %31 = vector.shape_cast %30 : vector<32xf32> to vector<32x1xf32>
    %32 = tpu.reciprocal %31 {approx = true} : vector<32x1xf32> -> vector<32x1xf32>
    %33 = vector.broadcast %32 : vector<32x1xf32> to vector<32x32xf32>
    %34 = arith.mulf %29, %33 : vector<32x32xf32>
    %35 = vector.extract_strided_slice %14 {offsets = [0, 0], sizes = [32, 4], strides = [1, 1]} : vector<32x48xf32> to vector<32x4xf32>
    %36 = arith.truncf %34 : vector<32x32xf32> to vector<32x32xbf16>
    %37 = arith.truncf %35 : vector<32x4xf32> to vector<32x4xbf16>
    %cst_18 = arith.constant dense<0.000000e+00> : vector<32x4xf32>
    %38 = tpu.matmul %36, %37, %cst_18 {dimension_numbers = #tpu.dot_dimension_numbers<[1], [0], [0], [1], [0, 0, 1, 1], [], []>} : vector<32x32xbf16>, vector<32x4xbf16>, vector<32x4xf32> -> vector<32x4xf32>
    %39 = vector.extract_strided_slice %16 {offsets = [0, 0], sizes = [4, 48], strides = [1, 1]} : vector<48x48xbf16> to vector<4x48xbf16>
    %40 = arith.truncf %38 : vector<32x4xf32> to vector<32x4xbf16>
    %cst_19 = arith.constant dense<0.000000e+00> : vector<32x48xf32>
    %41 = tpu.matmul %40, %39, %cst_19 {dimension_numbers = #tpu.dot_dimension_numbers<[1], [0], [0], [1], [0, 0, 1, 1], [], []>} : vector<32x4xbf16>, vector<4x48xbf16>, vector<32x48xf32> -> vector<32x48xf32>
    %42 = arith.addf %19, %41 : vector<32x48xf32>
    %43 = vector.extract_strided_slice %12 {offsets = [0, 4], sizes = [32, 4], strides = [1, 1]} : vector<32x48xf32> to vector<32x4xf32>
    %44 = vector.extract_strided_slice %13 {offsets = [0, 4], sizes = [32, 4], strides = [1, 1]} : vector<32x48xf32> to vector<32x4xf32>
    %45 = arith.truncf %43 : vector<32x4xf32> to vector<32x4xbf16>
    %46 = arith.truncf %44 : vector<32x4xf32> to vector<32x4xbf16>
    %cst_20 = arith.constant dense<0.000000e+00> : vector<32x32xf32>
    %47 = tpu.matmul %45, %46, %cst_20 {dimension_numbers = #tpu.dot_dimension_numbers<[1], [1], [0], [0], [0, 0, 1, 0], [], []>} : vector<32x4xbf16>, vector<32x4xbf16>, vector<32x32xf32> -> vector<32x32xf32>
    %cst_21 = arith.constant dense<0xFF800000> : vector<32xf32>
    %48 = vector.multi_reduction <maximumf>, %47, %cst_21 [1] : vector<32x32xf32> to vector<32xf32>
    %49 = vector.shape_cast %48 : vector<32xf32> to vector<32x1xf32>
    %50 = vector.broadcast %49 : vector<32x1xf32> to vector<32x32xf32>
    %51 = arith.subf %47, %50 : vector<32x32xf32>
    %52 = math.exp %51 : vector<32x32xf32>
    %cst_22 = arith.constant dense<0.000000e+00> : vector<32xf32>
    %53 = vector.multi_reduction <add>, %52, %cst_22 [1] : vector<32x32xf32> to vector<32xf32>
    %54 = vector.shape_cast %53 : vector<32xf32> to vector<32x1xf32>
    %55 = tpu.reciprocal %54 {approx = true} : vector<32x1xf32> -> vector<32x1xf32>
    %56 = vector.broadcast %55 : vector<32x1xf32> to vector<32x32xf32>
    %57 = arith.mulf %52, %56 : vector<32x32xf32>
    %58 = vector.extract_strided_slice %14 {offsets = [0, 4], sizes = [32, 4], strides = [1, 1]} : vector<32x48xf32> to vector<32x4xf32>
    %59 = arith.truncf %57 : vector<32x32xf32> to vector<32x32xbf16>
    %60 = arith.truncf %58 : vector<32x4xf32> to vector<32x4xbf16>
    %cst_23 = arith.constant dense<0.000000e+00> : vector<32x4xf32>
    %61 = tpu.matmul %59, %60, %cst_23 {dimension_numbers = #tpu.dot_dimension_numbers<[1], [0], [0], [1], [0, 0, 1, 1], [], []>} : vector<32x32xbf16>, vector<32x4xbf16>, vector<32x4xf32> -> vector<32x4xf32>
    %62 = vector.extract_strided_slice %16 {offsets = [4, 0], sizes = [4, 48], strides = [1, 1]} : vector<48x48xbf16> to vector<4x48xbf16>
    %63 = arith.truncf %61 : vector<32x4xf32> to vector<32x4xbf16>
    %cst_24 = arith.constant dense<0.000000e+00> : vector<32x48xf32>
    %64 = tpu.matmul %63, %62, %cst_24 {dimension_numbers = #tpu.dot_dimension_numbers<[1], [0], [0], [1], [0, 0, 1, 1], [], []>} : vector<32x4xbf16>, vector<4x48xbf16>, vector<32x48xf32> -> vector<32x48xf32>
    %65 = arith.addf %42, %64 : vector<32x48xf32>
    %66 = vector.extract_strided_slice %12 {offsets = [0, 8], sizes = [32, 4], strides = [1, 1]} : vector<32x48xf32> to vector<32x4xf32>
    %67 = vector.extract_strided_slice %13 {offsets = [0, 8], sizes = [32, 4], strides = [1, 1]} : vector<32x48xf32> to vector<32x4xf32>
    %68 = arith.truncf %66 : vector<32x4xf32> to vector<32x4xbf16>
    %69 = arith.truncf %67 : vector<32x4xf32> to vector<32x4xbf16>
    %cst_25 = arith.constant dense<0.000000e+00> : vector<32x32xf32>
    %70 = tpu.matmul %68, %69, %cst_25 {dimension_numbers = #tpu.dot_dimension_numbers<[1], [1], [0], [0], [0, 0, 1, 0], [], []>} : vector<32x4xbf16>, vector<32x4xbf16>, vector<32x32xf32> -> vector<32x32xf32>
    %cst_26 = arith.constant dense<0xFF800000> : vector<32xf32>
    %71 = vector.multi_reduction <maximumf>, %70, %cst_26 [1] : vector<32x32xf32> to vector<32xf32>
    %72 = vector.shape_cast %71 : vector<32xf32> to vector<32x1xf32>
    %73 = vector.broadcast %72 : vector<32x1xf32> to vector<32x32xf32>
    %74 = arith.subf %70, %73 : vector<32x32xf32>
    %75 = math.exp %74 : vector<32x32xf32>
    %cst_27 = arith.constant dense<0.000000e+00> : vector<32xf32>
    %76 = vector.multi_reduction <add>, %75, %cst_27 [1] : vector<32x32xf32> to vector<32xf32>
    %77 = vector.shape_cast %76 : vector<32xf32> to vector<32x1xf32>
    %78 = tpu.reciprocal %77 {approx = true} : vector<32x1xf32> -> vector<32x1xf32>
    %79 = vector.broadcast %78 : vector<32x1xf32> to vector<32x32xf32>
    %80 = arith.mulf %75, %79 : vector<32x32xf32>
    %81 = vector.extract_strided_slice %14 {offsets = [0, 8], sizes = [32, 4], strides = [1, 1]} : vector<32x48xf32> to vector<32x4xf32>
    %82 = arith.truncf %80 : vector<32x32xf32> to vector<32x32xbf16>
    %83 = arith.truncf %81 : vector<32x4xf32> to vector<32x4xbf16>
    %cst_28 = arith.constant dense<0.000000e+00> : vector<32x4xf32>
    %84 = tpu.matmul %82, %83, %cst_28 {dimension_numbers = #tpu.dot_dimension_numbers<[1], [0], [0], [1], [0, 0, 1, 1], [], []>} : vector<32x32xbf16>, vector<32x4xbf16>, vector<32x4xf32> -> vector<32x4xf32>
    %85 = vector.extract_strided_slice %16 {offsets = [8, 0], sizes = [4, 48], strides = [1, 1]} : vector<48x48xbf16> to vector<4x48xbf16>
    %86 = arith.truncf %84 : vector<32x4xf32> to vector<32x4xbf16>
    %cst_29 = arith.constant dense<0.000000e+00> : vector<32x48xf32>
    %87 = tpu.matmul %86, %85, %cst_29 {dimension_numbers = #tpu.dot_dimension_numbers<[1], [0], [0], [1], [0, 0, 1, 1], [], []>} : vector<32x4xbf16>, vector<4x48xbf16>, vector<32x48xf32> -> vector<32x48xf32>
    %88 = arith.addf %65, %87 : vector<32x48xf32>
    %89 = vector.extract_strided_slice %12 {offsets = [0, 12], sizes = [32, 4], strides = [1, 1]} : vector<32x48xf32> to vector<32x4xf32>
    %90 = vector.extract_strided_slice %13 {offsets = [0, 12], sizes = [32, 4], strides = [1, 1]} : vector<32x48xf32> to vector<32x4xf32>
    %91 = arith.truncf %89 : vector<32x4xf32> to vector<32x4xbf16>
    %92 = arith.truncf %90 : vector<32x4xf32> to vector<32x4xbf16>
    %cst_30 = arith.constant dense<0.000000e+00> : vector<32x32xf32>
    %93 = tpu.matmul %91, %92, %cst_30 {dimension_numbers = #tpu.dot_dimension_numbers<[1], [1], [0], [0], [0, 0, 1, 0], [], []>} : vector<32x4xbf16>, vector<32x4xbf16>, vector<32x32xf32> -> vector<32x32xf32>
    %cst_31 = arith.constant dense<0xFF800000> : vector<32xf32>
    %94 = vector.multi_reduction <maximumf>, %93, %cst_31 [1] : vector<32x32xf32> to vector<32xf32>
    %95 = vector.shape_cast %94 : vector<32xf32> to vector<32x1xf32>
    %96 = vector.broadcast %95 : vector<32x1xf32> to vector<32x32xf32>
    %97 = arith.subf %93, %96 : vector<32x32xf32>
    %98 = math.exp %97 : vector<32x32xf32>
    %cst_32 = arith.constant dense<0.000000e+00> : vector<32xf32>
    %99 = vector.multi_reduction <add>, %98, %cst_32 [1] : vector<32x32xf32> to vector<32xf32>
    %100 = vector.shape_cast %99 : vector<32xf32> to vector<32x1xf32>
    %101 = tpu.reciprocal %100 {approx = true} : vector<32x1xf32> -> vector<32x1xf32>
    %102 = vector.broadcast %101 : vector<32x1xf32> to vector<32x32xf32>
    %103 = arith.mulf %98, %102 : vector<32x32xf32>
    %104 = vector.extract_strided_slice %14 {offsets = [0, 12], sizes = [32, 4], strides = [1, 1]} : vector<32x48xf32> to vector<32x4xf32>
    %105 = arith.truncf %103 : vector<32x32xf32> to vector<32x32xbf16>
    %106 = arith.truncf %104 : vector<32x4xf32> to vector<32x4xbf16>
    %cst_33 = arith.constant dense<0.000000e+00> : vector<32x4xf32>
    %107 = tpu.matmul %105, %106, %cst_33 {dimension_numbers = #tpu.dot_dimension_numbers<[1], [0], [0], [1], [0, 0, 1, 1], [], []>} : vector<32x32xbf16>, vector<32x4xbf16>, vector<32x4xf32> -> vector<32x4xf32>
    %108 = vector.extract_strided_slice %16 {offsets = [12, 0], sizes = [4, 48], strides = [1, 1]} : vector<48x48xbf16> to vector<4x48xbf16>
    %109 = arith.truncf %107 : vector<32x4xf32> to vector<32x4xbf16>
    %cst_34 = arith.constant dense<0.000000e+00> : vector<32x48xf32>
    %110 = tpu.matmul %109, %108, %cst_34 {dimension_numbers = #tpu.dot_dimension_numbers<[1], [0], [0], [1], [0, 0, 1, 1], [], []>} : vector<32x4xbf16>, vector<4x48xbf16>, vector<32x48xf32> -> vector<32x48xf32>
    %111 = arith.addf %88, %110 : vector<32x48xf32>
    %112 = vector.extract_strided_slice %12 {offsets = [0, 16], sizes = [32, 4], strides = [1, 1]} : vector<32x48xf32> to vector<32x4xf32>
    %113 = vector.extract_strided_slice %13 {offsets = [0, 16], sizes = [32, 4], strides = [1, 1]} : vector<32x48xf32> to vector<32x4xf32>
    %114 = arith.truncf %112 : vector<32x4xf32> to vector<32x4xbf16>
    %115 = arith.truncf %113 : vector<32x4xf32> to vector<32x4xbf16>
    %cst_35 = arith.constant dense<0.000000e+00> : vector<32x32xf32>
    %116 = tpu.matmul %114, %115, %cst_35 {dimension_numbers = #tpu.dot_dimension_numbers<[1], [1], [0], [0], [0, 0, 1, 0], [], []>} : vector<32x4xbf16>, vector<32x4xbf16>, vector<32x32xf32> -> vector<32x32xf32>
    %cst_36 = arith.constant dense<0xFF800000> : vector<32xf32>
    %117 = vector.multi_reduction <maximumf>, %116, %cst_36 [1] : vector<32x32xf32> to vector<32xf32>
    %118 = vector.shape_cast %117 : vector<32xf32> to vector<32x1xf32>
    %119 = vector.broadcast %118 : vector<32x1xf32> to vector<32x32xf32>
    %120 = arith.subf %116, %119 : vector<32x32xf32>
    %121 = math.exp %120 : vector<32x32xf32>
    %cst_37 = arith.constant dense<0.000000e+00> : vector<32xf32>
    %122 = vector.multi_reduction <add>, %121, %cst_37 [1] : vector<32x32xf32> to vector<32xf32>
    %123 = vector.shape_cast %122 : vector<32xf32> to vector<32x1xf32>
    %124 = tpu.reciprocal %123 {approx = true} : vector<32x1xf32> -> vector<32x1xf32>
    %125 = vector.broadcast %124 : vector<32x1xf32> to vector<32x32xf32>
    %126 = arith.mulf %121, %125 : vector<32x32xf32>
    %127 = vector.extract_strided_slice %14 {offsets = [0, 16], sizes = [32, 4], strides = [1, 1]} : vector<32x48xf32> to vector<32x4xf32>
    %128 = arith.truncf %126 : vector<32x32xf32> to vector<32x32xbf16>
    %129 = arith.truncf %127 : vector<32x4xf32> to vector<32x4xbf16>
    %cst_38 = arith.constant dense<0.000000e+00> : vector<32x4xf32>
    %130 = tpu.matmul %128, %129, %cst_38 {dimension_numbers = #tpu.dot_dimension_numbers<[1], [0], [0], [1], [0, 0, 1, 1], [], []>} : vector<32x32xbf16>, vector<32x4xbf16>, vector<32x4xf32> -> vector<32x4xf32>
    %131 = vector.extract_strided_slice %16 {offsets = [16, 0], sizes = [4, 48], strides = [1, 1]} : vector<48x48xbf16> to vector<4x48xbf16>
    %132 = arith.truncf %130 : vector<32x4xf32> to vector<32x4xbf16>
    %cst_39 = arith.constant dense<0.000000e+00> : vector<32x48xf32>
    %133 = tpu.matmul %132, %131, %cst_39 {dimension_numbers = #tpu.dot_dimension_numbers<[1], [0], [0], [1], [0, 0, 1, 1], [], []>} : vector<32x4xbf16>, vector<4x48xbf16>, vector<32x48xf32> -> vector<32x48xf32>
    %134 = arith.addf %111, %133 : vector<32x48xf32>
    %135 = vector.extract_strided_slice %12 {offsets = [0, 20], sizes = [32, 4], strides = [1, 1]} : vector<32x48xf32> to vector<32x4xf32>
    %136 = vector.extract_strided_slice %13 {offsets = [0, 20], sizes = [32, 4], strides = [1, 1]} : vector<32x48xf32> to vector<32x4xf32>
    %137 = arith.truncf %135 : vector<32x4xf32> to vector<32x4xbf16>
    %138 = arith.truncf %136 : vector<32x4xf32> to vector<32x4xbf16>
    %cst_40 = arith.constant dense<0.000000e+00> : vector<32x32xf32>
    %139 = tpu.matmul %137, %138, %cst_40 {dimension_numbers = #tpu.dot_dimension_numbers<[1], [1], [0], [0], [0, 0, 1, 0], [], []>} : vector<32x4xbf16>, vector<32x4xbf16>, vector<32x32xf32> -> vector<32x32xf32>
    %cst_41 = arith.constant dense<0xFF800000> : vector<32xf32>
    %140 = vector.multi_reduction <maximumf>, %139, %cst_41 [1] : vector<32x32xf32> to vector<32xf32>
    %141 = vector.shape_cast %140 : vector<32xf32> to vector<32x1xf32>
    %142 = vector.broadcast %141 : vector<32x1xf32> to vector<32x32xf32>
    %143 = arith.subf %139, %142 : vector<32x32xf32>
    %144 = math.exp %143 : vector<32x32xf32>
    %cst_42 = arith.constant dense<0.000000e+00> : vector<32xf32>
    %145 = vector.multi_reduction <add>, %144, %cst_42 [1] : vector<32x32xf32> to vector<32xf32>
    %146 = vector.shape_cast %145 : vector<32xf32> to vector<32x1xf32>
    %147 = tpu.reciprocal %146 {approx = true} : vector<32x1xf32> -> vector<32x1xf32>
    %148 = vector.broadcast %147 : vector<32x1xf32> to vector<32x32xf32>
    %149 = arith.mulf %144, %148 : vector<32x32xf32>
    %150 = vector.extract_strided_slice %14 {offsets = [0, 20], sizes = [32, 4], strides = [1, 1]} : vector<32x48xf32> to vector<32x4xf32>
    %151 = arith.truncf %149 : vector<32x32xf32> to vector<32x32xbf16>
    %152 = arith.truncf %150 : vector<32x4xf32> to vector<32x4xbf16>
    %cst_43 = arith.constant dense<0.000000e+00> : vector<32x4xf32>
    %153 = tpu.matmul %151, %152, %cst_43 {dimension_numbers = #tpu.dot_dimension_numbers<[1], [0], [0], [1], [0, 0, 1, 1], [], []>} : vector<32x32xbf16>, vector<32x4xbf16>, vector<32x4xf32> -> vector<32x4xf32>
    %154 = vector.extract_strided_slice %16 {offsets = [20, 0], sizes = [4, 48], strides = [1, 1]} : vector<48x48xbf16> to vector<4x48xbf16>
    %155 = arith.truncf %153 : vector<32x4xf32> to vector<32x4xbf16>
    %cst_44 = arith.constant dense<0.000000e+00> : vector<32x48xf32>
    %156 = tpu.matmul %155, %154, %cst_44 {dimension_numbers = #tpu.dot_dimension_numbers<[1], [0], [0], [1], [0, 0, 1, 1], [], []>} : vector<32x4xbf16>, vector<4x48xbf16>, vector<32x48xf32> -> vector<32x48xf32>
    %157 = arith.addf %134, %156 : vector<32x48xf32>
    %158 = vector.extract_strided_slice %12 {offsets = [0, 24], sizes = [32, 4], strides = [1, 1]} : vector<32x48xf32> to vector<32x4xf32>
    %159 = vector.extract_strided_slice %13 {offsets = [0, 24], sizes = [32, 4], strides = [1, 1]} : vector<32x48xf32> to vector<32x4xf32>
    %160 = arith.truncf %158 : vector<32x4xf32> to vector<32x4xbf16>
    %161 = arith.truncf %159 : vector<32x4xf32> to vector<32x4xbf16>
    %cst_45 = arith.constant dense<0.000000e+00> : vector<32x32xf32>
    %162 = tpu.matmul %160, %161, %cst_45 {dimension_numbers = #tpu.dot_dimension_numbers<[1], [1], [0], [0], [0, 0, 1, 0], [], []>} : vector<32x4xbf16>, vector<32x4xbf16>, vector<32x32xf32> -> vector<32x32xf32>
    %cst_46 = arith.constant dense<0xFF800000> : vector<32xf32>
    %163 = vector.multi_reduction <maximumf>, %162, %cst_46 [1] : vector<32x32xf32> to vector<32xf32>
    %164 = vector.shape_cast %163 : vector<32xf32> to vector<32x1xf32>
    %165 = vector.broadcast %164 : vector<32x1xf32> to vector<32x32xf32>
    %166 = arith.subf %162, %165 : vector<32x32xf32>
    %167 = math.exp %166 : vector<32x32xf32>
    %cst_47 = arith.constant dense<0.000000e+00> : vector<32xf32>
    %168 = vector.multi_reduction <add>, %167, %cst_47 [1] : vector<32x32xf32> to vector<32xf32>
    %169 = vector.shape_cast %168 : vector<32xf32> to vector<32x1xf32>
    %170 = tpu.reciprocal %169 {approx = true} : vector<32x1xf32> -> vector<32x1xf32>
    %171 = vector.broadcast %170 : vector<32x1xf32> to vector<32x32xf32>
    %172 = arith.mulf %167, %171 : vector<32x32xf32>
    %173 = vector.extract_strided_slice %14 {offsets = [0, 24], sizes = [32, 4], strides = [1, 1]} : vector<32x48xf32> to vector<32x4xf32>
    %174 = arith.truncf %172 : vector<32x32xf32> to vector<32x32xbf16>
    %175 = arith.truncf %173 : vector<32x4xf32> to vector<32x4xbf16>
    %cst_48 = arith.constant dense<0.000000e+00> : vector<32x4xf32>
    %176 = tpu.matmul %174, %175, %cst_48 {dimension_numbers = #tpu.dot_dimension_numbers<[1], [0], [0], [1], [0, 0, 1, 1], [], []>} : vector<32x32xbf16>, vector<32x4xbf16>, vector<32x4xf32> -> vector<32x4xf32>
    %177 = vector.extract_strided_slice %16 {offsets = [24, 0], sizes = [4, 48], strides = [1, 1]} : vector<48x48xbf16> to vector<4x48xbf16>
    %178 = arith.truncf %176 : vector<32x4xf32> to vector<32x4xbf16>
    %cst_49 = arith.constant dense<0.000000e+00> : vector<32x48xf32>
    %179 = tpu.matmul %178, %177, %cst_49 {dimension_numbers = #tpu.dot_dimension_numbers<[1], [0], [0], [1], [0, 0, 1, 1], [], []>} : vector<32x4xbf16>, vector<4x48xbf16>, vector<32x48xf32> -> vector<32x48xf32>
    %180 = arith.addf %157, %179 : vector<32x48xf32>
    %181 = vector.extract_strided_slice %12 {offsets = [0, 28], sizes = [32, 4], strides = [1, 1]} : vector<32x48xf32> to vector<32x4xf32>
    %182 = vector.extract_strided_slice %13 {offsets = [0, 28], sizes = [32, 4], strides = [1, 1]} : vector<32x48xf32> to vector<32x4xf32>
    %183 = arith.truncf %181 : vector<32x4xf32> to vector<32x4xbf16>
    %184 = arith.truncf %182 : vector<32x4xf32> to vector<32x4xbf16>
    %cst_50 = arith.constant dense<0.000000e+00> : vector<32x32xf32>
    %185 = tpu.matmul %183, %184, %cst_50 {dimension_numbers = #tpu.dot_dimension_numbers<[1], [1], [0], [0], [0, 0, 1, 0], [], []>} : vector<32x4xbf16>, vector<32x4xbf16>, vector<32x32xf32> -> vector<32x32xf32>
    %cst_51 = arith.constant dense<0xFF800000> : vector<32xf32>
    %186 = vector.multi_reduction <maximumf>, %185, %cst_51 [1] : vector<32x32xf32> to vector<32xf32>
    %187 = vector.shape_cast %186 : vector<32xf32> to vector<32x1xf32>
    %188 = vector.broadcast %187 : vector<32x1xf32> to vector<32x32xf32>
    %189 = arith.subf %185, %188 : vector<32x32xf32>
    %190 = math.exp %189 : vector<32x32xf32>
    %cst_52 = arith.constant dense<0.000000e+00> : vector<32xf32>
    %191 = vector.multi_reduction <add>, %190, %cst_52 [1] : vector<32x32xf32> to vector<32xf32>
    %192 = vector.shape_cast %191 : vector<32xf32> to vector<32x1xf32>
    %193 = tpu.reciprocal %192 {approx = true} : vector<32x1xf32> -> vector<32x1xf32>
    %194 = vector.broadcast %193 : vector<32x1xf32> to vector<32x32xf32>
    %195 = arith.mulf %190, %194 : vector<32x32xf32>
    %196 = vector.extract_strided_slice %14 {offsets = [0, 28], sizes = [32, 4], strides = [1, 1]} : vector<32x48xf32> to vector<32x4xf32>
    %197 = arith.truncf %195 : vector<32x32xf32> to vector<32x32xbf16>
    %198 = arith.truncf %196 : vector<32x4xf32> to vector<32x4xbf16>
    %cst_53 = arith.constant dense<0.000000e+00> : vector<32x4xf32>
    %199 = tpu.matmul %197, %198, %cst_53 {dimension_numbers = #tpu.dot_dimension_numbers<[1], [0], [0], [1], [0, 0, 1, 1], [], []>} : vector<32x32xbf16>, vector<32x4xbf16>, vector<32x4xf32> -> vector<32x4xf32>
    %200 = vector.extract_strided_slice %16 {offsets = [28, 0], sizes = [4, 48], strides = [1, 1]} : vector<48x48xbf16> to vector<4x48xbf16>
    %201 = arith.truncf %199 : vector<32x4xf32> to vector<32x4xbf16>
    %cst_54 = arith.constant dense<0.000000e+00> : vector<32x48xf32>
    %202 = tpu.matmul %201, %200, %cst_54 {dimension_numbers = #tpu.dot_dimension_numbers<[1], [0], [0], [1], [0, 0, 1, 1], [], []>} : vector<32x4xbf16>, vector<4x48xbf16>, vector<32x48xf32> -> vector<32x48xf32>
    %203 = arith.addf %180, %202 : vector<32x48xf32>
    %204 = vector.extract_strided_slice %12 {offsets = [0, 32], sizes = [32, 4], strides = [1, 1]} : vector<32x48xf32> to vector<32x4xf32>
    %205 = vector.extract_strided_slice %13 {offsets = [0, 32], sizes = [32, 4], strides = [1, 1]} : vector<32x48xf32> to vector<32x4xf32>
    %206 = arith.truncf %204 : vector<32x4xf32> to vector<32x4xbf16>
    %207 = arith.truncf %205 : vector<32x4xf32> to vector<32x4xbf16>
    %cst_55 = arith.constant dense<0.000000e+00> : vector<32x32xf32>
    %208 = tpu.matmul %206, %207, %cst_55 {dimension_numbers = #tpu.dot_dimension_numbers<[1], [1], [0], [0], [0, 0, 1, 0], [], []>} : vector<32x4xbf16>, vector<32x4xbf16>, vector<32x32xf32> -> vector<32x32xf32>
    %cst_56 = arith.constant dense<0xFF800000> : vector<32xf32>
    %209 = vector.multi_reduction <maximumf>, %208, %cst_56 [1] : vector<32x32xf32> to vector<32xf32>
    %210 = vector.shape_cast %209 : vector<32xf32> to vector<32x1xf32>
    %211 = vector.broadcast %210 : vector<32x1xf32> to vector<32x32xf32>
    %212 = arith.subf %208, %211 : vector<32x32xf32>
    %213 = math.exp %212 : vector<32x32xf32>
    %cst_57 = arith.constant dense<0.000000e+00> : vector<32xf32>
    %214 = vector.multi_reduction <add>, %213, %cst_57 [1] : vector<32x32xf32> to vector<32xf32>
    %215 = vector.shape_cast %214 : vector<32xf32> to vector<32x1xf32>
    %216 = tpu.reciprocal %215 {approx = true} : vector<32x1xf32> -> vector<32x1xf32>
    %217 = vector.broadcast %216 : vector<32x1xf32> to vector<32x32xf32>
    %218 = arith.mulf %213, %217 : vector<32x32xf32>
    %219 = vector.extract_strided_slice %14 {offsets = [0, 32], sizes = [32, 4], strides = [1, 1]} : vector<32x48xf32> to vector<32x4xf32>
    %220 = arith.truncf %218 : vector<32x32xf32> to vector<32x32xbf16>
    %221 = arith.truncf %219 : vector<32x4xf32> to vector<32x4xbf16>
    %cst_58 = arith.constant dense<0.000000e+00> : vector<32x4xf32>
    %222 = tpu.matmul %220, %221, %cst_58 {dimension_numbers = #tpu.dot_dimension_numbers<[1], [0], [0], [1], [0, 0, 1, 1], [], []>} : vector<32x32xbf16>, vector<32x4xbf16>, vector<32x4xf32> -> vector<32x4xf32>
    %223 = vector.extract_strided_slice %16 {offsets = [32, 0], sizes = [4, 48], strides = [1, 1]} : vector<48x48xbf16> to vector<4x48xbf16>
    %224 = arith.truncf %222 : vector<32x4xf32> to vector<32x4xbf16>
    %cst_59 = arith.constant dense<0.000000e+00> : vector<32x48xf32>
    %225 = tpu.matmul %224, %223, %cst_59 {dimension_numbers = #tpu.dot_dimension_numbers<[1], [0], [0], [1], [0, 0, 1, 1], [], []>} : vector<32x4xbf16>, vector<4x48xbf16>, vector<32x48xf32> -> vector<32x48xf32>
    %226 = arith.addf %203, %225 : vector<32x48xf32>
    %227 = vector.extract_strided_slice %12 {offsets = [0, 36], sizes = [32, 4], strides = [1, 1]} : vector<32x48xf32> to vector<32x4xf32>
    %228 = vector.extract_strided_slice %13 {offsets = [0, 36], sizes = [32, 4], strides = [1, 1]} : vector<32x48xf32> to vector<32x4xf32>
    %229 = arith.truncf %227 : vector<32x4xf32> to vector<32x4xbf16>
    %230 = arith.truncf %228 : vector<32x4xf32> to vector<32x4xbf16>
    %cst_60 = arith.constant dense<0.000000e+00> : vector<32x32xf32>
    %231 = tpu.matmul %229, %230, %cst_60 {dimension_numbers = #tpu.dot_dimension_numbers<[1], [1], [0], [0], [0, 0, 1, 0], [], []>} : vector<32x4xbf16>, vector<32x4xbf16>, vector<32x32xf32> -> vector<32x32xf32>
    %cst_61 = arith.constant dense<0xFF800000> : vector<32xf32>
    %232 = vector.multi_reduction <maximumf>, %231, %cst_61 [1] : vector<32x32xf32> to vector<32xf32>
    %233 = vector.shape_cast %232 : vector<32xf32> to vector<32x1xf32>
    %234 = vector.broadcast %233 : vector<32x1xf32> to vector<32x32xf32>
    %235 = arith.subf %231, %234 : vector<32x32xf32>
    %236 = math.exp %235 : vector<32x32xf32>
    %cst_62 = arith.constant dense<0.000000e+00> : vector<32xf32>
    %237 = vector.multi_reduction <add>, %236, %cst_62 [1] : vector<32x32xf32> to vector<32xf32>
    %238 = vector.shape_cast %237 : vector<32xf32> to vector<32x1xf32>
    %239 = tpu.reciprocal %238 {approx = true} : vector<32x1xf32> -> vector<32x1xf32>
    %240 = vector.broadcast %239 : vector<32x1xf32> to vector<32x32xf32>
    %241 = arith.mulf %236, %240 : vector<32x32xf32>
    %242 = vector.extract_strided_slice %14 {offsets = [0, 36], sizes = [32, 4], strides = [1, 1]} : vector<32x48xf32> to vector<32x4xf32>
    %243 = arith.truncf %241 : vector<32x32xf32> to vector<32x32xbf16>
    %244 = arith.truncf %242 : vector<32x4xf32> to vector<32x4xbf16>
    %cst_63 = arith.constant dense<0.000000e+00> : vector<32x4xf32>
    %245 = tpu.matmul %243, %244, %cst_63 {dimension_numbers = #tpu.dot_dimension_numbers<[1], [0], [0], [1], [0, 0, 1, 1], [], []>} : vector<32x32xbf16>, vector<32x4xbf16>, vector<32x4xf32> -> vector<32x4xf32>
    %246 = vector.extract_strided_slice %16 {offsets = [36, 0], sizes = [4, 48], strides = [1, 1]} : vector<48x48xbf16> to vector<4x48xbf16>
    %247 = arith.truncf %245 : vector<32x4xf32> to vector<32x4xbf16>
    %cst_64 = arith.constant dense<0.000000e+00> : vector<32x48xf32>
    %248 = tpu.matmul %247, %246, %cst_64 {dimension_numbers = #tpu.dot_dimension_numbers<[1], [0], [0], [1], [0, 0, 1, 1], [], []>} : vector<32x4xbf16>, vector<4x48xbf16>, vector<32x48xf32> -> vector<32x48xf32>
    %249 = arith.addf %226, %248 : vector<32x48xf32>
    %250 = vector.extract_strided_slice %12 {offsets = [0, 40], sizes = [32, 4], strides = [1, 1]} : vector<32x48xf32> to vector<32x4xf32>
    %251 = vector.extract_strided_slice %13 {offsets = [0, 40], sizes = [32, 4], strides = [1, 1]} : vector<32x48xf32> to vector<32x4xf32>
    %252 = arith.truncf %250 : vector<32x4xf32> to vector<32x4xbf16>
    %253 = arith.truncf %251 : vector<32x4xf32> to vector<32x4xbf16>
    %cst_65 = arith.constant dense<0.000000e+00> : vector<32x32xf32>
    %254 = tpu.matmul %252, %253, %cst_65 {dimension_numbers = #tpu.dot_dimension_numbers<[1], [1], [0], [0], [0, 0, 1, 0], [], []>} : vector<32x4xbf16>, vector<32x4xbf16>, vector<32x32xf32> -> vector<32x32xf32>
    %cst_66 = arith.constant dense<0xFF800000> : vector<32xf32>
    %255 = vector.multi_reduction <maximumf>, %254, %cst_66 [1] : vector<32x32xf32> to vector<32xf32>
    %256 = vector.shape_cast %255 : vector<32xf32> to vector<32x1xf32>
    %257 = vector.broadcast %256 : vector<32x1xf32> to vector<32x32xf32>
    %258 = arith.subf %254, %257 : vector<32x32xf32>
    %259 = math.exp %258 : vector<32x32xf32>
    %cst_67 = arith.constant dense<0.000000e+00> : vector<32xf32>
    %260 = vector.multi_reduction <add>, %259, %cst_67 [1] : vector<32x32xf32> to vector<32xf32>
    %261 = vector.shape_cast %260 : vector<32xf32> to vector<32x1xf32>
    %262 = tpu.reciprocal %261 {approx = true} : vector<32x1xf32> -> vector<32x1xf32>
    %263 = vector.broadcast %262 : vector<32x1xf32> to vector<32x32xf32>
    %264 = arith.mulf %259, %263 : vector<32x32xf32>
    %265 = vector.extract_strided_slice %14 {offsets = [0, 40], sizes = [32, 4], strides = [1, 1]} : vector<32x48xf32> to vector<32x4xf32>
    %266 = arith.truncf %264 : vector<32x32xf32> to vector<32x32xbf16>
    %267 = arith.truncf %265 : vector<32x4xf32> to vector<32x4xbf16>
    %cst_68 = arith.constant dense<0.000000e+00> : vector<32x4xf32>
    %268 = tpu.matmul %266, %267, %cst_68 {dimension_numbers = #tpu.dot_dimension_numbers<[1], [0], [0], [1], [0, 0, 1, 1], [], []>} : vector<32x32xbf16>, vector<32x4xbf16>, vector<32x4xf32> -> vector<32x4xf32>
    %269 = vector.extract_strided_slice %16 {offsets = [40, 0], sizes = [4, 48], strides = [1, 1]} : vector<48x48xbf16> to vector<4x48xbf16>
    %270 = arith.truncf %268 : vector<32x4xf32> to vector<32x4xbf16>
    %cst_69 = arith.constant dense<0.000000e+00> : vector<32x48xf32>
    %271 = tpu.matmul %270, %269, %cst_69 {dimension_numbers = #tpu.dot_dimension_numbers<[1], [0], [0], [1], [0, 0, 1, 1], [], []>} : vector<32x4xbf16>, vector<4x48xbf16>, vector<32x48xf32> -> vector<32x48xf32>
    %272 = arith.addf %249, %271 : vector<32x48xf32>
    %273 = vector.extract_strided_slice %12 {offsets = [0, 44], sizes = [32, 4], strides = [1, 1]} : vector<32x48xf32> to vector<32x4xf32>
    %274 = vector.extract_strided_slice %13 {offsets = [0, 44], sizes = [32, 4], strides = [1, 1]} : vector<32x48xf32> to vector<32x4xf32>
    %275 = arith.truncf %273 : vector<32x4xf32> to vector<32x4xbf16>
    %276 = arith.truncf %274 : vector<32x4xf32> to vector<32x4xbf16>
    %cst_70 = arith.constant dense<0.000000e+00> : vector<32x32xf32>
    %277 = tpu.matmul %275, %276, %cst_70 {dimension_numbers = #tpu.dot_dimension_numbers<[1], [1], [0], [0], [0, 0, 1, 0], [], []>} : vector<32x4xbf16>, vector<32x4xbf16>, vector<32x32xf32> -> vector<32x32xf32>
    %cst_71 = arith.constant dense<0xFF800000> : vector<32xf32>
    %278 = vector.multi_reduction <maximumf>, %277, %cst_71 [1] : vector<32x32xf32> to vector<32xf32>
    %279 = vector.shape_cast %278 : vector<32xf32> to vector<32x1xf32>
    %280 = vector.broadcast %279 : vector<32x1xf32> to vector<32x32xf32>
    %281 = arith.subf %277, %280 : vector<32x32xf32>
    %282 = math.exp %281 : vector<32x32xf32>
    %cst_72 = arith.constant dense<0.000000e+00> : vector<32xf32>
    %283 = vector.multi_reduction <add>, %282, %cst_72 [1] : vector<32x32xf32> to vector<32xf32>
    %284 = vector.shape_cast %283 : vector<32xf32> to vector<32x1xf32>
    %285 = tpu.reciprocal %284 {approx = true} : vector<32x1xf32> -> vector<32x1xf32>
    %286 = vector.broadcast %285 : vector<32x1xf32> to vector<32x32xf32>
    %287 = arith.mulf %282, %286 : vector<32x32xf32>
    %288 = vector.extract_strided_slice %14 {offsets = [0, 44], sizes = [32, 4], strides = [1, 1]} : vector<32x48xf32> to vector<32x4xf32>
    %289 = arith.truncf %287 : vector<32x32xf32> to vector<32x32xbf16>
    %290 = arith.truncf %288 : vector<32x4xf32> to vector<32x4xbf16>
    %cst_73 = arith.constant dense<0.000000e+00> : vector<32x4xf32>
    %291 = tpu.matmul %289, %290, %cst_73 {dimension_numbers = #tpu.dot_dimension_numbers<[1], [0], [0], [1], [0, 0, 1, 1], [], []>} : vector<32x32xbf16>, vector<32x4xbf16>, vector<32x4xf32> -> vector<32x4xf32>
    %292 = vector.extract_strided_slice %16 {offsets = [44, 0], sizes = [4, 48], strides = [1, 1]} : vector<48x48xbf16> to vector<4x48xbf16>
    %293 = arith.truncf %291 : vector<32x4xf32> to vector<32x4xbf16>
    %cst_74 = arith.constant dense<0.000000e+00> : vector<32x48xf32>
    %294 = tpu.matmul %293, %292, %cst_74 {dimension_numbers = #tpu.dot_dimension_numbers<[1], [0], [0], [1], [0, 0, 1, 1], [], []>} : vector<32x4xbf16>, vector<4x48xbf16>, vector<32x48xf32> -> vector<32x48xf32>
    %295 = arith.addf %272, %294 : vector<32x48xf32>
    %296 = vector.broadcast %18 : vector<1x48xf32> to vector<32x48xf32>
    %297 = arith.addf %295, %296 : vector<32x48xf32>
    %298 = arith.addf %3, %297 : vector<32x48xf32>
    %c0_75 = arith.constant 0 : index
    %c0_76 = arith.constant 0 : index
    %c0_77 = arith.constant 0 : index
    %299 = vector.load %arg7[%c0_75, %c0_76, %c0_77] : memref<1x1x48xf32, #tpu.memory_space<vmem>>, vector<1x1x48xf32>
    %300 = vector.shape_cast %299 : vector<1x1x48xf32> to vector<1x48xf32>
    %c0_78 = arith.constant 0 : index
    %c0_79 = arith.constant 0 : index
    %c0_80 = arith.constant 0 : index
    %301 = vector.load %arg8[%c0_78, %c0_79, %c0_80] : memref<1x1x48xf32, #tpu.memory_space<vmem>>, vector<1x1x48xf32>
    %302 = vector.shape_cast %301 : vector<1x1x48xf32> to vector<1x48xf32>
    %cst_81 = arith.constant dense<0.000000e+00> : vector<32xf32>
    %303 = vector.multi_reduction <add>, %298, %cst_81 [1] : vector<32x48xf32> to vector<32xf32>
    %304 = vector.shape_cast %303 : vector<32xf32> to vector<32x1xf32>
    %cst_82 = arith.constant 4.800000e+01 : f32
    %305 = vector.broadcast %cst_82 : f32 to vector<32x1xf32>
    %306 = arith.divf %304, %305 : vector<32x1xf32>
    %307 = vector.broadcast %306 : vector<32x1xf32> to vector<32x48xf32>
    %308 = arith.subf %298, %307 : vector<32x48xf32>
    %309 = arith.mulf %308, %308 : vector<32x48xf32>
    %cst_83 = arith.constant dense<0.000000e+00> : vector<32xf32>
    %310 = vector.multi_reduction <add>, %309, %cst_83 [1] : vector<32x48xf32> to vector<32xf32>
    %311 = vector.shape_cast %310 : vector<32xf32> to vector<32x1xf32>
    %cst_84 = arith.constant 4.800000e+01 : f32
    %312 = vector.broadcast %cst_84 : f32 to vector<32x1xf32>
    %313 = arith.divf %311, %312 : vector<32x1xf32>
    %314 = vector.broadcast %306 : vector<32x1xf32> to vector<32x48xf32>
    %315 = arith.subf %298, %314 : vector<32x48xf32>
    %cst_85 = arith.constant 9.99999974E-6 : f32
    %316 = vector.broadcast %cst_85 : f32 to vector<32x1xf32>
    %317 = arith.addf %313, %316 : vector<32x1xf32>
    %318 = math.rsqrt %317 : vector<32x1xf32>
    %319 = vector.broadcast %318 : vector<32x1xf32> to vector<32x48xf32>
    %320 = arith.mulf %315, %319 : vector<32x48xf32>
    %321 = vector.broadcast %300 : vector<1x48xf32> to vector<32x48xf32>
    %322 = arith.mulf %320, %321 : vector<32x48xf32>
    %323 = vector.broadcast %302 : vector<1x48xf32> to vector<32x48xf32>
    %324 = arith.addf %322, %323 : vector<32x48xf32>
    %c0_86 = arith.constant 0 : index
    %c0_87 = arith.constant 0 : index
    %c0_88 = arith.constant 0 : index
    %325 = vector.load %arg9[%c0_86, %c0_87, %c0_88] : memref<1x48x96xbf16, #tpu.memory_space<vmem>>, vector<1x48x96xbf16>
    %326 = vector.shape_cast %325 : vector<1x48x96xbf16> to vector<48x96xbf16>
    %327 = arith.truncf %324 : vector<32x48xf32> to vector<32x48xbf16>
    %cst_89 = arith.constant dense<0.000000e+00> : vector<32x96xf32>
    %328 = tpu.matmul %327, %326, %cst_89 {dimension_numbers = #tpu.dot_dimension_numbers<[1], [0], [0], [1], [0, 0, 1, 1], [], []>} : vector<32x48xbf16>, vector<48x96xbf16>, vector<32x96xf32> -> vector<32x96xf32>
    %c0_90 = arith.constant 0 : index
    %c0_91 = arith.constant 0 : index
    %c0_92 = arith.constant 0 : index
    %329 = vector.load %arg10[%c0_90, %c0_91, %c0_92] : memref<1x1x96xf32, #tpu.memory_space<vmem>>, vector<1x1x96xf32>
    %330 = vector.shape_cast %329 : vector<1x1x96xf32> to vector<1x96xf32>
    %331 = vector.broadcast %330 : vector<1x96xf32> to vector<32x96xf32>
    %332 = arith.addf %328, %331 : vector<32x96xf32>
    %333 = arith.mulf %332, %332 : vector<32x96xf32>
    %334 = arith.mulf %332, %333 : vector<32x96xf32>
    %cst_93 = arith.constant 4.471500e-02 : f32
    %335 = vector.broadcast %cst_93 : f32 to vector<32x96xf32>
    %336 = arith.mulf %335, %334 : vector<32x96xf32>
    %337 = arith.addf %332, %336 : vector<32x96xf32>
    %cst_94 = arith.constant 0.797884583 : f32
    %338 = vector.broadcast %cst_94 : f32 to vector<32x96xf32>
    %339 = arith.mulf %338, %337 : vector<32x96xf32>
    %340 = math.tanh %339 : vector<32x96xf32>
    %cst_95 = arith.constant 1.000000e+00 : f32
    %341 = vector.broadcast %cst_95 : f32 to vector<32x96xf32>
    %342 = arith.addf %341, %340 : vector<32x96xf32>
    %cst_96 = arith.constant 5.000000e-01 : f32
    %343 = vector.broadcast %cst_96 : f32 to vector<32x96xf32>
    %344 = arith.mulf %343, %342 : vector<32x96xf32>
    %345 = arith.mulf %332, %344 : vector<32x96xf32>
    %c0_97 = arith.constant 0 : index
    %c0_98 = arith.constant 0 : index
    %c0_99 = arith.constant 0 : index
    %346 = vector.load %arg11[%c0_97, %c0_98, %c0_99] : memref<1x96x48xbf16, #tpu.memory_space<vmem>>, vector<1x96x48xbf16>
    %347 = vector.shape_cast %346 : vector<1x96x48xbf16> to vector<96x48xbf16>
    %348 = arith.truncf %345 : vector<32x96xf32> to vector<32x96xbf16>
    %cst_100 = arith.constant dense<0.000000e+00> : vector<32x48xf32>
    %349 = tpu.matmul %348, %347, %cst_100 {dimension_numbers = #tpu.dot_dimension_numbers<[1], [0], [0], [1], [0, 0, 1, 1], [], []>} : vector<32x96xbf16>, vector<96x48xbf16>, vector<32x48xf32> -> vector<32x48xf32>
    %c0_101 = arith.constant 0 : index
    %c0_102 = arith.constant 0 : index
    %c0_103 = arith.constant 0 : index
    %350 = vector.load %arg12[%c0_101, %c0_102, %c0_103] : memref<1x1x48xf32, #tpu.memory_space<vmem>>, vector<1x1x48xf32>
    %351 = vector.shape_cast %350 : vector<1x1x48xf32> to vector<1x48xf32>
    %352 = vector.broadcast %351 : vector<1x48xf32> to vector<32x48xf32>
    %353 = arith.addf %349, %352 : vector<32x48xf32>
    %354 = arith.addf %324, %353 : vector<32x48xf32>
    %c0_104 = arith.constant 0 : index
    %c0_105 = arith.constant 0 : index
    %c0_106 = arith.constant 0 : index
    %355 = vector.load %arg13[%c0_104, %c0_105, %c0_106] : memref<1x1x48xf32, #tpu.memory_space<vmem>>, vector<1x1x48xf32>
    %356 = vector.shape_cast %355 : vector<1x1x48xf32> to vector<1x48xf32>
    %c0_107 = arith.constant 0 : index
    %c0_108 = arith.constant 0 : index
    %c0_109 = arith.constant 0 : index
    %357 = vector.load %arg14[%c0_107, %c0_108, %c0_109] : memref<1x1x48xf32, #tpu.memory_space<vmem>>, vector<1x1x48xf32>
    %358 = vector.shape_cast %357 : vector<1x1x48xf32> to vector<1x48xf32>
    %cst_110 = arith.constant dense<0.000000e+00> : vector<32xf32>
    %359 = vector.multi_reduction <add>, %354, %cst_110 [1] : vector<32x48xf32> to vector<32xf32>
    %360 = vector.shape_cast %359 : vector<32xf32> to vector<32x1xf32>
    %cst_111 = arith.constant 4.800000e+01 : f32
    %361 = vector.broadcast %cst_111 : f32 to vector<32x1xf32>
    %362 = arith.divf %360, %361 : vector<32x1xf32>
    %363 = vector.broadcast %362 : vector<32x1xf32> to vector<32x48xf32>
    %364 = arith.subf %354, %363 : vector<32x48xf32>
    %365 = arith.mulf %364, %364 : vector<32x48xf32>
    %cst_112 = arith.constant dense<0.000000e+00> : vector<32xf32>
    %366 = vector.multi_reduction <add>, %365, %cst_112 [1] : vector<32x48xf32> to vector<32xf32>
    %367 = vector.shape_cast %366 : vector<32xf32> to vector<32x1xf32>
    %cst_113 = arith.constant 4.800000e+01 : f32
    %368 = vector.broadcast %cst_113 : f32 to vector<32x1xf32>
    %369 = arith.divf %367, %368 : vector<32x1xf32>
    %370 = vector.broadcast %362 : vector<32x1xf32> to vector<32x48xf32>
    %371 = arith.subf %354, %370 : vector<32x48xf32>
    %cst_114 = arith.constant 9.99999974E-6 : f32
    %372 = vector.broadcast %cst_114 : f32 to vector<32x1xf32>
    %373 = arith.addf %369, %372 : vector<32x1xf32>
    %374 = math.rsqrt %373 : vector<32x1xf32>
    %375 = vector.broadcast %374 : vector<32x1xf32> to vector<32x48xf32>
    %376 = arith.mulf %371, %375 : vector<32x48xf32>
    %377 = vector.broadcast %356 : vector<1x48xf32> to vector<32x48xf32>
    %378 = arith.mulf %376, %377 : vector<32x48xf32>
    %379 = vector.broadcast %358 : vector<1x48xf32> to vector<32x48xf32>
    %380 = arith.addf %378, %379 : vector<32x48xf32>
    %c0_115 = arith.constant 0 : index
    %c0_116 = arith.constant 0 : index
    %381 = vector.load %arg16[%c0_115, %c0_116] : memref<32x48xf32, #tpu.memory_space<vmem>>, vector<32x48xf32>
    tpu.vector_store %arg16[%c0_115, %c0_116], %380 {strides = array<i32>} : memref<32x48xf32, #tpu.memory_space<vmem>>, vector<32x48xf32>,
    %c1_i32 = arith.constant 1 : i32
    %382 = arith.cmpi eq, %arg1, %c1_i32 : i32
    %383 = arith.extui %382 : i1 to i32
    %c0_i32_117 = arith.constant 0 : i32
    %384 = arith.cmpi ne, %383, %c0_i32_117 : i32
    scf.if %384 {
      %385 = arith.truncf %380 : vector<32x48xf32> to vector<32x48xbf16>
      %c0_118 = arith.constant 0 : index
      %c0_119 = arith.constant 0 : index
      %c0_120 = arith.constant 0 : index
      %386 = vector.load %arg15[%c0_118, %c0_119, %c0_120] : memref<1x32x48xbf16, #tpu.memory_space<vmem>>, vector<1x32x48xbf16>
      %387 = vector.shape_cast %386 : vector<1x32x48xbf16> to vector<32x48xbf16>
      %388 = vector.shape_cast %385 : vector<32x48xbf16> to vector<1x32x48xbf16>
      tpu.vector_store %arg15[%c0_118, %c0_119, %c0_120], %388 {strides = array<i32>} : memref<1x32x48xbf16, #tpu.memory_space<vmem>>, vector<1x32x48xbf16>,
    } else {
    }
    return
  }
  func.func @transform_0(%arg0: i32, %arg1: i32) -> (i32, i32, i32) {
    %c0_i32 = arith.constant 0 : i32
    %c0_i32_0 = arith.constant 0 : i32
    %c0_i32_1 = arith.constant 0 : i32
    return %arg0, %c0_i32, %c0_i32_0 : i32, i32, i32
  }
  func.func @transform_1(%arg0: i32, %arg1: i32) -> (i32, i32, i32) {
    %c0_i32 = arith.constant 0 : i32
    %c0_i32_0 = arith.constant 0 : i32
    %c0_i32_1 = arith.constant 0 : i32
    return %arg1, %c0_i32, %c0_i32_0 : i32, i32, i32
  }
  func.func @transform_2(%arg0: i32, %arg1: i32) -> (i32, i32, i32) {
    %c0_i32 = arith.constant 0 : i32
    %c0_i32_0 = arith.constant 0 : i32
    %c0_i32_1 = arith.constant 0 : i32
    return %arg1, %c0_i32, %c0_i32_0 : i32, i32, i32
  }
  func.func @transform_3(%arg0: i32, %arg1: i32) -> (i32, i32, i32) {
    %c0_i32 = arith.constant 0 : i32
    %c0_i32_0 = arith.constant 0 : i32
    %c0_i32_1 = arith.constant 0 : i32
    return %arg1, %c0_i32, %c0_i32_0 : i32, i32, i32
  }
  func.func @transform_4(%arg0: i32, %arg1: i32) -> (i32, i32, i32) {
    %c0_i32 = arith.constant 0 : i32
    %c0_i32_0 = arith.constant 0 : i32
    %c0_i32_1 = arith.constant 0 : i32
    return %arg1, %c0_i32, %c0_i32_0 : i32, i32, i32
  }
  func.func @transform_5(%arg0: i32, %arg1: i32) -> (i32, i32, i32) {
    %c0_i32 = arith.constant 0 : i32
    %c0_i32_0 = arith.constant 0 : i32
    %c0_i32_1 = arith.constant 0 : i32
    return %arg1, %c0_i32, %c0_i32_0 : i32, i32, i32
  }
  func.func @transform_6(%arg0: i32, %arg1: i32) -> (i32, i32, i32) {
    %c0_i32 = arith.constant 0 : i32
    %c0_i32_0 = arith.constant 0 : i32
    %c0_i32_1 = arith.constant 0 : i32
    return %arg1, %c0_i32, %c0_i32_0 : i32, i32, i32
  }
  func.func @transform_7(%arg0: i32, %arg1: i32) -> (i32, i32, i32) {
    %c0_i32 = arith.constant 0 : i32
    %c0_i32_0 = arith.constant 0 : i32
    %c0_i32_1 = arith.constant 0 : i32
    return %arg1, %c0_i32, %c0_i32_0 : i32, i32, i32
  }
  func.func @transform_8(%arg0: i32, %arg1: i32) -> (i32, i32, i32) {
    %c0_i32 = arith.constant 0 : i32
    %c0_i32_0 = arith.constant 0 : i32
    %c0_i32_1 = arith.constant 0 : i32
    return %arg1, %c0_i32, %c0_i32_0 : i32, i32, i32
  }
  func.func @transform_9(%arg0: i32, %arg1: i32) -> (i32, i32, i32) {
    %c0_i32 = arith.constant 0 : i32
    %c0_i32_0 = arith.constant 0 : i32
    %c0_i32_1 = arith.constant 0 : i32
    return %arg1, %c0_i32, %c0_i32_0 : i32, i32, i32
  }
  func.func @transform_10(%arg0: i32, %arg1: i32) -> (i32, i32, i32) {
    %c0_i32 = arith.constant 0 : i32
    %c0_i32_0 = arith.constant 0 : i32
    %c0_i32_1 = arith.constant 0 : i32
    return %arg1, %c0_i32, %c0_i32_0 : i32, i32, i32
  }
  func.func @transform_11(%arg0: i32, %arg1: i32) -> (i32, i32, i32) {
    %c0_i32 = arith.constant 0 : i32
    %c0_i32_0 = arith.constant 0 : i32
    %c0_i32_1 = arith.constant 0 : i32
    return %arg1, %c0_i32, %c0_i32_0 : i32, i32, i32
  }
  func.func @transform_12(%arg0: i32, %arg1: i32) -> (i32, i32, i32) {
    %c0_i32 = arith.constant 0 : i32
    %c0_i32_0 = arith.constant 0 : i32
    %c0_i32_1 = arith.constant 0 : i32
    return %arg1, %c0_i32, %c0_i32_0 : i32, i32, i32
  }
  func.func @transform_13(%arg0: i32, %arg1: i32) -> (i32, i32, i32) {
    %c0_i32 = arith.constant 0 : i32
    %c0_i32_0 = arith.constant 0 : i32
    %c0_i32_1 = arith.constant 0 : i32
    return %arg0, %c0_i32, %c0_i32_0 : i32, i32, i32
  }
}

module attributes {stable_mosaic.version = 11 : i64} {
  func.func @_dense_kernel(%arg0: i32, %arg1: memref<16x48xbf16, #tpu.memory_space<vmem>>, %arg2: memref<48x48xbf16, #tpu.memory_space<vmem>>, %arg3: memref<1x48xf32, #tpu.memory_space<vmem>>, %arg4: memref<16x48xbf16, #tpu.memory_space<vmem>>) attributes {dimension_semantics = [#tpu.dimension_semantics<parallel>], iteration_bounds = array<i64: 1>, scalar_prefetch = 0 : i64, scratch_operands = 0 : i64, tpu.core_type = #tpu.core_type<tc>, window_params = [{transform_indices = @transform_0, window_bounds = array<i64: 16, 48>}, {pipeline_mode = #tpu.pipeline_mode<synchronous>, transform_indices = @transform_1, window_bounds = array<i64: 48, 48>}, {pipeline_mode = #tpu.pipeline_mode<synchronous>, transform_indices = @transform_2, window_bounds = array<i64: 1, 48>}, {transform_indices = @transform_3, window_bounds = array<i64: 16, 48>}]} {
    %c0 = arith.constant 0 : index
    %c0_0 = arith.constant 0 : index
    %0 = vector.load %arg1[%c0, %c0_0] : memref<16x48xbf16, #tpu.memory_space<vmem>>, vector<16x48xbf16>
    %c0_1 = arith.constant 0 : index
    %c0_2 = arith.constant 0 : index
    %1 = vector.load %arg2[%c0_1, %c0_2] : memref<48x48xbf16, #tpu.memory_space<vmem>>, vector<48x48xbf16>
    %cst = arith.constant dense<0.000000e+00> : vector<16x48xf32>
    %2 = tpu.matmul %0, %1, %cst {dimension_numbers = #tpu.dot_dimension_numbers<[1], [0], [0], [1], [0, 0, 1, 1], [], []>} : vector<16x48xbf16>, vector<48x48xbf16>, vector<16x48xf32> -> vector<16x48xf32>
    %c0_3 = arith.constant 0 : index
    %c0_4 = arith.constant 0 : index
    %3 = vector.load %arg3[%c0_3, %c0_4] : memref<1x48xf32, #tpu.memory_space<vmem>>, vector<1x48xf32>
    %4 = vector.broadcast %3 : vector<1x48xf32> to vector<16x48xf32>
    %5 = arith.addf %2, %4 : vector<16x48xf32>
    %6 = arith.truncf %5 : vector<16x48xf32> to vector<16x48xbf16>
    %c0_5 = arith.constant 0 : index
    %c0_6 = arith.constant 0 : index
    %7 = vector.load %arg4[%c0_5, %c0_6] : memref<16x48xbf16, #tpu.memory_space<vmem>>, vector<16x48xbf16>
    tpu.vector_store %arg4[%c0_5, %c0_6], %6 {strides = array<i32>} : memref<16x48xbf16, #tpu.memory_space<vmem>>, vector<16x48xbf16>,
    return
  }
  func.func @transform_0(%arg0: i32) -> (i32, i32) {
    %c0_i32 = arith.constant 0 : i32
    %c0_i32_0 = arith.constant 0 : i32
    return %arg0, %c0_i32 : i32, i32
  }
  func.func @transform_1(%arg0: i32) -> (i32, i32) {
    %c0_i32 = arith.constant 0 : i32
    %c0_i32_0 = arith.constant 0 : i32
    %c0_i32_1 = arith.constant 0 : i32
    return %c0_i32, %c0_i32_0 : i32, i32
  }
  func.func @transform_2(%arg0: i32) -> (i32, i32) {
    %c0_i32 = arith.constant 0 : i32
    %c0_i32_0 = arith.constant 0 : i32
    %c0_i32_1 = arith.constant 0 : i32
    return %c0_i32, %c0_i32_0 : i32, i32
  }
  func.func @transform_3(%arg0: i32) -> (i32, i32) {
    %c0_i32 = arith.constant 0 : i32
    %c0_i32_0 = arith.constant 0 : i32
    return %arg0, %c0_i32 : i32, i32
  }
}

module attributes {stable_mosaic.version = 11 : i64} {
  func.func @_rgb_mlp_kernel(%arg0: i32, %arg1: memref<16x48xbf16, #tpu.memory_space<vmem>>, %arg2: memref<48x256xbf16, #tpu.memory_space<vmem>>, %arg3: memref<1x256xf32, #tpu.memory_space<vmem>>, %arg4: memref<256x64xbf16, #tpu.memory_space<vmem>>, %arg5: memref<1x64xf32, #tpu.memory_space<vmem>>, %arg6: memref<64x128xbf16, #tpu.memory_space<vmem>>, %arg7: memref<1x128xf32, #tpu.memory_space<vmem>>, %arg8: memref<16x128xf32, #tpu.memory_space<vmem>>) attributes {dimension_semantics = [#tpu.dimension_semantics<parallel>], iteration_bounds = array<i64: 1>, scalar_prefetch = 0 : i64, scratch_operands = 0 : i64, tpu.core_type = #tpu.core_type<tc>, window_params = [{transform_indices = @transform_0, window_bounds = array<i64: 16, 48>}, {pipeline_mode = #tpu.pipeline_mode<synchronous>, transform_indices = @transform_1, window_bounds = array<i64: 48, 256>}, {pipeline_mode = #tpu.pipeline_mode<synchronous>, transform_indices = @transform_2, window_bounds = array<i64: 1, 256>}, {pipeline_mode = #tpu.pipeline_mode<synchronous>, transform_indices = @transform_3, window_bounds = array<i64: 256, 64>}, {pipeline_mode = #tpu.pipeline_mode<synchronous>, transform_indices = @transform_4, window_bounds = array<i64: 1, 64>}, {pipeline_mode = #tpu.pipeline_mode<synchronous>, transform_indices = @transform_5, window_bounds = array<i64: 64, 128>}, {pipeline_mode = #tpu.pipeline_mode<synchronous>, transform_indices = @transform_6, window_bounds = array<i64: 1, 128>}, {transform_indices = @transform_7, window_bounds = array<i64: 16, 128>}]} {
    %c0 = arith.constant 0 : index
    %c0_0 = arith.constant 0 : index
    %0 = vector.load %arg1[%c0, %c0_0] : memref<16x48xbf16, #tpu.memory_space<vmem>>, vector<16x48xbf16>
    %c0_1 = arith.constant 0 : index
    %c0_2 = arith.constant 0 : index
    %1 = vector.load %arg2[%c0_1, %c0_2] : memref<48x256xbf16, #tpu.memory_space<vmem>>, vector<48x256xbf16>
    %cst = arith.constant dense<0.000000e+00> : vector<16x256xf32>
    %2 = tpu.matmul %0, %1, %cst {dimension_numbers = #tpu.dot_dimension_numbers<[1], [0], [0], [1], [0, 0, 1, 1], [], []>} : vector<16x48xbf16>, vector<48x256xbf16>, vector<16x256xf32> -> vector<16x256xf32>
    %c0_3 = arith.constant 0 : index
    %c0_4 = arith.constant 0 : index
    %3 = vector.load %arg3[%c0_3, %c0_4] : memref<1x256xf32, #tpu.memory_space<vmem>>, vector<1x256xf32>
    %4 = vector.broadcast %3 : vector<1x256xf32> to vector<16x256xf32>
    %5 = arith.addf %2, %4 : vector<16x256xf32>
    %cst_5 = arith.constant 0.000000e+00 : f32
    %6 = vector.broadcast %cst_5 : f32 to vector<16x256xf32>
    %7 = arith.maximumf %5, %6 : vector<16x256xf32>
    %c0_6 = arith.constant 0 : index
    %c0_7 = arith.constant 0 : index
    %8 = vector.load %arg4[%c0_6, %c0_7] : memref<256x64xbf16, #tpu.memory_space<vmem>>, vector<256x64xbf16>
    %9 = arith.truncf %7 : vector<16x256xf32> to vector<16x256xbf16>
    %cst_8 = arith.constant dense<0.000000e+00> : vector<16x64xf32>
    %10 = tpu.matmul %9, %8, %cst_8 {dimension_numbers = #tpu.dot_dimension_numbers<[1], [0], [0], [1], [0, 0, 1, 1], [], []>} : vector<16x256xbf16>, vector<256x64xbf16>, vector<16x64xf32> -> vector<16x64xf32>
    %c0_9 = arith.constant 0 : index
    %c0_10 = arith.constant 0 : index
    %11 = vector.load %arg5[%c0_9, %c0_10] : memref<1x64xf32, #tpu.memory_space<vmem>>, vector<1x64xf32>
    %12 = vector.broadcast %11 : vector<1x64xf32> to vector<16x64xf32>
    %13 = arith.addf %10, %12 : vector<16x64xf32>
    %cst_11 = arith.constant 0.000000e+00 : f32
    %14 = vector.broadcast %cst_11 : f32 to vector<16x64xf32>
    %15 = arith.maximumf %13, %14 : vector<16x64xf32>
    %c0_12 = arith.constant 0 : index
    %c0_13 = arith.constant 0 : index
    %16 = vector.load %arg6[%c0_12, %c0_13] : memref<64x128xbf16, #tpu.memory_space<vmem>>, vector<64x128xbf16>
    %17 = arith.truncf %15 : vector<16x64xf32> to vector<16x64xbf16>
    %cst_14 = arith.constant dense<0.000000e+00> : vector<16x128xf32>
    %18 = tpu.matmul %17, %16, %cst_14 {dimension_numbers = #tpu.dot_dimension_numbers<[1], [0], [0], [1], [0, 0, 1, 1], [], []>} : vector<16x64xbf16>, vector<64x128xbf16>, vector<16x128xf32> -> vector<16x128xf32>
    %c0_15 = arith.constant 0 : index
    %c0_16 = arith.constant 0 : index
    %19 = vector.load %arg7[%c0_15, %c0_16] : memref<1x128xf32, #tpu.memory_space<vmem>>, vector<1x128xf32>
    %20 = vector.broadcast %19 : vector<1x128xf32> to vector<16x128xf32>
    %21 = arith.addf %18, %20 : vector<16x128xf32>
    %22 = arith.negf %21 : vector<16x128xf32>
    %23 = math.exp %22 : vector<16x128xf32>
    %cst_17 = arith.constant 1.000000e+00 : f32
    %24 = vector.broadcast %cst_17 : f32 to vector<16x128xf32>
    %25 = arith.addf %24, %23 : vector<16x128xf32>
    %26 = arith.divf %24, %25 : vector<16x128xf32>
    %c0_18 = arith.constant 0 : index
    %c0_19 = arith.constant 0 : index
    %27 = vector.load %arg8[%c0_18, %c0_19] : memref<16x128xf32, #tpu.memory_space<vmem>>, vector<16x128xf32>
    tpu.vector_store %arg8[%c0_18, %c0_19], %26 {strides = array<i32>} : memref<16x128xf32, #tpu.memory_space<vmem>>, vector<16x128xf32>,
    return
  }
  func.func @transform_0(%arg0: i32) -> (i32, i32) {
    %c0_i32 = arith.constant 0 : i32
    %c0_i32_0 = arith.constant 0 : i32
    return %arg0, %c0_i32 : i32, i32
  }
  func.func @transform_1(%arg0: i32) -> (i32, i32) {
    %c0_i32 = arith.constant 0 : i32
    %c0_i32_0 = arith.constant 0 : i32
    %c0_i32_1 = arith.constant 0 : i32
    return %c0_i32, %c0_i32_0 : i32, i32
  }
  func.func @transform_2(%arg0: i32) -> (i32, i32) {
    %c0_i32 = arith.constant 0 : i32
    %c0_i32_0 = arith.constant 0 : i32
    %c0_i32_1 = arith.constant 0 : i32
    return %c0_i32, %c0_i32_0 : i32, i32
  }
  func.func @transform_3(%arg0: i32) -> (i32, i32) {
    %c0_i32 = arith.constant 0 : i32
    %c0_i32_0 = arith.constant 0 : i32
    %c0_i32_1 = arith.constant 0 : i32
    return %c0_i32, %c0_i32_0 : i32, i32
  }
  func.func @transform_4(%arg0: i32) -> (i32, i32) {
    %c0_i32 = arith.constant 0 : i32
    %c0_i32_0 = arith.constant 0 : i32
    %c0_i32_1 = arith.constant 0 : i32
    return %c0_i32, %c0_i32_0 : i32, i32
  }
  func.func @transform_5(%arg0: i32) -> (i32, i32) {
    %c0_i32 = arith.constant 0 : i32
    %c0_i32_0 = arith.constant 0 : i32
    %c0_i32_1 = arith.constant 0 : i32
    return %c0_i32, %c0_i32_0 : i32, i32
  }
  func.func @transform_6(%arg0: i32) -> (i32, i32) {
    %c0_i32 = arith.constant 0 : i32
    %c0_i32_0 = arith.constant 0 : i32
    %c0_i32_1 = arith.constant 0 : i32
    return %c0_i32, %c0_i32_0 : i32, i32
  }
  func.func @transform_7(%arg0: i32) -> (i32, i32) {
    %c0_i32 = arith.constant 0 : i32
    %c0_i32_0 = arith.constant 0 : i32
    return %arg0, %c0_i32 : i32, i32
  }
}

module attributes {stable_mosaic.version = 11 : i64} {
  func.func @_decoder_stack_kernel(%arg0: i32, %arg1: i32, %arg2: memref<1x8x48xbf16, #tpu.memory_space<vmem>>, %arg3: memref<1x32x48xbf16, #tpu.memory_space<vmem>>, %arg4: memref<1x48x144xbf16, #tpu.memory_space<vmem>>, %arg5: memref<1x1x144xf32, #tpu.memory_space<vmem>>, %arg6: memref<1x48x48xbf16, #tpu.memory_space<vmem>>, %arg7: memref<1x1x48xf32, #tpu.memory_space<vmem>>, %arg8: memref<1x1x48xf32, #tpu.memory_space<vmem>>, %arg9: memref<1x1x48xf32, #tpu.memory_space<vmem>>, %arg10: memref<1x48x48xbf16, #tpu.memory_space<vmem>>, %arg11: memref<1x1x48xf32, #tpu.memory_space<vmem>>, %arg12: memref<1x48x96xbf16, #tpu.memory_space<vmem>>, %arg13: memref<1x1x96xf32, #tpu.memory_space<vmem>>, %arg14: memref<1x48x48xbf16, #tpu.memory_space<vmem>>, %arg15: memref<1x1x48xf32, #tpu.memory_space<vmem>>, %arg16: memref<1x1x48xf32, #tpu.memory_space<vmem>>, %arg17: memref<1x1x48xf32, #tpu.memory_space<vmem>>, %arg18: memref<1x48x96xbf16, #tpu.memory_space<vmem>>, %arg19: memref<1x1x96xf32, #tpu.memory_space<vmem>>, %arg20: memref<1x96x48xbf16, #tpu.memory_space<vmem>>, %arg21: memref<1x1x48xf32, #tpu.memory_space<vmem>>, %arg22: memref<1x1x48xf32, #tpu.memory_space<vmem>>, %arg23: memref<1x1x48xf32, #tpu.memory_space<vmem>>, %arg24: memref<1x8x48xbf16, #tpu.memory_space<vmem>>, %arg25: memref<8x48xf32, #tpu.memory_space<vmem>>) attributes {dimension_semantics = [#tpu.dimension_semantics<parallel>, #tpu.dimension_semantics<arbitrary>], iteration_bounds = array<i64: 2, 2>, scalar_prefetch = 0 : i64, scratch_operands = 1 : i64, tpu.core_type = #tpu.core_type<tc>, window_params = [{transform_indices = @transform_0, window_bounds = array<i64: 1, 8, 48>}, {transform_indices = @transform_1, window_bounds = array<i64: 1, 32, 48>}, {transform_indices = @transform_2, window_bounds = array<i64: 1, 48, 144>}, {transform_indices = @transform_3, window_bounds = array<i64: 1, 1, 144>}, {transform_indices = @transform_4, window_bounds = array<i64: 1, 48, 48>}, {transform_indices = @transform_5, window_bounds = array<i64: 1, 1, 48>}, {transform_indices = @transform_6, window_bounds = array<i64: 1, 1, 48>}, {transform_indices = @transform_7, window_bounds = array<i64: 1, 1, 48>}, {transform_indices = @transform_8, window_bounds = array<i64: 1, 48, 48>}, {transform_indices = @transform_9, window_bounds = array<i64: 1, 1, 48>}, {transform_indices = @transform_10, window_bounds = array<i64: 1, 48, 96>}, {transform_indices = @transform_11, window_bounds = array<i64: 1, 1, 96>}, {transform_indices = @transform_12, window_bounds = array<i64: 1, 48, 48>}, {transform_indices = @transform_13, window_bounds = array<i64: 1, 1, 48>}, {transform_indices = @transform_14, window_bounds = array<i64: 1, 1, 48>}, {transform_indices = @transform_15, window_bounds = array<i64: 1, 1, 48>}, {transform_indices = @transform_16, window_bounds = array<i64: 1, 48, 96>}, {transform_indices = @transform_17, window_bounds = array<i64: 1, 1, 96>}, {transform_indices = @transform_18, window_bounds = array<i64: 1, 96, 48>}, {transform_indices = @transform_19, window_bounds = array<i64: 1, 1, 48>}, {transform_indices = @transform_20, window_bounds = array<i64: 1, 1, 48>}, {transform_indices = @transform_21, window_bounds = array<i64: 1, 1, 48>}, {transform_indices = @transform_22, window_bounds = array<i64: 1, 8, 48>}]} {
    %c0_i32 = arith.constant 0 : i32
    %0 = arith.cmpi eq, %arg1, %c0_i32 : i32
    %1 = arith.extui %0 : i1 to i32
    %c0_i32_0 = arith.constant 0 : i32
    %2 = arith.cmpi ne, %1, %c0_i32_0 : i32
    scf.if %2 {
      %c0_213 = arith.constant 0 : index
      %c0_214 = arith.constant 0 : index
      %c0_215 = arith.constant 0 : index
      %714 = vector.load %arg2[%c0_213, %c0_214, %c0_215] : memref<1x8x48xbf16, #tpu.memory_space<vmem>>, vector<1x8x48xbf16>
      %715 = vector.shape_cast %714 : vector<1x8x48xbf16> to vector<8x48xbf16>
      %716 = arith.extf %715 : vector<8x48xbf16> to vector<8x48xf32>
      %c0_216 = arith.constant 0 : index
      %c0_217 = arith.constant 0 : index
      %717 = vector.load %arg25[%c0_216, %c0_217] : memref<8x48xf32, #tpu.memory_space<vmem>>, vector<8x48xf32>
      tpu.vector_store %arg25[%c0_216, %c0_217], %716 {strides = array<i32>} : memref<8x48xf32, #tpu.memory_space<vmem>>, vector<8x48xf32>,
    } else {
    }
    %c0 = arith.constant 0 : index
    %c0_1 = arith.constant 0 : index
    %3 = vector.load %arg25[%c0, %c0_1] : memref<8x48xf32, #tpu.memory_space<vmem>>, vector<8x48xf32>
    %c0_2 = arith.constant 0 : index
    %c0_3 = arith.constant 0 : index
    %c0_4 = arith.constant 0 : index
    %4 = vector.load %arg3[%c0_2, %c0_3, %c0_4] : memref<1x32x48xbf16, #tpu.memory_space<vmem>>, vector<1x32x48xbf16>
    %5 = vector.shape_cast %4 : vector<1x32x48xbf16> to vector<32x48xbf16>
    %c0_5 = arith.constant 0 : index
    %c0_6 = arith.constant 0 : index
    %c0_7 = arith.constant 0 : index
    %6 = vector.load %arg4[%c0_5, %c0_6, %c0_7] : memref<1x48x144xbf16, #tpu.memory_space<vmem>>, vector<1x48x144xbf16>
    %7 = vector.shape_cast %6 : vector<1x48x144xbf16> to vector<48x144xbf16>
    %8 = arith.truncf %3 : vector<8x48xf32> to vector<8x48xbf16>
    %cst = arith.constant dense<0.000000e+00> : vector<8x144xf32>
    %9 = tpu.matmul %8, %7, %cst {dimension_numbers = #tpu.dot_dimension_numbers<[1], [0], [0], [1], [0, 0, 1, 1], [], []>} : vector<8x48xbf16>, vector<48x144xbf16>, vector<8x144xf32> -> vector<8x144xf32>
    %c0_8 = arith.constant 0 : index
    %c0_9 = arith.constant 0 : index
    %c0_10 = arith.constant 0 : index
    %10 = vector.load %arg5[%c0_8, %c0_9, %c0_10] : memref<1x1x144xf32, #tpu.memory_space<vmem>>, vector<1x1x144xf32>
    %11 = vector.shape_cast %10 : vector<1x1x144xf32> to vector<1x144xf32>
    %12 = vector.broadcast %11 : vector<1x144xf32> to vector<8x144xf32>
    %13 = arith.addf %9, %12 : vector<8x144xf32>
    %14 = vector.extract_strided_slice %13 {offsets = [0, 0], sizes = [8, 48], strides = [1, 1]} : vector<8x144xf32> to vector<8x48xf32>
    %15 = vector.extract_strided_slice %13 {offsets = [0, 48], sizes = [8, 48], strides = [1, 1]} : vector<8x144xf32> to vector<8x48xf32>
    %16 = vector.extract_strided_slice %13 {offsets = [0, 96], sizes = [8, 48], strides = [1, 1]} : vector<8x144xf32> to vector<8x48xf32>
    %c0_11 = arith.constant 0 : index
    %c0_12 = arith.constant 0 : index
    %c0_13 = arith.constant 0 : index
    %17 = vector.load %arg6[%c0_11, %c0_12, %c0_13] : memref<1x48x48xbf16, #tpu.memory_space<vmem>>, vector<1x48x48xbf16>
    %18 = vector.shape_cast %17 : vector<1x48x48xbf16> to vector<48x48xbf16>
    %c0_14 = arith.constant 0 : index
    %c0_15 = arith.constant 0 : index
    %c0_16 = arith.constant 0 : index
    %19 = vector.load %arg7[%c0_14, %c0_15, %c0_16] : memref<1x1x48xf32, #tpu.memory_space<vmem>>, vector<1x1x48xf32>
    %20 = vector.shape_cast %19 : vector<1x1x48xf32> to vector<1x48xf32>
    %cst_17 = arith.constant 0.000000e+00 : f32
    %21 = vector.broadcast %cst_17 : f32 to vector<8x48xf32>
    %22 = vector.extract_strided_slice %14 {offsets = [0, 0], sizes = [8, 4], strides = [1, 1]} : vector<8x48xf32> to vector<8x4xf32>
    %23 = vector.extract_strided_slice %15 {offsets = [0, 0], sizes = [8, 4], strides = [1, 1]} : vector<8x48xf32> to vector<8x4xf32>
    %24 = arith.truncf %22 : vector<8x4xf32> to vector<8x4xbf16>
    %25 = arith.truncf %23 : vector<8x4xf32> to vector<8x4xbf16>
    %cst_18 = arith.constant dense<0.000000e+00> : vector<8x8xf32>
    %26 = tpu.matmul %24, %25, %cst_18 {dimension_numbers = #tpu.dot_dimension_numbers<[1], [1], [0], [0], [0, 0, 1, 0], [], []>} : vector<8x4xbf16>, vector<8x4xbf16>, vector<8x8xf32> -> vector<8x8xf32>
    %cst_19 = arith.constant dense<0xFF800000> : vector<8xf32>
    %27 = vector.multi_reduction <maximumf>, %26, %cst_19 [1] : vector<8x8xf32> to vector<8xf32>
    %28 = vector.shape_cast %27 : vector<8xf32> to vector<8x1xf32>
    %29 = vector.broadcast %28 : vector<8x1xf32> to vector<8x8xf32>
    %30 = arith.subf %26, %29 : vector<8x8xf32>
    %31 = math.exp %30 : vector<8x8xf32>
    %cst_20 = arith.constant dense<0.000000e+00> : vector<8xf32>
    %32 = vector.multi_reduction <add>, %31, %cst_20 [1] : vector<8x8xf32> to vector<8xf32>
    %33 = vector.shape_cast %32 : vector<8xf32> to vector<8x1xf32>
    %34 = tpu.reciprocal %33 {approx = true} : vector<8x1xf32> -> vector<8x1xf32>
    %35 = vector.broadcast %34 : vector<8x1xf32> to vector<8x8xf32>
    %36 = arith.mulf %31, %35 : vector<8x8xf32>
    %37 = vector.extract_strided_slice %16 {offsets = [0, 0], sizes = [8, 4], strides = [1, 1]} : vector<8x48xf32> to vector<8x4xf32>
    %38 = arith.truncf %36 : vector<8x8xf32> to vector<8x8xbf16>
    %39 = arith.truncf %37 : vector<8x4xf32> to vector<8x4xbf16>
    %cst_21 = arith.constant dense<0.000000e+00> : vector<8x4xf32>
    %40 = tpu.matmul %38, %39, %cst_21 {dimension_numbers = #tpu.dot_dimension_numbers<[1], [0], [0], [1], [0, 0, 1, 1], [], []>} : vector<8x8xbf16>, vector<8x4xbf16>, vector<8x4xf32> -> vector<8x4xf32>
    %41 = vector.extract_strided_slice %18 {offsets = [0, 0], sizes = [4, 48], strides = [1, 1]} : vector<48x48xbf16> to vector<4x48xbf16>
    %42 = arith.truncf %40 : vector<8x4xf32> to vector<8x4xbf16>
    %cst_22 = arith.constant dense<0.000000e+00> : vector<8x48xf32>
    %43 = tpu.matmul %42, %41, %cst_22 {dimension_numbers = #tpu.dot_dimension_numbers<[1], [0], [0], [1], [0, 0, 1, 1], [], []>} : vector<8x4xbf16>, vector<4x48xbf16>, vector<8x48xf32> -> vector<8x48xf32>
    %44 = arith.addf %21, %43 : vector<8x48xf32>
    %45 = vector.extract_strided_slice %14 {offsets = [0, 4], sizes = [8, 4], strides = [1, 1]} : vector<8x48xf32> to vector<8x4xf32>
    %46 = vector.extract_strided_slice %15 {offsets = [0, 4], sizes = [8, 4], strides = [1, 1]} : vector<8x48xf32> to vector<8x4xf32>
    %47 = arith.truncf %45 : vector<8x4xf32> to vector<8x4xbf16>
    %48 = arith.truncf %46 : vector<8x4xf32> to vector<8x4xbf16>
    %cst_23 = arith.constant dense<0.000000e+00> : vector<8x8xf32>
    %49 = tpu.matmul %47, %48, %cst_23 {dimension_numbers = #tpu.dot_dimension_numbers<[1], [1], [0], [0], [0, 0, 1, 0], [], []>} : vector<8x4xbf16>, vector<8x4xbf16>, vector<8x8xf32> -> vector<8x8xf32>
    %cst_24 = arith.constant dense<0xFF800000> : vector<8xf32>
    %50 = vector.multi_reduction <maximumf>, %49, %cst_24 [1] : vector<8x8xf32> to vector<8xf32>
    %51 = vector.shape_cast %50 : vector<8xf32> to vector<8x1xf32>
    %52 = vector.broadcast %51 : vector<8x1xf32> to vector<8x8xf32>
    %53 = arith.subf %49, %52 : vector<8x8xf32>
    %54 = math.exp %53 : vector<8x8xf32>
    %cst_25 = arith.constant dense<0.000000e+00> : vector<8xf32>
    %55 = vector.multi_reduction <add>, %54, %cst_25 [1] : vector<8x8xf32> to vector<8xf32>
    %56 = vector.shape_cast %55 : vector<8xf32> to vector<8x1xf32>
    %57 = tpu.reciprocal %56 {approx = true} : vector<8x1xf32> -> vector<8x1xf32>
    %58 = vector.broadcast %57 : vector<8x1xf32> to vector<8x8xf32>
    %59 = arith.mulf %54, %58 : vector<8x8xf32>
    %60 = vector.extract_strided_slice %16 {offsets = [0, 4], sizes = [8, 4], strides = [1, 1]} : vector<8x48xf32> to vector<8x4xf32>
    %61 = arith.truncf %59 : vector<8x8xf32> to vector<8x8xbf16>
    %62 = arith.truncf %60 : vector<8x4xf32> to vector<8x4xbf16>
    %cst_26 = arith.constant dense<0.000000e+00> : vector<8x4xf32>
    %63 = tpu.matmul %61, %62, %cst_26 {dimension_numbers = #tpu.dot_dimension_numbers<[1], [0], [0], [1], [0, 0, 1, 1], [], []>} : vector<8x8xbf16>, vector<8x4xbf16>, vector<8x4xf32> -> vector<8x4xf32>
    %64 = vector.extract_strided_slice %18 {offsets = [4, 0], sizes = [4, 48], strides = [1, 1]} : vector<48x48xbf16> to vector<4x48xbf16>
    %65 = arith.truncf %63 : vector<8x4xf32> to vector<8x4xbf16>
    %cst_27 = arith.constant dense<0.000000e+00> : vector<8x48xf32>
    %66 = tpu.matmul %65, %64, %cst_27 {dimension_numbers = #tpu.dot_dimension_numbers<[1], [0], [0], [1], [0, 0, 1, 1], [], []>} : vector<8x4xbf16>, vector<4x48xbf16>, vector<8x48xf32> -> vector<8x48xf32>
    %67 = arith.addf %44, %66 : vector<8x48xf32>
    %68 = vector.extract_strided_slice %14 {offsets = [0, 8], sizes = [8, 4], strides = [1, 1]} : vector<8x48xf32> to vector<8x4xf32>
    %69 = vector.extract_strided_slice %15 {offsets = [0, 8], sizes = [8, 4], strides = [1, 1]} : vector<8x48xf32> to vector<8x4xf32>
    %70 = arith.truncf %68 : vector<8x4xf32> to vector<8x4xbf16>
    %71 = arith.truncf %69 : vector<8x4xf32> to vector<8x4xbf16>
    %cst_28 = arith.constant dense<0.000000e+00> : vector<8x8xf32>
    %72 = tpu.matmul %70, %71, %cst_28 {dimension_numbers = #tpu.dot_dimension_numbers<[1], [1], [0], [0], [0, 0, 1, 0], [], []>} : vector<8x4xbf16>, vector<8x4xbf16>, vector<8x8xf32> -> vector<8x8xf32>
    %cst_29 = arith.constant dense<0xFF800000> : vector<8xf32>
    %73 = vector.multi_reduction <maximumf>, %72, %cst_29 [1] : vector<8x8xf32> to vector<8xf32>
    %74 = vector.shape_cast %73 : vector<8xf32> to vector<8x1xf32>
    %75 = vector.broadcast %74 : vector<8x1xf32> to vector<8x8xf32>
    %76 = arith.subf %72, %75 : vector<8x8xf32>
    %77 = math.exp %76 : vector<8x8xf32>
    %cst_30 = arith.constant dense<0.000000e+00> : vector<8xf32>
    %78 = vector.multi_reduction <add>, %77, %cst_30 [1] : vector<8x8xf32> to vector<8xf32>
    %79 = vector.shape_cast %78 : vector<8xf32> to vector<8x1xf32>
    %80 = tpu.reciprocal %79 {approx = true} : vector<8x1xf32> -> vector<8x1xf32>
    %81 = vector.broadcast %80 : vector<8x1xf32> to vector<8x8xf32>
    %82 = arith.mulf %77, %81 : vector<8x8xf32>
    %83 = vector.extract_strided_slice %16 {offsets = [0, 8], sizes = [8, 4], strides = [1, 1]} : vector<8x48xf32> to vector<8x4xf32>
    %84 = arith.truncf %82 : vector<8x8xf32> to vector<8x8xbf16>
    %85 = arith.truncf %83 : vector<8x4xf32> to vector<8x4xbf16>
    %cst_31 = arith.constant dense<0.000000e+00> : vector<8x4xf32>
    %86 = tpu.matmul %84, %85, %cst_31 {dimension_numbers = #tpu.dot_dimension_numbers<[1], [0], [0], [1], [0, 0, 1, 1], [], []>} : vector<8x8xbf16>, vector<8x4xbf16>, vector<8x4xf32> -> vector<8x4xf32>
    %87 = vector.extract_strided_slice %18 {offsets = [8, 0], sizes = [4, 48], strides = [1, 1]} : vector<48x48xbf16> to vector<4x48xbf16>
    %88 = arith.truncf %86 : vector<8x4xf32> to vector<8x4xbf16>
    %cst_32 = arith.constant dense<0.000000e+00> : vector<8x48xf32>
    %89 = tpu.matmul %88, %87, %cst_32 {dimension_numbers = #tpu.dot_dimension_numbers<[1], [0], [0], [1], [0, 0, 1, 1], [], []>} : vector<8x4xbf16>, vector<4x48xbf16>, vector<8x48xf32> -> vector<8x48xf32>
    %90 = arith.addf %67, %89 : vector<8x48xf32>
    %91 = vector.extract_strided_slice %14 {offsets = [0, 12], sizes = [8, 4], strides = [1, 1]} : vector<8x48xf32> to vector<8x4xf32>
    %92 = vector.extract_strided_slice %15 {offsets = [0, 12], sizes = [8, 4], strides = [1, 1]} : vector<8x48xf32> to vector<8x4xf32>
    %93 = arith.truncf %91 : vector<8x4xf32> to vector<8x4xbf16>
    %94 = arith.truncf %92 : vector<8x4xf32> to vector<8x4xbf16>
    %cst_33 = arith.constant dense<0.000000e+00> : vector<8x8xf32>
    %95 = tpu.matmul %93, %94, %cst_33 {dimension_numbers = #tpu.dot_dimension_numbers<[1], [1], [0], [0], [0, 0, 1, 0], [], []>} : vector<8x4xbf16>, vector<8x4xbf16>, vector<8x8xf32> -> vector<8x8xf32>
    %cst_34 = arith.constant dense<0xFF800000> : vector<8xf32>
    %96 = vector.multi_reduction <maximumf>, %95, %cst_34 [1] : vector<8x8xf32> to vector<8xf32>
    %97 = vector.shape_cast %96 : vector<8xf32> to vector<8x1xf32>
    %98 = vector.broadcast %97 : vector<8x1xf32> to vector<8x8xf32>
    %99 = arith.subf %95, %98 : vector<8x8xf32>
    %100 = math.exp %99 : vector<8x8xf32>
    %cst_35 = arith.constant dense<0.000000e+00> : vector<8xf32>
    %101 = vector.multi_reduction <add>, %100, %cst_35 [1] : vector<8x8xf32> to vector<8xf32>
    %102 = vector.shape_cast %101 : vector<8xf32> to vector<8x1xf32>
    %103 = tpu.reciprocal %102 {approx = true} : vector<8x1xf32> -> vector<8x1xf32>
    %104 = vector.broadcast %103 : vector<8x1xf32> to vector<8x8xf32>
    %105 = arith.mulf %100, %104 : vector<8x8xf32>
    %106 = vector.extract_strided_slice %16 {offsets = [0, 12], sizes = [8, 4], strides = [1, 1]} : vector<8x48xf32> to vector<8x4xf32>
    %107 = arith.truncf %105 : vector<8x8xf32> to vector<8x8xbf16>
    %108 = arith.truncf %106 : vector<8x4xf32> to vector<8x4xbf16>
    %cst_36 = arith.constant dense<0.000000e+00> : vector<8x4xf32>
    %109 = tpu.matmul %107, %108, %cst_36 {dimension_numbers = #tpu.dot_dimension_numbers<[1], [0], [0], [1], [0, 0, 1, 1], [], []>} : vector<8x8xbf16>, vector<8x4xbf16>, vector<8x4xf32> -> vector<8x4xf32>
    %110 = vector.extract_strided_slice %18 {offsets = [12, 0], sizes = [4, 48], strides = [1, 1]} : vector<48x48xbf16> to vector<4x48xbf16>
    %111 = arith.truncf %109 : vector<8x4xf32> to vector<8x4xbf16>
    %cst_37 = arith.constant dense<0.000000e+00> : vector<8x48xf32>
    %112 = tpu.matmul %111, %110, %cst_37 {dimension_numbers = #tpu.dot_dimension_numbers<[1], [0], [0], [1], [0, 0, 1, 1], [], []>} : vector<8x4xbf16>, vector<4x48xbf16>, vector<8x48xf32> -> vector<8x48xf32>
    %113 = arith.addf %90, %112 : vector<8x48xf32>
    %114 = vector.extract_strided_slice %14 {offsets = [0, 16], sizes = [8, 4], strides = [1, 1]} : vector<8x48xf32> to vector<8x4xf32>
    %115 = vector.extract_strided_slice %15 {offsets = [0, 16], sizes = [8, 4], strides = [1, 1]} : vector<8x48xf32> to vector<8x4xf32>
    %116 = arith.truncf %114 : vector<8x4xf32> to vector<8x4xbf16>
    %117 = arith.truncf %115 : vector<8x4xf32> to vector<8x4xbf16>
    %cst_38 = arith.constant dense<0.000000e+00> : vector<8x8xf32>
    %118 = tpu.matmul %116, %117, %cst_38 {dimension_numbers = #tpu.dot_dimension_numbers<[1], [1], [0], [0], [0, 0, 1, 0], [], []>} : vector<8x4xbf16>, vector<8x4xbf16>, vector<8x8xf32> -> vector<8x8xf32>
    %cst_39 = arith.constant dense<0xFF800000> : vector<8xf32>
    %119 = vector.multi_reduction <maximumf>, %118, %cst_39 [1] : vector<8x8xf32> to vector<8xf32>
    %120 = vector.shape_cast %119 : vector<8xf32> to vector<8x1xf32>
    %121 = vector.broadcast %120 : vector<8x1xf32> to vector<8x8xf32>
    %122 = arith.subf %118, %121 : vector<8x8xf32>
    %123 = math.exp %122 : vector<8x8xf32>
    %cst_40 = arith.constant dense<0.000000e+00> : vector<8xf32>
    %124 = vector.multi_reduction <add>, %123, %cst_40 [1] : vector<8x8xf32> to vector<8xf32>
    %125 = vector.shape_cast %124 : vector<8xf32> to vector<8x1xf32>
    %126 = tpu.reciprocal %125 {approx = true} : vector<8x1xf32> -> vector<8x1xf32>
    %127 = vector.broadcast %126 : vector<8x1xf32> to vector<8x8xf32>
    %128 = arith.mulf %123, %127 : vector<8x8xf32>
    %129 = vector.extract_strided_slice %16 {offsets = [0, 16], sizes = [8, 4], strides = [1, 1]} : vector<8x48xf32> to vector<8x4xf32>
    %130 = arith.truncf %128 : vector<8x8xf32> to vector<8x8xbf16>
    %131 = arith.truncf %129 : vector<8x4xf32> to vector<8x4xbf16>
    %cst_41 = arith.constant dense<0.000000e+00> : vector<8x4xf32>
    %132 = tpu.matmul %130, %131, %cst_41 {dimension_numbers = #tpu.dot_dimension_numbers<[1], [0], [0], [1], [0, 0, 1, 1], [], []>} : vector<8x8xbf16>, vector<8x4xbf16>, vector<8x4xf32> -> vector<8x4xf32>
    %133 = vector.extract_strided_slice %18 {offsets = [16, 0], sizes = [4, 48], strides = [1, 1]} : vector<48x48xbf16> to vector<4x48xbf16>
    %134 = arith.truncf %132 : vector<8x4xf32> to vector<8x4xbf16>
    %cst_42 = arith.constant dense<0.000000e+00> : vector<8x48xf32>
    %135 = tpu.matmul %134, %133, %cst_42 {dimension_numbers = #tpu.dot_dimension_numbers<[1], [0], [0], [1], [0, 0, 1, 1], [], []>} : vector<8x4xbf16>, vector<4x48xbf16>, vector<8x48xf32> -> vector<8x48xf32>
    %136 = arith.addf %113, %135 : vector<8x48xf32>
    %137 = vector.extract_strided_slice %14 {offsets = [0, 20], sizes = [8, 4], strides = [1, 1]} : vector<8x48xf32> to vector<8x4xf32>
    %138 = vector.extract_strided_slice %15 {offsets = [0, 20], sizes = [8, 4], strides = [1, 1]} : vector<8x48xf32> to vector<8x4xf32>
    %139 = arith.truncf %137 : vector<8x4xf32> to vector<8x4xbf16>
    %140 = arith.truncf %138 : vector<8x4xf32> to vector<8x4xbf16>
    %cst_43 = arith.constant dense<0.000000e+00> : vector<8x8xf32>
    %141 = tpu.matmul %139, %140, %cst_43 {dimension_numbers = #tpu.dot_dimension_numbers<[1], [1], [0], [0], [0, 0, 1, 0], [], []>} : vector<8x4xbf16>, vector<8x4xbf16>, vector<8x8xf32> -> vector<8x8xf32>
    %cst_44 = arith.constant dense<0xFF800000> : vector<8xf32>
    %142 = vector.multi_reduction <maximumf>, %141, %cst_44 [1] : vector<8x8xf32> to vector<8xf32>
    %143 = vector.shape_cast %142 : vector<8xf32> to vector<8x1xf32>
    %144 = vector.broadcast %143 : vector<8x1xf32> to vector<8x8xf32>
    %145 = arith.subf %141, %144 : vector<8x8xf32>
    %146 = math.exp %145 : vector<8x8xf32>
    %cst_45 = arith.constant dense<0.000000e+00> : vector<8xf32>
    %147 = vector.multi_reduction <add>, %146, %cst_45 [1] : vector<8x8xf32> to vector<8xf32>
    %148 = vector.shape_cast %147 : vector<8xf32> to vector<8x1xf32>
    %149 = tpu.reciprocal %148 {approx = true} : vector<8x1xf32> -> vector<8x1xf32>
    %150 = vector.broadcast %149 : vector<8x1xf32> to vector<8x8xf32>
    %151 = arith.mulf %146, %150 : vector<8x8xf32>
    %152 = vector.extract_strided_slice %16 {offsets = [0, 20], sizes = [8, 4], strides = [1, 1]} : vector<8x48xf32> to vector<8x4xf32>
    %153 = arith.truncf %151 : vector<8x8xf32> to vector<8x8xbf16>
    %154 = arith.truncf %152 : vector<8x4xf32> to vector<8x4xbf16>
    %cst_46 = arith.constant dense<0.000000e+00> : vector<8x4xf32>
    %155 = tpu.matmul %153, %154, %cst_46 {dimension_numbers = #tpu.dot_dimension_numbers<[1], [0], [0], [1], [0, 0, 1, 1], [], []>} : vector<8x8xbf16>, vector<8x4xbf16>, vector<8x4xf32> -> vector<8x4xf32>
    %156 = vector.extract_strided_slice %18 {offsets = [20, 0], sizes = [4, 48], strides = [1, 1]} : vector<48x48xbf16> to vector<4x48xbf16>
    %157 = arith.truncf %155 : vector<8x4xf32> to vector<8x4xbf16>
    %cst_47 = arith.constant dense<0.000000e+00> : vector<8x48xf32>
    %158 = tpu.matmul %157, %156, %cst_47 {dimension_numbers = #tpu.dot_dimension_numbers<[1], [0], [0], [1], [0, 0, 1, 1], [], []>} : vector<8x4xbf16>, vector<4x48xbf16>, vector<8x48xf32> -> vector<8x48xf32>
    %159 = arith.addf %136, %158 : vector<8x48xf32>
    %160 = vector.extract_strided_slice %14 {offsets = [0, 24], sizes = [8, 4], strides = [1, 1]} : vector<8x48xf32> to vector<8x4xf32>
    %161 = vector.extract_strided_slice %15 {offsets = [0, 24], sizes = [8, 4], strides = [1, 1]} : vector<8x48xf32> to vector<8x4xf32>
    %162 = arith.truncf %160 : vector<8x4xf32> to vector<8x4xbf16>
    %163 = arith.truncf %161 : vector<8x4xf32> to vector<8x4xbf16>
    %cst_48 = arith.constant dense<0.000000e+00> : vector<8x8xf32>
    %164 = tpu.matmul %162, %163, %cst_48 {dimension_numbers = #tpu.dot_dimension_numbers<[1], [1], [0], [0], [0, 0, 1, 0], [], []>} : vector<8x4xbf16>, vector<8x4xbf16>, vector<8x8xf32> -> vector<8x8xf32>
    %cst_49 = arith.constant dense<0xFF800000> : vector<8xf32>
    %165 = vector.multi_reduction <maximumf>, %164, %cst_49 [1] : vector<8x8xf32> to vector<8xf32>
    %166 = vector.shape_cast %165 : vector<8xf32> to vector<8x1xf32>
    %167 = vector.broadcast %166 : vector<8x1xf32> to vector<8x8xf32>
    %168 = arith.subf %164, %167 : vector<8x8xf32>
    %169 = math.exp %168 : vector<8x8xf32>
    %cst_50 = arith.constant dense<0.000000e+00> : vector<8xf32>
    %170 = vector.multi_reduction <add>, %169, %cst_50 [1] : vector<8x8xf32> to vector<8xf32>
    %171 = vector.shape_cast %170 : vector<8xf32> to vector<8x1xf32>
    %172 = tpu.reciprocal %171 {approx = true} : vector<8x1xf32> -> vector<8x1xf32>
    %173 = vector.broadcast %172 : vector<8x1xf32> to vector<8x8xf32>
    %174 = arith.mulf %169, %173 : vector<8x8xf32>
    %175 = vector.extract_strided_slice %16 {offsets = [0, 24], sizes = [8, 4], strides = [1, 1]} : vector<8x48xf32> to vector<8x4xf32>
    %176 = arith.truncf %174 : vector<8x8xf32> to vector<8x8xbf16>
    %177 = arith.truncf %175 : vector<8x4xf32> to vector<8x4xbf16>
    %cst_51 = arith.constant dense<0.000000e+00> : vector<8x4xf32>
    %178 = tpu.matmul %176, %177, %cst_51 {dimension_numbers = #tpu.dot_dimension_numbers<[1], [0], [0], [1], [0, 0, 1, 1], [], []>} : vector<8x8xbf16>, vector<8x4xbf16>, vector<8x4xf32> -> vector<8x4xf32>
    %179 = vector.extract_strided_slice %18 {offsets = [24, 0], sizes = [4, 48], strides = [1, 1]} : vector<48x48xbf16> to vector<4x48xbf16>
    %180 = arith.truncf %178 : vector<8x4xf32> to vector<8x4xbf16>
    %cst_52 = arith.constant dense<0.000000e+00> : vector<8x48xf32>
    %181 = tpu.matmul %180, %179, %cst_52 {dimension_numbers = #tpu.dot_dimension_numbers<[1], [0], [0], [1], [0, 0, 1, 1], [], []>} : vector<8x4xbf16>, vector<4x48xbf16>, vector<8x48xf32> -> vector<8x48xf32>
    %182 = arith.addf %159, %181 : vector<8x48xf32>
    %183 = vector.extract_strided_slice %14 {offsets = [0, 28], sizes = [8, 4], strides = [1, 1]} : vector<8x48xf32> to vector<8x4xf32>
    %184 = vector.extract_strided_slice %15 {offsets = [0, 28], sizes = [8, 4], strides = [1, 1]} : vector<8x48xf32> to vector<8x4xf32>
    %185 = arith.truncf %183 : vector<8x4xf32> to vector<8x4xbf16>
    %186 = arith.truncf %184 : vector<8x4xf32> to vector<8x4xbf16>
    %cst_53 = arith.constant dense<0.000000e+00> : vector<8x8xf32>
    %187 = tpu.matmul %185, %186, %cst_53 {dimension_numbers = #tpu.dot_dimension_numbers<[1], [1], [0], [0], [0, 0, 1, 0], [], []>} : vector<8x4xbf16>, vector<8x4xbf16>, vector<8x8xf32> -> vector<8x8xf32>
    %cst_54 = arith.constant dense<0xFF800000> : vector<8xf32>
    %188 = vector.multi_reduction <maximumf>, %187, %cst_54 [1] : vector<8x8xf32> to vector<8xf32>
    %189 = vector.shape_cast %188 : vector<8xf32> to vector<8x1xf32>
    %190 = vector.broadcast %189 : vector<8x1xf32> to vector<8x8xf32>
    %191 = arith.subf %187, %190 : vector<8x8xf32>
    %192 = math.exp %191 : vector<8x8xf32>
    %cst_55 = arith.constant dense<0.000000e+00> : vector<8xf32>
    %193 = vector.multi_reduction <add>, %192, %cst_55 [1] : vector<8x8xf32> to vector<8xf32>
    %194 = vector.shape_cast %193 : vector<8xf32> to vector<8x1xf32>
    %195 = tpu.reciprocal %194 {approx = true} : vector<8x1xf32> -> vector<8x1xf32>
    %196 = vector.broadcast %195 : vector<8x1xf32> to vector<8x8xf32>
    %197 = arith.mulf %192, %196 : vector<8x8xf32>
    %198 = vector.extract_strided_slice %16 {offsets = [0, 28], sizes = [8, 4], strides = [1, 1]} : vector<8x48xf32> to vector<8x4xf32>
    %199 = arith.truncf %197 : vector<8x8xf32> to vector<8x8xbf16>
    %200 = arith.truncf %198 : vector<8x4xf32> to vector<8x4xbf16>
    %cst_56 = arith.constant dense<0.000000e+00> : vector<8x4xf32>
    %201 = tpu.matmul %199, %200, %cst_56 {dimension_numbers = #tpu.dot_dimension_numbers<[1], [0], [0], [1], [0, 0, 1, 1], [], []>} : vector<8x8xbf16>, vector<8x4xbf16>, vector<8x4xf32> -> vector<8x4xf32>
    %202 = vector.extract_strided_slice %18 {offsets = [28, 0], sizes = [4, 48], strides = [1, 1]} : vector<48x48xbf16> to vector<4x48xbf16>
    %203 = arith.truncf %201 : vector<8x4xf32> to vector<8x4xbf16>
    %cst_57 = arith.constant dense<0.000000e+00> : vector<8x48xf32>
    %204 = tpu.matmul %203, %202, %cst_57 {dimension_numbers = #tpu.dot_dimension_numbers<[1], [0], [0], [1], [0, 0, 1, 1], [], []>} : vector<8x4xbf16>, vector<4x48xbf16>, vector<8x48xf32> -> vector<8x48xf32>
    %205 = arith.addf %182, %204 : vector<8x48xf32>
    %206 = vector.extract_strided_slice %14 {offsets = [0, 32], sizes = [8, 4], strides = [1, 1]} : vector<8x48xf32> to vector<8x4xf32>
    %207 = vector.extract_strided_slice %15 {offsets = [0, 32], sizes = [8, 4], strides = [1, 1]} : vector<8x48xf32> to vector<8x4xf32>
    %208 = arith.truncf %206 : vector<8x4xf32> to vector<8x4xbf16>
    %209 = arith.truncf %207 : vector<8x4xf32> to vector<8x4xbf16>
    %cst_58 = arith.constant dense<0.000000e+00> : vector<8x8xf32>
    %210 = tpu.matmul %208, %209, %cst_58 {dimension_numbers = #tpu.dot_dimension_numbers<[1], [1], [0], [0], [0, 0, 1, 0], [], []>} : vector<8x4xbf16>, vector<8x4xbf16>, vector<8x8xf32> -> vector<8x8xf32>
    %cst_59 = arith.constant dense<0xFF800000> : vector<8xf32>
    %211 = vector.multi_reduction <maximumf>, %210, %cst_59 [1] : vector<8x8xf32> to vector<8xf32>
    %212 = vector.shape_cast %211 : vector<8xf32> to vector<8x1xf32>
    %213 = vector.broadcast %212 : vector<8x1xf32> to vector<8x8xf32>
    %214 = arith.subf %210, %213 : vector<8x8xf32>
    %215 = math.exp %214 : vector<8x8xf32>
    %cst_60 = arith.constant dense<0.000000e+00> : vector<8xf32>
    %216 = vector.multi_reduction <add>, %215, %cst_60 [1] : vector<8x8xf32> to vector<8xf32>
    %217 = vector.shape_cast %216 : vector<8xf32> to vector<8x1xf32>
    %218 = tpu.reciprocal %217 {approx = true} : vector<8x1xf32> -> vector<8x1xf32>
    %219 = vector.broadcast %218 : vector<8x1xf32> to vector<8x8xf32>
    %220 = arith.mulf %215, %219 : vector<8x8xf32>
    %221 = vector.extract_strided_slice %16 {offsets = [0, 32], sizes = [8, 4], strides = [1, 1]} : vector<8x48xf32> to vector<8x4xf32>
    %222 = arith.truncf %220 : vector<8x8xf32> to vector<8x8xbf16>
    %223 = arith.truncf %221 : vector<8x4xf32> to vector<8x4xbf16>
    %cst_61 = arith.constant dense<0.000000e+00> : vector<8x4xf32>
    %224 = tpu.matmul %222, %223, %cst_61 {dimension_numbers = #tpu.dot_dimension_numbers<[1], [0], [0], [1], [0, 0, 1, 1], [], []>} : vector<8x8xbf16>, vector<8x4xbf16>, vector<8x4xf32> -> vector<8x4xf32>
    %225 = vector.extract_strided_slice %18 {offsets = [32, 0], sizes = [4, 48], strides = [1, 1]} : vector<48x48xbf16> to vector<4x48xbf16>
    %226 = arith.truncf %224 : vector<8x4xf32> to vector<8x4xbf16>
    %cst_62 = arith.constant dense<0.000000e+00> : vector<8x48xf32>
    %227 = tpu.matmul %226, %225, %cst_62 {dimension_numbers = #tpu.dot_dimension_numbers<[1], [0], [0], [1], [0, 0, 1, 1], [], []>} : vector<8x4xbf16>, vector<4x48xbf16>, vector<8x48xf32> -> vector<8x48xf32>
    %228 = arith.addf %205, %227 : vector<8x48xf32>
    %229 = vector.extract_strided_slice %14 {offsets = [0, 36], sizes = [8, 4], strides = [1, 1]} : vector<8x48xf32> to vector<8x4xf32>
    %230 = vector.extract_strided_slice %15 {offsets = [0, 36], sizes = [8, 4], strides = [1, 1]} : vector<8x48xf32> to vector<8x4xf32>
    %231 = arith.truncf %229 : vector<8x4xf32> to vector<8x4xbf16>
    %232 = arith.truncf %230 : vector<8x4xf32> to vector<8x4xbf16>
    %cst_63 = arith.constant dense<0.000000e+00> : vector<8x8xf32>
    %233 = tpu.matmul %231, %232, %cst_63 {dimension_numbers = #tpu.dot_dimension_numbers<[1], [1], [0], [0], [0, 0, 1, 0], [], []>} : vector<8x4xbf16>, vector<8x4xbf16>, vector<8x8xf32> -> vector<8x8xf32>
    %cst_64 = arith.constant dense<0xFF800000> : vector<8xf32>
    %234 = vector.multi_reduction <maximumf>, %233, %cst_64 [1] : vector<8x8xf32> to vector<8xf32>
    %235 = vector.shape_cast %234 : vector<8xf32> to vector<8x1xf32>
    %236 = vector.broadcast %235 : vector<8x1xf32> to vector<8x8xf32>
    %237 = arith.subf %233, %236 : vector<8x8xf32>
    %238 = math.exp %237 : vector<8x8xf32>
    %cst_65 = arith.constant dense<0.000000e+00> : vector<8xf32>
    %239 = vector.multi_reduction <add>, %238, %cst_65 [1] : vector<8x8xf32> to vector<8xf32>
    %240 = vector.shape_cast %239 : vector<8xf32> to vector<8x1xf32>
    %241 = tpu.reciprocal %240 {approx = true} : vector<8x1xf32> -> vector<8x1xf32>
    %242 = vector.broadcast %241 : vector<8x1xf32> to vector<8x8xf32>
    %243 = arith.mulf %238, %242 : vector<8x8xf32>
    %244 = vector.extract_strided_slice %16 {offsets = [0, 36], sizes = [8, 4], strides = [1, 1]} : vector<8x48xf32> to vector<8x4xf32>
    %245 = arith.truncf %243 : vector<8x8xf32> to vector<8x8xbf16>
    %246 = arith.truncf %244 : vector<8x4xf32> to vector<8x4xbf16>
    %cst_66 = arith.constant dense<0.000000e+00> : vector<8x4xf32>
    %247 = tpu.matmul %245, %246, %cst_66 {dimension_numbers = #tpu.dot_dimension_numbers<[1], [0], [0], [1], [0, 0, 1, 1], [], []>} : vector<8x8xbf16>, vector<8x4xbf16>, vector<8x4xf32> -> vector<8x4xf32>
    %248 = vector.extract_strided_slice %18 {offsets = [36, 0], sizes = [4, 48], strides = [1, 1]} : vector<48x48xbf16> to vector<4x48xbf16>
    %249 = arith.truncf %247 : vector<8x4xf32> to vector<8x4xbf16>
    %cst_67 = arith.constant dense<0.000000e+00> : vector<8x48xf32>
    %250 = tpu.matmul %249, %248, %cst_67 {dimension_numbers = #tpu.dot_dimension_numbers<[1], [0], [0], [1], [0, 0, 1, 1], [], []>} : vector<8x4xbf16>, vector<4x48xbf16>, vector<8x48xf32> -> vector<8x48xf32>
    %251 = arith.addf %228, %250 : vector<8x48xf32>
    %252 = vector.extract_strided_slice %14 {offsets = [0, 40], sizes = [8, 4], strides = [1, 1]} : vector<8x48xf32> to vector<8x4xf32>
    %253 = vector.extract_strided_slice %15 {offsets = [0, 40], sizes = [8, 4], strides = [1, 1]} : vector<8x48xf32> to vector<8x4xf32>
    %254 = arith.truncf %252 : vector<8x4xf32> to vector<8x4xbf16>
    %255 = arith.truncf %253 : vector<8x4xf32> to vector<8x4xbf16>
    %cst_68 = arith.constant dense<0.000000e+00> : vector<8x8xf32>
    %256 = tpu.matmul %254, %255, %cst_68 {dimension_numbers = #tpu.dot_dimension_numbers<[1], [1], [0], [0], [0, 0, 1, 0], [], []>} : vector<8x4xbf16>, vector<8x4xbf16>, vector<8x8xf32> -> vector<8x8xf32>
    %cst_69 = arith.constant dense<0xFF800000> : vector<8xf32>
    %257 = vector.multi_reduction <maximumf>, %256, %cst_69 [1] : vector<8x8xf32> to vector<8xf32>
    %258 = vector.shape_cast %257 : vector<8xf32> to vector<8x1xf32>
    %259 = vector.broadcast %258 : vector<8x1xf32> to vector<8x8xf32>
    %260 = arith.subf %256, %259 : vector<8x8xf32>
    %261 = math.exp %260 : vector<8x8xf32>
    %cst_70 = arith.constant dense<0.000000e+00> : vector<8xf32>
    %262 = vector.multi_reduction <add>, %261, %cst_70 [1] : vector<8x8xf32> to vector<8xf32>
    %263 = vector.shape_cast %262 : vector<8xf32> to vector<8x1xf32>
    %264 = tpu.reciprocal %263 {approx = true} : vector<8x1xf32> -> vector<8x1xf32>
    %265 = vector.broadcast %264 : vector<8x1xf32> to vector<8x8xf32>
    %266 = arith.mulf %261, %265 : vector<8x8xf32>
    %267 = vector.extract_strided_slice %16 {offsets = [0, 40], sizes = [8, 4], strides = [1, 1]} : vector<8x48xf32> to vector<8x4xf32>
    %268 = arith.truncf %266 : vector<8x8xf32> to vector<8x8xbf16>
    %269 = arith.truncf %267 : vector<8x4xf32> to vector<8x4xbf16>
    %cst_71 = arith.constant dense<0.000000e+00> : vector<8x4xf32>
    %270 = tpu.matmul %268, %269, %cst_71 {dimension_numbers = #tpu.dot_dimension_numbers<[1], [0], [0], [1], [0, 0, 1, 1], [], []>} : vector<8x8xbf16>, vector<8x4xbf16>, vector<8x4xf32> -> vector<8x4xf32>
    %271 = vector.extract_strided_slice %18 {offsets = [40, 0], sizes = [4, 48], strides = [1, 1]} : vector<48x48xbf16> to vector<4x48xbf16>
    %272 = arith.truncf %270 : vector<8x4xf32> to vector<8x4xbf16>
    %cst_72 = arith.constant dense<0.000000e+00> : vector<8x48xf32>
    %273 = tpu.matmul %272, %271, %cst_72 {dimension_numbers = #tpu.dot_dimension_numbers<[1], [0], [0], [1], [0, 0, 1, 1], [], []>} : vector<8x4xbf16>, vector<4x48xbf16>, vector<8x48xf32> -> vector<8x48xf32>
    %274 = arith.addf %251, %273 : vector<8x48xf32>
    %275 = vector.extract_strided_slice %14 {offsets = [0, 44], sizes = [8, 4], strides = [1, 1]} : vector<8x48xf32> to vector<8x4xf32>
    %276 = vector.extract_strided_slice %15 {offsets = [0, 44], sizes = [8, 4], strides = [1, 1]} : vector<8x48xf32> to vector<8x4xf32>
    %277 = arith.truncf %275 : vector<8x4xf32> to vector<8x4xbf16>
    %278 = arith.truncf %276 : vector<8x4xf32> to vector<8x4xbf16>
    %cst_73 = arith.constant dense<0.000000e+00> : vector<8x8xf32>
    %279 = tpu.matmul %277, %278, %cst_73 {dimension_numbers = #tpu.dot_dimension_numbers<[1], [1], [0], [0], [0, 0, 1, 0], [], []>} : vector<8x4xbf16>, vector<8x4xbf16>, vector<8x8xf32> -> vector<8x8xf32>
    %cst_74 = arith.constant dense<0xFF800000> : vector<8xf32>
    %280 = vector.multi_reduction <maximumf>, %279, %cst_74 [1] : vector<8x8xf32> to vector<8xf32>
    %281 = vector.shape_cast %280 : vector<8xf32> to vector<8x1xf32>
    %282 = vector.broadcast %281 : vector<8x1xf32> to vector<8x8xf32>
    %283 = arith.subf %279, %282 : vector<8x8xf32>
    %284 = math.exp %283 : vector<8x8xf32>
    %cst_75 = arith.constant dense<0.000000e+00> : vector<8xf32>
    %285 = vector.multi_reduction <add>, %284, %cst_75 [1] : vector<8x8xf32> to vector<8xf32>
    %286 = vector.shape_cast %285 : vector<8xf32> to vector<8x1xf32>
    %287 = tpu.reciprocal %286 {approx = true} : vector<8x1xf32> -> vector<8x1xf32>
    %288 = vector.broadcast %287 : vector<8x1xf32> to vector<8x8xf32>
    %289 = arith.mulf %284, %288 : vector<8x8xf32>
    %290 = vector.extract_strided_slice %16 {offsets = [0, 44], sizes = [8, 4], strides = [1, 1]} : vector<8x48xf32> to vector<8x4xf32>
    %291 = arith.truncf %289 : vector<8x8xf32> to vector<8x8xbf16>
    %292 = arith.truncf %290 : vector<8x4xf32> to vector<8x4xbf16>
    %cst_76 = arith.constant dense<0.000000e+00> : vector<8x4xf32>
    %293 = tpu.matmul %291, %292, %cst_76 {dimension_numbers = #tpu.dot_dimension_numbers<[1], [0], [0], [1], [0, 0, 1, 1], [], []>} : vector<8x8xbf16>, vector<8x4xbf16>, vector<8x4xf32> -> vector<8x4xf32>
    %294 = vector.extract_strided_slice %18 {offsets = [44, 0], sizes = [4, 48], strides = [1, 1]} : vector<48x48xbf16> to vector<4x48xbf16>
    %295 = arith.truncf %293 : vector<8x4xf32> to vector<8x4xbf16>
    %cst_77 = arith.constant dense<0.000000e+00> : vector<8x48xf32>
    %296 = tpu.matmul %295, %294, %cst_77 {dimension_numbers = #tpu.dot_dimension_numbers<[1], [0], [0], [1], [0, 0, 1, 1], [], []>} : vector<8x4xbf16>, vector<4x48xbf16>, vector<8x48xf32> -> vector<8x48xf32>
    %297 = arith.addf %274, %296 : vector<8x48xf32>
    %298 = vector.broadcast %20 : vector<1x48xf32> to vector<8x48xf32>
    %299 = arith.addf %297, %298 : vector<8x48xf32>
    %300 = arith.addf %3, %299 : vector<8x48xf32>
    %c0_78 = arith.constant 0 : index
    %c0_79 = arith.constant 0 : index
    %c0_80 = arith.constant 0 : index
    %301 = vector.load %arg8[%c0_78, %c0_79, %c0_80] : memref<1x1x48xf32, #tpu.memory_space<vmem>>, vector<1x1x48xf32>
    %302 = vector.shape_cast %301 : vector<1x1x48xf32> to vector<1x48xf32>
    %c0_81 = arith.constant 0 : index
    %c0_82 = arith.constant 0 : index
    %c0_83 = arith.constant 0 : index
    %303 = vector.load %arg9[%c0_81, %c0_82, %c0_83] : memref<1x1x48xf32, #tpu.memory_space<vmem>>, vector<1x1x48xf32>
    %304 = vector.shape_cast %303 : vector<1x1x48xf32> to vector<1x48xf32>
    %cst_84 = arith.constant dense<0.000000e+00> : vector<8xf32>
    %305 = vector.multi_reduction <add>, %300, %cst_84 [1] : vector<8x48xf32> to vector<8xf32>
    %306 = vector.shape_cast %305 : vector<8xf32> to vector<8x1xf32>
    %cst_85 = arith.constant 4.800000e+01 : f32
    %307 = vector.broadcast %cst_85 : f32 to vector<8x1xf32>
    %308 = arith.divf %306, %307 : vector<8x1xf32>
    %309 = vector.broadcast %308 : vector<8x1xf32> to vector<8x48xf32>
    %310 = arith.subf %300, %309 : vector<8x48xf32>
    %311 = arith.mulf %310, %310 : vector<8x48xf32>
    %cst_86 = arith.constant dense<0.000000e+00> : vector<8xf32>
    %312 = vector.multi_reduction <add>, %311, %cst_86 [1] : vector<8x48xf32> to vector<8xf32>
    %313 = vector.shape_cast %312 : vector<8xf32> to vector<8x1xf32>
    %cst_87 = arith.constant 4.800000e+01 : f32
    %314 = vector.broadcast %cst_87 : f32 to vector<8x1xf32>
    %315 = arith.divf %313, %314 : vector<8x1xf32>
    %316 = vector.broadcast %308 : vector<8x1xf32> to vector<8x48xf32>
    %317 = arith.subf %300, %316 : vector<8x48xf32>
    %cst_88 = arith.constant 9.99999974E-6 : f32
    %318 = vector.broadcast %cst_88 : f32 to vector<8x1xf32>
    %319 = arith.addf %315, %318 : vector<8x1xf32>
    %320 = math.rsqrt %319 : vector<8x1xf32>
    %321 = vector.broadcast %320 : vector<8x1xf32> to vector<8x48xf32>
    %322 = arith.mulf %317, %321 : vector<8x48xf32>
    %323 = vector.broadcast %302 : vector<1x48xf32> to vector<8x48xf32>
    %324 = arith.mulf %322, %323 : vector<8x48xf32>
    %325 = vector.broadcast %304 : vector<1x48xf32> to vector<8x48xf32>
    %326 = arith.addf %324, %325 : vector<8x48xf32>
    %c0_89 = arith.constant 0 : index
    %c0_90 = arith.constant 0 : index
    %c0_91 = arith.constant 0 : index
    %327 = vector.load %arg10[%c0_89, %c0_90, %c0_91] : memref<1x48x48xbf16, #tpu.memory_space<vmem>>, vector<1x48x48xbf16>
    %328 = vector.shape_cast %327 : vector<1x48x48xbf16> to vector<48x48xbf16>
    %329 = arith.truncf %326 : vector<8x48xf32> to vector<8x48xbf16>
    %cst_92 = arith.constant dense<0.000000e+00> : vector<8x48xf32>
    %330 = tpu.matmul %329, %328, %cst_92 {dimension_numbers = #tpu.dot_dimension_numbers<[1], [0], [0], [1], [0, 0, 1, 1], [], []>} : vector<8x48xbf16>, vector<48x48xbf16>, vector<8x48xf32> -> vector<8x48xf32>
    %c0_93 = arith.constant 0 : index
    %c0_94 = arith.constant 0 : index
    %c0_95 = arith.constant 0 : index
    %331 = vector.load %arg11[%c0_93, %c0_94, %c0_95] : memref<1x1x48xf32, #tpu.memory_space<vmem>>, vector<1x1x48xf32>
    %332 = vector.shape_cast %331 : vector<1x1x48xf32> to vector<1x48xf32>
    %333 = vector.broadcast %332 : vector<1x48xf32> to vector<8x48xf32>
    %334 = arith.addf %330, %333 : vector<8x48xf32>
    %c0_96 = arith.constant 0 : index
    %c0_97 = arith.constant 0 : index
    %c0_98 = arith.constant 0 : index
    %335 = vector.load %arg12[%c0_96, %c0_97, %c0_98] : memref<1x48x96xbf16, #tpu.memory_space<vmem>>, vector<1x48x96xbf16>
    %336 = vector.shape_cast %335 : vector<1x48x96xbf16> to vector<48x96xbf16>
    %cst_99 = arith.constant dense<0.000000e+00> : vector<32x96xf32>
    %337 = tpu.matmul %5, %336, %cst_99 {dimension_numbers = #tpu.dot_dimension_numbers<[1], [0], [0], [1], [0, 0, 1, 1], [], []>} : vector<32x48xbf16>, vector<48x96xbf16>, vector<32x96xf32> -> vector<32x96xf32>
    %c0_100 = arith.constant 0 : index
    %c0_101 = arith.constant 0 : index
    %c0_102 = arith.constant 0 : index
    %338 = vector.load %arg13[%c0_100, %c0_101, %c0_102] : memref<1x1x96xf32, #tpu.memory_space<vmem>>, vector<1x1x96xf32>
    %339 = vector.shape_cast %338 : vector<1x1x96xf32> to vector<1x96xf32>
    %340 = vector.broadcast %339 : vector<1x96xf32> to vector<32x96xf32>
    %341 = arith.addf %337, %340 : vector<32x96xf32>
    %342 = vector.extract_strided_slice %341 {offsets = [0, 0], sizes = [32, 48], strides = [1, 1]} : vector<32x96xf32> to vector<32x48xf32>
    %343 = vector.extract_strided_slice %341 {offsets = [0, 48], sizes = [32, 48], strides = [1, 1]} : vector<32x96xf32> to vector<32x48xf32>
    %c0_103 = arith.constant 0 : index
    %c0_104 = arith.constant 0 : index
    %c0_105 = arith.constant 0 : index
    %344 = vector.load %arg14[%c0_103, %c0_104, %c0_105] : memref<1x48x48xbf16, #tpu.memory_space<vmem>>, vector<1x48x48xbf16>
    %345 = vector.shape_cast %344 : vector<1x48x48xbf16> to vector<48x48xbf16>
    %c0_106 = arith.constant 0 : index
    %c0_107 = arith.constant 0 : index
    %c0_108 = arith.constant 0 : index
    %346 = vector.load %arg15[%c0_106, %c0_107, %c0_108] : memref<1x1x48xf32, #tpu.memory_space<vmem>>, vector<1x1x48xf32>
    %347 = vector.shape_cast %346 : vector<1x1x48xf32> to vector<1x48xf32>
    %cst_109 = arith.constant 0.000000e+00 : f32
    %348 = vector.broadcast %cst_109 : f32 to vector<8x48xf32>
    %349 = vector.extract_strided_slice %334 {offsets = [0, 0], sizes = [8, 4], strides = [1, 1]} : vector<8x48xf32> to vector<8x4xf32>
    %350 = vector.extract_strided_slice %342 {offsets = [0, 0], sizes = [32, 4], strides = [1, 1]} : vector<32x48xf32> to vector<32x4xf32>
    %351 = arith.truncf %349 : vector<8x4xf32> to vector<8x4xbf16>
    %352 = arith.truncf %350 : vector<32x4xf32> to vector<32x4xbf16>
    %cst_110 = arith.constant dense<0.000000e+00> : vector<8x32xf32>
    %353 = tpu.matmul %351, %352, %cst_110 {dimension_numbers = #tpu.dot_dimension_numbers<[1], [1], [0], [0], [0, 0, 1, 0], [], []>} : vector<8x4xbf16>, vector<32x4xbf16>, vector<8x32xf32> -> vector<8x32xf32>
    %cst_111 = arith.constant dense<0xFF800000> : vector<8xf32>
    %354 = vector.multi_reduction <maximumf>, %353, %cst_111 [1] : vector<8x32xf32> to vector<8xf32>
    %355 = vector.shape_cast %354 : vector<8xf32> to vector<8x1xf32>
    %356 = vector.broadcast %355 : vector<8x1xf32> to vector<8x32xf32>
    %357 = arith.subf %353, %356 : vector<8x32xf32>
    %358 = math.exp %357 : vector<8x32xf32>
    %cst_112 = arith.constant dense<0.000000e+00> : vector<8xf32>
    %359 = vector.multi_reduction <add>, %358, %cst_112 [1] : vector<8x32xf32> to vector<8xf32>
    %360 = vector.shape_cast %359 : vector<8xf32> to vector<8x1xf32>
    %361 = tpu.reciprocal %360 {approx = true} : vector<8x1xf32> -> vector<8x1xf32>
    %362 = vector.broadcast %361 : vector<8x1xf32> to vector<8x32xf32>
    %363 = arith.mulf %358, %362 : vector<8x32xf32>
    %364 = vector.extract_strided_slice %343 {offsets = [0, 0], sizes = [32, 4], strides = [1, 1]} : vector<32x48xf32> to vector<32x4xf32>
    %365 = arith.truncf %363 : vector<8x32xf32> to vector<8x32xbf16>
    %366 = arith.truncf %364 : vector<32x4xf32> to vector<32x4xbf16>
    %cst_113 = arith.constant dense<0.000000e+00> : vector<8x4xf32>
    %367 = tpu.matmul %365, %366, %cst_113 {dimension_numbers = #tpu.dot_dimension_numbers<[1], [0], [0], [1], [0, 0, 1, 1], [], []>} : vector<8x32xbf16>, vector<32x4xbf16>, vector<8x4xf32> -> vector<8x4xf32>
    %368 = vector.extract_strided_slice %345 {offsets = [0, 0], sizes = [4, 48], strides = [1, 1]} : vector<48x48xbf16> to vector<4x48xbf16>
    %369 = arith.truncf %367 : vector<8x4xf32> to vector<8x4xbf16>
    %cst_114 = arith.constant dense<0.000000e+00> : vector<8x48xf32>
    %370 = tpu.matmul %369, %368, %cst_114 {dimension_numbers = #tpu.dot_dimension_numbers<[1], [0], [0], [1], [0, 0, 1, 1], [], []>} : vector<8x4xbf16>, vector<4x48xbf16>, vector<8x48xf32> -> vector<8x48xf32>
    %371 = arith.addf %348, %370 : vector<8x48xf32>
    %372 = vector.extract_strided_slice %334 {offsets = [0, 4], sizes = [8, 4], strides = [1, 1]} : vector<8x48xf32> to vector<8x4xf32>
    %373 = vector.extract_strided_slice %342 {offsets = [0, 4], sizes = [32, 4], strides = [1, 1]} : vector<32x48xf32> to vector<32x4xf32>
    %374 = arith.truncf %372 : vector<8x4xf32> to vector<8x4xbf16>
    %375 = arith.truncf %373 : vector<32x4xf32> to vector<32x4xbf16>
    %cst_115 = arith.constant dense<0.000000e+00> : vector<8x32xf32>
    %376 = tpu.matmul %374, %375, %cst_115 {dimension_numbers = #tpu.dot_dimension_numbers<[1], [1], [0], [0], [0, 0, 1, 0], [], []>} : vector<8x4xbf16>, vector<32x4xbf16>, vector<8x32xf32> -> vector<8x32xf32>
    %cst_116 = arith.constant dense<0xFF800000> : vector<8xf32>
    %377 = vector.multi_reduction <maximumf>, %376, %cst_116 [1] : vector<8x32xf32> to vector<8xf32>
    %378 = vector.shape_cast %377 : vector<8xf32> to vector<8x1xf32>
    %379 = vector.broadcast %378 : vector<8x1xf32> to vector<8x32xf32>
    %380 = arith.subf %376, %379 : vector<8x32xf32>
    %381 = math.exp %380 : vector<8x32xf32>
    %cst_117 = arith.constant dense<0.000000e+00> : vector<8xf32>
    %382 = vector.multi_reduction <add>, %381, %cst_117 [1] : vector<8x32xf32> to vector<8xf32>
    %383 = vector.shape_cast %382 : vector<8xf32> to vector<8x1xf32>
    %384 = tpu.reciprocal %383 {approx = true} : vector<8x1xf32> -> vector<8x1xf32>
    %385 = vector.broadcast %384 : vector<8x1xf32> to vector<8x32xf32>
    %386 = arith.mulf %381, %385 : vector<8x32xf32>
    %387 = vector.extract_strided_slice %343 {offsets = [0, 4], sizes = [32, 4], strides = [1, 1]} : vector<32x48xf32> to vector<32x4xf32>
    %388 = arith.truncf %386 : vector<8x32xf32> to vector<8x32xbf16>
    %389 = arith.truncf %387 : vector<32x4xf32> to vector<32x4xbf16>
    %cst_118 = arith.constant dense<0.000000e+00> : vector<8x4xf32>
    %390 = tpu.matmul %388, %389, %cst_118 {dimension_numbers = #tpu.dot_dimension_numbers<[1], [0], [0], [1], [0, 0, 1, 1], [], []>} : vector<8x32xbf16>, vector<32x4xbf16>, vector<8x4xf32> -> vector<8x4xf32>
    %391 = vector.extract_strided_slice %345 {offsets = [4, 0], sizes = [4, 48], strides = [1, 1]} : vector<48x48xbf16> to vector<4x48xbf16>
    %392 = arith.truncf %390 : vector<8x4xf32> to vector<8x4xbf16>
    %cst_119 = arith.constant dense<0.000000e+00> : vector<8x48xf32>
    %393 = tpu.matmul %392, %391, %cst_119 {dimension_numbers = #tpu.dot_dimension_numbers<[1], [0], [0], [1], [0, 0, 1, 1], [], []>} : vector<8x4xbf16>, vector<4x48xbf16>, vector<8x48xf32> -> vector<8x48xf32>
    %394 = arith.addf %371, %393 : vector<8x48xf32>
    %395 = vector.extract_strided_slice %334 {offsets = [0, 8], sizes = [8, 4], strides = [1, 1]} : vector<8x48xf32> to vector<8x4xf32>
    %396 = vector.extract_strided_slice %342 {offsets = [0, 8], sizes = [32, 4], strides = [1, 1]} : vector<32x48xf32> to vector<32x4xf32>
    %397 = arith.truncf %395 : vector<8x4xf32> to vector<8x4xbf16>
    %398 = arith.truncf %396 : vector<32x4xf32> to vector<32x4xbf16>
    %cst_120 = arith.constant dense<0.000000e+00> : vector<8x32xf32>
    %399 = tpu.matmul %397, %398, %cst_120 {dimension_numbers = #tpu.dot_dimension_numbers<[1], [1], [0], [0], [0, 0, 1, 0], [], []>} : vector<8x4xbf16>, vector<32x4xbf16>, vector<8x32xf32> -> vector<8x32xf32>
    %cst_121 = arith.constant dense<0xFF800000> : vector<8xf32>
    %400 = vector.multi_reduction <maximumf>, %399, %cst_121 [1] : vector<8x32xf32> to vector<8xf32>
    %401 = vector.shape_cast %400 : vector<8xf32> to vector<8x1xf32>
    %402 = vector.broadcast %401 : vector<8x1xf32> to vector<8x32xf32>
    %403 = arith.subf %399, %402 : vector<8x32xf32>
    %404 = math.exp %403 : vector<8x32xf32>
    %cst_122 = arith.constant dense<0.000000e+00> : vector<8xf32>
    %405 = vector.multi_reduction <add>, %404, %cst_122 [1] : vector<8x32xf32> to vector<8xf32>
    %406 = vector.shape_cast %405 : vector<8xf32> to vector<8x1xf32>
    %407 = tpu.reciprocal %406 {approx = true} : vector<8x1xf32> -> vector<8x1xf32>
    %408 = vector.broadcast %407 : vector<8x1xf32> to vector<8x32xf32>
    %409 = arith.mulf %404, %408 : vector<8x32xf32>
    %410 = vector.extract_strided_slice %343 {offsets = [0, 8], sizes = [32, 4], strides = [1, 1]} : vector<32x48xf32> to vector<32x4xf32>
    %411 = arith.truncf %409 : vector<8x32xf32> to vector<8x32xbf16>
    %412 = arith.truncf %410 : vector<32x4xf32> to vector<32x4xbf16>
    %cst_123 = arith.constant dense<0.000000e+00> : vector<8x4xf32>
    %413 = tpu.matmul %411, %412, %cst_123 {dimension_numbers = #tpu.dot_dimension_numbers<[1], [0], [0], [1], [0, 0, 1, 1], [], []>} : vector<8x32xbf16>, vector<32x4xbf16>, vector<8x4xf32> -> vector<8x4xf32>
    %414 = vector.extract_strided_slice %345 {offsets = [8, 0], sizes = [4, 48], strides = [1, 1]} : vector<48x48xbf16> to vector<4x48xbf16>
    %415 = arith.truncf %413 : vector<8x4xf32> to vector<8x4xbf16>
    %cst_124 = arith.constant dense<0.000000e+00> : vector<8x48xf32>
    %416 = tpu.matmul %415, %414, %cst_124 {dimension_numbers = #tpu.dot_dimension_numbers<[1], [0], [0], [1], [0, 0, 1, 1], [], []>} : vector<8x4xbf16>, vector<4x48xbf16>, vector<8x48xf32> -> vector<8x48xf32>
    %417 = arith.addf %394, %416 : vector<8x48xf32>
    %418 = vector.extract_strided_slice %334 {offsets = [0, 12], sizes = [8, 4], strides = [1, 1]} : vector<8x48xf32> to vector<8x4xf32>
    %419 = vector.extract_strided_slice %342 {offsets = [0, 12], sizes = [32, 4], strides = [1, 1]} : vector<32x48xf32> to vector<32x4xf32>
    %420 = arith.truncf %418 : vector<8x4xf32> to vector<8x4xbf16>
    %421 = arith.truncf %419 : vector<32x4xf32> to vector<32x4xbf16>
    %cst_125 = arith.constant dense<0.000000e+00> : vector<8x32xf32>
    %422 = tpu.matmul %420, %421, %cst_125 {dimension_numbers = #tpu.dot_dimension_numbers<[1], [1], [0], [0], [0, 0, 1, 0], [], []>} : vector<8x4xbf16>, vector<32x4xbf16>, vector<8x32xf32> -> vector<8x32xf32>
    %cst_126 = arith.constant dense<0xFF800000> : vector<8xf32>
    %423 = vector.multi_reduction <maximumf>, %422, %cst_126 [1] : vector<8x32xf32> to vector<8xf32>
    %424 = vector.shape_cast %423 : vector<8xf32> to vector<8x1xf32>
    %425 = vector.broadcast %424 : vector<8x1xf32> to vector<8x32xf32>
    %426 = arith.subf %422, %425 : vector<8x32xf32>
    %427 = math.exp %426 : vector<8x32xf32>
    %cst_127 = arith.constant dense<0.000000e+00> : vector<8xf32>
    %428 = vector.multi_reduction <add>, %427, %cst_127 [1] : vector<8x32xf32> to vector<8xf32>
    %429 = vector.shape_cast %428 : vector<8xf32> to vector<8x1xf32>
    %430 = tpu.reciprocal %429 {approx = true} : vector<8x1xf32> -> vector<8x1xf32>
    %431 = vector.broadcast %430 : vector<8x1xf32> to vector<8x32xf32>
    %432 = arith.mulf %427, %431 : vector<8x32xf32>
    %433 = vector.extract_strided_slice %343 {offsets = [0, 12], sizes = [32, 4], strides = [1, 1]} : vector<32x48xf32> to vector<32x4xf32>
    %434 = arith.truncf %432 : vector<8x32xf32> to vector<8x32xbf16>
    %435 = arith.truncf %433 : vector<32x4xf32> to vector<32x4xbf16>
    %cst_128 = arith.constant dense<0.000000e+00> : vector<8x4xf32>
    %436 = tpu.matmul %434, %435, %cst_128 {dimension_numbers = #tpu.dot_dimension_numbers<[1], [0], [0], [1], [0, 0, 1, 1], [], []>} : vector<8x32xbf16>, vector<32x4xbf16>, vector<8x4xf32> -> vector<8x4xf32>
    %437 = vector.extract_strided_slice %345 {offsets = [12, 0], sizes = [4, 48], strides = [1, 1]} : vector<48x48xbf16> to vector<4x48xbf16>
    %438 = arith.truncf %436 : vector<8x4xf32> to vector<8x4xbf16>
    %cst_129 = arith.constant dense<0.000000e+00> : vector<8x48xf32>
    %439 = tpu.matmul %438, %437, %cst_129 {dimension_numbers = #tpu.dot_dimension_numbers<[1], [0], [0], [1], [0, 0, 1, 1], [], []>} : vector<8x4xbf16>, vector<4x48xbf16>, vector<8x48xf32> -> vector<8x48xf32>
    %440 = arith.addf %417, %439 : vector<8x48xf32>
    %441 = vector.extract_strided_slice %334 {offsets = [0, 16], sizes = [8, 4], strides = [1, 1]} : vector<8x48xf32> to vector<8x4xf32>
    %442 = vector.extract_strided_slice %342 {offsets = [0, 16], sizes = [32, 4], strides = [1, 1]} : vector<32x48xf32> to vector<32x4xf32>
    %443 = arith.truncf %441 : vector<8x4xf32> to vector<8x4xbf16>
    %444 = arith.truncf %442 : vector<32x4xf32> to vector<32x4xbf16>
    %cst_130 = arith.constant dense<0.000000e+00> : vector<8x32xf32>
    %445 = tpu.matmul %443, %444, %cst_130 {dimension_numbers = #tpu.dot_dimension_numbers<[1], [1], [0], [0], [0, 0, 1, 0], [], []>} : vector<8x4xbf16>, vector<32x4xbf16>, vector<8x32xf32> -> vector<8x32xf32>
    %cst_131 = arith.constant dense<0xFF800000> : vector<8xf32>
    %446 = vector.multi_reduction <maximumf>, %445, %cst_131 [1] : vector<8x32xf32> to vector<8xf32>
    %447 = vector.shape_cast %446 : vector<8xf32> to vector<8x1xf32>
    %448 = vector.broadcast %447 : vector<8x1xf32> to vector<8x32xf32>
    %449 = arith.subf %445, %448 : vector<8x32xf32>
    %450 = math.exp %449 : vector<8x32xf32>
    %cst_132 = arith.constant dense<0.000000e+00> : vector<8xf32>
    %451 = vector.multi_reduction <add>, %450, %cst_132 [1] : vector<8x32xf32> to vector<8xf32>
    %452 = vector.shape_cast %451 : vector<8xf32> to vector<8x1xf32>
    %453 = tpu.reciprocal %452 {approx = true} : vector<8x1xf32> -> vector<8x1xf32>
    %454 = vector.broadcast %453 : vector<8x1xf32> to vector<8x32xf32>
    %455 = arith.mulf %450, %454 : vector<8x32xf32>
    %456 = vector.extract_strided_slice %343 {offsets = [0, 16], sizes = [32, 4], strides = [1, 1]} : vector<32x48xf32> to vector<32x4xf32>
    %457 = arith.truncf %455 : vector<8x32xf32> to vector<8x32xbf16>
    %458 = arith.truncf %456 : vector<32x4xf32> to vector<32x4xbf16>
    %cst_133 = arith.constant dense<0.000000e+00> : vector<8x4xf32>
    %459 = tpu.matmul %457, %458, %cst_133 {dimension_numbers = #tpu.dot_dimension_numbers<[1], [0], [0], [1], [0, 0, 1, 1], [], []>} : vector<8x32xbf16>, vector<32x4xbf16>, vector<8x4xf32> -> vector<8x4xf32>
    %460 = vector.extract_strided_slice %345 {offsets = [16, 0], sizes = [4, 48], strides = [1, 1]} : vector<48x48xbf16> to vector<4x48xbf16>
    %461 = arith.truncf %459 : vector<8x4xf32> to vector<8x4xbf16>
    %cst_134 = arith.constant dense<0.000000e+00> : vector<8x48xf32>
    %462 = tpu.matmul %461, %460, %cst_134 {dimension_numbers = #tpu.dot_dimension_numbers<[1], [0], [0], [1], [0, 0, 1, 1], [], []>} : vector<8x4xbf16>, vector<4x48xbf16>, vector<8x48xf32> -> vector<8x48xf32>
    %463 = arith.addf %440, %462 : vector<8x48xf32>
    %464 = vector.extract_strided_slice %334 {offsets = [0, 20], sizes = [8, 4], strides = [1, 1]} : vector<8x48xf32> to vector<8x4xf32>
    %465 = vector.extract_strided_slice %342 {offsets = [0, 20], sizes = [32, 4], strides = [1, 1]} : vector<32x48xf32> to vector<32x4xf32>
    %466 = arith.truncf %464 : vector<8x4xf32> to vector<8x4xbf16>
    %467 = arith.truncf %465 : vector<32x4xf32> to vector<32x4xbf16>
    %cst_135 = arith.constant dense<0.000000e+00> : vector<8x32xf32>
    %468 = tpu.matmul %466, %467, %cst_135 {dimension_numbers = #tpu.dot_dimension_numbers<[1], [1], [0], [0], [0, 0, 1, 0], [], []>} : vector<8x4xbf16>, vector<32x4xbf16>, vector<8x32xf32> -> vector<8x32xf32>
    %cst_136 = arith.constant dense<0xFF800000> : vector<8xf32>
    %469 = vector.multi_reduction <maximumf>, %468, %cst_136 [1] : vector<8x32xf32> to vector<8xf32>
    %470 = vector.shape_cast %469 : vector<8xf32> to vector<8x1xf32>
    %471 = vector.broadcast %470 : vector<8x1xf32> to vector<8x32xf32>
    %472 = arith.subf %468, %471 : vector<8x32xf32>
    %473 = math.exp %472 : vector<8x32xf32>
    %cst_137 = arith.constant dense<0.000000e+00> : vector<8xf32>
    %474 = vector.multi_reduction <add>, %473, %cst_137 [1] : vector<8x32xf32> to vector<8xf32>
    %475 = vector.shape_cast %474 : vector<8xf32> to vector<8x1xf32>
    %476 = tpu.reciprocal %475 {approx = true} : vector<8x1xf32> -> vector<8x1xf32>
    %477 = vector.broadcast %476 : vector<8x1xf32> to vector<8x32xf32>
    %478 = arith.mulf %473, %477 : vector<8x32xf32>
    %479 = vector.extract_strided_slice %343 {offsets = [0, 20], sizes = [32, 4], strides = [1, 1]} : vector<32x48xf32> to vector<32x4xf32>
    %480 = arith.truncf %478 : vector<8x32xf32> to vector<8x32xbf16>
    %481 = arith.truncf %479 : vector<32x4xf32> to vector<32x4xbf16>
    %cst_138 = arith.constant dense<0.000000e+00> : vector<8x4xf32>
    %482 = tpu.matmul %480, %481, %cst_138 {dimension_numbers = #tpu.dot_dimension_numbers<[1], [0], [0], [1], [0, 0, 1, 1], [], []>} : vector<8x32xbf16>, vector<32x4xbf16>, vector<8x4xf32> -> vector<8x4xf32>
    %483 = vector.extract_strided_slice %345 {offsets = [20, 0], sizes = [4, 48], strides = [1, 1]} : vector<48x48xbf16> to vector<4x48xbf16>
    %484 = arith.truncf %482 : vector<8x4xf32> to vector<8x4xbf16>
    %cst_139 = arith.constant dense<0.000000e+00> : vector<8x48xf32>
    %485 = tpu.matmul %484, %483, %cst_139 {dimension_numbers = #tpu.dot_dimension_numbers<[1], [0], [0], [1], [0, 0, 1, 1], [], []>} : vector<8x4xbf16>, vector<4x48xbf16>, vector<8x48xf32> -> vector<8x48xf32>
    %486 = arith.addf %463, %485 : vector<8x48xf32>
    %487 = vector.extract_strided_slice %334 {offsets = [0, 24], sizes = [8, 4], strides = [1, 1]} : vector<8x48xf32> to vector<8x4xf32>
    %488 = vector.extract_strided_slice %342 {offsets = [0, 24], sizes = [32, 4], strides = [1, 1]} : vector<32x48xf32> to vector<32x4xf32>
    %489 = arith.truncf %487 : vector<8x4xf32> to vector<8x4xbf16>
    %490 = arith.truncf %488 : vector<32x4xf32> to vector<32x4xbf16>
    %cst_140 = arith.constant dense<0.000000e+00> : vector<8x32xf32>
    %491 = tpu.matmul %489, %490, %cst_140 {dimension_numbers = #tpu.dot_dimension_numbers<[1], [1], [0], [0], [0, 0, 1, 0], [], []>} : vector<8x4xbf16>, vector<32x4xbf16>, vector<8x32xf32> -> vector<8x32xf32>
    %cst_141 = arith.constant dense<0xFF800000> : vector<8xf32>
    %492 = vector.multi_reduction <maximumf>, %491, %cst_141 [1] : vector<8x32xf32> to vector<8xf32>
    %493 = vector.shape_cast %492 : vector<8xf32> to vector<8x1xf32>
    %494 = vector.broadcast %493 : vector<8x1xf32> to vector<8x32xf32>
    %495 = arith.subf %491, %494 : vector<8x32xf32>
    %496 = math.exp %495 : vector<8x32xf32>
    %cst_142 = arith.constant dense<0.000000e+00> : vector<8xf32>
    %497 = vector.multi_reduction <add>, %496, %cst_142 [1] : vector<8x32xf32> to vector<8xf32>
    %498 = vector.shape_cast %497 : vector<8xf32> to vector<8x1xf32>
    %499 = tpu.reciprocal %498 {approx = true} : vector<8x1xf32> -> vector<8x1xf32>
    %500 = vector.broadcast %499 : vector<8x1xf32> to vector<8x32xf32>
    %501 = arith.mulf %496, %500 : vector<8x32xf32>
    %502 = vector.extract_strided_slice %343 {offsets = [0, 24], sizes = [32, 4], strides = [1, 1]} : vector<32x48xf32> to vector<32x4xf32>
    %503 = arith.truncf %501 : vector<8x32xf32> to vector<8x32xbf16>
    %504 = arith.truncf %502 : vector<32x4xf32> to vector<32x4xbf16>
    %cst_143 = arith.constant dense<0.000000e+00> : vector<8x4xf32>
    %505 = tpu.matmul %503, %504, %cst_143 {dimension_numbers = #tpu.dot_dimension_numbers<[1], [0], [0], [1], [0, 0, 1, 1], [], []>} : vector<8x32xbf16>, vector<32x4xbf16>, vector<8x4xf32> -> vector<8x4xf32>
    %506 = vector.extract_strided_slice %345 {offsets = [24, 0], sizes = [4, 48], strides = [1, 1]} : vector<48x48xbf16> to vector<4x48xbf16>
    %507 = arith.truncf %505 : vector<8x4xf32> to vector<8x4xbf16>
    %cst_144 = arith.constant dense<0.000000e+00> : vector<8x48xf32>
    %508 = tpu.matmul %507, %506, %cst_144 {dimension_numbers = #tpu.dot_dimension_numbers<[1], [0], [0], [1], [0, 0, 1, 1], [], []>} : vector<8x4xbf16>, vector<4x48xbf16>, vector<8x48xf32> -> vector<8x48xf32>
    %509 = arith.addf %486, %508 : vector<8x48xf32>
    %510 = vector.extract_strided_slice %334 {offsets = [0, 28], sizes = [8, 4], strides = [1, 1]} : vector<8x48xf32> to vector<8x4xf32>
    %511 = vector.extract_strided_slice %342 {offsets = [0, 28], sizes = [32, 4], strides = [1, 1]} : vector<32x48xf32> to vector<32x4xf32>
    %512 = arith.truncf %510 : vector<8x4xf32> to vector<8x4xbf16>
    %513 = arith.truncf %511 : vector<32x4xf32> to vector<32x4xbf16>
    %cst_145 = arith.constant dense<0.000000e+00> : vector<8x32xf32>
    %514 = tpu.matmul %512, %513, %cst_145 {dimension_numbers = #tpu.dot_dimension_numbers<[1], [1], [0], [0], [0, 0, 1, 0], [], []>} : vector<8x4xbf16>, vector<32x4xbf16>, vector<8x32xf32> -> vector<8x32xf32>
    %cst_146 = arith.constant dense<0xFF800000> : vector<8xf32>
    %515 = vector.multi_reduction <maximumf>, %514, %cst_146 [1] : vector<8x32xf32> to vector<8xf32>
    %516 = vector.shape_cast %515 : vector<8xf32> to vector<8x1xf32>
    %517 = vector.broadcast %516 : vector<8x1xf32> to vector<8x32xf32>
    %518 = arith.subf %514, %517 : vector<8x32xf32>
    %519 = math.exp %518 : vector<8x32xf32>
    %cst_147 = arith.constant dense<0.000000e+00> : vector<8xf32>
    %520 = vector.multi_reduction <add>, %519, %cst_147 [1] : vector<8x32xf32> to vector<8xf32>
    %521 = vector.shape_cast %520 : vector<8xf32> to vector<8x1xf32>
    %522 = tpu.reciprocal %521 {approx = true} : vector<8x1xf32> -> vector<8x1xf32>
    %523 = vector.broadcast %522 : vector<8x1xf32> to vector<8x32xf32>
    %524 = arith.mulf %519, %523 : vector<8x32xf32>
    %525 = vector.extract_strided_slice %343 {offsets = [0, 28], sizes = [32, 4], strides = [1, 1]} : vector<32x48xf32> to vector<32x4xf32>
    %526 = arith.truncf %524 : vector<8x32xf32> to vector<8x32xbf16>
    %527 = arith.truncf %525 : vector<32x4xf32> to vector<32x4xbf16>
    %cst_148 = arith.constant dense<0.000000e+00> : vector<8x4xf32>
    %528 = tpu.matmul %526, %527, %cst_148 {dimension_numbers = #tpu.dot_dimension_numbers<[1], [0], [0], [1], [0, 0, 1, 1], [], []>} : vector<8x32xbf16>, vector<32x4xbf16>, vector<8x4xf32> -> vector<8x4xf32>
    %529 = vector.extract_strided_slice %345 {offsets = [28, 0], sizes = [4, 48], strides = [1, 1]} : vector<48x48xbf16> to vector<4x48xbf16>
    %530 = arith.truncf %528 : vector<8x4xf32> to vector<8x4xbf16>
    %cst_149 = arith.constant dense<0.000000e+00> : vector<8x48xf32>
    %531 = tpu.matmul %530, %529, %cst_149 {dimension_numbers = #tpu.dot_dimension_numbers<[1], [0], [0], [1], [0, 0, 1, 1], [], []>} : vector<8x4xbf16>, vector<4x48xbf16>, vector<8x48xf32> -> vector<8x48xf32>
    %532 = arith.addf %509, %531 : vector<8x48xf32>
    %533 = vector.extract_strided_slice %334 {offsets = [0, 32], sizes = [8, 4], strides = [1, 1]} : vector<8x48xf32> to vector<8x4xf32>
    %534 = vector.extract_strided_slice %342 {offsets = [0, 32], sizes = [32, 4], strides = [1, 1]} : vector<32x48xf32> to vector<32x4xf32>
    %535 = arith.truncf %533 : vector<8x4xf32> to vector<8x4xbf16>
    %536 = arith.truncf %534 : vector<32x4xf32> to vector<32x4xbf16>
    %cst_150 = arith.constant dense<0.000000e+00> : vector<8x32xf32>
    %537 = tpu.matmul %535, %536, %cst_150 {dimension_numbers = #tpu.dot_dimension_numbers<[1], [1], [0], [0], [0, 0, 1, 0], [], []>} : vector<8x4xbf16>, vector<32x4xbf16>, vector<8x32xf32> -> vector<8x32xf32>
    %cst_151 = arith.constant dense<0xFF800000> : vector<8xf32>
    %538 = vector.multi_reduction <maximumf>, %537, %cst_151 [1] : vector<8x32xf32> to vector<8xf32>
    %539 = vector.shape_cast %538 : vector<8xf32> to vector<8x1xf32>
    %540 = vector.broadcast %539 : vector<8x1xf32> to vector<8x32xf32>
    %541 = arith.subf %537, %540 : vector<8x32xf32>
    %542 = math.exp %541 : vector<8x32xf32>
    %cst_152 = arith.constant dense<0.000000e+00> : vector<8xf32>
    %543 = vector.multi_reduction <add>, %542, %cst_152 [1] : vector<8x32xf32> to vector<8xf32>
    %544 = vector.shape_cast %543 : vector<8xf32> to vector<8x1xf32>
    %545 = tpu.reciprocal %544 {approx = true} : vector<8x1xf32> -> vector<8x1xf32>
    %546 = vector.broadcast %545 : vector<8x1xf32> to vector<8x32xf32>
    %547 = arith.mulf %542, %546 : vector<8x32xf32>
    %548 = vector.extract_strided_slice %343 {offsets = [0, 32], sizes = [32, 4], strides = [1, 1]} : vector<32x48xf32> to vector<32x4xf32>
    %549 = arith.truncf %547 : vector<8x32xf32> to vector<8x32xbf16>
    %550 = arith.truncf %548 : vector<32x4xf32> to vector<32x4xbf16>
    %cst_153 = arith.constant dense<0.000000e+00> : vector<8x4xf32>
    %551 = tpu.matmul %549, %550, %cst_153 {dimension_numbers = #tpu.dot_dimension_numbers<[1], [0], [0], [1], [0, 0, 1, 1], [], []>} : vector<8x32xbf16>, vector<32x4xbf16>, vector<8x4xf32> -> vector<8x4xf32>
    %552 = vector.extract_strided_slice %345 {offsets = [32, 0], sizes = [4, 48], strides = [1, 1]} : vector<48x48xbf16> to vector<4x48xbf16>
    %553 = arith.truncf %551 : vector<8x4xf32> to vector<8x4xbf16>
    %cst_154 = arith.constant dense<0.000000e+00> : vector<8x48xf32>
    %554 = tpu.matmul %553, %552, %cst_154 {dimension_numbers = #tpu.dot_dimension_numbers<[1], [0], [0], [1], [0, 0, 1, 1], [], []>} : vector<8x4xbf16>, vector<4x48xbf16>, vector<8x48xf32> -> vector<8x48xf32>
    %555 = arith.addf %532, %554 : vector<8x48xf32>
    %556 = vector.extract_strided_slice %334 {offsets = [0, 36], sizes = [8, 4], strides = [1, 1]} : vector<8x48xf32> to vector<8x4xf32>
    %557 = vector.extract_strided_slice %342 {offsets = [0, 36], sizes = [32, 4], strides = [1, 1]} : vector<32x48xf32> to vector<32x4xf32>
    %558 = arith.truncf %556 : vector<8x4xf32> to vector<8x4xbf16>
    %559 = arith.truncf %557 : vector<32x4xf32> to vector<32x4xbf16>
    %cst_155 = arith.constant dense<0.000000e+00> : vector<8x32xf32>
    %560 = tpu.matmul %558, %559, %cst_155 {dimension_numbers = #tpu.dot_dimension_numbers<[1], [1], [0], [0], [0, 0, 1, 0], [], []>} : vector<8x4xbf16>, vector<32x4xbf16>, vector<8x32xf32> -> vector<8x32xf32>
    %cst_156 = arith.constant dense<0xFF800000> : vector<8xf32>
    %561 = vector.multi_reduction <maximumf>, %560, %cst_156 [1] : vector<8x32xf32> to vector<8xf32>
    %562 = vector.shape_cast %561 : vector<8xf32> to vector<8x1xf32>
    %563 = vector.broadcast %562 : vector<8x1xf32> to vector<8x32xf32>
    %564 = arith.subf %560, %563 : vector<8x32xf32>
    %565 = math.exp %564 : vector<8x32xf32>
    %cst_157 = arith.constant dense<0.000000e+00> : vector<8xf32>
    %566 = vector.multi_reduction <add>, %565, %cst_157 [1] : vector<8x32xf32> to vector<8xf32>
    %567 = vector.shape_cast %566 : vector<8xf32> to vector<8x1xf32>
    %568 = tpu.reciprocal %567 {approx = true} : vector<8x1xf32> -> vector<8x1xf32>
    %569 = vector.broadcast %568 : vector<8x1xf32> to vector<8x32xf32>
    %570 = arith.mulf %565, %569 : vector<8x32xf32>
    %571 = vector.extract_strided_slice %343 {offsets = [0, 36], sizes = [32, 4], strides = [1, 1]} : vector<32x48xf32> to vector<32x4xf32>
    %572 = arith.truncf %570 : vector<8x32xf32> to vector<8x32xbf16>
    %573 = arith.truncf %571 : vector<32x4xf32> to vector<32x4xbf16>
    %cst_158 = arith.constant dense<0.000000e+00> : vector<8x4xf32>
    %574 = tpu.matmul %572, %573, %cst_158 {dimension_numbers = #tpu.dot_dimension_numbers<[1], [0], [0], [1], [0, 0, 1, 1], [], []>} : vector<8x32xbf16>, vector<32x4xbf16>, vector<8x4xf32> -> vector<8x4xf32>
    %575 = vector.extract_strided_slice %345 {offsets = [36, 0], sizes = [4, 48], strides = [1, 1]} : vector<48x48xbf16> to vector<4x48xbf16>
    %576 = arith.truncf %574 : vector<8x4xf32> to vector<8x4xbf16>
    %cst_159 = arith.constant dense<0.000000e+00> : vector<8x48xf32>
    %577 = tpu.matmul %576, %575, %cst_159 {dimension_numbers = #tpu.dot_dimension_numbers<[1], [0], [0], [1], [0, 0, 1, 1], [], []>} : vector<8x4xbf16>, vector<4x48xbf16>, vector<8x48xf32> -> vector<8x48xf32>
    %578 = arith.addf %555, %577 : vector<8x48xf32>
    %579 = vector.extract_strided_slice %334 {offsets = [0, 40], sizes = [8, 4], strides = [1, 1]} : vector<8x48xf32> to vector<8x4xf32>
    %580 = vector.extract_strided_slice %342 {offsets = [0, 40], sizes = [32, 4], strides = [1, 1]} : vector<32x48xf32> to vector<32x4xf32>
    %581 = arith.truncf %579 : vector<8x4xf32> to vector<8x4xbf16>
    %582 = arith.truncf %580 : vector<32x4xf32> to vector<32x4xbf16>
    %cst_160 = arith.constant dense<0.000000e+00> : vector<8x32xf32>
    %583 = tpu.matmul %581, %582, %cst_160 {dimension_numbers = #tpu.dot_dimension_numbers<[1], [1], [0], [0], [0, 0, 1, 0], [], []>} : vector<8x4xbf16>, vector<32x4xbf16>, vector<8x32xf32> -> vector<8x32xf32>
    %cst_161 = arith.constant dense<0xFF800000> : vector<8xf32>
    %584 = vector.multi_reduction <maximumf>, %583, %cst_161 [1] : vector<8x32xf32> to vector<8xf32>
    %585 = vector.shape_cast %584 : vector<8xf32> to vector<8x1xf32>
    %586 = vector.broadcast %585 : vector<8x1xf32> to vector<8x32xf32>
    %587 = arith.subf %583, %586 : vector<8x32xf32>
    %588 = math.exp %587 : vector<8x32xf32>
    %cst_162 = arith.constant dense<0.000000e+00> : vector<8xf32>
    %589 = vector.multi_reduction <add>, %588, %cst_162 [1] : vector<8x32xf32> to vector<8xf32>
    %590 = vector.shape_cast %589 : vector<8xf32> to vector<8x1xf32>
    %591 = tpu.reciprocal %590 {approx = true} : vector<8x1xf32> -> vector<8x1xf32>
    %592 = vector.broadcast %591 : vector<8x1xf32> to vector<8x32xf32>
    %593 = arith.mulf %588, %592 : vector<8x32xf32>
    %594 = vector.extract_strided_slice %343 {offsets = [0, 40], sizes = [32, 4], strides = [1, 1]} : vector<32x48xf32> to vector<32x4xf32>
    %595 = arith.truncf %593 : vector<8x32xf32> to vector<8x32xbf16>
    %596 = arith.truncf %594 : vector<32x4xf32> to vector<32x4xbf16>
    %cst_163 = arith.constant dense<0.000000e+00> : vector<8x4xf32>
    %597 = tpu.matmul %595, %596, %cst_163 {dimension_numbers = #tpu.dot_dimension_numbers<[1], [0], [0], [1], [0, 0, 1, 1], [], []>} : vector<8x32xbf16>, vector<32x4xbf16>, vector<8x4xf32> -> vector<8x4xf32>
    %598 = vector.extract_strided_slice %345 {offsets = [40, 0], sizes = [4, 48], strides = [1, 1]} : vector<48x48xbf16> to vector<4x48xbf16>
    %599 = arith.truncf %597 : vector<8x4xf32> to vector<8x4xbf16>
    %cst_164 = arith.constant dense<0.000000e+00> : vector<8x48xf32>
    %600 = tpu.matmul %599, %598, %cst_164 {dimension_numbers = #tpu.dot_dimension_numbers<[1], [0], [0], [1], [0, 0, 1, 1], [], []>} : vector<8x4xbf16>, vector<4x48xbf16>, vector<8x48xf32> -> vector<8x48xf32>
    %601 = arith.addf %578, %600 : vector<8x48xf32>
    %602 = vector.extract_strided_slice %334 {offsets = [0, 44], sizes = [8, 4], strides = [1, 1]} : vector<8x48xf32> to vector<8x4xf32>
    %603 = vector.extract_strided_slice %342 {offsets = [0, 44], sizes = [32, 4], strides = [1, 1]} : vector<32x48xf32> to vector<32x4xf32>
    %604 = arith.truncf %602 : vector<8x4xf32> to vector<8x4xbf16>
    %605 = arith.truncf %603 : vector<32x4xf32> to vector<32x4xbf16>
    %cst_165 = arith.constant dense<0.000000e+00> : vector<8x32xf32>
    %606 = tpu.matmul %604, %605, %cst_165 {dimension_numbers = #tpu.dot_dimension_numbers<[1], [1], [0], [0], [0, 0, 1, 0], [], []>} : vector<8x4xbf16>, vector<32x4xbf16>, vector<8x32xf32> -> vector<8x32xf32>
    %cst_166 = arith.constant dense<0xFF800000> : vector<8xf32>
    %607 = vector.multi_reduction <maximumf>, %606, %cst_166 [1] : vector<8x32xf32> to vector<8xf32>
    %608 = vector.shape_cast %607 : vector<8xf32> to vector<8x1xf32>
    %609 = vector.broadcast %608 : vector<8x1xf32> to vector<8x32xf32>
    %610 = arith.subf %606, %609 : vector<8x32xf32>
    %611 = math.exp %610 : vector<8x32xf32>
    %cst_167 = arith.constant dense<0.000000e+00> : vector<8xf32>
    %612 = vector.multi_reduction <add>, %611, %cst_167 [1] : vector<8x32xf32> to vector<8xf32>
    %613 = vector.shape_cast %612 : vector<8xf32> to vector<8x1xf32>
    %614 = tpu.reciprocal %613 {approx = true} : vector<8x1xf32> -> vector<8x1xf32>
    %615 = vector.broadcast %614 : vector<8x1xf32> to vector<8x32xf32>
    %616 = arith.mulf %611, %615 : vector<8x32xf32>
    %617 = vector.extract_strided_slice %343 {offsets = [0, 44], sizes = [32, 4], strides = [1, 1]} : vector<32x48xf32> to vector<32x4xf32>
    %618 = arith.truncf %616 : vector<8x32xf32> to vector<8x32xbf16>
    %619 = arith.truncf %617 : vector<32x4xf32> to vector<32x4xbf16>
    %cst_168 = arith.constant dense<0.000000e+00> : vector<8x4xf32>
    %620 = tpu.matmul %618, %619, %cst_168 {dimension_numbers = #tpu.dot_dimension_numbers<[1], [0], [0], [1], [0, 0, 1, 1], [], []>} : vector<8x32xbf16>, vector<32x4xbf16>, vector<8x4xf32> -> vector<8x4xf32>
    %621 = vector.extract_strided_slice %345 {offsets = [44, 0], sizes = [4, 48], strides = [1, 1]} : vector<48x48xbf16> to vector<4x48xbf16>
    %622 = arith.truncf %620 : vector<8x4xf32> to vector<8x4xbf16>
    %cst_169 = arith.constant dense<0.000000e+00> : vector<8x48xf32>
    %623 = tpu.matmul %622, %621, %cst_169 {dimension_numbers = #tpu.dot_dimension_numbers<[1], [0], [0], [1], [0, 0, 1, 1], [], []>} : vector<8x4xbf16>, vector<4x48xbf16>, vector<8x48xf32> -> vector<8x48xf32>
    %624 = arith.addf %601, %623 : vector<8x48xf32>
    %625 = vector.broadcast %347 : vector<1x48xf32> to vector<8x48xf32>
    %626 = arith.addf %624, %625 : vector<8x48xf32>
    %627 = arith.addf %326, %626 : vector<8x48xf32>
    %c0_170 = arith.constant 0 : index
    %c0_171 = arith.constant 0 : index
    %c0_172 = arith.constant 0 : index
    %628 = vector.load %arg16[%c0_170, %c0_171, %c0_172] : memref<1x1x48xf32, #tpu.memory_space<vmem>>, vector<1x1x48xf32>
    %629 = vector.shape_cast %628 : vector<1x1x48xf32> to vector<1x48xf32>
    %c0_173 = arith.constant 0 : index
    %c0_174 = arith.constant 0 : index
    %c0_175 = arith.constant 0 : index
    %630 = vector.load %arg17[%c0_173, %c0_174, %c0_175] : memref<1x1x48xf32, #tpu.memory_space<vmem>>, vector<1x1x48xf32>
    %631 = vector.shape_cast %630 : vector<1x1x48xf32> to vector<1x48xf32>
    %cst_176 = arith.constant dense<0.000000e+00> : vector<8xf32>
    %632 = vector.multi_reduction <add>, %627, %cst_176 [1] : vector<8x48xf32> to vector<8xf32>
    %633 = vector.shape_cast %632 : vector<8xf32> to vector<8x1xf32>
    %cst_177 = arith.constant 4.800000e+01 : f32
    %634 = vector.broadcast %cst_177 : f32 to vector<8x1xf32>
    %635 = arith.divf %633, %634 : vector<8x1xf32>
    %636 = vector.broadcast %635 : vector<8x1xf32> to vector<8x48xf32>
    %637 = arith.subf %627, %636 : vector<8x48xf32>
    %638 = arith.mulf %637, %637 : vector<8x48xf32>
    %cst_178 = arith.constant dense<0.000000e+00> : vector<8xf32>
    %639 = vector.multi_reduction <add>, %638, %cst_178 [1] : vector<8x48xf32> to vector<8xf32>
    %640 = vector.shape_cast %639 : vector<8xf32> to vector<8x1xf32>
    %cst_179 = arith.constant 4.800000e+01 : f32
    %641 = vector.broadcast %cst_179 : f32 to vector<8x1xf32>
    %642 = arith.divf %640, %641 : vector<8x1xf32>
    %643 = vector.broadcast %635 : vector<8x1xf32> to vector<8x48xf32>
    %644 = arith.subf %627, %643 : vector<8x48xf32>
    %cst_180 = arith.constant 9.99999974E-6 : f32
    %645 = vector.broadcast %cst_180 : f32 to vector<8x1xf32>
    %646 = arith.addf %642, %645 : vector<8x1xf32>
    %647 = math.rsqrt %646 : vector<8x1xf32>
    %648 = vector.broadcast %647 : vector<8x1xf32> to vector<8x48xf32>
    %649 = arith.mulf %644, %648 : vector<8x48xf32>
    %650 = vector.broadcast %629 : vector<1x48xf32> to vector<8x48xf32>
    %651 = arith.mulf %649, %650 : vector<8x48xf32>
    %652 = vector.broadcast %631 : vector<1x48xf32> to vector<8x48xf32>
    %653 = arith.addf %651, %652 : vector<8x48xf32>
    %c0_181 = arith.constant 0 : index
    %c0_182 = arith.constant 0 : index
    %c0_183 = arith.constant 0 : index
    %654 = vector.load %arg18[%c0_181, %c0_182, %c0_183] : memref<1x48x96xbf16, #tpu.memory_space<vmem>>, vector<1x48x96xbf16>
    %655 = vector.shape_cast %654 : vector<1x48x96xbf16> to vector<48x96xbf16>
    %656 = arith.truncf %653 : vector<8x48xf32> to vector<8x48xbf16>
    %cst_184 = arith.constant dense<0.000000e+00> : vector<8x96xf32>
    %657 = tpu.matmul %656, %655, %cst_184 {dimension_numbers = #tpu.dot_dimension_numbers<[1], [0], [0], [1], [0, 0, 1, 1], [], []>} : vector<8x48xbf16>, vector<48x96xbf16>, vector<8x96xf32> -> vector<8x96xf32>
    %c0_185 = arith.constant 0 : index
    %c0_186 = arith.constant 0 : index
    %c0_187 = arith.constant 0 : index
    %658 = vector.load %arg19[%c0_185, %c0_186, %c0_187] : memref<1x1x96xf32, #tpu.memory_space<vmem>>, vector<1x1x96xf32>
    %659 = vector.shape_cast %658 : vector<1x1x96xf32> to vector<1x96xf32>
    %660 = vector.broadcast %659 : vector<1x96xf32> to vector<8x96xf32>
    %661 = arith.addf %657, %660 : vector<8x96xf32>
    %662 = arith.mulf %661, %661 : vector<8x96xf32>
    %663 = arith.mulf %661, %662 : vector<8x96xf32>
    %cst_188 = arith.constant 4.471500e-02 : f32
    %664 = vector.broadcast %cst_188 : f32 to vector<8x96xf32>
    %665 = arith.mulf %664, %663 : vector<8x96xf32>
    %666 = arith.addf %661, %665 : vector<8x96xf32>
    %cst_189 = arith.constant 0.797884583 : f32
    %667 = vector.broadcast %cst_189 : f32 to vector<8x96xf32>
    %668 = arith.mulf %667, %666 : vector<8x96xf32>
    %669 = math.tanh %668 : vector<8x96xf32>
    %cst_190 = arith.constant 1.000000e+00 : f32
    %670 = vector.broadcast %cst_190 : f32 to vector<8x96xf32>
    %671 = arith.addf %670, %669 : vector<8x96xf32>
    %cst_191 = arith.constant 5.000000e-01 : f32
    %672 = vector.broadcast %cst_191 : f32 to vector<8x96xf32>
    %673 = arith.mulf %672, %671 : vector<8x96xf32>
    %674 = arith.mulf %661, %673 : vector<8x96xf32>
    %c0_192 = arith.constant 0 : index
    %c0_193 = arith.constant 0 : index
    %c0_194 = arith.constant 0 : index
    %675 = vector.load %arg20[%c0_192, %c0_193, %c0_194] : memref<1x96x48xbf16, #tpu.memory_space<vmem>>, vector<1x96x48xbf16>
    %676 = vector.shape_cast %675 : vector<1x96x48xbf16> to vector<96x48xbf16>
    %677 = arith.truncf %674 : vector<8x96xf32> to vector<8x96xbf16>
    %cst_195 = arith.constant dense<0.000000e+00> : vector<8x48xf32>
    %678 = tpu.matmul %677, %676, %cst_195 {dimension_numbers = #tpu.dot_dimension_numbers<[1], [0], [0], [1], [0, 0, 1, 1], [], []>} : vector<8x96xbf16>, vector<96x48xbf16>, vector<8x48xf32> -> vector<8x48xf32>
    %c0_196 = arith.constant 0 : index
    %c0_197 = arith.constant 0 : index
    %c0_198 = arith.constant 0 : index
    %679 = vector.load %arg21[%c0_196, %c0_197, %c0_198] : memref<1x1x48xf32, #tpu.memory_space<vmem>>, vector<1x1x48xf32>
    %680 = vector.shape_cast %679 : vector<1x1x48xf32> to vector<1x48xf32>
    %681 = vector.broadcast %680 : vector<1x48xf32> to vector<8x48xf32>
    %682 = arith.addf %678, %681 : vector<8x48xf32>
    %683 = arith.addf %653, %682 : vector<8x48xf32>
    %c0_199 = arith.constant 0 : index
    %c0_200 = arith.constant 0 : index
    %c0_201 = arith.constant 0 : index
    %684 = vector.load %arg22[%c0_199, %c0_200, %c0_201] : memref<1x1x48xf32, #tpu.memory_space<vmem>>, vector<1x1x48xf32>
    %685 = vector.shape_cast %684 : vector<1x1x48xf32> to vector<1x48xf32>
    %c0_202 = arith.constant 0 : index
    %c0_203 = arith.constant 0 : index
    %c0_204 = arith.constant 0 : index
    %686 = vector.load %arg23[%c0_202, %c0_203, %c0_204] : memref<1x1x48xf32, #tpu.memory_space<vmem>>, vector<1x1x48xf32>
    %687 = vector.shape_cast %686 : vector<1x1x48xf32> to vector<1x48xf32>
    %cst_205 = arith.constant dense<0.000000e+00> : vector<8xf32>
    %688 = vector.multi_reduction <add>, %683, %cst_205 [1] : vector<8x48xf32> to vector<8xf32>
    %689 = vector.shape_cast %688 : vector<8xf32> to vector<8x1xf32>
    %cst_206 = arith.constant 4.800000e+01 : f32
    %690 = vector.broadcast %cst_206 : f32 to vector<8x1xf32>
    %691 = arith.divf %689, %690 : vector<8x1xf32>
    %692 = vector.broadcast %691 : vector<8x1xf32> to vector<8x48xf32>
    %693 = arith.subf %683, %692 : vector<8x48xf32>
    %694 = arith.mulf %693, %693 : vector<8x48xf32>
    %cst_207 = arith.constant dense<0.000000e+00> : vector<8xf32>
    %695 = vector.multi_reduction <add>, %694, %cst_207 [1] : vector<8x48xf32> to vector<8xf32>
    %696 = vector.shape_cast %695 : vector<8xf32> to vector<8x1xf32>
    %cst_208 = arith.constant 4.800000e+01 : f32
    %697 = vector.broadcast %cst_208 : f32 to vector<8x1xf32>
    %698 = arith.divf %696, %697 : vector<8x1xf32>
    %699 = vector.broadcast %691 : vector<8x1xf32> to vector<8x48xf32>
    %700 = arith.subf %683, %699 : vector<8x48xf32>
    %cst_209 = arith.constant 9.99999974E-6 : f32
    %701 = vector.broadcast %cst_209 : f32 to vector<8x1xf32>
    %702 = arith.addf %698, %701 : vector<8x1xf32>
    %703 = math.rsqrt %702 : vector<8x1xf32>
    %704 = vector.broadcast %703 : vector<8x1xf32> to vector<8x48xf32>
    %705 = arith.mulf %700, %704 : vector<8x48xf32>
    %706 = vector.broadcast %685 : vector<1x48xf32> to vector<8x48xf32>
    %707 = arith.mulf %705, %706 : vector<8x48xf32>
    %708 = vector.broadcast %687 : vector<1x48xf32> to vector<8x48xf32>
    %709 = arith.addf %707, %708 : vector<8x48xf32>
    %c0_210 = arith.constant 0 : index
    %c0_211 = arith.constant 0 : index
    %710 = vector.load %arg25[%c0_210, %c0_211] : memref<8x48xf32, #tpu.memory_space<vmem>>, vector<8x48xf32>
    tpu.vector_store %arg25[%c0_210, %c0_211], %709 {strides = array<i32>} : memref<8x48xf32, #tpu.memory_space<vmem>>, vector<8x48xf32>,
    %c1_i32 = arith.constant 1 : i32
    %711 = arith.cmpi eq, %arg1, %c1_i32 : i32
    %712 = arith.extui %711 : i1 to i32
    %c0_i32_212 = arith.constant 0 : i32
    %713 = arith.cmpi ne, %712, %c0_i32_212 : i32
    scf.if %713 {
      %714 = arith.truncf %709 : vector<8x48xf32> to vector<8x48xbf16>
      %c0_213 = arith.constant 0 : index
      %c0_214 = arith.constant 0 : index
      %c0_215 = arith.constant 0 : index
      %715 = vector.load %arg24[%c0_213, %c0_214, %c0_215] : memref<1x8x48xbf16, #tpu.memory_space<vmem>>, vector<1x8x48xbf16>
      %716 = vector.shape_cast %715 : vector<1x8x48xbf16> to vector<8x48xbf16>
      %717 = vector.shape_cast %714 : vector<8x48xbf16> to vector<1x8x48xbf16>
      tpu.vector_store %arg24[%c0_213, %c0_214, %c0_215], %717 {strides = array<i32>} : memref<1x8x48xbf16, #tpu.memory_space<vmem>>, vector<1x8x48xbf16>,
    } else {
    }
    return
  }
  func.func @transform_0(%arg0: i32, %arg1: i32) -> (i32, i32, i32) {
    %c0_i32 = arith.constant 0 : i32
    %c0_i32_0 = arith.constant 0 : i32
    %c0_i32_1 = arith.constant 0 : i32
    return %arg0, %c0_i32, %c0_i32_0 : i32, i32, i32
  }
  func.func @transform_1(%arg0: i32, %arg1: i32) -> (i32, i32, i32) {
    %c0_i32 = arith.constant 0 : i32
    %c0_i32_0 = arith.constant 0 : i32
    %c0_i32_1 = arith.constant 0 : i32
    return %arg0, %c0_i32, %c0_i32_0 : i32, i32, i32
  }
  func.func @transform_2(%arg0: i32, %arg1: i32) -> (i32, i32, i32) {
    %c0_i32 = arith.constant 0 : i32
    %c0_i32_0 = arith.constant 0 : i32
    %c0_i32_1 = arith.constant 0 : i32
    return %arg1, %c0_i32, %c0_i32_0 : i32, i32, i32
  }
  func.func @transform_3(%arg0: i32, %arg1: i32) -> (i32, i32, i32) {
    %c0_i32 = arith.constant 0 : i32
    %c0_i32_0 = arith.constant 0 : i32
    %c0_i32_1 = arith.constant 0 : i32
    return %arg1, %c0_i32, %c0_i32_0 : i32, i32, i32
  }
  func.func @transform_4(%arg0: i32, %arg1: i32) -> (i32, i32, i32) {
    %c0_i32 = arith.constant 0 : i32
    %c0_i32_0 = arith.constant 0 : i32
    %c0_i32_1 = arith.constant 0 : i32
    return %arg1, %c0_i32, %c0_i32_0 : i32, i32, i32
  }
  func.func @transform_5(%arg0: i32, %arg1: i32) -> (i32, i32, i32) {
    %c0_i32 = arith.constant 0 : i32
    %c0_i32_0 = arith.constant 0 : i32
    %c0_i32_1 = arith.constant 0 : i32
    return %arg1, %c0_i32, %c0_i32_0 : i32, i32, i32
  }
  func.func @transform_6(%arg0: i32, %arg1: i32) -> (i32, i32, i32) {
    %c0_i32 = arith.constant 0 : i32
    %c0_i32_0 = arith.constant 0 : i32
    %c0_i32_1 = arith.constant 0 : i32
    return %arg1, %c0_i32, %c0_i32_0 : i32, i32, i32
  }
  func.func @transform_7(%arg0: i32, %arg1: i32) -> (i32, i32, i32) {
    %c0_i32 = arith.constant 0 : i32
    %c0_i32_0 = arith.constant 0 : i32
    %c0_i32_1 = arith.constant 0 : i32
    return %arg1, %c0_i32, %c0_i32_0 : i32, i32, i32
  }
  func.func @transform_8(%arg0: i32, %arg1: i32) -> (i32, i32, i32) {
    %c0_i32 = arith.constant 0 : i32
    %c0_i32_0 = arith.constant 0 : i32
    %c0_i32_1 = arith.constant 0 : i32
    return %arg1, %c0_i32, %c0_i32_0 : i32, i32, i32
  }
  func.func @transform_9(%arg0: i32, %arg1: i32) -> (i32, i32, i32) {
    %c0_i32 = arith.constant 0 : i32
    %c0_i32_0 = arith.constant 0 : i32
    %c0_i32_1 = arith.constant 0 : i32
    return %arg1, %c0_i32, %c0_i32_0 : i32, i32, i32
  }
  func.func @transform_10(%arg0: i32, %arg1: i32) -> (i32, i32, i32) {
    %c0_i32 = arith.constant 0 : i32
    %c0_i32_0 = arith.constant 0 : i32
    %c0_i32_1 = arith.constant 0 : i32
    return %arg1, %c0_i32, %c0_i32_0 : i32, i32, i32
  }
  func.func @transform_11(%arg0: i32, %arg1: i32) -> (i32, i32, i32) {
    %c0_i32 = arith.constant 0 : i32
    %c0_i32_0 = arith.constant 0 : i32
    %c0_i32_1 = arith.constant 0 : i32
    return %arg1, %c0_i32, %c0_i32_0 : i32, i32, i32
  }
  func.func @transform_12(%arg0: i32, %arg1: i32) -> (i32, i32, i32) {
    %c0_i32 = arith.constant 0 : i32
    %c0_i32_0 = arith.constant 0 : i32
    %c0_i32_1 = arith.constant 0 : i32
    return %arg1, %c0_i32, %c0_i32_0 : i32, i32, i32
  }
  func.func @transform_13(%arg0: i32, %arg1: i32) -> (i32, i32, i32) {
    %c0_i32 = arith.constant 0 : i32
    %c0_i32_0 = arith.constant 0 : i32
    %c0_i32_1 = arith.constant 0 : i32
    return %arg1, %c0_i32, %c0_i32_0 : i32, i32, i32
  }
  func.func @transform_14(%arg0: i32, %arg1: i32) -> (i32, i32, i32) {
    %c0_i32 = arith.constant 0 : i32
    %c0_i32_0 = arith.constant 0 : i32
    %c0_i32_1 = arith.constant 0 : i32
    return %arg1, %c0_i32, %c0_i32_0 : i32, i32, i32
  }
  func.func @transform_15(%arg0: i32, %arg1: i32) -> (i32, i32, i32) {
    %c0_i32 = arith.constant 0 : i32
    %c0_i32_0 = arith.constant 0 : i32
    %c0_i32_1 = arith.constant 0 : i32
    return %arg1, %c0_i32, %c0_i32_0 : i32, i32, i32
  }
  func.func @transform_16(%arg0: i32, %arg1: i32) -> (i32, i32, i32) {
    %c0_i32 = arith.constant 0 : i32
    %c0_i32_0 = arith.constant 0 : i32
    %c0_i32_1 = arith.constant 0 : i32
    return %arg1, %c0_i32, %c0_i32_0 : i32, i32, i32
  }
  func.func @transform_17(%arg0: i32, %arg1: i32) -> (i32, i32, i32) {
    %c0_i32 = arith.constant 0 : i32
    %c0_i32_0 = arith.constant 0 : i32
    %c0_i32_1 = arith.constant 0 : i32
    return %arg1, %c0_i32, %c0_i32_0 : i32, i32, i32
  }
  func.func @transform_18(%arg0: i32, %arg1: i32) -> (i32, i32, i32) {
    %c0_i32 = arith.constant 0 : i32
    %c0_i32_0 = arith.constant 0 : i32
    %c0_i32_1 = arith.constant 0 : i32
    return %arg1, %c0_i32, %c0_i32_0 : i32, i32, i32
  }
  func.func @transform_19(%arg0: i32, %arg1: i32) -> (i32, i32, i32) {
    %c0_i32 = arith.constant 0 : i32
    %c0_i32_0 = arith.constant 0 : i32
    %c0_i32_1 = arith.constant 0 : i32
    return %arg1, %c0_i32, %c0_i32_0 : i32, i32, i32
  }
  func.func @transform_20(%arg0: i32, %arg1: i32) -> (i32, i32, i32) {
    %c0_i32 = arith.constant 0 : i32
    %c0_i32_0 = arith.constant 0 : i32
    %c0_i32_1 = arith.constant 0 : i32
    return %arg1, %c0_i32, %c0_i32_0 : i32, i32, i32
  }
  func.func @transform_21(%arg0: i32, %arg1: i32) -> (i32, i32, i32) {
    %c0_i32 = arith.constant 0 : i32
    %c0_i32_0 = arith.constant 0 : i32
    %c0_i32_1 = arith.constant 0 : i32
    return %arg1, %c0_i32, %c0_i32_0 : i32, i32, i32
  }
  func.func @transform_22(%arg0: i32, %arg1: i32) -> (i32, i32, i32) {
    %c0_i32 = arith.constant 0 : i32
    %c0_i32_0 = arith.constant 0 : i32
    %c0_i32_1 = arith.constant 0 : i32
    return %arg0, %c0_i32, %c0_i32_0 : i32, i32, i32
  }
}

</mosaic_0001>

<bundles_post_ra>
// kernel: _lambda_.5
= control target key start
LH: loop header
LB: loop body
LE: loop exit
PB: predicated region body
PF: predicated region fallthrough
CT: control target
= control target key end

     0   :  { %vm94_vm0 = vcmask 719872   ;;  %vm107_vm1 = vcmask 1043456   ;;  %vm208_vm2 = vcmask 388096   ;;  %s395_s1 = inlined_call_operand.vmem [shape: bf16[88,48], index: 1, kind: input, shape index: {}]   ;;  %s396_s0 = inlined_call_operand.vmem [shape: bf16[64,88], index: 0, kind: input, shape index: {}]   ;;  %s397_s2 = inlined_call_operand.vmem [shape: f32[1,48], index: 2, kind: input, shape index: {}]   ;;  %s398_s3 = inlined_call_operand.vmem [shape: bf16[64,48], index: 3, kind: output, shape index: {}]  }
   0x1   :  { %v296_v0 = vld [vmem:[%s395_s1] sm:$0xff]   ;;  %v297_v1 = vld [vmem:[%s395_s1 + $0x8] sm:$0xff]   ;;  %v298_v2 = vld [vmem:[%s395_s1 + $0x10] sm:$0xff]  }
   0x2   :  { %262 = vmatprep.subr.bf16.mxu0 %v296_v0  ;;  %282 = vmatprep.subr.bf16.mxu1 %v296_v0  ;;  %v302_v3 = vld [vmem:[%s396_s0] sm:$0xff]   ;;  %v303_v4 = vld [vmem:[%s396_s0 + $0x10] sm:$0xff]   ;;  %v299_v5 = vld [vmem:[%s395_s1 + $0x18] sm:$0xff]  }
   0x3   :  { %263 = vmatpush3.bf16.msra.mxu0 %v296_v0  ;;  %288 = vmatpush3.bf16.msra.mxu1 %v296_v0  ;;  %v300_v6 = vld [vmem:[%s395_s1 + $0x20] sm:$0xff]   ;;  %v301_v7 = vld [vmem:[%s395_s1 + $0x28] ss:$0 sps:$4 sm:$0xff]   ;;  %v305_v10 = vld [vmem:[%s396_s0 + $0x18] sm:$0xff]  }
   0x4   :  { %264 = vmatprep.subr.bf16.mxu0 %v297_v1  ;;  %283 = vmatprep.subr.bf16.mxu1 %v297_v1  ;;  %v109_v8 = vsel %vm107_vm1, %v301_v7, 0  ;;  %v304_v9 = vld [vmem:[%s396_s0 + $0x8] sm:$0xff]   ;;  %v221_v11 = vld [vmem:[%s397_s2] ss:$0 sm:$0xff] }
   0x5   :  { %274 = vmatprep.mubr.msk.bf16.mxu0 %vm94_vm0, %v302_v3  ;;  %278 = vmatprep.mubr.msk.bf16.mxu1 %vm94_vm0, %v303_v4 }
   0x7   :  { %265 = vmatpush3.bf16.msra.mxu0 %v297_v1  ;;  %289 = vmatpush3.bf16.msra.mxu1 %v297_v1 }
   0x8   :  { %266 = vmatprep.subr.bf16.mxu0 %v298_v2  ;;  %284 = vmatprep.subr.bf16.mxu1 %v298_v2 }
   0xb   :  { %267 = vmatpush3.bf16.msra.mxu0 %v298_v2  ;;  %290 = vmatpush3.bf16.msra.mxu1 %v298_v2 }
   0xc   :  { %268 = vmatprep.subr.bf16.mxu0 %v299_v5  ;;  %285 = vmatprep.subr.bf16.mxu1 %v299_v5 }
   0xf   :  { %269 = vmatpush3.bf16.msra.mxu0 %v299_v5  ;;  %291 = vmatpush3.bf16.msra.mxu1 %v299_v5 }
  0x10   :  { %270 = vmatprep.subr.bf16.mxu0 %v300_v6  ;;  %286 = vmatprep.subr.bf16.mxu1 %v300_v6 }
  0x13   :  { %271 = vmatpush3.bf16.msra.mxu0 %v300_v6  ;;  %292 = vmatpush3.bf16.msra.mxu1 %v300_v6 }
  0x14   :  { %294 = vmatprep.subr.msk.bf16.mxu0 %vm107_vm1, %v301_v7  ;;  %295 = vmatprep.subr.msk.bf16.mxu1 %vm107_vm1, %v301_v7 }
  0x17   :  { %273 = vmatpush3.bf16.msra.mxu0 %v109_v8  ;;  %293 = vmatpush3.bf16.msra.mxu1 %v109_v8 }
  0x1a   :  { %275 = vmatmul.mubr.msk.bf16.vlgmr.msra.gmra.mrb[0].mxu0 %vm94_vm0, %v304_v9  ;;  %279 = vmatmul.mubr.msk.bf16.vlgmr.msra.gmra.mrb[0].mxu1 %vm94_vm0, %v305_v10 }
  0xed   :  { %v276_v12 = vpop.f32.mrb[0].mxu0  ;;  %v280_v13 = vpop.f32.mrb[0].mxu1 }
  0xee   :  { %v154_v14 = vadd.f32 %v276_v12, %v221_v11  ;;  %v170_v15 = vadd.f32 %v280_v13, %v221_v11  ;;  %v145_v16 = vpop.f32.mrb[1].mxu0  ;;  %v161_v17 = vpop.f32.mrb[1].mxu1 }
  0xef   :  { %v146_v18 = vadd.f32 %v221_v11, %v145_v16  ;;  %v162_v19 = vadd.f32 %v221_v11, %v161_v17  ;;  %v277_v20 = vpop.f32.mrb[2].mxu0  ;;  %v281_v21 = vpop.f32.mrb[2].mxu1 }
  0xf0   :  { %v246_v22 = vpack.c.bf16 %v154_v14, %v154_v14  ;;  %v250_v23 = vpack.c.bf16 %v170_v15, %v170_v15  ;;  %v157_v24 = vadd.f32 %v277_v20, %v221_v11  ;;  %v173_v25 = vadd.f32 %v281_v21, %v221_v11  ;;  %v148_v26 = vpop.f32.mrb[3].mxu0  ;;  %v164_v27 = vpop.f32.mrb[3].mxu1 }
  0xf1   :  { %v244_v28 = vpack.c.bf16 %v146_v18, %v146_v18  ;;  %v248_v29 = vpack.c.bf16 %v162_v19, %v162_v19  ;;  %v149_v30 = vadd.f32 %v221_v11, %v148_v26  ;;  %v165_v31 = vadd.f32 %v221_v11, %v164_v27 }
  0xf2   :  { %211 = vst.msk [vmem:[%s398_s3 + $0x8] sm:$0xf] %vm208_vm2, %v246_v22  ;;  %215 = vst.msk [vmem:[%s398_s3 + $0x18] sm:$0xf] %vm208_vm2, %v250_v23  ;;  %v247_v32 = vpack.c.bf16 %v157_v24, %v157_v24  ;;  %v251_v33 = vpack.c.bf16 %v173_v25, %v173_v25 }
  0xf3   :  { %209 = vst.msk [vmem:[%s398_s3] sm:$0xf] %vm208_vm2, %v244_v28  ;;  %213 = vst.msk [vmem:[%s398_s3 + $0x10] sm:$0xf] %vm208_vm2, %v248_v29  ;;  %v245_v34 = vpack.c.bf16 %v149_v30, %v149_v30  ;;  %v249_v35 = vpack.c.bf16 %v165_v31, %v165_v31 }
  0xf4   :  { %212 = vst.msk [vmem:[%s398_s3 + $0xc] sm:$0xf] %vm208_vm2, %v247_v32  ;;  %216 = vst.msk [vmem:[%s398_s3 + $0x1c] sm:$0xf] %vm208_vm2, %v251_v33 }
  0xf5   :  { %210 = vst.msk [vmem:[%s398_s3 + $0x4] sm:$0xf] %vm208_vm2, %v245_v34  ;;  %214 = vst.msk [vmem:[%s398_s3 + $0x14] sm:$0xf] %vm208_vm2, %v249_v35 }

// kernel: _lambda_.7
= control target key start
LH: loop header
LB: loop body
LE: loop exit
PB: predicated region body
PF: predicated region fallthrough
CT: control target
= control target key end

     0   :  { %v143_v0 = vmov 0.0   ;;  %vm144_vm0 = vmmov 0   ;;  %vm53_vm1 = vcmask 392192   ;;  %vm106_vm2 = vcmask 388096   ;;  %s186_s1 = inlined_call_operand.vmem [shape: bf16[48,48], index: 1, kind: input, shape index: {}]   ;;  %s187_s0 = inlined_call_operand.vmem [shape: bf16[16,48], index: 0, kind: input, shape index: {}]   ;;  %s188_s2 = inlined_call_operand.vmem [shape: f32[1,48], index: 2, kind: input, shape index: {}]   ;;  %s189_s3 = inlined_call_operand.vmem [shape: bf16[16,48], index: 3, kind: output, shape index: {}]  }
   0x1   :  { %127 = vmatprep.subr.bf16.mxu0 %v143_v0  ;;  %v139_v1 = vld [vmem:[%s186_s1] sm:$0xff]   ;;  %133 = vmatprep.mubr.msk.bf16.mxu0 %vm144_vm0, %v143_v0  ;;  %v140_v2 = vld [vmem:[%s186_s1 + $0x8] sm:$0xff]   ;;  %v141_v3 = vld [vmem:[%s186_s1 + $0x10] sm:$0xff]  }
   0x2   :  { %128 = vmatpush3.bf16.msra.mxu0 %v139_v1  ;;  %v142_v4 = vld [vmem:[%s187_s0] sm:$0xff]  }
   0x3   :  { %129 = vmatprep.subr.bf16.mxu0 %v143_v0  ;;  %v113_v5 = vld [vmem:[%s188_s2] ss:$0 sm:$0xff] }
   0x6   :  { %130 = vmatpush3.bf16.msra.mxu0 %v140_v2 }
   0x7   :  { %131 = vmatprep.subr.bf16.mxu0 %v143_v0 }
   0xa   :  { %132 = vmatpush3.bf16.msra.mxu0 %v141_v3 }
   0xd   :  { %134 = vmatmul.mubr.msk.bf16.vlgmr.msra.gmra.mrb[0].mxu0 %vm53_vm1, %v142_v4 }
  0xe0   :  { %v91_v6 = vpop.f32.mrb[0].mxu0 }
  0xe1   :  { %v92_v7 = vadd.f32 %v113_v5, %v91_v6  ;;  %v135_v8 = vpop.f32.mrb[1].mxu0 }
  0xe2   :  { %v94_v9 = vpop.f32.mrb[2].mxu0 }
  0xe3   :  { %v121_v10 = vpack.c.bf16 %v92_v7, %v92_v7  ;;  %v95_v11 = vadd.f32 %v113_v5, %v94_v9  ;;  %v136_v12 = vpop.f32.mrb[3].mxu0 }
  0xe5   :  { %107 = vst.msk [vmem:[%s189_s3] sm:$0xf] %vm106_vm2, %v121_v10  ;;  %v122_v13 = vpack.c.bf16 %v95_v11, %v95_v11 }
  0xe7   :  { %108 = vst.msk [vmem:[%s189_s3 + $0x4] sm:$0xf] %vm106_vm2, %v122_v13 }

// kernel: _lambda_.9
= control target key start
LH: loop header
LB: loop body
LE: loop exit
PB: predicated region body
PF: predicated region fallthrough
CT: control target
= control target key end

     0   :  { %v529_v1 = vmov 0   ;;  %vm82_vm0 = vcmask 392192   ;;  %v530_v24 = vmov 0.0   ;;  %v37_v26 = vlaneseq  ;;  %s668_s1 = inlined_call_operand.vmem [shape: bf16[48,256], index: 1, kind: input, shape index: {}]   ;;  %s669_s3 = inlined_call_operand.vmem [shape: bf16[256,64], index: 3, kind: input, shape index: {}]   ;;  %s670_s0 = inlined_call_operand.vmem [shape: bf16[16,48], index: 0, kind: input, shape index: {}]   ;;  %s671_s5 = inlined_call_operand.vmem [shape: bf16[64,128], index: 5, kind: input, shape index: {}]   ;;  %s672_s2 = inlined_call_operand.vmem [shape: f32[1,256], index: 2, kind: input, shape index: {}]   ;;  %s673_s4 = inlined_call_operand.vmem [shape: f32[1,64], index: 4, kind: input, shape index: {}]   ;;  %s674_s6 = inlined_call_operand.vmem [shape: f32[1,128], index: 6, kind: input, shape index: {}]   ;;  %s675_s7 = inlined_call_operand.vmem [shape: f32[16,128], index: 7, kind: output, shape index: {}]  }
   0x1   :  { %v491_v0 = vld [vmem:[%s668_s1 + $0x4] ss:$8 sps:$4 sm:$0xff]   ;;  %118 = vmatprep.mubr.bf16.mxu0 %v529_v1  ;;  %v493_v2 = vld [vmem:[%s668_s1] ss:$8 sps:$4 sm:$0xff]   ;;  %v494_v3 = vld [vmem:[%s668_s1 + $0x14] ss:$8 sps:$4 sm:$0xff]  }
   0x2   :  { %86 = vmatprep.subr.bf16.mxu0 %v491_v0  ;;  %v496_v4 = vld [vmem:[%s668_s1 + $0x10] ss:$8 sps:$4 sm:$0xff]   ;;  %v497_v5 = vld [vmem:[%s668_s1 + $0x24] ss:$8 sps:$4 sm:$0xff]   ;;  %v499_v6 = vld [vmem:[%s668_s1 + $0x20] ss:$8 sps:$4 sm:$0xff]  }
   0x3   :  { %87 = vmatpush1.bf16.msra.mxu0 %v493_v2  ;;  %v501_v7 = vld [vmem:[%s669_s3 + $0x40] sm:$0xff]   ;;  %v503_v9 = vld [vmem:[%s669_s3 + $0x48] sm:$0xff]   ;;  %v505_v11 = vld [vmem:[%s669_s3 + $0x50] sm:$0xff]   ;;  %v38_v27 = vshrl.u32 %v37_v26, 7  ;;  %vm531_vm1 = vmmov 0   ;;  %vm353_vm2 = vcmask 523264  }
   0x4   :  { %88 = vmatprep.subr.bf16.mxu0 %v494_v3  ;;  %v502_v8 = vld [vmem:[%s669_s3] sm:$0xff]   ;;  %449 = vmatprep.subr.bf16.mxu1 %v501_v7  ;;  %v504_v10 = vld [vmem:[%s669_s3 + $0x8] sm:$0xff]   ;;  %v506_v13 = vld [vmem:[%s669_s3 + $0x10] sm:$0xff]  }
   0x5   :  { %450 = vmatpush3.bf16.msra.mxu1 %v502_v8  ;;  %v500_v12 = vld [vmem:[%s670_s0] sm:$0xff]   ;;  %v507_v14 = vld [vmem:[%s669_s3 + $0x58] sm:$0xff]   ;;  %v511_v18 = vld [vmem:[%s669_s3 + $0x68] sm:$0xff]   ;;  %v39_v28 = vsub.s32 0, %v38_v27  ;;  %v43_v30 = vsub.s32 1, %v38_v27 }
   0x6   :  { %451 = vmatprep.subr.bf16.mxu1 %v503_v9  ;;  %v508_v15 = vld [vmem:[%s669_s3 + $0x18] sm:$0xff]   ;;  %v509_v16 = vld [vmem:[%s669_s3 + $0x60] sm:$0xff]   ;;  %v512_v19 = vld [vmem:[%s669_s3 + $0x28] sm:$0xff]  }
   0x7   :  { %89 = vmatpush1.bf16.msra.mxu0 %v496_v4  ;;  %v510_v17 = vld [vmem:[%s669_s3 + $0x20] sm:$0xff]   ;;  %v513_v20 = vld [vmem:[%s669_s3 + $0x70] sm:$0xff]   ;;  %v515_v22 = vld [vmem:[%s669_s3 + $0x78] sm:$0xff]  }
   0x8   :  { %90 = vmatprep.subr.bf16.mxu0 %v497_v5  ;;  %v514_v21 = vld [vmem:[%s669_s3 + $0x30] sm:$0xff]   ;;  %v516_v23 = vld [vmem:[%s669_s3 + $0x38] sm:$0xff]   ;;  %v517_v25 = vld [vmem:[%s671_s5] sm:$0xff]  }
   0x9   :  { %452 = vmatpush3.bf16.msra.mxu1 %v504_v10  ;;  %v35_v29 = vld [vmem:[%s672_s2] sm:$0x3]  ;;  %v518_v47 = vld [vmem:[%s671_s5 + $0x8] sm:$0xff]   ;;  %v519_v48 = vld [vmem:[%s671_s5 + $0x10] sm:$0xff]  }
   0xa   :  { %453 = vmatprep.subr.bf16.mxu1 %v505_v11  ;;  %v40_v31 = vrot.slane %v35_v29, %v39_v28  ;;  %v44_v32 = vrot.slane %v35_v29, %v43_v30  ;;  %v520_v49 = vld [vmem:[%s671_s5 + $0x18] sm:$0xff]   ;;  %v424_v51 = vld [vmem:[%s673_s4] ss:$0 sm:$0xff] }
   0xb   :  { %91 = vmatpush1.bf16.msra.mxu0 %v499_v6  ;;  %v441_v62 = vld [vmem:[%s674_s6] ss:$0 sm:$0xff] }
   0xc   :  { %476 = vmatprep.subr.bf16.mxu0 %v530_v24 }
   0xd   :  { %454 = vmatpush3.bf16.msra.mxu1 %v506_v13 }
   0xe   :  { %423 = vmatmul.mubr.msk.bf16.vlgmr.msra.gmra.mrb[0].mxu0 %vm82_vm0, %v500_v12  ;;  %455 = vmatprep.subr.bf16.mxu1 %v507_v14 }
   0xf   :  { %477 = vmatpush3.bf16.msra.mxu0 %v517_v25  ;;  %484 = vmatprep.mubr.msk.bf16.mxu0 %vm531_vm1, %v530_v24 }
  0x10   :  { %478 = vmatprep.subr.bf16.mxu0 %v530_v24 }
  0x11   :  { %456 = vmatpush3.bf16.msra.mxu1 %v508_v15 }
  0x12   :  { %457 = vmatprep.subr.bf16.mxu1 %v509_v16 }
  0x13   :  { %479 = vmatpush3.bf16.msra.mxu0 %v518_v47 }
  0x14   :  { %480 = vmatprep.subr.bf16.mxu0 %v530_v24 }
  0x15   :  { %458 = vmatpush3.bf16.msra.mxu1 %v510_v17 }
  0x16   :  { %459 = vmatprep.subr.bf16.mxu1 %v511_v18 }
  0x17   :  { %481 = vmatpush3.bf16.msra.mxu0 %v519_v48 }
  0x18   :  { %482 = vmatprep.subr.bf16.mxu0 %v530_v24 }
  0x19   :  { %460 = vmatpush3.bf16.msra.mxu1 %v512_v19 }
  0x1a   :  { %461 = vmatprep.subr.bf16.mxu1 %v513_v20 }
  0x1b   :  { %483 = vmatpush3.bf16.msra.mxu0 %v520_v49 }
  0x1d   :  { %462 = vmatpush3.bf16.msra.mxu1 %v514_v21 }
  0x1e   :  { %463 = vmatprep.subr.bf16.mxu1 %v515_v22 }
  0x21   :  { %464 = vmatpush3.bf16.msra.mxu1 %v516_v23 }
  0xe1   :  { %v120_v33 = vpop.f32.mrb[0].mxu0 }
  0xe2   :  { %v121_v34 = vadd.f32 %v120_v33, %v40_v31  ;;  %v122_v35 = vpop.f32.mrb[1].mxu0 }
  0xe3   :  { %v123_v36 = vadd.f32 %v122_v35, %v44_v32  ;;  %v124_v37 = vpop.f32.mrb[2].mxu0 }
  0xe4   :  { %v125_v38 = vadd.f32 %v124_v37, %v40_v31  ;;  %v126_v39 = vpop.f32.mrb[3].mxu0  ;;  %v129_v41 = vmax.f32 %v121_v34, 0.0 }
  0xe5   :  { %v127_v40 = vadd.f32 %v126_v39, %v44_v32  ;;  %v130_v43 = vmax.f32 %v123_v36, 0.0 }
  0xe6   :  { %v131_v42 = vmax.f32 %v125_v38, 0.0 }
  0xe7   :  { %v132_v44 = vmax.f32 %v127_v40, 0.0 }
  0xe8   :  { %v165_v45 = vpack.c.bf16 %v131_v42, %v129_v41 }
  0xe9   :  { %v166_v46 = vpack.c.bf16 %v132_v44, %v130_v43 }
  0xeb   :  { %302 = vmatprep.mubr.bf16.mxu1 %v166_v46 }
  0xec   :  { %303 = vmatmul.mubr.bf16.vlgmr.msra.gmra.mrb[0].mxu1 %v165_v45 }
 0x1bf   :  { %v465_v50 = vpop.f32.mrb[0].mxu1 }
 0x1c0   :  { %v466_v52 = vpop.f32.mrb[1].mxu1 }
 0x1c1   :  { %v467_v53 = vadd.f32 %v466_v52, %v465_v50  ;;  %v468_v54 = vpop.f32.mrb[2].mxu1 }
 0x1c2   :  { %v469_v55 = vpop.f32.mrb[3].mxu1 }
 0x1c3   :  { %v305_v56 = vadd.f32 %v467_v53, %v424_v51  ;;  %v470_v57 = vadd.f32 %v469_v55, %v468_v54 }
 0x1c5   :  { %v308_v58 = vadd.f32 %v470_v57, %v424_v51  ;;  %v311_v59 = vmax.f32 %v305_v56, 0.0 }
 0x1c7   :  { %v312_v60 = vmax.f32 %v308_v58, 0.0 }
 0x1c9   :  { %v321_v61 = vpack.c.bf16 %v312_v60, %v311_v59 }
 0x1cb   :  { %485 = vmatmul.mubr.msk.bf16.vlgmr.msra.gmra.mrb[4].mxu0 %vm353_vm2, %v321_v61 }
 0x29e   :  { %v391_v63 = vpop.f32.mrb[4].mxu0 }
 0x29f   :  { %v392_v0 = vadd.f32 %v441_v62, %v391_v63  ;;  %v486_v1 = vpop.f32.mrb[5].mxu0 }
 0x2a0   :  { %v394_v2 = vpop.f32.mrb[6].mxu0 }
 0x2a1   :  { %v447_v3 = vmul.f32 -1.442695, %v392_v0  ;;  %v395_v4 = vadd.f32 %v441_v62, %v394_v2  ;;  %v487_v5 = vpop.f32.mrb[7].mxu0 }
 0x2a3   :  { %521 = vpow2.f32 %v447_v3  ;;  %v448_v6 = vmul.f32 -1.442695, %v395_v4 }
 0x2a5   :  { %523 = vpow2.f32 %v448_v6 }
 0x2ad   :  { %v522_v7 = vpop.eup %521 }
 0x2ae   :  { %v404_v8 = vadd.f32 1.0, %v522_v7 }
 0x2af   :  { %v524_v9 = vpop.eup %523 }
 0x2b0   :  { %525 = vrcp.f32 %v404_v8  ;;  %v405_v10 = vadd.f32 1.0, %v524_v9 }
 0x2b2   :  { %527 = vrcp.f32 %v405_v10 }
 0x2ba   :  { %v526_v11 = vpop.eup %525 }
 0x2bb   :  { %410 = vst [vmem:[%s675_s7] sm:$0xff] %v526_v11 }
 0x2bc   :  { %v528_v12 = vpop.eup %527 }
 0x2bd   :  { %411 = vst [vmem:[%s675_s7 + $0x8] sm:$0xff] %v528_v12 }

// kernel: _lambda_.6
= control target key start
LH: loop header
LB: loop body
LE: loop exit
PB: predicated region body
PF: predicated region fallthrough
CT: control target
= control target key end

     0   :  { %s5424_s25 = smov 0   ;;  %s5426_s26 = smov 0   ;;  %s6114_s0 = inlined_call_operand.vmem [shape: bf16[2,32,48], index: 0, kind: input, shape index: {}]   ;;  %s6115_s1 = inlined_call_operand.vmem [shape: bf16[2,48,144], index: 1, kind: input, shape index: {}]   ;;  %s6116_s2 = inlined_call_operand.vmem [shape: f32[2,1,144], index: 2, kind: input, shape index: {}]   ;;  %s6117_s3 = inlined_call_operand.vmem [shape: bf16[2,48,48], index: 3, kind: input, shape index: {}]   ;;  %s6118_s4 = inlined_call_operand.vmem [shape: f32[2,1,48], index: 4, kind: input, shape index: {}]   ;;  %s6119_s5 = inlined_call_operand.vmem [shape: f32[2,1,48], index: 5, kind: input, shape index: {}]   ;;  %s6120_s6 = inlined_call_operand.vmem [shape: f32[2,1,48], index: 6, kind: input, shape index: {}]   ;;  %s6121_s7 = inlined_call_operand.vmem [shape: bf16[2,48,96], index: 7, kind: input, shape index: {}]   ;;  %s6122_s8 = inlined_call_operand.vmem [shape: f32[2,1,96], index: 8, kind: input, shape index: {}]   ;;  %s6123_s9 = inlined_call_operand.vmem [shape: bf16[2,96,48], index: 9, kind: input, shape index: {}]   ;;  %s6124_s10 = inlined_call_operand.vmem [shape: f32[2,1,48], index: 10, kind: input, shape index: {}]   ;;  %s6125_s11 = inlined_call_operand.vmem [shape: f32[2,1,48], index: 11, kind: input, shape index: {}]   ;;  %s6126_s12 = inlined_call_operand.vmem [shape: f32[2,1,48], index: 12, kind: input, shape index: {}]   ;;  %s6127_s13 = inlined_call_operand.vmem [shape: bf16[2,32,48], index: 13, kind: output, shape index: {}]  }
   0x1   :  { %6133 = sst [smem:[#allocation10_spill]] %s6114_s0  ;;  %s5428_s27 = smov 0  }
   0x2   :  { %6134 = sst [smem:[#allocation11_spill]] %s6115_s1  ;;  %s5430_s28 = smov 0  }
   0x3   :  { %6135 = sst [smem:[#allocation12_spill]] %s6116_s2  ;;  %s5432_s29 = smov 0  }
   0x4   :  { %6136 = sst [smem:[#allocation13_spill]] %s6117_s3 }
   0x5   :  { %6137 = sst [smem:[#allocation14_spill]] %s6121_s7 }
   0x6   :  { %6138 = sst [smem:[#allocation15_spill]] %s6126_s12 }
   0x7   :  { %6139 = sst [smem:[#allocation16_spill]] %s6127_s13 }
   0x8 LB: > { %6140 = sst [smem:[#allocation3_spill]] %s5304_s25  ;;  %s32_s30 = sadd.s32 1, %s5312_s27  ;;  %s5320_s29 = sphi %s5432_s29, %s23_s29   ;;  %s5316_s28 = sphi %s5430_s28, %s6166_s28   ;;  %s5312_s27 = sphi %s5428_s27, %s6165_s27   ;;  %s5308_s26 = sphi %s5426_s26, %s6164_s26   ;;  %s5304_s25 = sphi %s5424_s25, %s6163_s25  }
   0x9   : > { %6141 = sst [smem:[#allocation4_spill]] %s5312_s27  ;;  %s35_s14 = sadd.s32 1, %s5316_s28 }
   0xa   : > { %6142 = sst [smem:[#allocation5_spill]] %s5316_s28  ;;  %p33_p0 = scmp.ge.s32.totalorder %s32_s30, 2 }
   0xb   : > { %6143 = sst [smem:[#allocation6_spill]] %s5320_s29  ;;  %p4310_p1 = scmp.ge.s32.totalorder %s5320_s29, 1 }
   0xc   : > { %p504_p2 = scmp.lt.s32.totalorder %s5320_s29, 5  ;;  %s6168_s30 = smov (%p33_p0, %s32_s30), 0 }
   0xd   : > { %6144 = sst [smem:[#allocation7_spill]] %s6168_s30  ;;  %s6170_s14 = smov (!%p33_p0, %s35_s14), %s5316_s28 }
   0xe   : > { %p505_p3 = pnand %p4310_p1, %p504_p2  ;;  %p37_p4 = scmp.ge.s32.totalorder %s6170_s14, 2 }
  0x10   : > { %s6172_s14 = smov (%p37_p4, %s6170_s14), 0  ;;  %508 = sbr.rel (%p505_p3) target bundleno = 5534 (0x159e), region = 72 }
  0x11   : > { %6145 = sst [smem:[#allocation8_spill]] %s6172_s14 }
  0x17   : > { %p593_p5 = scmp.lt.s32.totalorder %s5308_s26, 1  ;;  %p598_p6 = scmp.lt.s32.totalorder %s5304_s25, 1 }
  0x18   : > { %s6146_s0 = sld [smem:[#allocation10_spill]]  ;;  %s6147_s1 = sld [smem:[#allocation11_spill]] }
  0x19   : > { %s6174_s26 = smov (!%p593_p5, %s5308_s26), 1  ;;  %s6149_s2 = sld [smem:[#allocation12_spill]] }
  0x1a   : > { %s5458_s15 = scalar_select %p598_p6, %s5304_s25, 1 }
  0x1b   : > { %s4434_s16 = sshll.u32 %s6174_s26, 4  ;;  %s6150_s3 = sld [smem:[#allocation13_spill]] }
  0x1c   : > { %s4964_s20 = smul.u32 48, %s5458_s15  ;;  %s4314_s21 = sshll.u32 %s5458_s15, 1 }
  0x1d   : > { %s4965_s22 = smul.u32 24, %s5458_s15  ;;  %s6151_s7 = sld [smem:[#allocation14_spill]] }
  0x1e   : > { %s597_s19 = scalar_lea.vmem %s6146_s0, %s4434_s16  ;;  %s5469_s14 = scalar_lea.vmem %s6147_s1, %s4964_s20 }
  0x1f   : > { %6148 = sst [smem:[#allocation9_spill]] %s5469_s14  ;;  %s5474_s27 = scalar_lea.vmem %s6149_s2, %s4314_s21 }
  0x20   : > { %s5505_s18 = scalar_lea.vmem %s6123_s9, %s4964_s20  ;;  %s636_s23 = scalar_lea.vmem %s6124_s10, %s5458_s15 }
  0x21   : > { %s5479_s25 = scalar_lea.vmem %s6150_s3, %s4965_s22  ;;  %s639_s14 = scalar_lea.vmem %s6125_s11, %s5458_s15 }
  0x22   : > { %s6152_s30 = sld [smem:[#allocation15_spill]]  ;;  %s6153_s26 = sld [smem:[#allocation16_spill]] }
  0x23   : > { %s5496_s21 = scalar_lea.vmem %s6151_s7, %s4965_s22  ;;  %s6154_s3 = sld [smem:[#allocation3_spill]] }
  0x28   : > { %s642_s0 = scalar_lea.vmem %s6152_s30, %s5458_s15  ;;  %s5522_s2 = scalar_lea.vmem %s6153_s26, %s4434_s16 }
  0x29   : > { %p4320_p7 = scmp.ne.s32.totalorder %s6154_s3, 0 }
  0x2a   : > { %v4441_v0 = vld [vmem:[%s597_s19] sm:$0xff] (!%p4320_p7)   ;;  %vm661_vm0 = vcmask (!%p4320_p7), 392192   ;;  %v4448_v1 = vld [vmem:[%s597_s19 + $0x8] sm:$0xff] (!%p4320_p7)  }
  0x2b   : > { %652 = sbr.rel (%p4320_p7) target bundleno = 50 (0x32), region = 76  ;;  %v4442_v2 = vunpack.c.l.bf16 (!%p4320_p7), %v4441_v0  ;;  %v4443_v3 = vunpack.c.h.bf16 (!%p4320_p7), %v4441_v0  ;;  %v4446_v4 = vunpack.c.l.bf16 (!%p4320_p7), %v4448_v1  ;;  %v4447_v5 = vunpack.c.h.bf16 (!%p4320_p7), %v4448_v1 }
  0x2d   : > { %662 = vst.msk [vmem:[#allocation2] sm:$0xff] (!%p4320_p7), %vm661_vm0, %v4442_v2  ;;  %663 = vst.msk [vmem:[#allocation2 + $0x8] sm:$0xff] (!%p4320_p7), %vm661_vm0, %v4443_v3 }
  0x2e   : > { %664 = vst.msk [vmem:[#allocation2 + $0x10] sm:$0xff] (!%p4320_p7), %vm661_vm0, %v4446_v4  ;;  %665 = vst.msk [vmem:[#allocation2 + $0x18] sm:$0xff] (!%p4320_p7), %vm661_vm0, %v4447_v5 }
  0x32 PF: > { %s6155_s20 = sld [smem:[#allocation9_spill]]  ;;  %v5322_v8 = vmov 0   ;;  %vm720_vm1 = vcmask 392192   ;;  %v680_v19 = vlaneseq  ;;  %v678_v22 = vld [vmem:[%s5474_s27] sm:$0x3]  ;;  %vm795_vm2 = vcmask 31744  }
  0x33   : > { %759 = vmatprep.mubr.bf16.mxu1 %v5322_v8  ;;  %s5323_s7 = smov 76   ;;  %s5324_s27 = smov 80   ;;  %vm857_vm3 = vcmask 261120   ;;  %vm1155_vm4 = vcmask 1041408   ;;  %vm3954_vm5 = vcmask 785408  }
  0x34   : > { %v666_v13 = vld [vmem:[#allocation2] sm:$0xff]  ;;  %v667_v14 = vld [vmem:[#allocation2 + $0x8] sm:$0xff]  ;;  %v681_v20 = vshrl.u32 %v680_v19, 7  ;;  %s5325_s16 = smov 124   ;;  %s5326_s19 = smov 32  }
  0x35   : > { %v676_v15 = vpack.c.bf16 %v667_v14, %v666_v13  ;;  %v668_v16 = vld [vmem:[#allocation2 + $0x10] sm:$0xff]  ;;  %v669_v17 = vld [vmem:[#allocation2 + $0x18] sm:$0xff]  ;;  %s5327_s17 = smov 28   ;;  %s5328_s12 = smov 72  }
  0x36   : > { %v677_v18 = vpack.c.bf16 %v669_v17, %v668_v16  ;;  %v682_v21 = vsub.s32 0, %v681_v20  ;;  %v686_v23 = vsub.s32 1, %v681_v20  ;;  %s5329_s13 = smov 120   ;;  %s5330_s1 = smov 68  }
  0x37   : > { %s5331_s24 = smov 116   ;;  %s5332_s28 = smov 24  }
  0x38   : > { %v5038_v6 = vld [vmem:[%s6155_s20 + $0x4] ss:$8 sps:$4 sm:$0xff]   ;;  %v5040_v7 = vld [vmem:[%s6155_s20] ss:$8 sps:$4 sm:$0xff]   ;;  %v5041_v9 = vld [vmem:[%s6155_s20 + $0x14] ss:$8 sps:$4 sm:$0xff]   ;;  %v683_v24 = vrot.slane %v678_v22, %v682_v21  ;;  %v687_v26 = vrot.slane %v678_v22, %v686_v23 }
  0x39   : > { %727 = vmatprep.subr.bf16.mxu1 %v5038_v6  ;;  %v5043_v10 = vld [vmem:[%s6155_s20 + $0x10] ss:$8 sps:$4 sm:$0xff]   ;;  %v5044_v11 = vld [vmem:[%s6155_s20 + $0x24] ss:$8 sps:$4 sm:$0xff]   ;;  %v5046_v12 = vld [vmem:[%s6155_s20 + $0x20] ss:$8 sps:$4 sm:$0xff]  }
  0x3a   : > { %728 = vmatpush1.bf16.msra.mxu1 %v5040_v7  ;;  %s5333_s22 = smov 64   ;;  %s5334_s30 = smov 112  }
  0x3b   : > { %729 = vmatprep.subr.bf16.mxu1 %v5041_v9  ;;  %s5335_s29 = smov 20   ;;  %s5336_s26 = smov 60  }
  0x3c   : > { %s5337_s3 = smov 108   ;;  %s5338_s20 = smov 16  }
  0x3e   : > { %730 = vmatpush1.bf16.msra.mxu1 %v5043_v10 }
  0x3f   : > { %731 = vmatprep.subr.bf16.mxu1 %v5044_v11 }
  0x42   : > { %732 = vmatpush1.bf16.msra.mxu1 %v5046_v12 }
  0x45   : > { %4327 = vmatmul.mubr.msk.bf16.vlgmr.msra.gmra.mrb[0].mxu1 %vm720_vm1, %v676_v15 }
  0x46   : > { %769 = vmatprep.mubr.bf16.mxu1 %v5322_v8 }
  0x4d   : > { %4328 = vmatmul.mubr.msk.bf16.gmra.mrb[4].mxu1 %vm720_vm1, %v677_v18 }
 0x118   : > { %v761_v25 = vpop.f32.mrb[0].mxu1 }
 0x119   : > { %v763_v27 = vpop.f32.mrb[1].mxu1  ;;  %v762_v29 = vadd.f32 %v761_v25, %v683_v24 }
 0x11a   : > { %v765_v28 = vpop.f32.mrb[2].mxu1  ;;  %v764_v32 = vadd.f32 %v763_v27, %v687_v26 }
 0x11b   : > { %v766_v30 = vadd.f32 %v765_v28, %v683_v24  ;;  %v767_v31 = vpop.f32.mrb[3].mxu1 }
 0x11c   : > { %v768_v33 = vadd.f32 %v767_v31, %v687_v26 }
 0x11d   : > { %v5534_v34 = vpack.c.bf16 %v766_v30, %v762_v29 }
 0x11e   : > { %v5536_v35 = vpack.c.bf16 %v768_v33, %v764_v32 }
 0x11f   : > { %971 = vrot.lane.b32.xlu1 %v5534_v34, %s5323_s7  ;;  %791 = vrot.lane.b32.xlu0 %v5534_v34, %s5324_s27 }
 0x120   : > { %4598 = vmatprep.mubr.msk.bf16.mxu1 %vm795_vm2, %v5534_v34  ;;  %v771_v36 = vpop.f32.mrb[4].mxu1 }
 0x121   : > { %v773_v37 = vpop.f32.mrb[5].mxu1  ;;  %v772_v40 = vadd.f32 %v771_v36, %v683_v24 }
 0x122   : > { %v774_v38 = vadd.f32 %v773_v37, %v687_v26  ;;  %v775_v39 = vpop.f32.mrb[6].mxu1 }
 0x123   : > { %v776_v41 = vadd.f32 %v775_v39, %v683_v24  ;;  %v777_v42 = vpop.f32.mrb[7].mxu1 }
 0x124   : > { %v778_v43 = vadd.f32 %v777_v42, %v687_v26 }
 0x125   : > { %v5542_v44 = vpack.c.bf16 %v776_v41, %v772_v40 }
 0x126   : > { %v5544_v45 = vpack.c.bf16 %v778_v43, %v774_v38 }
 0x127   : > { %973 = vrot.lane.b32.xlu1 %v5542_v44, %s5323_s7  ;;  %793 = vrot.lane.b32.xlu0 %v5542_v44, %s5324_s27  ;;  %s5339_s7 = smov 56   ;;  %s5340_s27 = smov 104  }
 0x12b   : > { %969 = vrot.lane.b32.xlu1 %v5542_v44, %s5325_s16  ;;  %967 = vrot.lane.b32.xlu0 %v5534_v34, %s5325_s16 }
 0x191   : > { %v972_v46 = vpop.permute.xlu1 %971  ;;  %v792_v47 = vpop.permute.xlu0 %791 }
 0x192   : > { %4928 = vmatprep.subr.msk.bf16.mxu1 %vm795_vm2, %v792_v47  ;;  %4930 = vmatprep.subr.msk.bf16.mxu0 %vm795_vm2, %v972_v46  ;;  %v803_v48 = vsel %vm795_vm2, %v792_v47, 0  ;;  %v982_v49 = vsel %vm795_vm2, %v972_v46, 0 }
 0x193   : > { %4595 = vmatpush3.bf16.xpose.msra.mxu1 %v803_v48  ;;  %4611 = vmatpush3.bf16.xpose.msra.mxu0 %v982_v49 }
 0x199   : > { %v974_v50 = vpop.permute.xlu1 %973  ;;  %v794_v51 = vpop.permute.xlu0 %793 }
 0x19a   : > { %4929 = vmatprep.subr.msk.bf16.mxu1 %vm795_vm2, %v794_v51  ;;  %4931 = vmatprep.subr.msk.bf16.mxu0 %vm795_vm2, %v974_v50  ;;  %v806_v52 = vsel %vm795_vm2, %v794_v51, 0  ;;  %v985_v53 = vsel %vm795_vm2, %v974_v50, 0 }
 0x19b   : > { %4597 = vmatpush3.bf16.xpose.msra.mxu1 %v806_v52  ;;  %4613 = vmatpush3.bf16.xpose.msra.mxu0 %v985_v53 }
 0x19d   : > { %v968_v54 = vpop.permute.xlu0 %967  ;;  %v970_v55 = vpop.permute.xlu1 %969 }
 0x19e   : > { %4614 = vmatprep.mubr.msk.bf16.mxu0 %vm795_vm2, %v968_v54 }
 0x1a2   : > { %4599 = vmatmul.mubr.msk.bf16.vlgmr.msra.gmra.mrb[8].mxu1 %vm795_vm2, %v5542_v44  ;;  %4615 = vmatmul.mubr.msk.bf16.vlgmr.msra.gmra.mrb[0].mxu0 %vm795_vm2, %v970_v55 }
 0x275   : > { %v4600_v56 = vpop.f32.mrb[8].mxu1  ;;  %v4616_v57 = vpop.f32.mrb[0].mxu0 }
 0x276   : > { %v842_v58 = vpop.f32.mrb[9].mxu1  ;;  %v1021_v59 = vpop.f32.mrb[1].mxu0  ;;  %v864_v2 = vsel %vm857_vm3, %v4600_v56, -inf  ;;  %v1042_v5 = vsel %vm857_vm3, %v4616_v57, -inf }
 0x277   : > { %v4601_v60 = vpop.f32.mrb[10].mxu1  ;;  %v4617_v61 = vpop.f32.mrb[2].mxu0  ;;  %v858_v62 = vsel %vm857_vm3, %v842_v58, -inf  ;;  %v1036_v3 = vsel %vm857_vm3, %v1021_v59, -inf }
 0x278   : > { %v5565_v63 = vpop.f32.mrb[3].mxu0  ;;  %859 = vmax.xlane.f32.xlu0 %v858_v62  ;;  %v845_v0 = vpop.f32.mrb[11].mxu1  ;;  %v867_v4 = vsel %vm857_vm3, %v4601_v60, -inf  ;;  %v1045_v7 = vsel %vm857_vm3, %v4617_v61, -inf }
 0x279   : > { %v861_v1 = vsel %vm857_vm3, %v845_v0, -inf  ;;  %v1039_v6 = vsel %vm857_vm3, %v5565_v63, -inf }
 0x27a   : > { %862 = vmax.xlane.f32.xlu1 %v861_v1 }
 0x27c   : > { %865 = vmax.xlane.f32.xlu0 %v864_v2 }
 0x27e   : > { %1037 = vmax.xlane.f32.xlu1 %v1036_v3 }
 0x280   : > { %868 = vmax.xlane.f32.xlu0 %v867_v4 }
 0x282   : > { %1043 = vmax.xlane.f32.xlu1 %v1042_v5 }
 0x284   : > { %1040 = vmax.xlane.f32.xlu0 %v1039_v6 }
 0x288   : > { %1046 = vmax.xlane.f32.xlu0 %v1045_v7 }
 0x293   : > { %904 = vrot.lane.b32.xlu1 %v5534_v34, %s5326_s19 }
 0x305   : > { %v860_v8 = vpop.xlane.xlu0 %859 }
 0x306   : > { %v870_v15 = vsub.f32 %v842_v58, %v860_v8 }
 0x307   : > { %v863_v9 = vpop.xlane.xlu1 %862 }
 0x308   : > { %v874_v22 = vmul.f32 1.442695, %v870_v15  ;;  %v871_v25 = vsub.f32 %v845_v0, %v863_v9 }
 0x309   : > { %v866_v10 = vpop.xlane.xlu0 %865 }
 0x30a   : > { %v872_v11 = vsub.f32 %v4600_v56, %v866_v10  ;;  %v876_v30 = vmul.f32 1.442695, %v871_v25 }
 0x30b   : > { %v1038_v12 = vpop.xlane.xlu1 %1037 }
 0x30c   : > { %v878_v13 = vmul.f32 1.442695, %v872_v11  ;;  %v1048_v20 = vsub.f32 %v1021_v59, %v1038_v12 }
 0x30d   : > { %v869_v14 = vpop.xlane.xlu0 %868 }
 0x30e   : > { %5062 = vpow2.f32 %v878_v13  ;;  %v873_v16 = vsub.f32 %v4601_v60, %v869_v14  ;;  %v1052_v26 = vmul.f32 1.442695, %v1048_v20 }
 0x30f   : > { %v1044_v17 = vpop.xlane.xlu1 %1043 }
 0x310   : > { %v880_v18 = vmul.f32 1.442695, %v873_v16  ;;  %v1050_v19 = vsub.f32 %v4616_v57, %v1044_v17 }
 0x311   : > { %v1041_v21 = vpop.xlane.xlu0 %1040 }
 0x312   : > { %5064 = vpow2.f32 %v880_v18  ;;  %v1056_v23 = vmul.f32 1.442695, %v1050_v19  ;;  %v1049_v49 = vsub.f32 %v5565_v63, %v1041_v21 }
 0x313   : > { %v905_v24 = vpop.permute.xlu1 %904 }
 0x314   : > { %5066 = vpow2.f32 %v1056_v23  ;;  %4602 = vmatprep.subr.bf16.mxu1 %v905_v24  ;;  %v1054_v50 = vmul.f32 1.442695, %v1049_v49 }
 0x315   : > { %v1047_v27 = vpop.xlane.xlu0 %1046  ;;  %4603 = vmatpush3.bf16.msra.mxu1 %v905_v24  ;;  %5068 = vpow2.f32 %v874_v22 }
 0x316   : > { %v1051_v28 = vsub.f32 %v4617_v61, %v1047_v27  ;;  %5070 = vpow2.f32 %v1052_v26 }
 0x318   : > { %v5577_v29 = vpop.eup %5062  ;;  %v1058_v31 = vmul.f32 1.442695, %v1051_v28 }
 0x319   : > { %v888_v32 = vsel %vm857_vm3, %v5577_v29, 0.0 }
 0x31a   : > { %5072 = vpow2.f32 %v1058_v31  ;;  %889 = vadd.xlane.f32.xlu1 %v888_v32  ;;  %v780_v32 = vld [vmem:[%s5479_s25] sm:$0xf] }
 0x31b   : > { %5074 = vpow2.f32 %v876_v30 }
 0x31c   : > { %v5065_v33 = vpop.eup %5064  ;;  %5076 = vpow2.f32 %v1054_v50 }
 0x31d   : > { %v891_v36 = vsel %vm857_vm3, %v5065_v33, 0.0 }
 0x31e   : > { %v5582_v37 = vpop.eup %5066  ;;  %892 = vadd.xlane.f32.xlu0 %v891_v36 }
 0x31f   : > { %v1066_v38 = vsel %vm857_vm3, %v5582_v37, 0.0  ;;  %v5069_v39 = vpop.eup %5068 }
 0x320   : > { %1067 = vadd.xlane.f32.xlu1 %v1066_v38  ;;  %v5586_v40 = vpop.eup %5070  ;;  %v882_v41 = vsel %vm857_vm3, %v5069_v39, 0.0 }
 0x321   : > { %v1060_v47 = vsel %vm857_vm3, %v5586_v40, 0.0 }
 0x324   : > { %v5589_v42 = vpop.eup %5072  ;;  %883 = vadd.xlane.f32.xlu1 %v882_v41 }
 0x325   : > { %v1069_v43 = vsel %vm857_vm3, %v5589_v42, 0.0  ;;  %v5075_v46 = vpop.eup %5074 }
 0x326   : > { %1070 = vadd.xlane.f32.xlu0 %v1069_v43  ;;  %v885_v48 = vsel %vm857_vm3, %v5075_v46, 0.0  ;;  %v5077_v51 = vpop.eup %5076 }
 0x327   : > { %v1063_v52 = vsel %vm857_vm3, %v5077_v51, 0.0 }
 0x328   : > { %1061 = vadd.xlane.f32.xlu1 %v1060_v47 }
 0x32a   : > { %886 = vadd.xlane.f32.xlu0 %v885_v48 }
 0x339   : > { %1082 = vrot.lane.b32.xlu1 %v5534_v34, %s5327_s17 }
 0x33d   : > { %1084 = vrot.lane.b32.xlu1 %v5542_v44, %s5327_s17  ;;  %s5342_s17 = smov 52  }
 0x340   : > { %906 = vrot.lane.b32.xlu0 %v5542_v44, %s5326_s19  ;;  %s5341_s19 = smov 12  }
 0x341   : > { %1272 = vrot.lane.b32.xlu1 %v5542_v44, %s5328_s12 }
 0x345   : > { %1268 = vrot.lane.b32.xlu1 %v5542_v44, %s5329_s13 }
 0x349   : > { %1512 = vrot.lane.b32.xlu1 %v5542_v44, %s5330_s1 }
 0x34d   : > { %1508 = vrot.lane.b32.xlu1 %v5542_v44, %s5331_s24 }
 0x35f   : > { %1064 = vadd.xlane.f32.xlu0 %v1063_v52  ;;  %v1215_v52 = vsel %vm1155_vm4, %v780_v32, 0 }
 0x375   : > { %1270 = vrot.lane.b32.xlu0 %v5534_v34, %s5328_s12  ;;  %s5343_s12 = smov 100  }
 0x379   : > { %1266 = vrot.lane.b32.xlu0 %v5534_v34, %s5329_s13 }
 0x37d   : > { %1510 = vrot.lane.b32.xlu0 %v5534_v34, %s5330_s1  ;;  %s5344_s1 = smov 8  }
 0x381   : > { %1506 = vrot.lane.b32.xlu0 %v5534_v34, %s5331_s24 }
 0x3a7   : > { %v890_v53 = vpop.xlane.xlu1 %889 }
 0x3ab   : > { %v893_v55 = vpop.xlane.xlu0 %892 }
 0x3ac   : > { %5078 = vrcp.f32 %v893_v55 }
 0x3ad   : > { %v1068_v54 = vpop.xlane.xlu1 %1067 }
 0x3b1   : > { %v884_v56 = vpop.xlane.xlu1 %883 }
 0x3b2   : > { %5080 = vrcp.f32 %v884_v56 }
 0x3b3   : > { %v1071_v57 = vpop.xlane.xlu0 %1070  ;;  %5082 = vrcp.f32 %v890_v53 }
 0x3b5   : > { %v1062_v58 = vpop.xlane.xlu1 %1061 }
 0x3b6   : > { %v5079_v62 = vpop.eup %5078 }
 0x3b7   : > { %v887_v59 = vpop.xlane.xlu0 %886  ;;  %v901_v2 = vmul.f32 %v5079_v62, %v5065_v33  ;;  %v4337_v33 = vcombine.low %v780_v32, %v780_v32 }
 0x3b8   : > { %5084 = vrcp.f32 %v887_v59 }
 0x3b9   : > { %v1083_v61 = vpop.permute.xlu1 %1082  ;;  %5086 = vrcp.f32 %v1071_v57  ;;  %v1148_v36 = vrot.slane %v4337_v33, 2 }
 0x3ba   : > { %5088 = vrcp.f32 %v1062_v58 }
 0x3bb   : > { %v907_v60 = vpop.permute.xlu0 %906  ;;  %5090 = vrcp.f32 %v1068_v54  ;;  %4932 = vmatprep.subr.msk.bf16.mxu0 %vm1155_vm4, %v1148_v36 }
 0x3bc   : > { %4604 = vmatprep.subr.bf16.mxu1 %v907_v60  ;;  %v5081_v63 = vpop.eup %5080 }
 0x3bd   : > { %4605 = vmatpush3.bf16.msra.mxu1 %v907_v60  ;;  %v5083_v0 = vpop.eup %5082  ;;  %v898_v3 = vmul.f32 %v5081_v63, %v5069_v39  ;;  %v1085_v8 = vpop.permute.xlu1 %1084 }
 0x3be   : > { %4618 = vmatprep.subr.bf16.mxu1 %v1083_v61  ;;  %v900_v5 = vmul.f32 %v5083_v0, %v5577_v29 }
 0x3c0   : > { %v903_v7 = vpack.c.bf16 %v901_v2, %v900_v5 }
 0x3c1   : > { %v1273_v23 = vpop.permute.xlu1 %1272 }
 0x3c2   : > { %v5085_v1 = vpop.eup %5084  ;;  %v1284_v24 = vsel %vm795_vm2, %v1273_v23, 0 }
 0x3c3   : > { %v899_v4 = vmul.f32 %v5085_v1, %v5075_v46  ;;  %v5087_v11 = vpop.eup %5086 }
 0x3c4   : > { %v5089_v12 = vpop.eup %5088  ;;  %v1079_v15 = vmul.f32 %v5087_v11, %v5589_v42 }
 0x3c5   : > { %v902_v6 = vpack.c.bf16 %v899_v4, %v898_v3  ;;  %v5091_v13 = vpop.eup %5090  ;;  %v1076_v16 = vmul.f32 %v5089_v12, %v5586_v40  ;;  %v1269_v26 = vpop.permute.xlu1 %1268 }
 0x3c6   : > { %v1078_v18 = vmul.f32 %v5091_v13, %v5582_v37  ;;  %v1157_v37 = vsel %vm1155_vm4, %v1148_v36, 0 }
 0x3c7   : > { %4606 = vmatprep.mubr.msk.bf16.mxu1 %vm857_vm3, %v902_v6  ;;  %4627 = vmatpush3.bf16.msra.mxu0 %v1157_v37 }
 0x3c8   : > { %4607 = vmatmul.mubr.msk.bf16.vlgmr.msra.gmra.mrb[12].mxu1 %vm857_vm3, %v903_v7  ;;  %v1081_v20 = vpack.c.bf16 %v1079_v15, %v1078_v18  ;;  %4933 = vmatprep.subr.msk.bf16.mxu0 %vm1155_vm4, %v780_v32 }
 0x3c9   : > { %4619 = vmatpush3.bf16.msra.mxu1 %v1083_v61  ;;  %v1513_v29 = vpop.permute.xlu1 %1512 }
 0x3ca   : > { %4620 = vmatprep.subr.bf16.mxu1 %v1085_v8  ;;  %v1524_v30 = vsel %vm795_vm2, %v1513_v29, 0 }
 0x3cd   : > { %4621 = vmatpush3.bf16.msra.mxu1 %v1085_v8  ;;  %v1509_v31 = vpop.permute.xlu1 %1508 }
 0x3ec   : > { %v1065_v9 = vpop.xlane.xlu0 %1064 }
 0x3ed   : > { %5092 = vrcp.f32 %v1065_v9 }
 0x3f0   : > { %v1271_v10 = vpop.permute.xlu0 %1270 }
 0x3f1   : > { %4934 = vmatprep.subr.msk.bf16.mxu1 %vm795_vm2, %v1271_v10  ;;  %v1281_v22 = vsel %vm795_vm2, %v1271_v10, 0 }
 0x3f4   : > { %v1267_v21 = vpop.permute.xlu0 %1266 }
 0x3f7   : > { %v5093_v14 = vpop.eup %5092 }
 0x3f8   : > { %v1077_v17 = vmul.f32 %v5093_v14, %v5077_v51  ;;  %v1511_v25 = vpop.permute.xlu0 %1510 }
 0x3f9   : > { %v1521_v28 = vsel %vm795_vm2, %v1511_v25, 0 }
 0x3fa   : > { %v1080_v19 = vpack.c.bf16 %v1077_v17, %v1076_v16 }
 0x3fc   : > { %4622 = vmatprep.mubr.msk.bf16.mxu1 %vm857_vm3, %v1080_v19  ;;  %v1507_v27 = vpop.permute.xlu0 %1506 }
 0x3fd   : > { %4623 = vmatmul.mubr.msk.bf16.vlgmr.msra.gmra.mrb[16].mxu1 %vm857_vm3, %v1081_v20 }
 0x3fe   : > { %4639 = vmatpush3.bf16.xpose.msra.mxu1 %v1281_v22  ;;  %4642 = vmatprep.mubr.msk.bf16.mxu1 %vm795_vm2, %v1267_v21 }
 0x3ff   : > { %4935 = vmatprep.subr.msk.bf16.mxu1 %vm795_vm2, %v1273_v23 }
 0x406   : > { %4641 = vmatpush3.bf16.xpose.msra.mxu1 %v1284_v24 }
 0x407   : > { %4937 = vmatprep.subr.msk.bf16.mxu1 %vm795_vm2, %v1511_v25 }
 0x40d   : > { %4643 = vmatmul.mubr.msk.bf16.vlgmr.msra.gmra.mrb[20].mxu1 %vm795_vm2, %v1269_v26 }
 0x40e   : > { %4661 = vmatpush3.bf16.xpose.msra.mxu1 %v1521_v28  ;;  %4664 = vmatprep.mubr.msk.bf16.mxu1 %vm795_vm2, %v1507_v27 }
 0x40f   : > { %4938 = vmatprep.subr.msk.bf16.mxu1 %vm795_vm2, %v1513_v29 }
 0x416   : > { %4663 = vmatpush3.bf16.xpose.msra.mxu1 %v1524_v30 }
 0x41d   : > { %4665 = vmatmul.mubr.msk.bf16.vlgmr.msra.gmra.mrb[24].mxu1 %vm795_vm2, %v1509_v31 }
 0x49b   : > { %v4608_v38 = vpop.f32.mrb[12].mxu1 }
 0x49c   : > { %v950_v39 = vpop.f32.mrb[13].mxu1 }
 0x49d   : > { %v4609_v40 = vpop.f32.mrb[14].mxu1 }
 0x49e   : > { %v966_v41 = vpack.c.bf16 %v4609_v40, %v4608_v38  ;;  %v953_v42 = vpop.f32.mrb[15].mxu1 }
 0x49f   : > { %v965_v43 = vpack.c.bf16 %v953_v42, %v950_v39 }
 0x4d0   : > { %v4624_v46 = vpop.f32.mrb[16].mxu1 }
 0x4d1   : > { %v1128_v47 = vpop.f32.mrb[17].mxu1 }
 0x4d2   : > { %v4625_v48 = vpop.f32.mrb[18].mxu1 }
 0x4d3   : > { %v1144_v49 = vpack.c.bf16 %v4625_v48, %v4624_v46  ;;  %v1131_v50 = vpop.f32.mrb[19].mxu1 }
 0x4d4   : > { %v1143_v51 = vpack.c.bf16 %v1131_v50, %v1128_v47 }
 0x4d6   : > { %4628 = vmatprep.mubr.msk.bf16.mxu0 %vm795_vm2, %v1143_v51 }
 0x4d7   : > { %4629 = vmatmul.mubr.msk.bf16.vlgmr.msra.gmra.mrb[4].mxu0 %vm795_vm2, %v1144_v49 }
 0x4d8   : > { %4634 = vmatprep.mubr.msk.bf16.mxu0 %vm795_vm2, %v965_v43  ;;  %4633 = vmatpush3.bf16.msra.mxu0 %v1215_v52 }
 0x4e0   : > { %v4644_v53 = vpop.f32.mrb[20].mxu1 }
 0x4e1   : > { %v1320_v54 = vpop.f32.mrb[21].mxu1  ;;  %v1341_v59 = vsel %vm857_vm3, %v4644_v53, -inf }
 0x4e2   : > { %v4645_v55 = vpop.f32.mrb[22].mxu1  ;;  %v1335_v56 = vsel %vm857_vm3, %v1320_v54, -inf }
 0x4e3   : > { %1336 = vmax.xlane.f32.xlu0 %v1335_v56  ;;  %v1323_v57 = vpop.f32.mrb[23].mxu1  ;;  %4635 = vmatmul.mubr.msk.bf16.vlgmr.msra.gmra.mrb[4].mxu0 %vm795_vm2, %v966_v41  ;;  %v1344_v60 = vsel %vm857_vm3, %v4645_v55, -inf }
 0x4e4   : > { %v1338_v58 = vsel %vm857_vm3, %v1323_v57, -inf }
 0x4e5   : > { %1339 = vmax.xlane.f32.xlu1 %v1338_v58 }
 0x4e7   : > { %1342 = vmax.xlane.f32.xlu0 %v1341_v59 }
 0x4eb   : > { %1345 = vmax.xlane.f32.xlu0 %v1344_v60 }
 0x4f0   : > { %v5647_v61 = vpop.f32.mrb[24].mxu1 }
 0x4f1   : > { %v5649_v62 = vpop.f32.mrb[25].mxu1  ;;  %v1581_v23 = vsel %vm857_vm3, %v5647_v61, -inf }
 0x4f2   : > { %v5651_v63 = vpop.f32.mrb[26].mxu1  ;;  %v1575_v21 = vsel %vm857_vm3, %v5649_v62, -inf }
 0x4f3   : > { %v5653_v0 = vpop.f32.mrb[27].mxu1  ;;  %v1584_v24 = vsel %vm857_vm3, %v5651_v63, -inf }
 0x4f4   : > { %v1578_v22 = vsel %vm857_vm3, %v5653_v0, -inf }
 0x570   : > { %v1337_v1 = vpop.xlane.xlu0 %1336 }
 0x571   : > { %v1347_v2 = vsub.f32 %v1320_v54, %v1337_v1 }
 0x572   : > { %v1340_v3 = vpop.xlane.xlu1 %1339 }
 0x573   : > { %v1351_v6 = vmul.f32 1.442695, %v1347_v2  ;;  %v1348_v7 = vsub.f32 %v1323_v57, %v1340_v3 }
 0x574   : > { %v1343_v4 = vpop.xlane.xlu0 %1342 }
 0x575   : > { %v1349_v5 = vsub.f32 %v4644_v53, %v1343_v4  ;;  %v1353_v11 = vmul.f32 1.442695, %v1348_v7  ;;  %v781_v7 = vld [vmem:[%s5479_s25 + $0x4] sm:$0xf] }
 0x577   : > { %v1355_v8 = vmul.f32 1.442695, %v1349_v5 }
 0x578   : > { %v1346_v9 = vpop.xlane.xlu0 %1345 }
 0x579   : > { %5094 = vpow2.f32 %v1355_v8  ;;  %v1350_v10 = vsub.f32 %v4645_v55, %v1346_v9  ;;  %v1451_v8 = vsel %vm1155_vm4, %v781_v7, 0 }
 0x57a   : > { %5096 = vpow2.f32 %v1351_v6 }
 0x57b   : > { %v1357_v12 = vmul.f32 1.442695, %v1350_v10 }
 0x57d   : > { %5098 = vpow2.f32 %v1357_v12 }
 0x57e   : > { %5100 = vpow2.f32 %v1353_v11 }
 0x583   : > { %v5095_v13 = vpop.eup %5094 }
 0x584   : > { %v1365_v14 = vsel %vm857_vm3, %v5095_v13, 0.0  ;;  %v5097_v15 = vpop.eup %5096 }
 0x585   : > { %1366 = vadd.xlane.f32.xlu1 %v1365_v14  ;;  %v1359_v18 = vsel %vm857_vm3, %v5097_v15, 0.0 }
 0x587   : > { %v5099_v16 = vpop.eup %5098 }
 0x588   : > { %v1368_v17 = vsel %vm857_vm3, %v5099_v16, 0.0  ;;  %v5101_v19 = vpop.eup %5100 }
 0x589   : > { %1369 = vadd.xlane.f32.xlu0 %v1368_v17  ;;  %1360 = vadd.xlane.f32.xlu1 %v1359_v18  ;;  %v1362_v20 = vsel %vm857_vm3, %v5101_v19, 0.0 }
 0x58d   : > { %1363 = vadd.xlane.f32.xlu0 %v1362_v20 }
 0x59a   : > { %1381 = vrot.lane.b32.xlu1 %v5534_v34, %s5332_s28 }
 0x59e   : > { %1754 = vrot.lane.b32.xlu1 %v5534_v34, %s5333_s22 }
 0x5a2   : > { %1756 = vrot.lane.b32.xlu1 %v5542_v44, %s5333_s22  ;;  %s5346_s22 = smov 96  }
 0x5a3   : > { %1383 = vrot.lane.b32.xlu0 %v5542_v44, %s5332_s28  ;;  %s5345_s28 = smov 48  }
 0x5a6   : > { %1752 = vrot.lane.b32.xlu1 %v5542_v44, %s5334_s30 }
 0x5a7   : > { %1750 = vrot.lane.b32.xlu0 %v5534_v34, %s5334_s30  ;;  %s5347_s30 = smov 4  }
 0x5c6   : > { %1576 = vmax.xlane.f32.xlu0 %v1575_v21 }
 0x5ca   : > { %1579 = vmax.xlane.f32.xlu1 %v1578_v22  ;;  %1582 = vmax.xlane.f32.xlu0 %v1581_v23  ;;  %v4352_v23 = vcombine.low %v781_v7, %v781_v7 }
 0x5ce   : > { %1585 = vmax.xlane.f32.xlu0 %v1584_v24 }
 0x612   : > { %v1367_v25 = vpop.xlane.xlu1 %1366 }
 0x616   : > { %v1370_v26 = vpop.xlane.xlu0 %1369  ;;  %v1361_v27 = vpop.xlane.xlu1 %1360 }
 0x617   : > { %5102 = vrcp.f32 %v1370_v26 }
 0x618   : > { %5104 = vrcp.f32 %v1361_v27 }
 0x619   : > { %5106 = vrcp.f32 %v1367_v25 }
 0x61a   : > { %v1364_v28 = vpop.xlane.xlu0 %1363  ;;  %v1382_v29 = vpop.permute.xlu1 %1381 }
 0x61b   : > { %5108 = vrcp.f32 %v1364_v28  ;;  %4646 = vmatprep.subr.bf16.mxu0 %v1382_v29 }
 0x61c   : > { %4647 = vmatpush3.bf16.msra.mxu0 %v1382_v29 }
 0x61e   : > { %v1384_v30 = vpop.permute.xlu0 %1383  ;;  %v1755_v31 = vpop.permute.xlu1 %1754 }
 0x61f   : > { %4648 = vmatprep.subr.bf16.mxu0 %v1384_v30  ;;  %4940 = vmatprep.subr.msk.bf16.mxu1 %vm795_vm2, %v1755_v31  ;;  %v1765_v32 = vsel %vm795_vm2, %v1755_v31, 0 }
 0x620   : > { %4649 = vmatpush3.bf16.msra.mxu0 %v1384_v30  ;;  %4683 = vmatpush3.bf16.xpose.msra.mxu1 %v1765_v32 }
 0x621   : > { %v5103_v33 = vpop.eup %5102  ;;  %4936 = vmatprep.subr.msk.bf16.mxu0 %vm1155_vm4, %v781_v7 }
 0x622   : > { %v1751_v36 = vpop.permute.xlu0 %1750  ;;  %v1757_v37 = vpop.permute.xlu1 %1756  ;;  %v1378_v41 = vmul.f32 %v5103_v33, %v5099_v16 }
 0x623   : > { %v5105_v38 = vpop.eup %5104  ;;  %4941 = vmatprep.subr.msk.bf16.mxu1 %vm795_vm2, %v1757_v37  ;;  %4686 = vmatprep.mubr.msk.bf16.mxu1 %vm795_vm2, %v1751_v36  ;;  %v1768_v47 = vsel %vm795_vm2, %v1757_v37, 0  ;;  %v1687_v37 = vrot.slane %v4352_v23, 2 }
 0x624   : > { %v5107_v39 = vpop.eup %5106  ;;  %v1375_v42 = vmul.f32 %v5105_v38, %v5097_v15 }
 0x625   : > { %v5109_v40 = vpop.eup %5108  ;;  %v1377_v46 = vmul.f32 %v5107_v39, %v5095_v13 }
 0x626   : > { %v1376_v43 = vmul.f32 %v5109_v40, %v5101_v19  ;;  %v1753_v50 = vpop.permute.xlu1 %1752 }
 0x627   : > { %v1380_v49 = vpack.c.bf16 %v1378_v41, %v1377_v46 }
 0x628   : > { %4685 = vmatpush3.bf16.xpose.msra.mxu1 %v1768_v47  ;;  %v1379_v48 = vpack.c.bf16 %v1376_v43, %v1375_v42 }
 0x62a   : > { %4650 = vmatprep.mubr.msk.bf16.mxu0 %vm857_vm3, %v1379_v48 }
 0x62b   : > { %4651 = vmatmul.mubr.msk.bf16.vlgmr.msra.gmra.mrb[8].mxu0 %vm857_vm3, %v1380_v49 }
 0x62c   : > { %4655 = vmatpush3.bf16.msra.mxu0 %v1451_v8 }
 0x62f   : > { %4687 = vmatmul.mubr.msk.bf16.vlgmr.msra.gmra.mrb[28].mxu1 %vm795_vm2, %v1753_v50 }
 0x653   : > { %v1577_v51 = vpop.xlane.xlu0 %1576 }
 0x654   : > { %v1587_v52 = vsub.f32 %v5649_v62, %v1577_v51  ;;  %v1695_v51 = vsel %vm1155_vm4, %v1687_v37, 0 }
 0x656   : > { %v1591_v56 = vmul.f32 1.442695, %v1587_v52 }
 0x657   : > { %v1583_v53 = vpop.xlane.xlu0 %1582  ;;  %v1580_v54 = vpop.xlane.xlu1 %1579 }
 0x658   : > { %v1589_v55 = vsub.f32 %v5647_v61, %v1583_v53  ;;  %v1588_v58 = vsub.f32 %v5653_v0, %v1580_v54 }
 0x65a   : > { %v1595_v57 = vmul.f32 1.442695, %v1589_v55  ;;  %v1593_v1 = vmul.f32 1.442695, %v1588_v58 }
 0x65b   : > { %v1586_v59 = vpop.xlane.xlu0 %1585 }
 0x65c   : > { %5110 = vpow2.f32 %v1595_v57  ;;  %v1590_v60 = vsub.f32 %v5651_v63, %v1586_v59 }
 0x65d   : > { %5112 = vpow2.f32 %v1591_v56 }
 0x65e   : > { %v1597_v2 = vmul.f32 1.442695, %v1590_v60 }
 0x660   : > { %5114 = vpow2.f32 %v1597_v2 }
 0x661   : > { %5116 = vpow2.f32 %v1593_v1 }
 0x666   : > { %v5685_v3 = vpop.eup %5110 }
 0x667   : > { %v1605_v62 = vsel %vm857_vm3, %v5685_v3, 0.0  ;;  %v5689_v61 = vpop.eup %5112 }
 0x668   : > { %1606 = vadd.xlane.f32.xlu1 %v1605_v62  ;;  %v1599_v0 = vsel %vm857_vm3, %v5689_v61, 0.0 }
 0x66a   : > { %v5691_v4 = vpop.eup %5114 }
 0x66b   : > { %v1608_v63 = vsel %vm857_vm3, %v5691_v4, 0.0  ;;  %v5697_v5 = vpop.eup %5116 }
 0x66c   : > { %1600 = vadd.xlane.f32.xlu1 %v1599_v0  ;;  %1609 = vadd.xlane.f32.xlu0 %v1608_v63  ;;  %v1602_v6 = vsel %vm857_vm3, %v5697_v5, 0.0 }
 0x670   : > { %1603 = vadd.xlane.f32.xlu0 %v1602_v6 }
 0x67d   : > { %1621 = vrot.lane.b32.xlu1 %v5534_v34, %s5335_s29 }
 0x681   : > { %1994 = vrot.lane.b32.xlu1 %v5534_v34, %s5336_s26 }
 0x685   : > { %1996 = vrot.lane.b32.xlu1 %v5542_v44, %s5336_s26  ;;  %s5349_s26 = smov 92  }
 0x686   : > { %1623 = vrot.lane.b32.xlu0 %v5542_v44, %s5335_s29  ;;  %s5348_s29 = smov 44  }
 0x689   : > { %1992 = vrot.lane.b32.xlu1 %v5542_v44, %s5337_s3 }
 0x68a   : > { %1990 = vrot.lane.b32.xlu0 %v5534_v34, %s5337_s3  ;;  %s5350_s3 = smov 40  }
 0x6f5   : > { %v1607_v9 = vpop.xlane.xlu1 %1606 }
 0x6f9   : > { %v1610_v10 = vpop.xlane.xlu0 %1609  ;;  %v1601_v11 = vpop.xlane.xlu1 %1600 }
 0x6fa   : > { %5118 = vrcp.f32 %v1610_v10 }
 0x6fb   : > { %5120 = vrcp.f32 %v1601_v11 }
 0x6fc   : > { %5122 = vrcp.f32 %v1607_v9 }
 0x6fd   : > { %v1604_v12 = vpop.xlane.xlu0 %1603  ;;  %v1622_v13 = vpop.permute.xlu1 %1621 }
 0x6fe   : > { %5124 = vrcp.f32 %v1604_v12  ;;  %v4652_v14 = vpop.f32.mrb[8].mxu0  ;;  %4668 = vmatprep.subr.bf16.mxu0 %v1622_v13 }
 0x6ff   : > { %v1427_v15 = vpop.f32.mrb[9].mxu0 }
 0x700   : > { %v4653_v16 = vpop.f32.mrb[10].mxu0 }
 0x701   : > { %v1443_v17 = vpack.c.bf16 %v4653_v16, %v4652_v14  ;;  %v1430_v18 = vpop.f32.mrb[11].mxu0  ;;  %v1624_v19 = vpop.permute.xlu0 %1623 }
 0x702   : > { %v1442_v20 = vpack.c.bf16 %v1430_v18, %v1427_v15  ;;  %v1995_v21 = vpop.permute.xlu1 %1994  ;;  %v4688_v22 = vpop.f32.mrb[28].mxu1 }
 0x703   : > { %4943 = vmatprep.subr.msk.bf16.mxu1 %vm795_vm2, %v1995_v21  ;;  %v1804_v24 = vpop.f32.mrb[29].mxu1  ;;  %v2005_v25 = vsel %vm795_vm2, %v1995_v21, 0  ;;  %v1825_v40 = vsel %vm857_vm3, %v4688_v22, -inf }
 0x704   : > { %4705 = vmatpush3.bf16.xpose.msra.mxu1 %v2005_v25  ;;  %4656 = vmatprep.mubr.msk.bf16.mxu0 %vm795_vm2, %v1442_v20  ;;  %v4689_v26 = vpop.f32.mrb[30].mxu1  ;;  %v1819_v27 = vsel %vm857_vm3, %v1804_v24, -inf  ;;  %v5119_v28 = vpop.eup %5118 }
 0x705   : > { %4657 = vmatmul.mubr.msk.bf16.vlgmr.msra.gmra.mrb[4].mxu0 %vm795_vm2, %v1443_v17  ;;  %v1807_v29 = vpop.f32.mrb[31].mxu1  ;;  %1820 = vmax.xlane.f32.xlu0 %v1819_v27  ;;  %v1991_v30 = vpop.permute.xlu0 %1990  ;;  %v1618_v39 = vmul.f32 %v5119_v28, %v5691_v4  ;;  %v1828_v48 = vsel %vm857_vm3, %v4689_v26, -inf }
 0x706   : > { %v5121_v31 = vpop.eup %5120  ;;  %4669 = vmatpush3.bf16.msra.mxu0 %v1622_v13  ;;  %v1997_v32 = vpop.permute.xlu1 %1996  ;;  %4708 = vmatprep.mubr.msk.bf16.mxu1 %vm795_vm2, %v1991_v30  ;;  %v1822_v33 = vsel %vm857_vm3, %v1807_v29, -inf }
 0x707   : > { %v5123_v36 = vpop.eup %5122  ;;  %4670 = vmatprep.subr.bf16.mxu0 %v1624_v19  ;;  %4944 = vmatprep.subr.msk.bf16.mxu1 %vm795_vm2, %v1997_v32  ;;  %v1615_v41 = vmul.f32 %v5121_v31, %v5689_v61  ;;  %v2008_v46 = vsel %vm795_vm2, %v1997_v32, 0 }
 0x708   : > { %v5125_v38 = vpop.eup %5124  ;;  %1823 = vmax.xlane.f32.xlu1 %v1822_v33  ;;  %v1617_v43 = vmul.f32 %v5123_v36, %v5685_v3 }
 0x709   : > { %1826 = vmax.xlane.f32.xlu0 %v1825_v40  ;;  %v1616_v42 = vmul.f32 %v5125_v38, %v5697_v5 }
 0x70a   : > { %4671 = vmatpush3.bf16.msra.mxu0 %v1624_v19  ;;  %v1620_v49 = vpack.c.bf16 %v1618_v39, %v1617_v43  ;;  %v1993_v50 = vpop.permute.xlu1 %1992 }
 0x70b   : > { %v1619_v47 = vpack.c.bf16 %v1616_v42, %v1615_v41  ;;  %4939 = vmatprep.subr.msk.bf16.mxu0 %vm1155_vm4, %v1687_v37 }
 0x70c   : > { %4707 = vmatpush3.bf16.xpose.msra.mxu1 %v2008_v46 }
 0x70d   : > { %1829 = vmax.xlane.f32.xlu0 %v1828_v48  ;;  %4672 = vmatprep.mubr.msk.bf16.mxu0 %vm857_vm3, %v1619_v47 }
 0x70e   : > { %4673 = vmatmul.mubr.msk.bf16.vlgmr.msra.gmra.mrb[12].mxu0 %vm857_vm3, %v1620_v49 }
 0x70f   : > { %4677 = vmatpush3.bf16.msra.mxu0 %v1695_v51 }
 0x713   : > { %4709 = vmatmul.mubr.msk.bf16.vlgmr.msra.gmra.mrb[32].mxu1 %vm795_vm2, %v1993_v50 }
 0x792   : > { %v1821_v52 = vpop.xlane.xlu0 %1820 }
 0x793   : > { %v1831_v53 = vsub.f32 %v1804_v24, %v1821_v52 }
 0x795   : > { %v1824_v54 = vpop.xlane.xlu1 %1823  ;;  %v1835_v57 = vmul.f32 1.442695, %v1831_v53 }
 0x796   : > { %v1827_v55 = vpop.xlane.xlu0 %1826  ;;  %v1832_v58 = vsub.f32 %v1807_v29, %v1824_v54 }
 0x797   : > { %v1833_v56 = vsub.f32 %v4688_v22, %v1827_v55 }
 0x798   : > { %v1837_v2 = vmul.f32 1.442695, %v1832_v58 }
 0x799   : > { %v1839_v59 = vmul.f32 1.442695, %v1833_v56 }
 0x79a   : > { %v1830_v60 = vpop.xlane.xlu0 %1829 }
 0x79b   : > { %5126 = vpow2.f32 %v1839_v59  ;;  %v1834_v1 = vsub.f32 %v4689_v26, %v1830_v60 }
 0x79c   : > { %5128 = vpow2.f32 %v1835_v57 }
 0x79d   : > { %v1841_v3 = vmul.f32 1.442695, %v1834_v1 }
 0x79f   : > { %5130 = vpow2.f32 %v1841_v3 }
 0x7a0   : > { %5132 = vpow2.f32 %v1837_v2 }
 0x7a5   : > { %v5730_v62 = vpop.eup %5126 }
 0x7a6   : > { %v1849_v61 = vsel %vm857_vm3, %v5730_v62, 0.0  ;;  %v5734_v4 = vpop.eup %5128 }
 0x7a7   : > { %1850 = vadd.xlane.f32.xlu1 %v1849_v61  ;;  %v1843_v63 = vsel %vm857_vm3, %v5734_v4, 0.0 }
 0x7a9   : > { %v5736_v0 = vpop.eup %5130 }
 0x7aa   : > { %v1852_v5 = vsel %vm857_vm3, %v5736_v0, 0.0  ;;  %v5133_v6 = vpop.eup %5132 }
 0x7ab   : > { %1844 = vadd.xlane.f32.xlu1 %v1843_v63  ;;  %1853 = vadd.xlane.f32.xlu0 %v1852_v5  ;;  %v1846_v7 = vsel %vm857_vm3, %v5133_v6, 0.0  ;;  %v782_v63 = vld [vmem:[%s5479_s25 + $0x8] sm:$0xf] }
 0x7ac   : > { %v1935_v5 = vsel %vm1155_vm4, %v782_v63, 0 }
 0x7af   : > { %1847 = vadd.xlane.f32.xlu0 %v1846_v7 }
 0x7bc   : > { %1865 = vrot.lane.b32.xlu1 %v5534_v34, %s5338_s20 }
 0x7c0   : > { %2238 = vrot.lane.b32.xlu1 %v5534_v34, %s5339_s7 }
 0x7c4   : > { %2240 = vrot.lane.b32.xlu1 %v5542_v44, %s5339_s7  ;;  %s5352_s7 = smov 36  }
 0x7c5   : > { %1867 = vrot.lane.b32.xlu0 %v5542_v44, %s5338_s20  ;;  %s5351_s20 = smov 88  }
 0x7c8   : > { %2236 = vrot.lane.b32.xlu1 %v5542_v44, %s5340_s27 }
 0x7c9   : > { %2234 = vrot.lane.b32.xlu0 %v5534_v34, %s5340_s27  ;;  %s5353_s27 = smov 84  }
 0x7e1   : > { %v4674_v8 = vpop.f32.mrb[12].mxu0 }
 0x7e2   : > { %v1667_v9 = vpop.f32.mrb[13].mxu0 }
 0x7e3   : > { %v4675_v10 = vpop.f32.mrb[14].mxu0 }
 0x7e4   : > { %v1683_v11 = vpack.c.bf16 %v4675_v10, %v4674_v8  ;;  %v1670_v12 = vpop.f32.mrb[15].mxu0 }
 0x7e5   : > { %v1682_v13 = vpack.c.bf16 %v1670_v12, %v1667_v9 }
 0x7e6   : > { %v4710_v14 = vpop.f32.mrb[32].mxu1 }
 0x7e7   : > { %v2044_v15 = vpop.f32.mrb[33].mxu1  ;;  %4678 = vmatprep.mubr.msk.bf16.mxu0 %vm795_vm2, %v1682_v13  ;;  %v2065_v20 = vsel %vm857_vm3, %v4710_v14, -inf }
 0x7e8   : > { %v4711_v16 = vpop.f32.mrb[34].mxu1  ;;  %4679 = vmatmul.mubr.msk.bf16.vlgmr.msra.gmra.mrb[4].mxu0 %vm795_vm2, %v1683_v11  ;;  %v2059_v17 = vsel %vm857_vm3, %v2044_v15, -inf }
 0x7e9   : > { %v2047_v18 = vpop.f32.mrb[35].mxu1  ;;  %2060 = vmax.xlane.f32.xlu0 %v2059_v17  ;;  %v2068_v21 = vsel %vm857_vm3, %v4711_v16, -inf }
 0x7ea   : > { %v2062_v19 = vsel %vm857_vm3, %v2047_v18, -inf }
 0x7ec   : > { %2063 = vmax.xlane.f32.xlu1 %v2062_v19 }
 0x7ed   : > { %2066 = vmax.xlane.f32.xlu0 %v2065_v20  ;;  %v4365_v20 = vcombine.low %v782_v63, %v782_v63 }
 0x7f1   : > { %2069 = vmax.xlane.f32.xlu0 %v2068_v21 }
 0x834   : > { %v1851_v22 = vpop.xlane.xlu1 %1850 }
 0x838   : > { %v1854_v23 = vpop.xlane.xlu0 %1853  ;;  %v1845_v24 = vpop.xlane.xlu1 %1844 }
 0x839   : > { %5134 = vrcp.f32 %v1854_v23 }
 0x83a   : > { %5136 = vrcp.f32 %v1845_v24 }
 0x83b   : > { %5138 = vrcp.f32 %v1851_v22 }
 0x83c   : > { %v1848_v25 = vpop.xlane.xlu0 %1847  ;;  %v1866_v26 = vpop.permute.xlu1 %1865 }
 0x83d   : > { %5140 = vrcp.f32 %v1848_v25  ;;  %4690 = vmatprep.subr.bf16.mxu0 %v1866_v26 }
 0x83e   : > { %4691 = vmatpush3.bf16.msra.mxu0 %v1866_v26 }
 0x840   : > { %v1868_v27 = vpop.permute.xlu0 %1867  ;;  %v2239_v28 = vpop.permute.xlu1 %2238 }
 0x841   : > { %4692 = vmatprep.subr.bf16.mxu0 %v1868_v27  ;;  %4946 = vmatprep.subr.msk.bf16.mxu1 %vm795_vm2, %v2239_v28  ;;  %v2249_v29 = vsel %vm795_vm2, %v2239_v28, 0 }
 0x842   : > { %4693 = vmatpush3.bf16.msra.mxu0 %v1868_v27  ;;  %4727 = vmatpush3.bf16.xpose.msra.mxu1 %v2249_v29 }
 0x843   : > { %v5135_v30 = vpop.eup %5134  ;;  %4942 = vmatprep.subr.msk.bf16.mxu0 %vm1155_vm4, %v782_v63 }
 0x844   : > { %v2235_v31 = vpop.permute.xlu0 %2234  ;;  %v2241_v32 = vpop.permute.xlu1 %2240  ;;  %v1862_v38 = vmul.f32 %v5135_v30, %v5736_v0 }
 0x845   : > { %v5137_v33 = vpop.eup %5136  ;;  %4947 = vmatprep.subr.msk.bf16.mxu1 %vm795_vm2, %v2241_v32  ;;  %4730 = vmatprep.mubr.msk.bf16.mxu1 %vm795_vm2, %v2235_v31  ;;  %v2252_v42 = vsel %vm795_vm2, %v2241_v32, 0  ;;  %v2171_v32 = vrot.slane %v4365_v20, 2 }
 0x846   : > { %v5139_v36 = vpop.eup %5138  ;;  %v1859_v39 = vmul.f32 %v5137_v33, %v5734_v4 }
 0x847   : > { %v5141_v37 = vpop.eup %5140  ;;  %v1861_v41 = vmul.f32 %v5139_v36, %v5730_v62 }
 0x848   : > { %v1860_v40 = vmul.f32 %v5141_v37, %v5133_v6  ;;  %v2237_v47 = vpop.permute.xlu1 %2236 }
 0x849   : > { %v1864_v46 = vpack.c.bf16 %v1862_v38, %v1861_v41 }
 0x84a   : > { %4729 = vmatpush3.bf16.xpose.msra.mxu1 %v2252_v42  ;;  %v1863_v43 = vpack.c.bf16 %v1860_v40, %v1859_v39 }
 0x84c   : > { %4694 = vmatprep.mubr.msk.bf16.mxu0 %vm857_vm3, %v1863_v43 }
 0x84d   : > { %4695 = vmatmul.mubr.msk.bf16.vlgmr.msra.gmra.mrb[16].mxu0 %vm857_vm3, %v1864_v46 }
 0x84e   : > { %4699 = vmatpush3.bf16.msra.mxu0 %v1935_v5 }
 0x851   : > { %4731 = vmatmul.mubr.msk.bf16.vlgmr.msra.gmra.mrb[36].mxu1 %vm795_vm2, %v2237_v47 }
 0x876   : > { %v2061_v48 = vpop.xlane.xlu0 %2060 }
 0x877   : > { %v2071_v49 = vsub.f32 %v2044_v15, %v2061_v48  ;;  %v2179_v48 = vsel %vm1155_vm4, %v2171_v32, 0 }
 0x879   : > { %v2064_v51 = vpop.xlane.xlu1 %2063  ;;  %v2075_v53 = vmul.f32 1.442695, %v2071_v49 }
 0x87a   : > { %v2067_v50 = vpop.xlane.xlu0 %2066  ;;  %v2072_v55 = vsub.f32 %v2047_v18, %v2064_v51 }
 0x87b   : > { %v2073_v52 = vsub.f32 %v4710_v14, %v2067_v50 }
 0x87c   : > { %v2077_v58 = vmul.f32 1.442695, %v2072_v55 }
 0x87d   : > { %v2079_v54 = vmul.f32 1.442695, %v2073_v52 }
 0x87e   : > { %v2070_v56 = vpop.xlane.xlu0 %2069 }
 0x87f   : > { %5142 = vpow2.f32 %v2079_v54  ;;  %v2074_v57 = vsub.f32 %v4711_v16, %v2070_v56 }
 0x880   : > { %5144 = vpow2.f32 %v2075_v53 }
 0x881   : > { %v2081_v59 = vmul.f32 1.442695, %v2074_v57 }
 0x883   : > { %5146 = vpow2.f32 %v2081_v59 }
 0x884   : > { %5148 = vpow2.f32 %v2077_v58 }
 0x889   : > { %v5766_v60 = vpop.eup %5142 }
 0x88a   : > { %v2089_v1 = vsel %vm857_vm3, %v5766_v60, 0.0  ;;  %v5770_v2 = vpop.eup %5144 }
 0x88b   : > { %2090 = vadd.xlane.f32.xlu1 %v2089_v1  ;;  %v2083_v62 = vsel %vm857_vm3, %v5770_v2, 0.0 }
 0x88d   : > { %v5772_v3 = vpop.eup %5146 }
 0x88e   : > { %v2092_v61 = vsel %vm857_vm3, %v5772_v3, 0.0  ;;  %v5778_v4 = vpop.eup %5148 }
 0x88f   : > { %2084 = vadd.xlane.f32.xlu1 %v2083_v62  ;;  %2093 = vadd.xlane.f32.xlu0 %v2092_v61  ;;  %v2086_v0 = vsel %vm857_vm3, %v5778_v4, 0.0 }
 0x893   : > { %2087 = vadd.xlane.f32.xlu0 %v2086_v0 }
 0x8a0   : > { %2105 = vrot.lane.b32.xlu1 %v5534_v34, %s5341_s19 }
 0x8a4   : > { %2478 = vrot.lane.b32.xlu1 %v5534_v34, %s5342_s17 }
 0x8a8   : > { %2480 = vrot.lane.b32.xlu1 %v5542_v44, %s5342_s17 }
 0x8a9   : > { %2107 = vrot.lane.b32.xlu0 %v5542_v44, %s5341_s19  ;;  %s6157_s19 = scalar_lea.vmem %s6119_s5, %s5458_s15 }
 0x8ac   : > { %2476 = vrot.lane.b32.xlu1 %v5542_v44, %s5343_s12 }
 0x8ad   : > { %2474 = vrot.lane.b32.xlu0 %v5534_v34, %s5343_s12 }
 0x918   : > { %v2091_v6 = vpop.xlane.xlu1 %2090 }
 0x91c   : > { %v2094_v7 = vpop.xlane.xlu0 %2093  ;;  %v2085_v8 = vpop.xlane.xlu1 %2084 }
 0x91d   : > { %5150 = vrcp.f32 %v2094_v7 }
 0x91e   : > { %5152 = vrcp.f32 %v2085_v8 }
 0x91f   : > { %5154 = vrcp.f32 %v2091_v6 }
 0x920   : > { %v2088_v9 = vpop.xlane.xlu0 %2087  ;;  %v2106_v10 = vpop.permute.xlu1 %2105 }
 0x921   : > { %5156 = vrcp.f32 %v2088_v9  ;;  %v4696_v11 = vpop.f32.mrb[16].mxu0  ;;  %4712 = vmatprep.subr.bf16.mxu0 %v2106_v10 }
 0x922   : > { %v1911_v12 = vpop.f32.mrb[17].mxu0 }
 0x923   : > { %v4697_v13 = vpop.f32.mrb[18].mxu0 }
 0x924   : > { %v1927_v14 = vpack.c.bf16 %v4697_v13, %v4696_v11  ;;  %v1914_v15 = vpop.f32.mrb[19].mxu0  ;;  %v2108_v16 = vpop.permute.xlu0 %2107 }
 0x925   : > { %v1926_v17 = vpack.c.bf16 %v1914_v15, %v1911_v12  ;;  %v2479_v18 = vpop.permute.xlu1 %2478  ;;  %v4732_v19 = vpop.f32.mrb[36].mxu1 }
 0x926   : > { %v2489_v21 = vsel %vm795_vm2, %v2479_v18, 0  ;;  %4949 = vmatprep.subr.msk.bf16.mxu1 %vm795_vm2, %v2479_v18  ;;  %v2288_v22 = vpop.f32.mrb[37].mxu1  ;;  %v2309_v37 = vsel %vm857_vm3, %v4732_v19, -inf }
 0x927   : > { %4749 = vmatpush3.bf16.xpose.msra.mxu1 %v2489_v21  ;;  %4700 = vmatprep.mubr.msk.bf16.mxu0 %vm795_vm2, %v1926_v17  ;;  %v4733_v23 = vpop.f32.mrb[38].mxu1  ;;  %v2303_v24 = vsel %vm857_vm3, %v2288_v22, -inf  ;;  %v5151_v25 = vpop.eup %5150 }
 0x928   : > { %4701 = vmatmul.mubr.msk.bf16.vlgmr.msra.gmra.mrb[4].mxu0 %vm795_vm2, %v1927_v14  ;;  %v2291_v26 = vpop.f32.mrb[39].mxu1  ;;  %2304 = vmax.xlane.f32.xlu0 %v2303_v24  ;;  %v2475_v27 = vpop.permute.xlu0 %2474  ;;  %v2102_v36 = vmul.f32 %v5151_v25, %v5772_v3  ;;  %v2312_v43 = vsel %vm857_vm3, %v4733_v23, -inf }
 0x929   : > { %v5153_v28 = vpop.eup %5152  ;;  %4713 = vmatpush3.bf16.msra.mxu0 %v2106_v10  ;;  %v2481_v29 = vpop.permute.xlu1 %2480  ;;  %4752 = vmatprep.mubr.msk.bf16.mxu1 %vm795_vm2, %v2475_v27  ;;  %v2306_v30 = vsel %vm857_vm3, %v2291_v26, -inf }
 0x92a   : > { %v5155_v31 = vpop.eup %5154  ;;  %4714 = vmatprep.subr.bf16.mxu0 %v2108_v16  ;;  %4950 = vmatprep.subr.msk.bf16.mxu1 %vm795_vm2, %v2481_v29  ;;  %v2099_v38 = vmul.f32 %v5153_v28, %v5770_v2  ;;  %v2492_v41 = vsel %vm795_vm2, %v2481_v29, 0 }
 0x92b   : > { %v5157_v33 = vpop.eup %5156  ;;  %2307 = vmax.xlane.f32.xlu1 %v2306_v30  ;;  %v2101_v40 = vmul.f32 %v5155_v31, %v5766_v60 }
 0x92c   : > { %2310 = vmax.xlane.f32.xlu0 %v2309_v37  ;;  %v2100_v39 = vmul.f32 %v5157_v33, %v5778_v4 }
 0x92d   : > { %4715 = vmatpush3.bf16.msra.mxu0 %v2108_v16  ;;  %v2104_v46 = vpack.c.bf16 %v2102_v36, %v2101_v40  ;;  %v2477_v47 = vpop.permute.xlu1 %2476 }
 0x92e   : > { %v2103_v42 = vpack.c.bf16 %v2100_v39, %v2099_v38  ;;  %4945 = vmatprep.subr.msk.bf16.mxu0 %vm1155_vm4, %v2171_v32 }
 0x92f   : > { %4751 = vmatpush3.bf16.xpose.msra.mxu1 %v2492_v41 }
 0x930   : > { %2313 = vmax.xlane.f32.xlu0 %v2312_v43  ;;  %4716 = vmatprep.mubr.msk.bf16.mxu0 %vm857_vm3, %v2103_v42 }
 0x931   : > { %4717 = vmatmul.mubr.msk.bf16.vlgmr.msra.gmra.mrb[20].mxu0 %vm857_vm3, %v2104_v46 }
 0x932   : > { %4721 = vmatpush3.bf16.msra.mxu0 %v2179_v48 }
 0x936   : > { %4753 = vmatmul.mubr.msk.bf16.vlgmr.msra.gmra.mrb[40].mxu1 %vm795_vm2, %v2477_v47 }
 0x9b5   : > { %v2305_v49 = vpop.xlane.xlu0 %2304 }
 0x9b6   : > { %v2315_v50 = vsub.f32 %v2288_v22, %v2305_v49 }
 0x9b8   : > { %v2308_v51 = vpop.xlane.xlu1 %2307  ;;  %v2319_v54 = vmul.f32 1.442695, %v2315_v50 }
 0x9b9   : > { %v2311_v52 = vpop.xlane.xlu0 %2310  ;;  %v2316_v55 = vsub.f32 %v2291_v26, %v2308_v51 }
 0x9ba   : > { %v2317_v53 = vsub.f32 %v4732_v19, %v2311_v52 }
 0x9bb   : > { %v2321_v59 = vmul.f32 1.442695, %v2316_v55 }
 0x9bc   : > { %v2323_v56 = vmul.f32 1.442695, %v2317_v53 }
 0x9bd   : > { %v2314_v57 = vpop.xlane.xlu0 %2313 }
 0x9be   : > { %5158 = vpow2.f32 %v2323_v56  ;;  %v2318_v58 = vsub.f32 %v4733_v23, %v2314_v57 }
 0x9bf   : > { %5160 = vpow2.f32 %v2319_v54 }
 0x9c0   : > { %v2325_v60 = vmul.f32 1.442695, %v2318_v58 }
 0x9c2   : > { %5162 = vpow2.f32 %v2325_v60 }
 0x9c3   : > { %5164 = vpow2.f32 %v2321_v59 }
 0x9c8   : > { %v5811_v1 = vpop.eup %5158 }
 0x9c9   : > { %v2333_v2 = vsel %vm857_vm3, %v5811_v1, 0.0  ;;  %v5815_v3 = vpop.eup %5160 }
 0x9ca   : > { %2334 = vadd.xlane.f32.xlu1 %v2333_v2  ;;  %v2327_v61 = vsel %vm857_vm3, %v5815_v3, 0.0 }
 0x9cc   : > { %v5817_v62 = vpop.eup %5162 }
 0x9cd   : > { %v2336_v4 = vsel %vm857_vm3, %v5817_v62, 0.0  ;;  %v5165_v0 = vpop.eup %5164 }
 0x9ce   : > { %2328 = vadd.xlane.f32.xlu1 %v2327_v61  ;;  %2337 = vadd.xlane.f32.xlu0 %v2336_v4  ;;  %v2330_v63 = vsel %vm857_vm3, %v5165_v0, 0.0  ;;  %v783_v61 = vld [vmem:[%s5479_s25 + $0xc] sm:$0xf] }
 0x9cf   : > { %v2419_v4 = vsel %vm1155_vm4, %v783_v61, 0 }
 0x9d2   : > { %2331 = vadd.xlane.f32.xlu0 %v2330_v63 }
 0x9df   : > { %2349 = vrot.lane.b32.xlu1 %v5534_v34, %s5344_s1 }
 0x9e3   : > { %2722 = vrot.lane.b32.xlu1 %v5534_v34, %s5345_s28 }
 0x9e7   : > { %2724 = vrot.lane.b32.xlu1 %v5542_v44, %s5345_s28 }
 0x9e8   : > { %2351 = vrot.lane.b32.xlu0 %v5542_v44, %s5344_s1  ;;  %s6158_s1 = scalar_lea.vmem %s6120_s6, %s5458_s15 }
 0x9eb   : > { %2720 = vrot.lane.b32.xlu1 %v5542_v44, %s5346_s22 }
 0x9ec   : > { %2718 = vrot.lane.b32.xlu0 %v5534_v34, %s5346_s22 }
 0xa04   : > { %v4718_v5 = vpop.f32.mrb[20].mxu0 }
 0xa05   : > { %v2151_v6 = vpop.f32.mrb[21].mxu0 }
 0xa06   : > { %v4719_v7 = vpop.f32.mrb[22].mxu0 }
 0xa07   : > { %v2167_v8 = vpack.c.bf16 %v4719_v7, %v4718_v5  ;;  %v2154_v9 = vpop.f32.mrb[23].mxu0 }
 0xa08   : > { %v2166_v10 = vpack.c.bf16 %v2154_v9, %v2151_v6 }
 0xa09   : > { %v4754_v11 = vpop.f32.mrb[40].mxu1 }
 0xa0a   : > { %v2528_v12 = vpop.f32.mrb[41].mxu1  ;;  %4722 = vmatprep.mubr.msk.bf16.mxu0 %vm795_vm2, %v2166_v10  ;;  %v2549_v17 = vsel %vm857_vm3, %v4754_v11, -inf }
 0xa0b   : > { %v4755_v13 = vpop.f32.mrb[42].mxu1  ;;  %4723 = vmatmul.mubr.msk.bf16.vlgmr.msra.gmra.mrb[4].mxu0 %vm795_vm2, %v2167_v8  ;;  %v2543_v14 = vsel %vm857_vm3, %v2528_v12, -inf }
 0xa0c   : > { %v2531_v15 = vpop.f32.mrb[43].mxu1  ;;  %2544 = vmax.xlane.f32.xlu0 %v2543_v14  ;;  %v2552_v18 = vsel %vm857_vm3, %v4755_v13, -inf }
 0xa0d   : > { %v2546_v16 = vsel %vm857_vm3, %v2531_v15, -inf }
 0xa0f   : > { %2547 = vmax.xlane.f32.xlu1 %v2546_v16 }
 0xa10   : > { %2550 = vmax.xlane.f32.xlu0 %v2549_v17  ;;  %v4378_v17 = vcombine.low %v783_v61, %v783_v61 }
 0xa14   : > { %2553 = vmax.xlane.f32.xlu0 %v2552_v18 }
 0xa57   : > { %v2335_v19 = vpop.xlane.xlu1 %2334 }
 0xa5b   : > { %v2338_v20 = vpop.xlane.xlu0 %2337  ;;  %v2329_v21 = vpop.xlane.xlu1 %2328 }
 0xa5c   : > { %5166 = vrcp.f32 %v2338_v20 }
 0xa5d   : > { %5168 = vrcp.f32 %v2329_v21 }
 0xa5e   : > { %5170 = vrcp.f32 %v2335_v19 }
 0xa5f   : > { %v2332_v22 = vpop.xlane.xlu0 %2331  ;;  %v2350_v23 = vpop.permute.xlu1 %2349 }
 0xa60   : > { %5172 = vrcp.f32 %v2332_v22  ;;  %4734 = vmatprep.subr.bf16.mxu0 %v2350_v23 }
 0xa61   : > { %4735 = vmatpush3.bf16.msra.mxu0 %v2350_v23 }
 0xa63   : > { %v2352_v24 = vpop.permute.xlu0 %2351  ;;  %v2723_v25 = vpop.permute.xlu1 %2722 }
 0xa64   : > { %v2733_v26 = vsel %vm795_vm2, %v2723_v25, 0  ;;  %4736 = vmatprep.subr.bf16.mxu0 %v2352_v24  ;;  %4952 = vmatprep.subr.msk.bf16.mxu1 %vm795_vm2, %v2723_v25 }
 0xa65   : > { %4737 = vmatpush3.bf16.msra.mxu0 %v2352_v24  ;;  %4771 = vmatpush3.bf16.xpose.msra.mxu1 %v2733_v26 }
 0xa66   : > { %v5167_v27 = vpop.eup %5166  ;;  %4948 = vmatprep.subr.msk.bf16.mxu0 %vm1155_vm4, %v783_v61 }
 0xa67   : > { %v2719_v28 = vpop.permute.xlu0 %2718  ;;  %v2725_v29 = vpop.permute.xlu1 %2724  ;;  %v2346_v33 = vmul.f32 %v5167_v27, %v5817_v62 }
 0xa68   : > { %v5169_v30 = vpop.eup %5168  ;;  %4953 = vmatprep.subr.msk.bf16.mxu1 %vm795_vm2, %v2725_v29  ;;  %4774 = vmatprep.mubr.msk.bf16.mxu1 %vm795_vm2, %v2719_v28  ;;  %v2736_v39 = vsel %vm795_vm2, %v2725_v29, 0  ;;  %v2655_v29 = vrot.slane %v4378_v17, 2 }
 0xa69   : > { %v5171_v31 = vpop.eup %5170  ;;  %v2343_v36 = vmul.f32 %v5169_v30, %v5815_v3 }
 0xa6a   : > { %v5173_v32 = vpop.eup %5172  ;;  %v2345_v38 = vmul.f32 %v5171_v31, %v5811_v1 }
 0xa6b   : > { %v2344_v37 = vmul.f32 %v5173_v32, %v5165_v0  ;;  %v2721_v42 = vpop.permute.xlu1 %2720 }
 0xa6c   : > { %v2348_v41 = vpack.c.bf16 %v2346_v33, %v2345_v38 }
 0xa6d   : > { %4773 = vmatpush3.bf16.xpose.msra.mxu1 %v2736_v39  ;;  %v2347_v40 = vpack.c.bf16 %v2344_v37, %v2343_v36 }
 0xa6f   : > { %4738 = vmatprep.mubr.msk.bf16.mxu0 %vm857_vm3, %v2347_v40 }
 0xa70   : > { %4739 = vmatmul.mubr.msk.bf16.vlgmr.msra.gmra.mrb[24].mxu0 %vm857_vm3, %v2348_v41 }
 0xa71   : > { %4743 = vmatpush3.bf16.msra.mxu0 %v2419_v4 }
 0xa74   : > { %4775 = vmatmul.mubr.msk.bf16.vlgmr.msra.gmra.mrb[44].mxu1 %vm795_vm2, %v2721_v42  ;;  %v2663_v42 = vsel %vm1155_vm4, %v2655_v29, 0 }
 0xa99   : > { %v2545_v43 = vpop.xlane.xlu0 %2544 }
 0xa9a   : > { %v2555_v46 = vsub.f32 %v2528_v12, %v2545_v43 }
 0xa9c   : > { %v2548_v48 = vpop.xlane.xlu1 %2547  ;;  %v2559_v50 = vmul.f32 1.442695, %v2555_v46 }
 0xa9d   : > { %v2551_v47 = vpop.xlane.xlu0 %2550  ;;  %v2556_v52 = vsub.f32 %v2531_v15, %v2548_v48 }
 0xa9e   : > { %v2557_v49 = vsub.f32 %v4754_v11, %v2551_v47 }
 0xa9f   : > { %v2561_v55 = vmul.f32 1.442695, %v2556_v52 }
 0xaa0   : > { %v2563_v51 = vmul.f32 1.442695, %v2557_v49 }
 0xaa1   : > { %v2554_v53 = vpop.xlane.xlu0 %2553 }
 0xaa2   : > { %5174 = vpow2.f32 %v2563_v51  ;;  %v2558_v54 = vsub.f32 %v4755_v13, %v2554_v53 }
 0xaa3   : > { %5176 = vpow2.f32 %v2559_v50 }
 0xaa4   : > { %v2565_v56 = vmul.f32 1.442695, %v2558_v54 }
 0xaa6   : > { %5178 = vpow2.f32 %v2565_v56 }
 0xaa7   : > { %5180 = vpow2.f32 %v2561_v55 }
 0xaac   : > { %v5847_v57 = vpop.eup %5174 }
 0xaad   : > { %v2573_v58 = vsel %vm857_vm3, %v5847_v57, 0.0  ;;  %v5851_v59 = vpop.eup %5176 }
 0xaae   : > { %2574 = vadd.xlane.f32.xlu1 %v2573_v58  ;;  %v2567_v1 = vsel %vm857_vm3, %v5851_v59, 0.0 }
 0xab0   : > { %v5853_v60 = vpop.eup %5178 }
 0xab1   : > { %v2576_v2 = vsel %vm857_vm3, %v5853_v60, 0.0  ;;  %v5859_v3 = vpop.eup %5180 }
 0xab2   : > { %2568 = vadd.xlane.f32.xlu1 %v2567_v1  ;;  %2577 = vadd.xlane.f32.xlu0 %v2576_v2  ;;  %v2570_v62 = vsel %vm857_vm3, %v5859_v3, 0.0 }
 0xab6   : > { %2571 = vadd.xlane.f32.xlu0 %v2570_v62 }
 0xac3   : > { %2589 = vrot.lane.b32.xlu1 %v5534_v34, %s5347_s30 }
 0xac7   : > { %2958 = vrot.lane.b32.xlu1 %v5534_v34, %s5348_s29 }
 0xacb   : > { %2960 = vrot.lane.b32.xlu1 %v5542_v44, %s5348_s29 }
 0xacc   : > { %2591 = vrot.lane.b32.xlu0 %v5542_v44, %s5347_s30  ;;  %s6159_s30 = scalar_lea.vmem %s6122_s8, %s5458_s15 }
 0xacf   : > { %2956 = vrot.lane.b32.xlu1 %v5542_v44, %s5349_s26 }
 0xad0   : > { %2954 = vrot.lane.b32.xlu0 %v5534_v34, %s5349_s26 }
 0xb3b   : > { %v2575_v0 = vpop.xlane.xlu1 %2574 }
 0xb3f   : > { %v2578_v63 = vpop.xlane.xlu0 %2577  ;;  %v2569_v5 = vpop.xlane.xlu1 %2568 }
 0xb40   : > { %5182 = vrcp.f32 %v2578_v63 }
 0xb41   : > { %5184 = vrcp.f32 %v2569_v5 }
 0xb42   : > { %5186 = vrcp.f32 %v2575_v0 }
 0xb43   : > { %v2572_v6 = vpop.xlane.xlu0 %2571  ;;  %v2590_v7 = vpop.permute.xlu1 %2589 }
 0xb44   : > { %5188 = vrcp.f32 %v2572_v6  ;;  %v4740_v8 = vpop.f32.mrb[24].mxu0  ;;  %4756 = vmatprep.subr.bf16.mxu0 %v2590_v7 }
 0xb45   : > { %v2395_v9 = vpop.f32.mrb[25].mxu0 }
 0xb46   : > { %v4741_v10 = vpop.f32.mrb[26].mxu0 }
 0xb47   : > { %v2411_v11 = vpack.c.bf16 %v4741_v10, %v4740_v8  ;;  %v2398_v12 = vpop.f32.mrb[27].mxu0  ;;  %v2592_v13 = vpop.permute.xlu0 %2591 }
 0xb48   : > { %v2410_v14 = vpack.c.bf16 %v2398_v12, %v2395_v9  ;;  %v2959_v15 = vpop.permute.xlu1 %2958  ;;  %v4776_v16 = vpop.f32.mrb[44].mxu1 }
 0xb49   : > { %v2969_v18 = vsel %vm795_vm2, %v2959_v15, 0  ;;  %4955 = vmatprep.subr.msk.bf16.mxu1 %vm795_vm2, %v2959_v15  ;;  %v2772_v19 = vpop.f32.mrb[45].mxu1  ;;  %v2793_v32 = vsel %vm857_vm3, %v4776_v16, -inf }
 0xb4a   : > { %4793 = vmatpush3.bf16.xpose.msra.mxu1 %v2969_v18  ;;  %4744 = vmatprep.mubr.msk.bf16.mxu0 %vm795_vm2, %v2410_v14  ;;  %v4777_v20 = vpop.f32.mrb[46].mxu1  ;;  %v2787_v21 = vsel %vm857_vm3, %v2772_v19, -inf  ;;  %v5183_v22 = vpop.eup %5182 }
 0xb4b   : > { %4745 = vmatmul.mubr.msk.bf16.vlgmr.msra.gmra.mrb[4].mxu0 %vm795_vm2, %v2411_v11  ;;  %v2775_v23 = vpop.f32.mrb[47].mxu1  ;;  %2788 = vmax.xlane.f32.xlu0 %v2787_v21  ;;  %v2955_v24 = vpop.permute.xlu0 %2954  ;;  %v2586_v31 = vmul.f32 %v5183_v22, %v5853_v60  ;;  %v2796_v40 = vsel %vm857_vm3, %v4777_v20, -inf }
 0xb4c   : > { %v5185_v25 = vpop.eup %5184  ;;  %4757 = vmatpush3.bf16.msra.mxu0 %v2590_v7  ;;  %v2961_v26 = vpop.permute.xlu1 %2960  ;;  %4796 = vmatprep.mubr.msk.bf16.mxu1 %vm795_vm2, %v2955_v24  ;;  %v2790_v27 = vsel %vm857_vm3, %v2775_v23, -inf }
 0xb4d   : > { %v5187_v28 = vpop.eup %5186  ;;  %4758 = vmatprep.subr.bf16.mxu0 %v2592_v13  ;;  %4956 = vmatprep.subr.msk.bf16.mxu1 %vm795_vm2, %v2961_v26  ;;  %v2583_v33 = vmul.f32 %v5185_v25, %v5851_v59  ;;  %v2972_v38 = vsel %vm795_vm2, %v2961_v26, 0 }
 0xb4e   : > { %v5189_v30 = vpop.eup %5188  ;;  %2791 = vmax.xlane.f32.xlu1 %v2790_v27  ;;  %v2585_v37 = vmul.f32 %v5187_v28, %v5847_v57 }
 0xb4f   : > { %2794 = vmax.xlane.f32.xlu0 %v2793_v32  ;;  %v2584_v36 = vmul.f32 %v5189_v30, %v5859_v3 }
 0xb50   : > { %4759 = vmatpush3.bf16.msra.mxu0 %v2592_v13  ;;  %v2588_v41 = vpack.c.bf16 %v2586_v31, %v2585_v37  ;;  %v2957_v43 = vpop.permute.xlu1 %2956 }
 0xb51   : > { %v2587_v39 = vpack.c.bf16 %v2584_v36, %v2583_v33  ;;  %4951 = vmatprep.subr.msk.bf16.mxu0 %vm1155_vm4, %v2655_v29 }
 0xb52   : > { %4795 = vmatpush3.bf16.xpose.msra.mxu1 %v2972_v38 }
 0xb53   : > { %2797 = vmax.xlane.f32.xlu0 %v2796_v40  ;;  %4760 = vmatprep.mubr.msk.bf16.mxu0 %vm857_vm3, %v2587_v39 }
 0xb54   : > { %4761 = vmatmul.mubr.msk.bf16.vlgmr.msra.gmra.mrb[28].mxu0 %vm857_vm3, %v2588_v41 }
 0xb55   : > { %4765 = vmatpush3.bf16.msra.mxu0 %v2663_v42 }
 0xb56   : > { %4778 = vmatprep.subr.bf16.mxu0 %v5536_v35 }
 0xb59   : > { %4797 = vmatmul.mubr.msk.bf16.vlgmr.msra.gmra.mrb[48].mxu1 %vm795_vm2, %v2957_v43 }
 0xbd8   : > { %v2789_v46 = vpop.xlane.xlu0 %2788 }
 0xbd9   : > { %v2799_v47 = vsub.f32 %v2772_v19, %v2789_v46 }
 0xbdb   : > { %v2803_v48 = vmul.f32 1.442695, %v2799_v47  ;;  %v2792_v49 = vpop.xlane.xlu1 %2791 }
 0xbdc   : > { %v2800_v50 = vsub.f32 %v2775_v23, %v2792_v49  ;;  %v2795_v51 = vpop.xlane.xlu0 %2794 }
 0xbdd   : > { %5190 = vpow2.f32 %v2803_v48  ;;  %v2801_v52 = vsub.f32 %v4776_v16, %v2795_v51 }
 0xbde   : > { %v2805_v53 = vmul.f32 1.442695, %v2800_v50 }
 0xbdf   : > { %v2807_v54 = vmul.f32 1.442695, %v2801_v52 }
 0xbe0   : > { %5192 = vpow2.f32 %v2805_v53  ;;  %v2798_v55 = vpop.xlane.xlu0 %2797 }
 0xbe1   : > { %5194 = vpow2.f32 %v2807_v54  ;;  %v2802_v56 = vsub.f32 %v4777_v20, %v2798_v55 }
 0xbe3   : > { %v2809_v57 = vmul.f32 1.442695, %v2802_v56 }
 0xbe5   : > { %5196 = vpow2.f32 %v2809_v57 }
 0xbe7   : > { %v5191_v58 = vpop.eup %5190 }
 0xbe8   : > { %v2811_v59 = vsel %vm857_vm3, %v5191_v58, 0.0 }
 0xbe9   : > { %2812 = vadd.xlane.f32.xlu1 %v2811_v59 }
 0xbea   : > { %v5193_v60 = vpop.eup %5192 }
 0xbeb   : > { %v5894_v1 = vpop.eup %5194  ;;  %v2814_v2 = vsel %vm857_vm3, %v5193_v60, 0.0 }
 0xbec   : > { %2815 = vadd.xlane.f32.xlu0 %v2814_v2  ;;  %v2817_v3 = vsel %vm857_vm3, %v5894_v1, 0.0 }
 0xbed   : > { %2818 = vadd.xlane.f32.xlu1 %v2817_v3 }
 0xbef   : > { %v5197_v62 = vpop.eup %5196 }
 0xbf0   : > { %v2820_v61 = vsel %vm857_vm3, %v5197_v62, 0.0 }
 0xbf1   : > { %2821 = vadd.xlane.f32.xlu0 %v2820_v61 }
 0xbfe   : > { %3204 = vrot.lane.b32.xlu1 %v5534_v34, %s5350_s3 }
 0xc02   : > { %3200 = vrot.lane.b32.xlu1 %v5534_v34, %s5351_s20 }
 0xc06   : > { %3202 = vrot.lane.b32.xlu1 %v5542_v44, %s5351_s20 }
 0xc07   : > { %3206 = vrot.lane.b32.xlu0 %v5542_v44, %s5350_s3 }
 0xc27   : > { %v4762_v4 = vpop.f32.mrb[28].mxu0 }
 0xc28   : > { %v2635_v0 = vpop.f32.mrb[29].mxu0 }
 0xc29   : > { %v4763_v63 = vpop.f32.mrb[30].mxu0 }
 0xc2a   : > { %v2651_v5 = vpack.c.bf16 %v4763_v63, %v4762_v4  ;;  %v2638_v6 = vpop.f32.mrb[31].mxu0 }
 0xc2b   : > { %v2650_v7 = vpack.c.bf16 %v2638_v6, %v2635_v0 }
 0xc2c   : > { %v4798_v8 = vpop.f32.mrb[48].mxu1 }
 0xc2d   : > { %v3008_v9 = vpop.f32.mrb[49].mxu1  ;;  %4766 = vmatprep.mubr.msk.bf16.mxu0 %vm795_vm2, %v2650_v7  ;;  %v3029_v14 = vsel %vm857_vm3, %v4798_v8, -inf }
 0xc2e   : > { %v4799_v10 = vpop.f32.mrb[50].mxu1  ;;  %4767 = vmatmul.mubr.msk.bf16.vlgmr.msra.gmra.mrb[4].mxu0 %vm795_vm2, %v2651_v5  ;;  %v3023_v11 = vsel %vm857_vm3, %v3008_v9, -inf }
 0xc2f   : > { %4779 = vmatpush3.bf16.msra.mxu0 %v5536_v35  ;;  %v3011_v12 = vpop.f32.mrb[51].mxu1  ;;  %3024 = vmax.xlane.f32.xlu0 %v3023_v11  ;;  %v3032_v15 = vsel %vm857_vm3, %v4799_v10, -inf }
 0xc30   : > { %4780 = vmatprep.subr.bf16.mxu0 %v5544_v45  ;;  %v3026_v13 = vsel %vm857_vm3, %v3011_v12, -inf }
 0xc31   : > { %3027 = vmax.xlane.f32.xlu1 %v3026_v13 }
 0xc33   : > { %4781 = vmatpush3.bf16.msra.mxu0 %v5544_v45  ;;  %3030 = vmax.xlane.f32.xlu0 %v3029_v14 }
 0xc37   : > { %3033 = vmax.xlane.f32.xlu0 %v3032_v15 }
 0xc76   : > { %v2813_v16 = vpop.xlane.xlu1 %2812 }
 0xc77   : > { %5198 = vrcp.f32 %v2813_v16 }
 0xc79   : > { %v2816_v17 = vpop.xlane.xlu0 %2815 }
 0xc7a   : > { %5200 = vrcp.f32 %v2816_v17  ;;  %v2819_v18 = vpop.xlane.xlu1 %2818 }
 0xc7b   : > { %5202 = vrcp.f32 %v2819_v18 }
 0xc7e   : > { %v2822_v19 = vpop.xlane.xlu0 %2821  ;;  %v3205_v20 = vpop.permute.xlu1 %3204 }
 0xc7f   : > { %5204 = vrcp.f32 %v2822_v19  ;;  %v3215_v21 = vsel %vm795_vm2, %v3205_v20, 0  ;;  %4958 = vmatprep.subr.msk.bf16.mxu1 %vm795_vm2, %v3205_v20 }
 0xc80   : > { %4815 = vmatpush3.bf16.xpose.msra.mxu1 %v3215_v21 }
 0xc81   : > { %v5199_v22 = vpop.eup %5198 }
 0xc82   : > { %v3207_v23 = vpop.permute.xlu0 %3206  ;;  %v3201_v24 = vpop.permute.xlu1 %3200  ;;  %v2827_v26 = vmul.f32 %v5199_v22, %v5191_v58 }
 0xc83   : > { %4959 = vmatprep.subr.msk.bf16.mxu1 %vm795_vm2, %v3207_v23  ;;  %4818 = vmatprep.mubr.msk.bf16.mxu1 %vm795_vm2, %v3201_v24  ;;  %v3218_v29 = vsel %vm795_vm2, %v3207_v23, 0 }
 0xc84   : > { %v5201_v25 = vpop.eup %5200 }
 0xc85   : > { %v2828_v27 = vmul.f32 %v5201_v25, %v5193_v60  ;;  %v5203_v28 = vpop.eup %5202  ;;  %v784_v60 = vld [vmem:[%s5479_s25 + $0x10] sm:$0xf] }
 0xc86   : > { %v2829_v32 = vmul.f32 %v5203_v28, %v5894_v1  ;;  %v3203_v37 = vpop.permute.xlu1 %3202  ;;  %4954 = vmatprep.subr.msk.bf16.mxu0 %vm1155_vm4, %v784_v60  ;;  %v2899_v1 = vsel %vm1155_vm4, %v784_v60, 0  ;;  %v4391_v11 = vcombine.low %v784_v60, %v784_v60 }
 0xc87   : > { %v2831_v30 = vpack.c.bf16 %v2828_v27, %v2827_v26 }
 0xc88   : > { %4817 = vmatpush3.bf16.xpose.msra.mxu1 %v3218_v29  ;;  %v3137_v16 = vrot.slane %v4391_v11, 2 }
 0xc89   : > { %v5205_v31 = vpop.eup %5204  ;;  %4782 = vmatprep.mubr.msk.bf16.mxu0 %vm857_vm3, %v2831_v30 }
 0xc8a   : > { %v2830_v33 = vmul.f32 %v5205_v31, %v5197_v62 }
 0xc8c   : > { %v2832_v36 = vpack.c.bf16 %v2830_v33, %v2829_v32 }
 0xc8e   : > { %4783 = vmatmul.mubr.msk.bf16.vlgmr.msra.gmra.mrb[32].mxu0 %vm857_vm3, %v2832_v36  ;;  %v3145_v36 = vsel %vm1155_vm4, %v3137_v16, 0 }
 0xc8f   : > { %4819 = vmatmul.mubr.msk.bf16.vlgmr.msra.gmra.mrb[52].mxu1 %vm795_vm2, %v3203_v37  ;;  %4787 = vmatpush3.bf16.msra.mxu0 %v2899_v1 }
 0xcbc   : > { %v3025_v38 = vpop.xlane.xlu0 %3024 }
 0xcbd   : > { %v3035_v39 = vsub.f32 %v3008_v9, %v3025_v38 }
 0xcbe   : > { %v3028_v40 = vpop.xlane.xlu1 %3027 }
 0xcbf   : > { %v3039_v43 = vmul.f32 1.442695, %v3035_v39  ;;  %v3036_v46 = vsub.f32 %v3011_v12, %v3028_v40 }
 0xcc0   : > { %v3031_v41 = vpop.xlane.xlu0 %3030 }
 0xcc1   : > { %v3037_v42 = vsub.f32 %v4798_v8, %v3031_v41  ;;  %v3041_v50 = vmul.f32 1.442695, %v3036_v46 }
 0xcc3   : > { %v3043_v47 = vmul.f32 1.442695, %v3037_v42 }
 0xcc4   : > { %v3034_v48 = vpop.xlane.xlu0 %3033 }
 0xcc5   : > { %5206 = vpow2.f32 %v3043_v47  ;;  %v3038_v49 = vsub.f32 %v4799_v10, %v3034_v48 }
 0xcc6   : > { %5208 = vpow2.f32 %v3039_v43 }
 0xcc7   : > { %v3045_v51 = vmul.f32 1.442695, %v3038_v49 }
 0xcc9   : > { %5210 = vpow2.f32 %v3045_v51 }
 0xcca   : > { %5212 = vpow2.f32 %v3041_v50 }
 0xccf   : > { %v5922_v52 = vpop.eup %5206 }
 0xcd0   : > { %v3053_v53 = vsel %vm857_vm3, %v5922_v52, 0.0  ;;  %v5926_v54 = vpop.eup %5208 }
 0xcd1   : > { %3054 = vadd.xlane.f32.xlu1 %v3053_v53  ;;  %v3047_v56 = vsel %vm857_vm3, %v5926_v54, 0.0 }
 0xcd3   : > { %v5928_v55 = vpop.eup %5210 }
 0xcd4   : > { %v3056_v57 = vsel %vm857_vm3, %v5928_v55, 0.0  ;;  %v5934_v58 = vpop.eup %5212 }
 0xcd5   : > { %3048 = vadd.xlane.f32.xlu1 %v3047_v56  ;;  %3057 = vadd.xlane.f32.xlu0 %v3056_v57  ;;  %v3050_v59 = vsel %vm857_vm3, %v5934_v58, 0.0 }
 0xcd9   : > { %3051 = vadd.xlane.f32.xlu0 %v3050_v59 }
 0xce6   : > { %3071 = vrot.lane.b32.xlu1 %v5536_v35, %s5325_s16 }
 0xcea   : > { %3444 = vrot.lane.b32.xlu1 %v5534_v34, %s5352_s7 }
 0xcee   : > { %3446 = vrot.lane.b32.xlu1 %v5542_v44, %s5352_s7 }
 0xcef   : > { %3073 = vrot.lane.b32.xlu0 %v5544_v45, %s5325_s16 }
 0xcf2   : > { %3442 = vrot.lane.b32.xlu1 %v5542_v44, %s5353_s27 }
 0xcf3   : > { %3440 = vrot.lane.b32.xlu0 %v5534_v34, %s5353_s27 }
 0xd5e   : > { %v3055_v2 = vpop.xlane.xlu1 %3054 }
 0xd61   : > { %v4784_v3 = vpop.f32.mrb[32].mxu0 }
 0xd62   : > { %v3058_v62 = vpop.xlane.xlu0 %3057  ;;  %v3049_v61 = vpop.xlane.xlu1 %3048 }
 0xd63   : > { %v2875_v4 = vpop.f32.mrb[33].mxu0  ;;  %v5949_v0 = vpop.f32.mrb[52].mxu1  ;;  %5214 = vrcp.f32 %v3058_v62 }
 0xd64   : > { %v4785_v63 = vpop.f32.mrb[34].mxu0  ;;  %v3254_v5 = vpop.f32.mrb[53].mxu1  ;;  %5216 = vrcp.f32 %v3049_v61  ;;  %v3275_v14 = vsel %vm857_vm3, %v5949_v0, -inf }
 0xd65   : > { %v2891_v6 = vpack.c.bf16 %v4785_v63, %v4784_v3  ;;  %v2878_v7 = vpop.f32.mrb[35].mxu0  ;;  %v5951_v8 = vpop.f32.mrb[54].mxu1  ;;  %v3269_v9 = vsel %vm857_vm3, %v3254_v5, -inf  ;;  %5218 = vrcp.f32 %v3055_v2 }
 0xd66   : > { %v2890_v44 = vpack.c.bf16 %v2878_v7, %v2875_v4  ;;  %v3257_v34 = vpop.f32.mrb[55].mxu1  ;;  %3270 = vmax.xlane.f32.xlu0 %v3269_v9  ;;  %v3052_v10 = vpop.xlane.xlu0 %3051  ;;  %v3278_v19 = vsel %vm857_vm3, %v5951_v8, -inf }
 0xd67   : > { %5220 = vrcp.f32 %v3052_v10  ;;  %v3072_v12 = vpop.permute.xlu1 %3071  ;;  %v3272_v13 = vsel %vm857_vm3, %v3257_v34, -inf }
 0xd68   : > { %4800 = vmatprep.subr.bf16.mxu0 %v3072_v12  ;;  %4788 = vmatprep.mubr.msk.bf16.mxu0 %vm795_vm2, %v2890_v44 }
 0xd69   : > { %3273 = vmax.xlane.f32.xlu1 %v3272_v13  ;;  %4789 = vmatmul.mubr.msk.bf16.vlgmr.msra.gmra.mrb[4].mxu0 %vm795_vm2, %v2891_v6 }
 0xd6a   : > { %4801 = vmatpush3.bf16.msra.mxu0 %v3072_v12  ;;  %3276 = vmax.xlane.f32.xlu0 %v3275_v14  ;;  %v3074_v15 = vpop.permute.xlu0 %3073 }
 0xd6b   : > { %v3445_v17 = vpop.permute.xlu1 %3444  ;;  %4802 = vmatprep.subr.bf16.mxu0 %v3074_v15 }
 0xd6c   : > { %v3455_v18 = vsel %vm795_vm2, %v3445_v17, 0  ;;  %4961 = vmatprep.subr.msk.bf16.mxu1 %vm795_vm2, %v3445_v17 }
 0xd6d   : > { %4837 = vmatpush3.bf16.xpose.msra.mxu1 %v3455_v18  ;;  %v5215_v20 = vpop.eup %5214 }
 0xd6e   : > { %4803 = vmatpush3.bf16.msra.mxu0 %v3074_v15  ;;  %3279 = vmax.xlane.f32.xlu0 %v3278_v19  ;;  %v3441_v21 = vpop.permute.xlu0 %3440  ;;  %v5217_v22 = vpop.eup %5216  ;;  %v3066_v26 = vmul.f32 %v5215_v20, %v5928_v55 }
 0xd6f   : > { %v3447_v23 = vpop.permute.xlu1 %3446  ;;  %4840 = vmatprep.mubr.msk.bf16.mxu1 %vm795_vm2, %v3441_v21  ;;  %4957 = vmatprep.subr.msk.bf16.mxu0 %vm1155_vm4, %v3137_v16  ;;  %v5219_v24 = vpop.eup %5218  ;;  %v3063_v27 = vmul.f32 %v5217_v22, %v5926_v54 }
 0xd70   : > { %4962 = vmatprep.subr.msk.bf16.mxu1 %vm795_vm2, %v3447_v23  ;;  %v3065_v29 = vmul.f32 %v5219_v24, %v5922_v52  ;;  %v3458_v30 = vsel %vm795_vm2, %v3447_v23, 0 }
 0xd71   : > { %v5221_v25 = vpop.eup %5220 }
 0xd72   : > { %v3064_v28 = vmul.f32 %v5221_v25, %v5934_v58  ;;  %v3068_v32 = vpack.c.bf16 %v3066_v26, %v3065_v29 }
 0xd73   : > { %v3443_v33 = vpop.permute.xlu1 %3442 }
 0xd74   : > { %v3067_v31 = vpack.c.bf16 %v3064_v28, %v3063_v27 }
 0xd75   : > { %4839 = vmatpush3.bf16.xpose.msra.mxu1 %v3458_v30 }
 0xd76   : > { %4804 = vmatprep.mubr.msk.bf16.mxu0 %vm857_vm3, %v3067_v31 }
 0xd77   : > { %4805 = vmatmul.mubr.msk.bf16.vlgmr.msra.gmra.mrb[36].mxu0 %vm857_vm3, %v3068_v32 }
 0xd78   : > { %4809 = vmatpush3.bf16.msra.mxu0 %v3145_v36 }
 0xd7c   : > { %4841 = vmatmul.mubr.msk.bf16.vlgmr.msra.gmra.mrb[56].mxu1 %vm795_vm2, %v3443_v33 }
 0xdf3   : > { %v3271_v37 = vpop.xlane.xlu0 %3270 }
 0xdf4   : > { %v3281_v38 = vsub.f32 %v3254_v5, %v3271_v37 }
 0xdf6   : > { %v3274_v39 = vpop.xlane.xlu1 %3273  ;;  %v3285_v42 = vmul.f32 1.442695, %v3281_v38 }
 0xdf7   : > { %v3277_v40 = vpop.xlane.xlu0 %3276  ;;  %v3282_v43 = vsub.f32 %v3257_v34, %v3274_v39 }
 0xdf8   : > { %v3283_v41 = vsub.f32 %v5949_v0, %v3277_v40 }
 0xdf9   : > { %v3287_v49 = vmul.f32 1.442695, %v3282_v43 }
 0xdfa   : > { %v3289_v46 = vmul.f32 1.442695, %v3283_v41 }
 0xdfb   : > { %v3280_v47 = vpop.xlane.xlu0 %3279 }
 0xdfc   : > { %5222 = vpow2.f32 %v3289_v46  ;;  %v3284_v48 = vsub.f32 %v5951_v8, %v3280_v47  ;;  %v785_v47 = vld [vmem:[%s5479_s25 + $0x14] sm:$0xf] }
 0xdfd   : > { %5224 = vpow2.f32 %v3285_v42 }
 0xdfe   : > { %v3291_v50 = vmul.f32 1.442695, %v3284_v48  ;;  %v3385_v48 = vsel %vm1155_vm4, %v785_v47, 0 }
 0xe00   : > { %5226 = vpow2.f32 %v3291_v50 }
 0xe01   : > { %5228 = vpow2.f32 %v3287_v49 }
 0xe06   : > { %v5223_v51 = vpop.eup %5222 }
 0xe07   : > { %v3299_v52 = vsel %vm857_vm3, %v5223_v51, 0.0  ;;  %v5225_v53 = vpop.eup %5224 }
 0xe08   : > { %3300 = vadd.xlane.f32.xlu1 %v3299_v52  ;;  %v3293_v55 = vsel %vm857_vm3, %v5225_v53, 0.0 }
 0xe0a   : > { %v5227_v54 = vpop.eup %5226 }
 0xe0b   : > { %v3302_v56 = vsel %vm857_vm3, %v5227_v54, 0.0  ;;  %v5229_v57 = vpop.eup %5228 }
 0xe0c   : > { %3294 = vadd.xlane.f32.xlu1 %v3293_v55  ;;  %3303 = vadd.xlane.f32.xlu0 %v3302_v56  ;;  %v3296_v58 = vsel %vm857_vm3, %v5229_v57, 0.0 }
 0xe10   : > { %3297 = vadd.xlane.f32.xlu0 %v3296_v58 }
 0xe1d   : > { %3315 = vrot.lane.b32.xlu1 %v5536_v35, %s5329_s13 }
 0xe26   : > { %3317 = vrot.lane.b32.xlu0 %v5544_v45, %s5329_s13  ;;  %s6156_s13 = scalar_lea.vmem %s6118_s4, %s5458_s15 }
 0xe4a   : > { %v4806_v59 = vpop.f32.mrb[36].mxu0 }
 0xe4b   : > { %v3117_v60 = vpop.f32.mrb[37].mxu0 }
 0xe4c   : > { %v4807_v1 = vpop.f32.mrb[38].mxu0 }
 0xe4d   : > { %v3133_v2 = vpack.c.bf16 %v4807_v1, %v4806_v59  ;;  %v3120_v3 = vpop.f32.mrb[39].mxu0  ;;  %v4404_v59 = vcombine.low %v785_v47, %v785_v47 }
 0xe4e   : > { %v3132_v62 = vpack.c.bf16 %v3120_v3, %v3117_v60 }
 0xe4f   : > { %v4842_v61 = vpop.f32.mrb[56].mxu1  ;;  %v3621_v60 = vrot.slane %v4404_v59, 2  ;;  %v5055_v59 = vld [vmem:[%s5496_s21 + $0x10] sm:$0xff]  }
 0xe50   : > { %v3494_v4 = vpop.f32.mrb[57].mxu1  ;;  %4810 = vmatprep.mubr.msk.bf16.mxu0 %vm795_vm2, %v3132_v62  ;;  %v3515_v7 = vsel %vm857_vm3, %v4842_v61, -inf }
 0xe51   : > { %v4843_v0 = vpop.f32.mrb[58].mxu1  ;;  %4811 = vmatmul.mubr.msk.bf16.vlgmr.msra.gmra.mrb[4].mxu0 %vm795_vm2, %v3133_v2  ;;  %v3509_v63 = vsel %vm857_vm3, %v3494_v4, -inf }
 0xe52   : > { %3510 = vmax.xlane.f32.xlu1 %v3509_v63  ;;  %v3497_v5 = vpop.f32.mrb[59].mxu1  ;;  %v3518_v8 = vsel %vm857_vm3, %v4843_v0, -inf }
 0xe53   : > { %v3512_v6 = vsel %vm857_vm3, %v3497_v5, -inf }
 0xe54   : > { %3513 = vmax.xlane.f32.xlu0 %v3512_v6 }
 0xe56   : > { %3516 = vmax.xlane.f32.xlu1 %v3515_v7  ;;  %v3629_v7 = vsel %vm1155_vm4, %v3621_v60, 0 }
 0xe58   : > { %3519 = vmax.xlane.f32.xlu0 %v3518_v8 }
 0xe95   : > { %v3301_v9 = vpop.xlane.xlu1 %3300 }
 0xe99   : > { %v3304_v44 = vpop.xlane.xlu0 %3303  ;;  %v3295_v34 = vpop.xlane.xlu1 %3294 }
 0xe9a   : > { %5230 = vrcp.f32 %v3304_v44 }
 0xe9b   : > { %5232 = vrcp.f32 %v3295_v34 }
 0xe9c   : > { %5234 = vrcp.f32 %v3301_v9 }
 0xe9d   : > { %v3298_v10 = vpop.xlane.xlu0 %3297  ;;  %v3316_v11 = vpop.permute.xlu1 %3315 }
 0xe9e   : > { %5236 = vrcp.f32 %v3298_v10  ;;  %4822 = vmatprep.subr.bf16.mxu0 %v3316_v11 }
 0xe9f   : > { %4823 = vmatpush3.bf16.msra.mxu0 %v3316_v11 }
 0xea1   : > { %v3318_v12 = vpop.permute.xlu0 %3317 }
 0xea2   : > { %4824 = vmatprep.subr.bf16.mxu0 %v3318_v12 }
 0xea3   : > { %4825 = vmatpush3.bf16.msra.mxu0 %v3318_v12  ;;  %v4407_v12 = vld [vmem:[%s6156_s13] ss:$0 sm:$0xff] }
 0xea4   : > { %v5231_v13 = vpop.eup %5230  ;;  %4960 = vmatprep.subr.msk.bf16.mxu0 %vm1155_vm4, %v785_v47 }
 0xea5   : > { %v5233_v14 = vpop.eup %5232  ;;  %v3312_v17 = vmul.f32 %v5231_v13, %v5227_v54 }
 0xea6   : > { %v5235_v15 = vpop.eup %5234  ;;  %v3309_v18 = vmul.f32 %v5233_v14, %v5225_v53 }
 0xea7   : > { %v3311_v20 = vmul.f32 %v5235_v15, %v5223_v51 }
 0xea8   : > { %v5237_v16 = vpop.eup %5236 }
 0xea9   : > { %v3310_v19 = vmul.f32 %v5237_v16, %v5229_v57  ;;  %v3314_v22 = vpack.c.bf16 %v3312_v17, %v3311_v20 }
 0xeab   : > { %v3313_v21 = vpack.c.bf16 %v3310_v19, %v3309_v18  ;;  %v5278_v19 = vld [vmem:[#allocation2] sm:$0xff] }
 0xead   : > { %4826 = vmatprep.mubr.msk.bf16.mxu0 %vm857_vm3, %v3313_v21 }
 0xeae   : > { %4827 = vmatmul.mubr.msk.bf16.vlgmr.msra.gmra.mrb[40].mxu0 %vm857_vm3, %v3314_v22 }
 0xeaf   : > { %4831 = vmatpush3.bf16.msra.mxu0 %v3385_v48 }
 0xedf   : > { %v3511_v23 = vpop.xlane.xlu1 %3510 }
 0xee0   : > { %v3521_v24 = vsub.f32 %v3494_v4, %v3511_v23  ;;  %v5279_v23 = vld [vmem:[#allocation2 + $0x10] sm:$0xff] }
 0xee1   : > { %v3514_v25 = vpop.xlane.xlu0 %3513 }
 0xee2   : > { %v3522_v27 = vsub.f32 %v3497_v5, %v3514_v25  ;;  %v3525_v29 = vmul.f32 1.442695, %v3521_v24  ;;  %v5280_v25 = vld [vmem:[#allocation2 + $0x8] sm:$0xff] }
 0xee3   : > { %v3517_v26 = vpop.xlane.xlu1 %3516 }
 0xee4   : > { %v3523_v28 = vsub.f32 %v4842_v61, %v3517_v26  ;;  %v3527_v33 = vmul.f32 1.442695, %v3522_v27 }
 0xee5   : > { %v3520_v30 = vpop.xlane.xlu0 %3519 }
 0xee6   : > { %v3529_v31 = vmul.f32 1.442695, %v3523_v28  ;;  %v3524_v32 = vsub.f32 %v4843_v0, %v3520_v30  ;;  %v5281_v28 = vld [vmem:[#allocation2 + $0x18] sm:$0xff] }
 0xee8   : > { %5238 = vpow2.f32 %v3529_v31  ;;  %v3531_v36 = vmul.f32 1.442695, %v3524_v32 }
 0xee9   : > { %5240 = vpow2.f32 %v3525_v29 }
 0xeea   : > { %5242 = vpow2.f32 %v3531_v36 }
 0xeeb   : > { %5244 = vpow2.f32 %v3527_v33 }
 0xef2   : > { %v5239_v37 = vpop.eup %5238 }
 0xef3   : > { %v5241_v38 = vpop.eup %5240  ;;  %v3539_v39 = vsel %vm857_vm3, %v5239_v37, 0.0 }
 0xef4   : > { %v5243_v40 = vpop.eup %5242  ;;  %3540 = vadd.xlane.f32.xlu1 %v3539_v39  ;;  %v3533_v43 = vsel %vm857_vm3, %v5241_v38, 0.0 }
 0xef5   : > { %v3542_v41 = vsel %vm857_vm3, %v5243_v40, 0.0  ;;  %v5245_v42 = vpop.eup %5244 }
 0xef6   : > { %3543 = vadd.xlane.f32.xlu0 %v3542_v41  ;;  %v3536_v46 = vsel %vm857_vm3, %v5245_v42, 0.0 }
 0xef8   : > { %3534 = vadd.xlane.f32.xlu1 %v3533_v43 }
 0xefa   : > { %3537 = vadd.xlane.f32.xlu0 %v3536_v46 }
 0xf09   : > { %3555 = vrot.lane.b32.xlu1 %v5536_v35, %s5331_s24 }
 0xf10   : > { %3557 = vrot.lane.b32.xlu0 %v5544_v45, %s5331_s24 }
 0xf81   : > { %v3541_v49 = vpop.xlane.xlu1 %3540  ;;  %v4828_v50 = vpop.f32.mrb[40].mxu0 }
 0xf82   : > { %v3361_v51 = vpop.f32.mrb[41].mxu0 }
 0xf83   : > { %v3544_v52 = vpop.xlane.xlu0 %3543  ;;  %v4829_v53 = vpop.f32.mrb[42].mxu0 }
 0xf84   : > { %v3377_v54 = vpack.c.bf16 %v4829_v53, %v4828_v50  ;;  %v3364_v55 = vpop.f32.mrb[43].mxu0  ;;  %5246 = vrcp.f32 %v3544_v52 }
 0xf85   : > { %v3376_v56 = vpack.c.bf16 %v3364_v55, %v3361_v51  ;;  %v3535_v57 = vpop.xlane.xlu1 %3534 }
 0xf86   : > { %5248 = vrcp.f32 %v3535_v57  ;;  %v5053_v57 = vld [vmem:[%s5496_s21] sm:$0xff]  }
 0xf87   : > { %5250 = vrcp.f32 %v3541_v49  ;;  %v3538_v58 = vpop.xlane.xlu0 %3537  ;;  %4832 = vmatprep.mubr.msk.bf16.mxu0 %vm795_vm2, %v3376_v56  ;;  %4858 = vmatprep.subr.bf16.mxu1 %v5053_v57 }
 0xf88   : > { %5252 = vrcp.f32 %v3538_v58  ;;  %4833 = vmatmul.mubr.msk.bf16.vlgmr.msra.gmra.mrb[4].mxu0 %vm795_vm2, %v3377_v54  ;;  %4859 = vmatpush3.bf16.msra.mxu1 %v5053_v57  ;;  %v5054_v58 = vld [vmem:[%s5496_s21 + $0x8] sm:$0xff]  }
 0xf89   : > { %v3556_v35 = vpop.permute.xlu1 %3555  ;;  %4860 = vmatprep.subr.bf16.mxu1 %v5054_v58 }
 0xf8a   : > { %4844 = vmatprep.subr.bf16.mxu0 %v3556_v35 }
 0xf8b   : > { %v3558_v45 = vpop.permute.xlu0 %3557  ;;  %4845 = vmatpush3.bf16.msra.mxu0 %v3556_v35 }
 0xf8c   : > { %4846 = vmatprep.subr.bf16.mxu0 %v3558_v45  ;;  %4861 = vmatpush3.bf16.msra.mxu1 %v5054_v58 }
 0xf8d   : > { %4862 = vmatprep.subr.bf16.mxu1 %v5055_v59 }
 0xf8e   : > { %v5247_v1 = vpop.eup %5246 }
 0xf8f   : > { %4847 = vmatpush3.bf16.msra.mxu0 %v3558_v45  ;;  %v3552_v61 = vmul.f32 %v5247_v1, %v5243_v40 }
 0xf90   : > { %v5249_v2 = vpop.eup %5248  ;;  %4963 = vmatprep.subr.msk.bf16.mxu0 %vm1155_vm4, %v3621_v60  ;;  %4863 = vmatpush3.bf16.msra.mxu1 %v5055_v59 }
 0xf91   : > { %v5251_v3 = vpop.eup %5250  ;;  %v3549_v4 = vmul.f32 %v5249_v2, %v5241_v38 }
 0xf92   : > { %v5253_v62 = vpop.eup %5252  ;;  %v3551_v63 = vmul.f32 %v5251_v3, %v5239_v37 }
 0xf93   : > { %v3550_v0 = vmul.f32 %v5253_v62, %v5245_v42 }
 0xf94   : > { %v3554_v6 = vpack.c.bf16 %v3552_v61, %v3551_v63 }
 0xf95   : > { %v3553_v5 = vpack.c.bf16 %v3550_v0, %v3549_v4 }
 0xf97   : > { %4848 = vmatprep.mubr.msk.bf16.mxu0 %vm857_vm3, %v3553_v5 }
 0xf98   : > { %4849 = vmatmul.mubr.msk.bf16.vlgmr.msra.gmra.mrb[44].mxu0 %vm857_vm3, %v3554_v6 }
 0xf99   : > { %4853 = vmatpush3.bf16.msra.mxu0 %v3629_v7  ;;  %v4408_v7 = vld [vmem:[%s6157_s19] ss:$0 sm:$0xff] }
0x106b   : > { %v4850_v8 = vpop.f32.mrb[44].mxu0 }
0x106c   : > { %v3601_v9 = vpop.f32.mrb[45].mxu0 }
0x106d   : > { %v4851_v44 = vpop.f32.mrb[46].mxu0 }
0x106e   : > { %v3617_v34 = vpack.c.bf16 %v4851_v44, %v4850_v8  ;;  %v3604_v10 = vpop.f32.mrb[47].mxu0 }
0x106f   : > { %v3616_v11 = vpack.c.bf16 %v3604_v10, %v3601_v9 }
0x1071   : > { %4854 = vmatprep.mubr.msk.bf16.mxu0 %vm795_vm2, %v3616_v11  ;;  %v4409_v11 = vld [vmem:[%s6158_s1] ss:$0 sm:$0xff] }
0x1072   : > { %4855 = vmatmul.mubr.msk.bf16.vlgmr.msra.gmra.mrb[4].mxu0 %vm795_vm2, %v3617_v34 }
0x1145   : > { %v4856_v13 = vpop.f32.mrb[4].mxu0 }
0x1146   : > { %v3665_v14 = vpop.f32.mrb[5].mxu0  ;;  %v3692_v15 = vadd.f32 %v4856_v13, %v4407_v12 }
0x1147   : > { %v3690_v16 = vadd.f32 %v4407_v12, %v3665_v14  ;;  %v4857_v17 = vpop.f32.mrb[6].mxu0 }
0x1148   : > { %v3668_v18 = vpop.f32.mrb[7].mxu0  ;;  %v3693_v21 = vadd.f32 %v4857_v17, %v4407_v12  ;;  %v3696_v24 = vadd.f32 %v5279_v23, %v3692_v15 }
0x1149   : > { %v3694_v20 = vadd.f32 %v5278_v19, %v3690_v16  ;;  %v3691_v22 = vadd.f32 %v4407_v12, %v3668_v18 }
0x114a   : > { %v3697_v29 = vadd.f32 %v5281_v28, %v3693_v21  ;;  %v3706_v31 = vsel %vm720_vm1, %v3696_v24, 0.0  ;;  %v5060_v28 = vld [vmem:[%s5505_s18 + $0x20] sm:$0xff]  }
0x114b   : > { %v3695_v26 = vadd.f32 %v5280_v25, %v3691_v22  ;;  %v3700_v27 = vsel %vm720_vm1, %v3694_v20, 0.0  ;;  %v5057_v25 = vld [vmem:[%s5505_s18 + $0x8] sm:$0xff]  }
0x114c   : > { %3701 = vadd.xlane.f32.xlu1 %v3700_v27  ;;  %v3709_v32 = vsel %vm720_vm1, %v3697_v29, 0.0  ;;  %v5059_v27 = vld [vmem:[%s5505_s18 + $0x18] sm:$0xff]  }
0x114d   : > { %v3703_v30 = vsel %vm720_vm1, %v3695_v26, 0.0 }
0x114e   : > { %3704 = vadd.xlane.f32.xlu0 %v3703_v30  ;;  %v4410_v30 = vld [vmem:[%s6159_s30] ss:$0 sm:$0xff] }
0x1150   : > { %3707 = vadd.xlane.f32.xlu1 %v3706_v31 }
0x1152   : > { %3710 = vadd.xlane.f32.xlu0 %v3709_v32 }
0x11d9   : > { %v3702_v33 = vpop.xlane.xlu1 %3701 }
0x11da   : > { %v3713_v36 = vmul.f32 0.020833334, %v3702_v33 }
0x11db   : > { %v3705_v37 = vpop.xlane.xlu0 %3704 }
0x11dc   : > { %v3717_v38 = vsub.f32 %v3694_v20, %v3713_v36  ;;  %v3714_v39 = vmul.f32 0.020833334, %v3705_v37 }
0x11dd   : > { %v3708_v40 = vpop.xlane.xlu1 %3707 }
0x11de   : > { %v3718_v41 = vsub.f32 %v3695_v26, %v3714_v39  ;;  %v3715_v42 = vmul.f32 0.020833334, %v3708_v40  ;;  %v3721_v43 = vmul.f32 %v3717_v38, %v3717_v38  ;;  %v5058_v26 = vld [vmem:[%s5505_s18 + $0x10] sm:$0xff]  }
0x11df   : > { %v3711_v46 = vpop.xlane.xlu0 %3710 }
0x11e0   : > { %v3719_v47 = vsub.f32 %v3696_v24, %v3715_v42  ;;  %v3716_v48 = vmul.f32 0.020833334, %v3711_v46  ;;  %v3725_v49 = vsel %vm720_vm1, %v3721_v43, 0.0  ;;  %v3722_v50 = vmul.f32 %v3718_v41, %v3718_v41  ;;  %v5056_v24 = vld [vmem:[%s5505_s18] sm:$0xff]  }
0x11e1   : > { %3726 = vadd.xlane.f32.xlu1 %v3725_v49  ;;  %4868 = vmatprep.subr.bf16.mxu0 %v5056_v24 }
0x11e2   : > { %v3720_v51 = vsub.f32 %v3697_v29, %v3716_v48  ;;  %v3728_v52 = vsel %vm720_vm1, %v3722_v50, 0.0  ;;  %v3723_v53 = vmul.f32 %v3719_v47, %v3719_v47  ;;  %4869 = vmatpush3.bf16.msra.mxu0 %v5056_v24  ;;  %v5061_v29 = vld [vmem:[%s5505_s18 + $0x28] sm:$0xff]  }
0x11e3   : > { %3729 = vadd.xlane.f32.xlu0 %v3728_v52  ;;  %4870 = vmatprep.subr.bf16.mxu0 %v5057_v25 }
0x11e4   : > { %v3731_v54 = vsel %vm720_vm1, %v3723_v53, 0.0  ;;  %v3724_v55 = vmul.f32 %v3720_v51, %v3720_v51 }
0x11e5   : > { %3732 = vadd.xlane.f32.xlu1 %v3731_v54 }
0x11e6   : > { %v3734_v56 = vsel %vm720_vm1, %v3724_v55, 0.0  ;;  %4871 = vmatpush3.bf16.msra.mxu0 %v5057_v25 }
0x11e7   : > { %3735 = vadd.xlane.f32.xlu0 %v3734_v56  ;;  %4872 = vmatprep.subr.bf16.mxu0 %v5058_v26 }
0x11ea   : > { %4873 = vmatpush3.bf16.msra.mxu0 %v5058_v26 }
0x11eb   : > { %4874 = vmatprep.subr.bf16.mxu0 %v5059_v27 }
0x11ee   : > { %4875 = vmatpush3.bf16.msra.mxu0 %v5059_v27 }
0x11ef   : > { %4876 = vmatprep.subr.bf16.mxu0 %v5060_v28 }
0x11f2   : > { %4877 = vmatpush3.bf16.msra.mxu0 %v5060_v28 }
0x11f3   : > { %4878 = vmatprep.subr.bf16.mxu0 %v5061_v29 }
0x11f6   : > { %4879 = vmatpush3.bf16.msra.mxu0 %v5061_v29 }
0x126e   : > { %v3727_v35 = vpop.xlane.xlu1 %3726 }
0x126f   : > { %v3737_v45 = vmul.f32 0.020833334, %v3727_v35 }
0x1270   : > { %v3730_v60 = vpop.xlane.xlu0 %3729 }
0x1271   : > { %v3741_v1 = vadd.f32 1e-05, %v3737_v45  ;;  %v3738_v2 = vmul.f32 0.020833334, %v3730_v60 }
0x1272   : > { %v3733_v3 = vpop.xlane.xlu1 %3732 }
0x1273   : > { %5254 = vrsqrt.f32 %v3741_v1  ;;  %v3742_v62 = vadd.f32 1e-05, %v3738_v2  ;;  %v3739_v61 = vmul.f32 0.020833334, %v3733_v3 }
0x1274   : > { %v3736_v4 = vpop.xlane.xlu0 %3735 }
0x1275   : > { %5256 = vrsqrt.f32 %v3742_v62  ;;  %v3743_v0 = vadd.f32 1e-05, %v3739_v61  ;;  %v3740_v63 = vmul.f32 0.020833334, %v3736_v4 }
0x1277   : > { %5258 = vrsqrt.f32 %v3743_v0  ;;  %v3744_v5 = vadd.f32 1e-05, %v3740_v63 }
0x1279   : > { %5260 = vrsqrt.f32 %v3744_v5 }
0x127d   : > { %v5255_v6 = vpop.eup %5254 }
0x127e   : > { %v3749_v8 = vmul.f32 %v5255_v6, %v3717_v38 }
0x127f   : > { %v5257_v9 = vpop.eup %5256 }
0x1280   : > { %v3750_v44 = vmul.f32 %v5257_v9, %v3718_v41  ;;  %v3759_v34 = vmul.f32 %v4408_v7, %v3749_v8 }
0x1281   : > { %v5259_v10 = vpop.eup %5258 }
0x1282   : > { %v3751_v12 = vmul.f32 %v5259_v10, %v3719_v47  ;;  %v3760_v13 = vmul.f32 %v4408_v7, %v3750_v44  ;;  %v6038_v17 = vadd.f32 %v4409_v11, %v3759_v34 }
0x1283   : > { %v5261_v14 = vpop.eup %5260 }
0x1284   : > { %v3761_v15 = vmul.f32 %v4408_v7, %v3751_v12  ;;  %v3752_v16 = vmul.f32 %v5261_v14, %v3720_v51  ;;  %v6040_v18 = vadd.f32 %v4409_v11, %v3760_v13  ;;  %v4416_v13 = vld [vmem:[%s636_s23] ss:$0 sm:$0xff] }
0x1286   : > { %v3762_v19 = vmul.f32 %v4408_v7, %v3752_v16  ;;  %v3779_v20 = vpack.c.bf16 %v6040_v18, %v6038_v17  ;;  %v6045_v21 = vadd.f32 %v4409_v11, %v3761_v15 }
0x1288   : > { %4864 = vmatprep.mubr.msk.bf16.mxu1 %vm720_vm1, %v3779_v20  ;;  %v6047_v22 = vadd.f32 %v4409_v11, %v3762_v19 }
0x128a   : > { %v3780_v23 = vpack.c.bf16 %v6047_v22, %v6045_v21 }
0x128c   : > { %4865 = vmatmul.mubr.msk.bf16.vlgmr.msra.gmra.mrb[60].mxu1 %vm720_vm1, %v3780_v23 }
0x135f   : > { %v4866_v31 = vpop.f32.mrb[60].mxu1 }
0x1360   : > { %v3855_v32 = vadd.f32 %v4866_v31, %v4410_v30  ;;  %v3846_v33 = vpop.f32.mrb[61].mxu1 }
0x1361   : > { %v3847_v36 = vadd.f32 %v4410_v30, %v3846_v33  ;;  %v4867_v37 = vpop.f32.mrb[62].mxu1 }
0x1362   : > { %v3863_v38 = vmul.f32 %v3855_v32, %v3855_v32  ;;  %v3858_v39 = vadd.f32 %v4867_v37, %v4410_v30  ;;  %v3849_v40 = vpop.f32.mrb[63].mxu1 }
0x1363   : > { %v3861_v41 = vmul.f32 %v3847_v36, %v3847_v36  ;;  %v3850_v42 = vadd.f32 %v4410_v30, %v3849_v40 }
0x1364   : > { %v3867_v43 = vmul.f32 %v3863_v38, %v3855_v32  ;;  %v3864_v46 = vmul.f32 %v3858_v39, %v3858_v39 }
0x1365   : > { %v3865_v47 = vmul.f32 %v3861_v41, %v3847_v36  ;;  %v3862_v48 = vmul.f32 %v3850_v42, %v3850_v42 }
0x1366   : > { %v3871_v49 = vmul.f32 0.044715, %v3867_v43  ;;  %v3868_v50 = vmul.f32 %v3864_v46, %v3858_v39 }
0x1367   : > { %v3869_v51 = vmul.f32 0.044715, %v3865_v47  ;;  %v3866_v52 = vmul.f32 %v3862_v48, %v3850_v42 }
0x1368   : > { %v3875_v53 = vadd.f32 %v3871_v49, %v3855_v32  ;;  %v3872_v54 = vmul.f32 0.044715, %v3868_v50 }
0x1369   : > { %v3873_v55 = vadd.f32 %v3869_v51, %v3847_v36  ;;  %v3870_v56 = vmul.f32 0.044715, %v3866_v52 }
0x136a   : > { %v3879_v57 = vmul.f32 0.7978846, %v3875_v53  ;;  %v3876_v58 = vadd.f32 %v3872_v54, %v3858_v39 }
0x136b   : > { %v3877_v59 = vmul.f32 0.7978846, %v3873_v55  ;;  %v3874_v35 = vadd.f32 %v3870_v56, %v3850_v42 }
0x136c   : > { %5262 = vtanh.f32 %v3879_v57  ;;  %v3880_v45 = vmul.f32 0.7978846, %v3876_v58 }
0x136d   : > { %5264 = vtanh.f32 %v3877_v59  ;;  %v3878_v60 = vmul.f32 0.7978846, %v3874_v35 }
0x136e   : > { %5266 = vtanh.f32 %v3880_v45 }
0x136f   : > { %5268 = vtanh.f32 %v3878_v60 }
0x1376   : > { %v5263_v1 = vpop.eup %5262 }
0x1377   : > { %v5265_v2 = vpop.eup %5264  ;;  %v3887_v3 = vadd.f32 1.0, %v5263_v1 }
0x1378   : > { %v5267_v62 = vpop.eup %5266  ;;  %v3885_v61 = vadd.f32 1.0, %v5265_v2 }
0x1379   : > { %v5269_v4 = vpop.eup %5268  ;;  %v3891_v0 = vmul.f32 0.5, %v3887_v3  ;;  %v3888_v63 = vadd.f32 1.0, %v5267_v62 }
0x137a   : > { %v3889_v5 = vmul.f32 0.5, %v3885_v61  ;;  %v3886_v6 = vadd.f32 1.0, %v5269_v4  ;;  %v4425_v61 = vld [vmem:[%s639_s14] ss:$0 sm:$0xff] }
0x137b   : > { %v3892_v7 = vmul.f32 0.5, %v3888_v63  ;;  %v3895_v9 = vmul.f32 %v3891_v0, %v3855_v32  ;;  %v4426_v63 = vld [vmem:[%s642_s0] ss:$0 sm:$0xff]  ;;  %s6161_s0 = sld [smem:[#allocation3_spill]] }
0x137c   : > { %v3890_v8 = vmul.f32 0.5, %v3886_v6  ;;  %v3893_v34 = vmul.f32 %v3889_v5, %v3847_v36 }
0x137d   : > { %v3896_v44 = vmul.f32 %v3892_v7, %v3858_v39 }
0x137e   : > { %v3894_v10 = vmul.f32 %v3890_v8, %v3850_v42 }
0x137f   : > { %v3910_v11 = vpack.c.bf16 %v3896_v44, %v3895_v9 }
0x1380   : > { %v3909_v12 = vpack.c.bf16 %v3894_v10, %v3893_v34 }
0x1381   : > { %p4427_p8 = scmp.ne.s32.totalorder %s6161_s0, 1 }
0x1382   : > { %4880 = vmatprep.mubr.msk.bf16.mxu0 %vm3954_vm5, %v3909_v12  ;;  %vm4112_vm6 = vcmask (!%p4427_p8), 388096  }
0x1383   : > { %4881 = vmatmul.mubr.msk.bf16.vlgmr.msra.gmra.mrb[48].mxu0 %vm3954_vm5, %v3910_v11 }
0x1456   : > { %v4882_v14 = vpop.f32.mrb[48].mxu0 }
0x1457   : > { %v3995_v15 = vpop.f32.mrb[49].mxu0  ;;  %v4004_v16 = vadd.f32 %v4882_v14, %v4416_v13 }
0x1458   : > { %v3996_v19 = vadd.f32 %v4416_v13, %v3995_v15  ;;  %v4883_v20 = vpop.f32.mrb[50].mxu0 }
0x1459   : > { %v3998_v23 = vpop.f32.mrb[51].mxu0  ;;  %v4007_v25 = vadd.f32 %v4883_v20, %v4416_v13  ;;  %v4012_v27 = vadd.f32 %v4004_v16, %v6045_v21 }
0x145a   : > { %v4010_v24 = vadd.f32 %v3996_v19, %v6038_v17  ;;  %v3999_v26 = vadd.f32 %v4416_v13, %v3998_v23 }
0x145b   : > { %v4013_v30 = vadd.f32 %v4007_v25, %v6047_v22  ;;  %v4022_v32 = vsel %vm720_vm1, %v4012_v27, 0.0 }
0x145c   : > { %v4011_v28 = vadd.f32 %v3999_v26, %v6040_v18  ;;  %v4016_v29 = vsel %vm720_vm1, %v4010_v24, 0.0 }
0x145d   : > { %4017 = vadd.xlane.f32.xlu1 %v4016_v29  ;;  %v4025_v33 = vsel %vm720_vm1, %v4013_v30, 0.0 }
0x145e   : > { %v4019_v31 = vsel %vm720_vm1, %v4011_v28, 0.0 }
0x145f   : > { %4020 = vadd.xlane.f32.xlu0 %v4019_v31 }
0x1461   : > { %4023 = vadd.xlane.f32.xlu1 %v4022_v32 }
0x1463   : > { %4026 = vadd.xlane.f32.xlu0 %v4025_v33 }
0x14ea   : > { %v4018_v17 = vpop.xlane.xlu1 %4017 }
0x14eb   : > { %v4028_v36 = vmul.f32 0.020833334, %v4018_v17 }
0x14ec   : > { %v4021_v37 = vpop.xlane.xlu0 %4020 }
0x14ed   : > { %v4032_v21 = vsub.f32 %v4010_v24, %v4028_v36  ;;  %v4029_v38 = vmul.f32 0.020833334, %v4021_v37 }
0x14ee   : > { %v4024_v18 = vpop.xlane.xlu1 %4023 }
0x14ef   : > { %v4033_v39 = vsub.f32 %v4011_v28, %v4029_v38  ;;  %v4030_v40 = vmul.f32 0.020833334, %v4024_v18  ;;  %v4036_v41 = vmul.f32 %v4032_v21, %v4032_v21 }
0x14f0   : > { %v4027_v42 = vpop.xlane.xlu0 %4026 }
0x14f1   : > { %v4034_v22 = vsub.f32 %v4012_v27, %v4030_v40  ;;  %v4031_v43 = vmul.f32 0.020833334, %v4027_v42  ;;  %v4040_v46 = vsel %vm720_vm1, %v4036_v41, 0.0  ;;  %v4037_v47 = vmul.f32 %v4033_v39, %v4033_v39 }
0x14f2   : > { %4041 = vadd.xlane.f32.xlu1 %v4040_v46 }
0x14f3   : > { %v4035_v48 = vsub.f32 %v4013_v30, %v4031_v43  ;;  %v4043_v49 = vsel %vm720_vm1, %v4037_v47, 0.0  ;;  %v4038_v50 = vmul.f32 %v4034_v22, %v4034_v22 }
0x14f4   : > { %4044 = vadd.xlane.f32.xlu0 %v4043_v49 }
0x14f5   : > { %v4046_v51 = vsel %vm720_vm1, %v4038_v50, 0.0  ;;  %v4039_v52 = vmul.f32 %v4035_v48, %v4035_v48 }
0x14f6   : > { %4047 = vadd.xlane.f32.xlu1 %v4046_v51 }
0x14f7   : > { %v4049_v53 = vsel %vm720_vm1, %v4039_v52, 0.0 }
0x14f8   : > { %4050 = vadd.xlane.f32.xlu0 %v4049_v53 }
0x157f   : > { %v4042_v54 = vpop.xlane.xlu1 %4041 }
0x1580   : > { %v4052_v55 = vmul.f32 0.020833334, %v4042_v54 }
0x1581   : > { %v4045_v56 = vpop.xlane.xlu0 %4044 }
0x1582   : > { %v4056_v57 = vadd.f32 1e-05, %v4052_v55  ;;  %v4053_v58 = vmul.f32 0.020833334, %v4045_v56 }
0x1583   : > { %v4048_v59 = vpop.xlane.xlu1 %4047 }
0x1584   : > { %5270 = vrsqrt.f32 %v4056_v57  ;;  %v4057_v35 = vadd.f32 1e-05, %v4053_v58  ;;  %v4054_v45 = vmul.f32 0.020833334, %v4048_v59 }
0x1585   : > { %v4051_v60 = vpop.xlane.xlu0 %4050 }
0x1586   : > { %5272 = vrsqrt.f32 %v4057_v35  ;;  %v4058_v1 = vadd.f32 1e-05, %v4054_v45  ;;  %v4055_v2 = vmul.f32 0.020833334, %v4051_v60 }
0x1588   : > { %5274 = vrsqrt.f32 %v4058_v1  ;;  %v4059_v3 = vadd.f32 1e-05, %v4055_v2 }
0x158a   : > { %5276 = vrsqrt.f32 %v4059_v3 }
0x158e   : > { %v5271_v62 = vpop.eup %5270 }
0x158f   : > { %v4064_v4 = vmul.f32 %v5271_v62, %v4032_v21 }
0x1590   : > { %v5273_v0 = vpop.eup %5272 }
0x1591   : > { %v4074_v5 = vmul.f32 %v4425_v61, %v4064_v4  ;;  %v4065_v6 = vmul.f32 %v5273_v0, %v4033_v39 }
0x1592   : > { %v5275_v7 = vpop.eup %5274 }
0x1593   : > { %v4084_v8 = vadd.f32 %v4426_v63, %v4074_v5  ;;  %v4075_v9 = vmul.f32 %v4425_v61, %v4065_v6  ;;  %v4066_v44 = vmul.f32 %v5275_v7, %v4034_v22 }
0x1594   : > { %v5277_v34 = vpop.eup %5276 }
0x1595   : > { %4088 = vst.msk [vmem:[#allocation2] sm:$0xff] %vm720_vm1, %v4084_v8  ;;  %v4085_v10 = vadd.f32 %v4426_v63, %v4075_v9  ;;  %v4076_v11 = vmul.f32 %v4425_v61, %v4066_v44  ;;  %v4067_v12 = vmul.f32 %v5277_v34, %v4035_v48  ;;  %4095 = sbr.rel (%p4427_p8) target bundleno = 5534 (0x159e), region = 80  ;;  %v4436_v16 = vpack.c.bf16 (!%p4427_p8), %v4084_v8, %v4084_v8 }
0x1597   : > { %4089 = vst.msk [vmem:[#allocation2 + $0x8] sm:$0xff] %vm720_vm1, %v4085_v10  ;;  %v4086_v13 = vadd.f32 %v4426_v63, %v4076_v11  ;;  %v4077_v14 = vmul.f32 %v4425_v61, %v4067_v12  ;;  %v4437_v19 = vpack.c.bf16 (!%p4427_p8), %v4085_v10, %v4085_v10 }
0x1598   : > { %4113 = vst.msk [vmem:[%s5522_s2] sm:$0xf] (!%p4427_p8), %vm4112_vm6, %v4436_v16 }
0x1599   : > { %4090 = vst.msk [vmem:[#allocation2 + $0x10] sm:$0xff] %vm720_vm1, %v4086_v13  ;;  %v4087_v15 = vadd.f32 %v4426_v63, %v4077_v14  ;;  %v4438_v20 = vpack.c.bf16 (!%p4427_p8), %v4086_v13, %v4086_v13 }
0x159a   : > { %4114 = vst.msk [vmem:[%s5522_s2 + $0x4] sm:$0xf] (!%p4427_p8), %vm4112_vm6, %v4437_v19 }
0x159b   : > { %4091 = vst.msk [vmem:[#allocation2 + $0x18] sm:$0xff] %vm720_vm1, %v4087_v15  ;;  %v4439_v23 = vpack.c.bf16 (!%p4427_p8), %v4087_v15, %v4087_v15 }
0x159c   : > { %4115 = vst.msk [vmem:[%s5522_s2 + $0x8] sm:$0xf] %vm4112_vm6, %v4438_v20 }
0x159d   : > { %4116 = vst.msk [vmem:[%s5522_s2 + $0xc] sm:$0xf] %vm4112_vm6, %v4439_v23 }
0x159e PF: > { %s6162_s14 = sld [smem:[#allocation6_spill]]  ;;  %s6163_s25 = sld [smem:[#allocation4_spill]] }
0x159f   : > { %s6164_s26 = sld [smem:[#allocation5_spill]]  ;;  %s6165_s27 = sld [smem:[#allocation7_spill]] }
0x15a0   : > { %s6166_s28 = sld [smem:[#allocation8_spill]] }
0x15a4   : > { %s23_s29 = sadd.s32 1, %s6162_s14  }
0x15a5   : > { %p20_p9 = scmp.ge.s32.totalorder %s23_s29, 6  }
0x15a7   :  { %22 = sbr.rel (!%p20_p9) target bundleno = 8 (0x8), region = 146 }

// kernel: _lambda_.8
= control target key start
LH: loop header
LB: loop body
LE: loop exit
PB: predicated region body
PF: predicated region fallthrough
CT: control target
= control target key end

     0   :  { %s7090_s28 = smov 0   ;;  %s7092_s29 = smov 0   ;;  %s8019_s0 = inlined_call_operand.vmem [shape: bf16[2,8,48], index: 0, kind: input, shape index: {}]   ;;  %s8020_s1 = inlined_call_operand.vmem [shape: bf16[2,32,48], index: 1, kind: input, shape index: {}]   ;;  %s8021_s2 = inlined_call_operand.vmem [shape: bf16[2,48,144], index: 2, kind: input, shape index: {}]   ;;  %s8022_s3 = inlined_call_operand.vmem [shape: f32[2,1,144], index: 3, kind: input, shape index: {}]   ;;  %s8023_s4 = inlined_call_operand.vmem [shape: bf16[2,48,48], index: 4, kind: input, shape index: {}]   ;;  %s8024_s5 = inlined_call_operand.vmem [shape: f32[2,1,48], index: 5, kind: input, shape index: {}]   ;;  %s8025_s6 = inlined_call_operand.vmem [shape: f32[2,1,48], index: 6, kind: input, shape index: {}]   ;;  %s8026_s7 = inlined_call_operand.vmem [shape: f32[2,1,48], index: 7, kind: input, shape index: {}]   ;;  %s8027_s8 = inlined_call_operand.vmem [shape: bf16[2,48,48], index: 8, kind: input, shape index: {}]   ;;  %s8028_s9 = inlined_call_operand.vmem [shape: f32[2,1,48], index: 9, kind: input, shape index: {}]   ;;  %s8029_s10 = inlined_call_operand.vmem [shape: bf16[2,48,96], index: 10, kind: input, shape index: {}]   ;;  %s8030_s11 = inlined_call_operand.vmem [shape: f32[2,1,96], index: 11, kind: input, shape index: {}]   ;;  %s8031_s12 = inlined_call_operand.vmem [shape: bf16[2,48,48], index: 12, kind: input, shape index: {}]   ;;  %s8032_s13 = inlined_call_operand.vmem [shape: f32[2,1,48], index: 13, kind: input, shape index: {}]   ;;  %s8033_s14 = inlined_call_operand.vmem [shape: f32[2,1,48], index: 14, kind: input, shape index: {}]   ;;  %s8034_s15 = inlined_call_operand.vmem [shape: f32[2,1,48], index: 15, kind: input, shape index: {}]   ;;  %s8035_s16 = inlined_call_operand.vmem [shape: bf16[2,48,96], index: 16, kind: input, shape index: {}]   ;;  %s8036_s17 = inlined_call_operand.vmem [shape: f32[2,1,96], index: 17, kind: input, shape index: {}]   ;;  %s8037_s18 = inlined_call_operand.vmem [shape: bf16[2,96,48], index: 18, kind: input, shape index: {}]   ;;  %s8038_s19 = inlined_call_operand.vmem [shape: f32[2,1,48], index: 19, kind: input, shape index: {}]   ;;  %s8039_s20 = inlined_call_operand.vmem [shape: f32[2,1,48], index: 20, kind: input, shape index: {}]   ;;  %s8040_s21 = inlined_call_operand.vmem [shape: f32[2,1,48], index: 21, kind: input, shape index: {}]   ;;  %s8041_s22 = inlined_call_operand.vmem [shape: bf16[2,8,48], index: 22, kind: output, shape index: {}]  }
   0x1   :  { %8060 = sst [smem:[#allocation14_spill]] %s8019_s0  ;;  %s7094_s30 = smov 0  }
   0x2   :  { %8061 = sst [smem:[#allocation15_spill]] %s8020_s1 }
   0x3   :  { %8062 = sst [smem:[#allocation16_spill]] %s8021_s2 }
   0x4   :  { %8063 = sst [smem:[#allocation17_spill]] %s8022_s3  ;;  %s7088_s3 = smov 0  }
   0x5   :  { %8064 = sst [smem:[#allocation18_spill]] %s8023_s4  ;;  %s7096_s4 = smov 0  }
   0x6   :  { %8065 = sst [smem:[#allocation19_spill]] %s8024_s5 }
   0x7   :  { %8066 = sst [smem:[#allocation20_spill]] %s8025_s6 }
   0x8   :  { %8067 = sst [smem:[#allocation21_spill]] %s8027_s8 }
   0x9   :  { %8068 = sst [smem:[#allocation22_spill]] %s8028_s9 }
   0xa   :  { %8069 = sst [smem:[#allocation23_spill]] %s8029_s10 }
   0xb   :  { %8070 = sst [smem:[#allocation24_spill]] %s8031_s12 }
   0xc   :  { %8071 = sst [smem:[#allocation25_spill]] %s8033_s14 }
   0xd   :  { %8072 = sst [smem:[#allocation26_spill]] %s8034_s15 }
   0xe   :  { %8073 = sst [smem:[#allocation27_spill]] %s8035_s16 }
   0xf   :  { %8074 = sst [smem:[#allocation28_spill]] %s8036_s17 }
  0x10   :  { %8075 = sst [smem:[#allocation29_spill]] %s8037_s18 }
  0x11   :  { %8076 = sst [smem:[#allocation30_spill]] %s8038_s19 }
  0x12   :  { %8077 = sst [smem:[#allocation31_spill]] %s8039_s20 }
  0x13   :  { %8078 = sst [smem:[#allocation32_spill]] %s8040_s21 }
  0x14   :  { %8079 = sst [smem:[#allocation33_spill]] %s8041_s22 }
  0x15 LB: > { %8080 = sst [smem:[#allocation3_spill]] %s6921_s3  ;;  %s41_s0 = sadd.s32 1, %s6929_s29  ;;  %s6937_s4 = sphi %s7096_s4, %s32_s4   ;;  %s6933_s30 = sphi %s7094_s30, %s8148_s30   ;;  %s6929_s29 = sphi %s7092_s29, %s8147_s29   ;;  %s6925_s28 = sphi %s7090_s28, %s8146_s28   ;;  %s6921_s3 = sphi %s7088_s3, %s8145_s3  }
  0x16   : > { %8081 = sst [smem:[#allocation4_spill]] %s6929_s29  ;;  %s44_s23 = sadd.s32 1, %s6933_s30 }
  0x17   : > { %8082 = sst [smem:[#allocation5_spill]] %s6933_s30  ;;  %p42_p0 = scmp.ge.s32.totalorder %s41_s0, 2 }
  0x18   : > { %8083 = sst [smem:[#allocation6_spill]] %s6937_s4  ;;  %p5823_p1 = scmp.ge.s32.totalorder %s6937_s4, 1 }
  0x19   : > { %p808_p2 = scmp.lt.s32.totalorder %s6937_s4, 5  ;;  %s8150_s0 = smov (%p42_p0, %s41_s0), 0 }
  0x1a   : > { %8084 = sst [smem:[#allocation7_spill]] %s8150_s0  ;;  %s8152_s23 = smov (!%p42_p0, %s44_s23), %s6933_s30 }
  0x1b   : > { %p809_p3 = pnand %p5823_p1, %p808_p2  ;;  %p46_p4 = scmp.ge.s32.totalorder %s8152_s23, 2 }
  0x1d   : > { %s8154_s23 = smov (%p46_p4, %s8152_s23), 0  ;;  %812 = sbr.rel (%p809_p3) target bundleno = 13187 (0x3383), region = 108 }
  0x1e   : > { %8085 = sst [smem:[#allocation8_spill]] %s8154_s23 }
  0x24   : > { %p948_p5 = scmp.lt.s32.totalorder %s6925_s28, 1  ;;  %p957_p6 = scmp.lt.s32.totalorder %s6921_s3, 1 }
  0x25   : > { %s8086_s26 = sld [smem:[#allocation14_spill]]  ;;  %s8087_s0 = sld [smem:[#allocation15_spill]] }
  0x26   : > { %s8156_s28 = smov (!%p948_p5, %s6925_s28), 1  ;;  %s8089_s21 = sld [smem:[#allocation17_spill]] }
  0x27   : > { %s7124_s1 = scalar_select %p957_p6, %s6921_s3, 1 }
  0x28   : > { %s5824_s5 = sshll.u32 %s8156_s28, 2  ;;  %s5965_s24 = sshll.u32 %s8156_s28, 4 }
  0x29   : > { %s6680_s29 = smul.u32 48, %s7124_s1  ;;  %s5828_s4 = sshll.u32 %s7124_s1, 1 }
  0x2a   : > { %s6681_s28 = smul.u32 24, %s7124_s1  ;;  %s8091_s25 = sld [smem:[#allocation16_spill]] }
  0x2b   : > { %s951_s2 = scalar_lea.vmem %s8086_s26, %s5824_s5  ;;  %s7134_s30 = scalar_lea.vmem %s8087_s0, %s5965_s24 }
  0x2c   : > { %8088 = sst [smem:[#allocation9_spill]] %s7134_s30  ;;  %s7141_s20 = scalar_lea.vmem %s8089_s21, %s5828_s4 }
  0x2d   : > { %8090 = sst [smem:[#allocation10_spill]] %s7141_s20  ;;  %s8094_s17 = sld [smem:[#allocation18_spill]] }
  0x2e   : > { %s8096_s8 = sld [smem:[#allocation21_spill]]  ;;  %s8098_s10 = sld [smem:[#allocation23_spill]] }
  0x2f   : > { %s8099_s12 = sld [smem:[#allocation24_spill]]  ;;  %s8103_s22 = sld [smem:[#allocation27_spill]] }
  0x30   : > { %s7147_s26 = scalar_lea.vmem %s8091_s25, %s6680_s29  ;;  %s8106_s25 = sld [smem:[#allocation29_spill]] }
  0x31   : > { %8092 = sst [smem:[#allocation11_spill]] %s7147_s26  ;;  %s8111_s9 = sld [smem:[#allocation3_spill]] }
  0x33   : > { %s7156_s16 = scalar_lea.vmem %s8094_s17, %s6681_s28 }
  0x34   : > { %s7169_s23 = scalar_lea.vmem %s8096_s8, %s6681_s28  ;;  %s7178_s24 = scalar_lea.vmem %s8098_s10, %s6681_s28 }
  0x35   : > { %s7187_s6 = scalar_lea.vmem %s8099_s12, %s6681_s28  ;;  %s7204_s3 = scalar_lea.vmem %s8103_s22, %s6681_s28 }
  0x36   : > { %8100 = sst [smem:[#allocation12_spill]] %s7187_s6  ;;  %s7213_s4 = scalar_lea.vmem %s8106_s25, %s6680_s29 }
  0x37   : > { %8104 = sst [smem:[#allocation13_spill]] %s7204_s3  ;;  %s8110_s12 = sld [smem:[#allocation33_spill]] }
  0x38   : > { %p5836_p7 = scmp.ne.s32.totalorder %s8111_s9, 0 }
  0x39   : > { %v1041_v0 = vld [vmem:[%s951_s2] sm:$0xf] (!%p5836_p7)  ;;  %vm1043_vm0 = vcmask (!%p5836_p7), 392192  }
  0x3a   : > { %1040 = sbr.rel (%p5836_p7) target bundleno = 65 (0x41), region = 112  ;;  %v1042_v1 = vunpack.c.l.bf16 (!%p5836_p7), %v1041_v0 }
  0x3c   : > { %1044 = vst.msk [vmem:[#allocation2] sm:$0xff] (!%p5836_p7), %vm1043_vm0, %v1042_v1 }
  0x3d   : > { %s7230_s19 = scalar_lea.vmem %s8110_s12, %s5824_s5 }
  0x41 PF: > { %s8112_s29 = sld [smem:[#allocation11_spill]]  ;;  %v6939_v4 = vmov 0   ;;  %s8113_s8 = sld [smem:[#allocation10_spill]]  ;;  %vm1099_vm1 = vcmask 392192   ;;  %v1059_v11 = vlaneseq  ;;  %v6940_v13 = vmov 0.0  }
  0x42   : > { %1135 = vmatprep.mubr.bf16.mxu0 %v6939_v4  ;;  %6160 = vmatprep.subr.bf16.mxu1 %v6940_v13  ;;  %vm6941_vm2 = vmmov 0   ;;  %s6942_s5 = smov 124   ;;  %s6943_s2 = smov 80   ;;  %vm1155_vm3 = vcmask 31744   ;;  %vm1202_vm4 = vcmask 64512   ;;  %vm1220_vm5 = vcmask 1043456  }
  0x43   : > { %v1045_v9 = vld [vmem:[#allocation2] sm:$0xff]  ;;  %v7240_v12 = vshrl.u32 %v1059_v11, 7  ;;  %6162 = vmatprep.mubr.msk.bf16.mxu1 %vm6941_vm2, %v6940_v13  ;;  %s6944_s18 = smov 76   ;;  %s6945_s3 = smov 32   ;;  %vm1383_vm6 = vcmask 1041408   ;;  %vm3341_vm7 = vcmask 261120  }
  0x44   : > { %v1056_v10 = vpack.c.bf16 %v1045_v9, %v1045_v9  ;;  %s6946_s26 = smov 28   ;;  %s6947_s25 = smov 120   ;;  %v1144_v60 = vld [vmem:[%s7156_s16] sm:$0xf]  ;;  %vm5457_vm8 = vcmask 785408  }
  0x45   : > { %v1061_v14 = vsub.s32 0, %v7240_v12  ;;  %s6948_s27 = smov 72   ;;  %v5848_v61 = vcombine.low %v1144_v60, %v1144_v60  ;;  %v1431_v62 = vsel %vm1383_vm6, %v1144_v60, 0  ;;  %s6949_s0 = smov 68  }
  0x46   : > { %s6950_s17 = smov 116   ;;  %s6951_s30 = smov 24  }
  0x47   : > { %v6756_v2 = vld [vmem:[%s8112_s29 + $0x4] ss:$8 sps:$4 sm:$0xff]   ;;  %v6758_v3 = vld [vmem:[%s8112_s29] ss:$8 sps:$4 sm:$0xff]   ;;  %v6759_v5 = vld [vmem:[%s8112_s29 + $0x14] ss:$8 sps:$4 sm:$0xff]  }
  0x48   : > { %1103 = vmatprep.subr.bf16.mxu0 %v6756_v2  ;;  %v6761_v6 = vld [vmem:[%s8112_s29 + $0x10] ss:$8 sps:$4 sm:$0xff]   ;;  %v6762_v7 = vld [vmem:[%s8112_s29 + $0x24] ss:$8 sps:$4 sm:$0xff]   ;;  %v6764_v8 = vld [vmem:[%s8112_s29 + $0x20] ss:$8 sps:$4 sm:$0xff]  }
  0x49   : > { %1104 = vmatpush1.bf16.msra.mxu0 %v6758_v3  ;;  %v7246_v15 = vld [vmem:[%s8113_s8] sm:$0x3]  ;;  %v1379_v63 = vrot.slane %v5848_v61, 2  ;;  %s6952_s10 = smov 20   ;;  %s6953_s28 = smov 112  }
  0x4a   : > { %1105 = vmatprep.subr.bf16.mxu0 %v6759_v5  ;;  %v1062_v16 = vrot.slane %v7246_v15, %v1061_v14  ;;  %s6954_s21 = smov 64   ;;  %s6955_s20 = smov 60  }
  0x4b   : > { %v1385_v0 = vsel %vm1383_vm6, %v1379_v63, 0  ;;  %s6956_s12 = smov 108   ;;  %s6957_s9 = smov 16  }
  0x4c   : > { %s6958_s29 = smov 12   ;;  %s6959_s8 = smov 104  }
  0x4d   : > { %1106 = vmatpush1.bf16.msra.mxu0 %v6761_v6  ;;  %s8056_s22 = smov 44   ;;  %s8050_s15 = smov 40  }
  0x4e   : > { %1107 = vmatprep.subr.bf16.mxu0 %v6762_v7  ;;  %s8058_s14 = smov 88   ;;  %s8054_s6 = smov 84  }
  0x51   : > { %1108 = vmatpush1.bf16.msra.mxu0 %v6764_v8 }
  0x52   : > { %6154 = vmatprep.subr.bf16.mxu0 %v6940_v13 }
  0x54   : > { %5843 = vmatmul.mubr.msk.bf16.vlgmr.msra.gmra.mrb[0].mxu0 %vm1099_vm1, %v1056_v10 }
  0x55   : > { %6156 = vmatprep.mubr.msk.bf16.mxu0 %vm6941_vm2, %v6940_v13 }
 0x127   : > { %v1137_v17 = vpop.f32.mrb[0].mxu0 }
 0x128   : > { %v1138_v18 = vadd.f32 %v1137_v17, %v1062_v16  ;;  %v7253_v19 = vpop.f32.mrb[1].mxu0 }
 0x129   : > { %v1141_v20 = vpop.f32.mrb[2].mxu0 }
 0x12a   : > { %v7255_v21 = vpack.c.bf16 %v1138_v18, %v1138_v18  ;;  %v1142_v22 = vpop.f32.mrb[3].mxu0 }
 0x12c   : > { %1265 = vrot.lane.b32.xlu1 %v7255_v21, %s6942_s5  ;;  %1153 = vrot.lane.b32.xlu0 %v7255_v21, %s6943_s2 }
 0x130   : > { %1267 = vrot.lane.b32.xlu0 %v7255_v21, %s6944_s18 }
 0x19e   : > { %v1154_v23 = vpop.permute.xlu0 %1153  ;;  %v1266_v27 = vpop.permute.xlu1 %1265 }
 0x19f   : > { %v1160_v24 = vsel %vm1155_vm3, %v1154_v23, 0 }
 0x1a0   : > { %6155 = vmatpush3.bf16.xpose.msra.mxu0 %v1160_v24 }
 0x1a1   : > { %6166 = vmatprep.subr.bf16.mxu0 %v6940_v13 }
 0x1a2   : > { %v1268_v25 = vpop.permute.xlu0 %1267 }
 0x1a3   : > { %v1273_v26 = vsel %vm1155_vm3, %v1268_v25, 0 }
 0x1a7   : > { %6157 = vmatmul.mubr.msk.bf16.vlgmr.msra.gmra.mrb[4].mxu0 %vm1155_vm3, %v7255_v21 }
 0x1a8   : > { %6167 = vmatpush3.bf16.xpose.msra.mxu0 %v1273_v26  ;;  %6168 = vmatprep.mubr.msk.bf16.mxu0 %vm6941_vm2, %v6940_v13 }
 0x1a9   : > { %6178 = vmatprep.subr.bf16.mxu0 %v6940_v13 }
 0x1af   : > { %6169 = vmatmul.mubr.msk.bf16.vlgmr.msra.gmra.mrb[8].mxu0 %vm1155_vm3, %v1266_v27 }
 0x1b0   : > { %6180 = vmatprep.mubr.msk.bf16.mxu0 %vm6941_vm2, %v6940_v13  ;;  %6179 = vmatpush3.bf16.msra.mxu0 %v1385_v0 }
 0x1b1   : > { %6190 = vmatprep.subr.bf16.mxu0 %v6940_v13 }
 0x27a   : > { %v1196_v28 = vpop.f32.mrb[4].mxu0 }
 0x27b   : > { %v6158_v29 = vpop.f32.mrb[5].mxu0  ;;  %v1203_v30 = vsel %vm1202_vm4, %v1196_v28, -inf }
 0x27c   : > { %1204 = vmax.xlane.f32.xlu1 %v1203_v30  ;;  %v1199_v31 = vpop.f32.mrb[6].mxu0 }
 0x27d   : > { %v6159_v32 = vpop.f32.mrb[7].mxu0 }
 0x282   : > { %v1309_v33 = vpop.f32.mrb[8].mxu0 }
 0x283   : > { %v6170_v34 = vpop.f32.mrb[9].mxu0  ;;  %v1315_v35 = vsel %vm1202_vm4, %v1309_v33, -inf }
 0x284   : > { %1316 = vmax.xlane.f32.xlu0 %v1315_v35  ;;  %v1312_v36 = vpop.f32.mrb[10].mxu0 }
 0x285   : > { %v6171_v37 = vpop.f32.mrb[11].mxu0 }
 0x309   : > { %v1205_v38 = vpop.xlane.xlu1 %1204 }
 0x30a   : > { %v1206_v39 = vsub.f32 %v1196_v28, %v1205_v38 }
 0x30c   : > { %v1207_v40 = vmul.f32 1.442695, %v1206_v39 }
 0x30e   : > { %6794 = vpow2.f32 %v1207_v40 }
 0x311   : > { %v1317_v41 = vpop.xlane.xlu0 %1316 }
 0x312   : > { %v1318_v42 = vsub.f32 %v1309_v33, %v1317_v41 }
 0x314   : > { %v1319_v43 = vmul.f32 1.442695, %v1318_v42 }
 0x316   : > { %6796 = vpow2.f32 %v1319_v43 }
 0x318   : > { %v6795_v44 = vpop.eup %6794 }
 0x319   : > { %v1209_v45 = vsel %vm1202_vm4, %v6795_v44, 0.0 }
 0x31a   : > { %1210 = vadd.xlane.f32.xlu0 %v1209_v45 }
 0x320   : > { %v6797_v46 = vpop.eup %6796 }
 0x321   : > { %v1321_v47 = vsel %vm1202_vm4, %v6797_v46, 0.0 }
 0x322   : > { %1322 = vadd.xlane.f32.xlu1 %v1321_v47  ;;  %v1145_v47 = vld [vmem:[%s7156_s16 + $0x4] sm:$0xf] }
 0x330   : > { %1215 = vrot.lane.b32.xlu0 %v7255_v21, %s6945_s3  ;;  %s6960_s3 = smov 56  }
 0x333   : > { %1327 = vrot.lane.b32.xlu1 %v7255_v21, %s6946_s26  ;;  %s6961_s26 = smov 52  }
 0x334   : > { %1473 = vrot.lane.b32.xlu0 %v7255_v21, %s6947_s25 }
 0x337   : > { %1475 = vrot.lane.b32.xlu1 %v7255_v21, %s6948_s27 }
 0x3a7   : > { %v1211_v48 = vpop.xlane.xlu0 %1210 }
 0x3a8   : > { %6798 = vrcp.f32 %v1211_v48  ;;  %v1588_v48 = vsel %vm1383_vm6, %v1145_v47, 0 }
 0x3ab   : > { %v1216_v49 = vpop.permute.xlu0 %1215 }
 0x3ac   : > { %v1222_v50 = vsel %vm1220_vm5, %v1216_v49, 0 }
 0x3ad   : > { %6161 = vmatpush3.bf16.msra.mxu1 %v1222_v50 }
 0x3ae   : > { %6172 = vmatprep.subr.bf16.mxu1 %v6940_v13 }
 0x3af   : > { %v1323_v51 = vpop.xlane.xlu1 %1322  ;;  %v1474_v16 = vpop.permute.xlu0 %1473 }
 0x3b0   : > { %6800 = vrcp.f32 %v1323_v51 }
 0x3b2   : > { %v6799_v52 = vpop.eup %6798 }
 0x3b3   : > { %v1213_v53 = vmul.f32 %v6799_v52, %v6795_v44  ;;  %v1328_v54 = vpop.permute.xlu1 %1327 }
 0x3b4   : > { %v1333_v56 = vsel %vm1220_vm5, %v1328_v54, 0 }
 0x3b5   : > { %v1214_v55 = vpack.c.bf16 %v1213_v53, %v1213_v53 }
 0x3b7   : > { %6163 = vmatmul.mubr.msk.bf16.vlgmr.msra.gmra.mrb[0].mxu1 %vm1202_vm4, %v1214_v55  ;;  %v1476_v6 = vpop.permute.xlu1 %1475 }
 0x3b8   : > { %6173 = vmatpush3.bf16.msra.mxu1 %v1333_v56  ;;  %6174 = vmatprep.mubr.msk.bf16.mxu1 %vm6941_vm2, %v6940_v13  ;;  %v1481_v11 = vsel %vm1155_vm3, %v1476_v6, 0 }
 0x3b9   : > { %6184 = vmatprep.subr.bf16.mxu1 %v6940_v13 }
 0x3ba   : > { %v6801_v57 = vpop.eup %6800 }
 0x3bb   : > { %v1325_v58 = vmul.f32 %v6801_v57, %v6797_v46 }
 0x3bd   : > { %v1326_v59 = vpack.c.bf16 %v1325_v58, %v1325_v58 }
 0x3bf   : > { %6175 = vmatmul.mubr.msk.bf16.vlgmr.msra.gmra.mrb[4].mxu1 %vm1202_vm4, %v1326_v59 }
 0x3c0   : > { %6186 = vmatprep.mubr.msk.bf16.mxu1 %vm6941_vm2, %v6940_v13  ;;  %6185 = vmatpush3.bf16.msra.mxu1 %v1431_v62 }
 0x3c1   : > { %6196 = vmatprep.subr.bf16.mxu1 %v6940_v13 }
 0x48a   : > { %v1258_v1 = vpop.f32.mrb[0].mxu1 }
 0x48b   : > { %v1264_v2 = vpack.c.bf16 %v1258_v1, %v1258_v1  ;;  %v6164_v3 = vpop.f32.mrb[1].mxu1 }
 0x48c   : > { %v1261_v4 = vpop.f32.mrb[2].mxu1 }
 0x48d   : > { %v6165_v5 = vpop.f32.mrb[3].mxu1  ;;  %6187 = vmatmul.mubr.msk.bf16.vlgmr.msra.gmra.mrb[8].mxu1 %vm1155_vm3, %v1264_v2 }
 0x48e   : > { %6198 = vmatprep.mubr.msk.bf16.mxu1 %vm6941_vm2, %v6940_v13 }
 0x492   : > { %v1369_v7 = vpop.f32.mrb[4].mxu1 }
 0x493   : > { %v1375_v8 = vpack.c.bf16 %v1369_v7, %v1369_v7  ;;  %v6176_v9 = vpop.f32.mrb[5].mxu1 }
 0x494   : > { %v1372_v10 = vpop.f32.mrb[6].mxu1 }
 0x495   : > { %v6177_v14 = vpop.f32.mrb[7].mxu1  ;;  %6181 = vmatmul.mubr.msk.bf16.vlgmr.msra.gmra.mrb[12].mxu0 %vm1155_vm3, %v1375_v8 }
 0x496   : > { %6191 = vmatpush3.bf16.xpose.msra.mxu0 %v1481_v11  ;;  %6192 = vmatprep.mubr.msk.bf16.mxu0 %vm6941_vm2, %v6940_v13 }
 0x497   : > { %6202 = vmatprep.subr.bf16.mxu0 %v6940_v13 }
 0x49d   : > { %6193 = vmatmul.mubr.msk.bf16.vlgmr.msra.gmra.mrb[16].mxu0 %vm1155_vm3, %v1474_v16 }
 0x49e   : > { %6204 = vmatprep.mubr.msk.bf16.mxu0 %vm6941_vm2, %v6940_v13  ;;  %6203 = vmatpush3.bf16.msra.mxu0 %v1588_v48 }
 0x49f   : > { %6214 = vmatprep.subr.bf16.mxu0 %v6940_v13 }
 0x560   : > { %v1467_v17 = vpop.f32.mrb[8].mxu1 }
 0x561   : > { %v6188_v18 = vpop.f32.mrb[9].mxu1 }
 0x562   : > { %v1470_v20 = vpop.f32.mrb[10].mxu1 }
 0x563   : > { %v6189_v22 = vpop.f32.mrb[11].mxu1 }
 0x568   : > { %v1421_v23 = vpop.f32.mrb[12].mxu0 }
 0x569   : > { %v7310_v24 = vadd.f32 %v1467_v17, %v1421_v23  ;;  %v6182_v25 = vpop.f32.mrb[13].mxu0  ;;  %v5856_v17 = vcombine.low %v1145_v47, %v1145_v47 }
 0x56a   : > { %v1424_v26 = vpop.f32.mrb[14].mxu0 }
 0x56b   : > { %v6183_v27 = vpop.f32.mrb[15].mxu0  ;;  %v1745_v18 = vrot.slane %v5856_v17, 2 }
 0x56d   : > { %v1750_v20 = vsel %vm1383_vm6, %v1745_v18, 0 }
 0x570   : > { %v1517_v28 = vpop.f32.mrb[16].mxu0 }
 0x571   : > { %v6194_v29 = vpop.f32.mrb[17].mxu0  ;;  %v1523_v30 = vsel %vm1202_vm4, %v1517_v28, -inf }
 0x572   : > { %1524 = vmax.xlane.f32.xlu1 %v1523_v30  ;;  %v1520_v31 = vpop.f32.mrb[18].mxu0 }
 0x573   : > { %v6195_v32 = vpop.f32.mrb[19].mxu0 }
 0x583   : > { %1633 = vrot.lane.b32.xlu1 %v7255_v21, %s6949_s0 }
 0x587   : > { %1631 = vrot.lane.b32.xlu1 %v7255_v21, %s6950_s17 }
 0x5ff   : > { %v1525_v33 = vpop.xlane.xlu1 %1524 }
 0x600   : > { %v1526_v34 = vsub.f32 %v1517_v28, %v1525_v33 }
 0x602   : > { %v1527_v35 = vmul.f32 1.442695, %v1526_v34 }
 0x603   : > { %v1634_v43 = vpop.permute.xlu1 %1633 }
 0x604   : > { %6802 = vpow2.f32 %v1527_v35  ;;  %v1639_v45 = vsel %vm1155_vm3, %v1634_v43, 0 }
 0x607   : > { %v1632_v46 = vpop.permute.xlu1 %1631 }
 0x60e   : > { %v6803_v36 = vpop.eup %6802 }
 0x60f   : > { %v1529_v37 = vsel %vm1202_vm4, %v6803_v36, 0.0 }
 0x610   : > { %1530 = vadd.xlane.f32.xlu0 %v1529_v37 }
 0x626   : > { %1535 = vrot.lane.b32.xlu0 %v7255_v21, %s6951_s30  ;;  %s6962_s30 = smov 100  }
 0x69d   : > { %v1531_v38 = vpop.xlane.xlu0 %1530 }
 0x69e   : > { %6804 = vrcp.f32 %v1531_v38 }
 0x6a1   : > { %v1536_v39 = vpop.permute.xlu0 %1535 }
 0x6a2   : > { %v1541_v40 = vsel %vm1220_vm5, %v1536_v39, 0 }
 0x6a3   : > { %6197 = vmatpush3.bf16.msra.mxu1 %v1541_v40 }
 0x6a4   : > { %6208 = vmatprep.subr.bf16.mxu1 %v6940_v13 }
 0x6a8   : > { %v6805_v41 = vpop.eup %6804 }
 0x6a9   : > { %v1533_v42 = vmul.f32 %v6805_v41, %v6803_v36 }
 0x6ab   : > { %v1534_v44 = vpack.c.bf16 %v1533_v42, %v1533_v42 }
 0x6ad   : > { %6199 = vmatmul.mubr.msk.bf16.vlgmr.msra.gmra.mrb[12].mxu1 %vm1202_vm4, %v1534_v44 }
 0x6ae   : > { %6209 = vmatpush3.bf16.xpose.msra.mxu1 %v1639_v45  ;;  %6210 = vmatprep.mubr.msk.bf16.mxu1 %vm6941_vm2, %v6940_v13 }
 0x6af   : > { %6220 = vmatprep.subr.bf16.mxu1 %v6940_v13 }
 0x6b5   : > { %6211 = vmatmul.mubr.msk.bf16.vlgmr.msra.gmra.mrb[16].mxu1 %vm1155_vm3, %v1632_v46 }
 0x6b6   : > { %6222 = vmatprep.mubr.msk.bf16.mxu1 %vm6941_vm2, %v6940_v13  ;;  %6221 = vmatpush3.bf16.msra.mxu1 %v1750_v20 }
 0x6b7   : > { %6232 = vmatprep.subr.bf16.mxu1 %v6940_v13 }
 0x780   : > { %v1577_v49 = vpop.f32.mrb[12].mxu1 }
 0x781   : > { %v1583_v50 = vpack.c.bf16 %v1577_v49, %v1577_v49  ;;  %v6200_v51 = vpop.f32.mrb[13].mxu1 }
 0x782   : > { %v1580_v52 = vpop.f32.mrb[14].mxu1  ;;  %v1146_v51 = vld [vmem:[%s7156_s16 + $0x8] sm:$0xf] }
 0x783   : > { %v6201_v53 = vpop.f32.mrb[15].mxu1  ;;  %6205 = vmatmul.mubr.msk.bf16.vlgmr.msra.gmra.mrb[20].mxu0 %vm1155_vm3, %v1583_v50  ;;  %v1908_v52 = vsel %vm1383_vm6, %v1146_v51, 0 }
 0x784   : > { %6216 = vmatprep.mubr.msk.bf16.mxu0 %vm6941_vm2, %v6940_v13 }
 0x788   : > { %v1675_v54 = vpop.f32.mrb[16].mxu1 }
 0x789   : > { %v6212_v55 = vpop.f32.mrb[17].mxu1  ;;  %v1681_v56 = vsel %vm1202_vm4, %v1675_v54, -inf }
 0x78a   : > { %1682 = vmax.xlane.f32.xlu0 %v1681_v56  ;;  %v1678_v57 = vpop.f32.mrb[18].mxu1 }
 0x78b   : > { %v6213_v58 = vpop.f32.mrb[19].mxu1 }
 0x7a0   : > { %1693 = vrot.lane.b32.xlu0 %v7255_v21, %s6952_s10  ;;  %s6963_s10 = smov 8  }
 0x7a4   : > { %1793 = vrot.lane.b32.xlu0 %v7255_v21, %s6953_s28 }
 0x817   : > { %v1683_v59 = vpop.xlane.xlu0 %1682 }
 0x818   : > { %v1684_v60 = vsub.f32 %v1675_v54, %v1683_v59 }
 0x81a   : > { %v1685_v61 = vmul.f32 1.442695, %v1684_v60 }
 0x81b   : > { %v1694_v62 = vpop.permute.xlu0 %1693 }
 0x81c   : > { %6806 = vpow2.f32 %v1685_v61  ;;  %v1699_v63 = vsel %vm1220_vm5, %v1694_v62, 0 }
 0x81d   : > { %6215 = vmatpush3.bf16.msra.mxu0 %v1699_v63 }
 0x81e   : > { %6226 = vmatprep.subr.bf16.mxu0 %v6940_v13 }
 0x81f   : > { %v1794_v16 = vpop.permute.xlu0 %1793 }
 0x826   : > { %v6807_v0 = vpop.eup %6806 }
 0x827   : > { %v1687_v1 = vsel %vm1202_vm4, %v6807_v0, 0.0 }
 0x828   : > { %1688 = vadd.xlane.f32.xlu1 %v1687_v1 }
 0x839   : > { %1795 = vrot.lane.b32.xlu1 %v7255_v21, %s6954_s21 }
 0x856   : > { %v1624_v2 = vpop.f32.mrb[20].mxu0 }
 0x857   : > { %v1630_v3 = vadd.f32 %v1624_v2, %v7310_v24  ;;  %v6206_v4 = vpop.f32.mrb[21].mxu0 }
 0x858   : > { %v1627_v5 = vpop.f32.mrb[22].mxu0 }
 0x859   : > { %v6207_v6 = vpop.f32.mrb[23].mxu0 }
 0x8b5   : > { %v1689_v7 = vpop.xlane.xlu1 %1688 }
 0x8b6   : > { %6808 = vrcp.f32 %v1689_v7 }
 0x8b9   : > { %v1796_v10 = vpop.permute.xlu1 %1795 }
 0x8ba   : > { %v1801_v14 = vsel %vm1155_vm3, %v1796_v10, 0 }
 0x8c0   : > { %v6809_v8 = vpop.eup %6808 }
 0x8c1   : > { %v1691_v9 = vmul.f32 %v6809_v8, %v6807_v0 }
 0x8c3   : > { %v1692_v11 = vpack.c.bf16 %v1691_v9, %v1691_v9 }
 0x8c5   : > { %6217 = vmatmul.mubr.msk.bf16.vlgmr.msra.gmra.mrb[24].mxu0 %vm1202_vm4, %v1692_v11 }
 0x8c6   : > { %6227 = vmatpush3.bf16.xpose.msra.mxu0 %v1801_v14  ;;  %6228 = vmatprep.mubr.msk.bf16.mxu0 %vm6941_vm2, %v6940_v13 }
 0x8c7   : > { %6238 = vmatprep.subr.bf16.mxu0 %v6940_v13 }
 0x8cd   : > { %6229 = vmatmul.mubr.msk.bf16.vlgmr.msra.gmra.mrb[28].mxu0 %vm1155_vm3, %v1794_v16 }
 0x8ce   : > { %6240 = vmatprep.mubr.msk.bf16.mxu0 %vm6941_vm2, %v6940_v13  ;;  %6239 = vmatpush3.bf16.msra.mxu0 %v1908_v52 }
 0x8cf   : > { %6250 = vmatprep.subr.bf16.mxu0 %v6940_v13 }
 0x998   : > { %v1735_v22 = vpop.f32.mrb[24].mxu0 }
 0x999   : > { %v1741_v23 = vpack.c.bf16 %v1735_v22, %v1735_v22  ;;  %v6218_v24 = vpop.f32.mrb[25].mxu0 }
 0x99a   : > { %v1738_v25 = vpop.f32.mrb[26].mxu0 }
 0x99b   : > { %v6219_v26 = vpop.f32.mrb[27].mxu0  ;;  %6223 = vmatmul.mubr.msk.bf16.vlgmr.msra.gmra.mrb[20].mxu1 %vm1155_vm3, %v1741_v23  ;;  %v5863_v23 = vcombine.low %v1146_v51, %v1146_v51 }
 0x99c   : > { %6234 = vmatprep.mubr.msk.bf16.mxu1 %vm6941_vm2, %v6940_v13 }
 0x99d   : > { %v2065_v24 = vrot.slane %v5863_v23, 2 }
 0x99f   : > { %v2070_v25 = vsel %vm1383_vm6, %v2065_v24, 0 }
 0x9a0   : > { %v1837_v27 = vpop.f32.mrb[28].mxu0 }
 0x9a1   : > { %v6230_v28 = vpop.f32.mrb[29].mxu0  ;;  %v1843_v29 = vsel %vm1202_vm4, %v1837_v27, -inf }
 0x9a2   : > { %1844 = vmax.xlane.f32.xlu1 %v1843_v29  ;;  %v1840_v30 = vpop.f32.mrb[30].mxu0 }
 0x9a3   : > { %v6231_v31 = vpop.f32.mrb[31].mxu0 }
 0x9b3   : > { %1953 = vrot.lane.b32.xlu1 %v7255_v21, %s6955_s20 }
 0x9b7   : > { %1951 = vrot.lane.b32.xlu1 %v7255_v21, %s6956_s12 }
 0xa2f   : > { %v1845_v32 = vpop.xlane.xlu1 %1844 }
 0xa30   : > { %v1846_v33 = vsub.f32 %v1837_v27, %v1845_v32 }
 0xa32   : > { %v1847_v34 = vmul.f32 1.442695, %v1846_v33 }
 0xa33   : > { %v1954_v47 = vpop.permute.xlu1 %1953 }
 0xa34   : > { %6810 = vpow2.f32 %v1847_v34  ;;  %v1959_v49 = vsel %vm1155_vm3, %v1954_v47, 0 }
 0xa37   : > { %v1952_v50 = vpop.permute.xlu1 %1951 }
 0xa3e   : > { %v6811_v35 = vpop.eup %6810 }
 0xa3f   : > { %v1849_v36 = vsel %vm1202_vm4, %v6811_v35, 0.0 }
 0xa40   : > { %1850 = vadd.xlane.f32.xlu0 %v1849_v36 }
 0xa56   : > { %1855 = vrot.lane.b32.xlu0 %v7255_v21, %s6957_s9  ;;  %s6964_s9 = smov 4  }
 0xa6e   : > { %v1786_v37 = vpop.f32.mrb[20].mxu1 }
 0xa6f   : > { %v1792_v38 = vadd.f32 %v1786_v37, %v1630_v3  ;;  %v6224_v39 = vpop.f32.mrb[21].mxu1 }
 0xa70   : > { %v1789_v40 = vpop.f32.mrb[22].mxu1 }
 0xa71   : > { %v6225_v41 = vpop.f32.mrb[23].mxu1 }
 0xacd   : > { %v1851_v42 = vpop.xlane.xlu0 %1850 }
 0xace   : > { %6812 = vrcp.f32 %v1851_v42 }
 0xad1   : > { %v1856_v43 = vpop.permute.xlu0 %1855 }
 0xad2   : > { %v1861_v44 = vsel %vm1220_vm5, %v1856_v43, 0 }
 0xad3   : > { %6233 = vmatpush3.bf16.msra.mxu1 %v1861_v44 }
 0xad4   : > { %6244 = vmatprep.subr.bf16.mxu1 %v6940_v13 }
 0xad8   : > { %v6813_v45 = vpop.eup %6812 }
 0xad9   : > { %v1853_v46 = vmul.f32 %v6813_v45, %v6811_v35 }
 0xadb   : > { %v1854_v48 = vpack.c.bf16 %v1853_v46, %v1853_v46 }
 0xadd   : > { %6235 = vmatmul.mubr.msk.bf16.vlgmr.msra.gmra.mrb[24].mxu1 %vm1202_vm4, %v1854_v48 }
 0xade   : > { %6245 = vmatpush3.bf16.xpose.msra.mxu1 %v1959_v49  ;;  %6246 = vmatprep.mubr.msk.bf16.mxu1 %vm6941_vm2, %v6940_v13 }
 0xadf   : > { %6256 = vmatprep.subr.bf16.mxu1 %v6940_v13 }
 0xae5   : > { %6247 = vmatmul.mubr.msk.bf16.vlgmr.msra.gmra.mrb[28].mxu1 %vm1155_vm3, %v1952_v50 }
 0xae6   : > { %6258 = vmatprep.mubr.msk.bf16.mxu1 %vm6941_vm2, %v6940_v13  ;;  %6257 = vmatpush3.bf16.msra.mxu1 %v2070_v25 }
 0xae7   : > { %6268 = vmatprep.subr.bf16.mxu1 %v6940_v13 }
 0xbb0   : > { %v1897_v53 = vpop.f32.mrb[24].mxu1 }
 0xbb1   : > { %v1903_v54 = vpack.c.bf16 %v1897_v53, %v1897_v53  ;;  %v6236_v55 = vpop.f32.mrb[25].mxu1 }
 0xbb2   : > { %v1900_v56 = vpop.f32.mrb[26].mxu1  ;;  %v1147_v55 = vld [vmem:[%s7156_s16 + $0xc] sm:$0xf] }
 0xbb3   : > { %v6237_v57 = vpop.f32.mrb[27].mxu1  ;;  %6241 = vmatmul.mubr.msk.bf16.vlgmr.msra.gmra.mrb[32].mxu0 %vm1155_vm3, %v1903_v54  ;;  %v2228_v56 = vsel %vm1383_vm6, %v1147_v55, 0 }
 0xbb4   : > { %6252 = vmatprep.mubr.msk.bf16.mxu0 %vm6941_vm2, %v6940_v13 }
 0xbb8   : > { %v1995_v58 = vpop.f32.mrb[28].mxu1 }
 0xbb9   : > { %v6248_v59 = vpop.f32.mrb[29].mxu1  ;;  %v2001_v60 = vsel %vm1202_vm4, %v1995_v58, -inf }
 0xbba   : > { %2002 = vmax.xlane.f32.xlu0 %v2001_v60  ;;  %v1998_v61 = vpop.f32.mrb[30].mxu1 }
 0xbbb   : > { %v6249_v62 = vpop.f32.mrb[31].mxu1 }
 0xbd0   : > { %2013 = vrot.lane.b32.xlu0 %v7255_v21, %s6958_s29  ;;  %s6965_s29 = smov 96  }
 0xbd4   : > { %2113 = vrot.lane.b32.xlu0 %v7255_v21, %s6959_s8 }
 0xc47   : > { %v2003_v63 = vpop.xlane.xlu0 %2002 }
 0xc48   : > { %v2004_v0 = vsub.f32 %v1995_v58, %v2003_v63 }
 0xc4a   : > { %v2005_v1 = vmul.f32 1.442695, %v2004_v0 }
 0xc4b   : > { %v2014_v2 = vpop.permute.xlu0 %2013 }
 0xc4c   : > { %6814 = vpow2.f32 %v2005_v1  ;;  %v2019_v3 = vsel %vm1220_vm5, %v2014_v2, 0 }
 0xc4d   : > { %6251 = vmatpush3.bf16.msra.mxu0 %v2019_v3 }
 0xc4e   : > { %6262 = vmatprep.subr.bf16.mxu0 %v6940_v13 }
 0xc4f   : > { %v2114_v22 = vpop.permute.xlu0 %2113 }
 0xc56   : > { %v6815_v4 = vpop.eup %6814 }
 0xc57   : > { %v2007_v5 = vsel %vm1202_vm4, %v6815_v4, 0.0 }
 0xc58   : > { %2008 = vadd.xlane.f32.xlu1 %v2007_v5 }
 0xc69   : > { %2115 = vrot.lane.b32.xlu1 %v7255_v21, %s6960_s3 }
 0xc86   : > { %v1944_v6 = vpop.f32.mrb[32].mxu0 }
 0xc87   : > { %v1950_v7 = vadd.f32 %v1944_v6, %v1792_v38  ;;  %v6242_v8 = vpop.f32.mrb[33].mxu0 }
 0xc88   : > { %v1947_v9 = vpop.f32.mrb[34].mxu0 }
 0xc89   : > { %v6243_v10 = vpop.f32.mrb[35].mxu0 }
 0xc8a   : > { %v5870_v10 = vcombine.low %v1147_v55, %v1147_v55 }
 0xce5   : > { %v2009_v11 = vpop.xlane.xlu1 %2008 }
 0xce6   : > { %6816 = vrcp.f32 %v2009_v11  ;;  %v2385_v11 = vrot.slane %v5870_v10, 2 }
 0xce9   : > { %v2116_v17 = vpop.permute.xlu1 %2115 }
 0xcea   : > { %v2121_v20 = vsel %vm1155_vm3, %v2116_v17, 0 }
 0xcf0   : > { %v6817_v14 = vpop.eup %6816 }
 0xcf1   : > { %v2011_v16 = vmul.f32 %v6817_v14, %v6815_v4  ;;  %v2390_v14 = vsel %vm1383_vm6, %v2385_v11, 0 }
 0xcf3   : > { %v2012_v18 = vpack.c.bf16 %v2011_v16, %v2011_v16 }
 0xcf5   : > { %6253 = vmatmul.mubr.msk.bf16.vlgmr.msra.gmra.mrb[36].mxu0 %vm1202_vm4, %v2012_v18 }
 0xcf6   : > { %6263 = vmatpush3.bf16.xpose.msra.mxu0 %v2121_v20  ;;  %6264 = vmatprep.mubr.msk.bf16.mxu0 %vm6941_vm2, %v6940_v13 }
 0xcf7   : > { %6274 = vmatprep.subr.bf16.mxu0 %v6940_v13 }
 0xcfd   : > { %6265 = vmatmul.mubr.msk.bf16.vlgmr.msra.gmra.mrb[40].mxu0 %vm1155_vm3, %v2114_v22 }
 0xcfe   : > { %6276 = vmatprep.mubr.msk.bf16.mxu0 %vm6941_vm2, %v6940_v13  ;;  %6275 = vmatpush3.bf16.msra.mxu0 %v2228_v56 }
 0xcff   : > { %6286 = vmatprep.subr.bf16.mxu0 %v6940_v13 }
 0xdc8   : > { %v2055_v26 = vpop.f32.mrb[36].mxu0 }
 0xdc9   : > { %v2061_v27 = vpack.c.bf16 %v2055_v26, %v2055_v26  ;;  %v6254_v28 = vpop.f32.mrb[37].mxu0 }
 0xdca   : > { %v2058_v29 = vpop.f32.mrb[38].mxu0 }
 0xdcb   : > { %v6255_v30 = vpop.f32.mrb[39].mxu0  ;;  %6259 = vmatmul.mubr.msk.bf16.vlgmr.msra.gmra.mrb[32].mxu1 %vm1155_vm3, %v2061_v27 }
 0xdcc   : > { %6270 = vmatprep.mubr.msk.bf16.mxu1 %vm6941_vm2, %v6940_v13  ;;  %v1065_v30 = vsub.s32 1, %v7240_v12 }
 0xdd0   : > { %v2157_v31 = vpop.f32.mrb[40].mxu0 }
 0xdd1   : > { %v6266_v32 = vpop.f32.mrb[41].mxu0  ;;  %v2163_v33 = vsel %vm1202_vm4, %v2157_v31, -inf }
 0xdd2   : > { %2164 = vmax.xlane.f32.xlu1 %v2163_v33  ;;  %v2160_v34 = vpop.f32.mrb[42].mxu0 }
 0xdd3   : > { %v6267_v35 = vpop.f32.mrb[43].mxu0 }
 0xde3   : > { %2273 = vrot.lane.b32.xlu1 %v7255_v21, %s6961_s26 }
 0xde7   : > { %2271 = vrot.lane.b32.xlu1 %v7255_v21, %s6962_s30 }
 0xe5f   : > { %v2165_v36 = vpop.xlane.xlu1 %2164 }
 0xe60   : > { %v2166_v37 = vsub.f32 %v2157_v31, %v2165_v36  ;;  %v1066_v31 = vrot.slane %v7246_v15, %v1065_v30 }
 0xe62   : > { %v2167_v38 = vmul.f32 1.442695, %v2166_v37  ;;  %v1140_v32 = vadd.f32 %v7253_v19, %v1066_v31 }
 0xe63   : > { %v2274_v51 = vpop.permute.xlu1 %2273 }
 0xe64   : > { %6818 = vpow2.f32 %v2167_v38  ;;  %v2279_v53 = vsel %vm1155_vm3, %v2274_v51, 0  ;;  %v7448_v33 = vpack.c.bf16 %v1140_v32, %v1140_v32 }
 0xe67   : > { %v2272_v54 = vpop.permute.xlu1 %2271 }
 0xe6e   : > { %v6819_v39 = vpop.eup %6818 }
 0xe6f   : > { %v2169_v40 = vsel %vm1202_vm4, %v6819_v39, 0.0 }
 0xe70   : > { %2170 = vadd.xlane.f32.xlu0 %v2169_v40 }
 0xe86   : > { %2175 = vrot.lane.b32.xlu0 %v7255_v21, %s6963_s10  ;;  %s6966_s10 = smov 48  }
 0xe9e   : > { %v2106_v41 = vpop.f32.mrb[32].mxu1 }
 0xe9f   : > { %v2112_v42 = vadd.f32 %v2106_v41, %v1950_v7  ;;  %v6260_v43 = vpop.f32.mrb[33].mxu1 }
 0xea0   : > { %v2109_v44 = vpop.f32.mrb[34].mxu1 }
 0xea1   : > { %v6261_v45 = vpop.f32.mrb[35].mxu1 }
 0xefd   : > { %v2171_v46 = vpop.xlane.xlu0 %2170 }
 0xefe   : > { %6820 = vrcp.f32 %v2171_v46 }
 0xf01   : > { %v2176_v47 = vpop.permute.xlu0 %2175 }
 0xf02   : > { %v2181_v48 = vsel %vm1220_vm5, %v2176_v47, 0 }
 0xf03   : > { %6269 = vmatpush3.bf16.msra.mxu1 %v2181_v48 }
 0xf04   : > { %6280 = vmatprep.subr.bf16.mxu1 %v6940_v13 }
 0xf08   : > { %v6821_v49 = vpop.eup %6820 }
 0xf09   : > { %v2173_v50 = vmul.f32 %v6821_v49, %v6819_v39  ;;  %v2500_v39 = vsel %vm1220_vm5, %v7448_v33, 0 }
 0xf0b   : > { %v2174_v52 = vpack.c.bf16 %v2173_v50, %v2173_v50 }
 0xf0d   : > { %6271 = vmatmul.mubr.msk.bf16.vlgmr.msra.gmra.mrb[36].mxu1 %vm1202_vm4, %v2174_v52 }
 0xf0e   : > { %6281 = vmatpush3.bf16.xpose.msra.mxu1 %v2279_v53  ;;  %6282 = vmatprep.mubr.msk.bf16.mxu1 %vm6941_vm2, %v6940_v13 }
 0xf0f   : > { %6292 = vmatprep.subr.bf16.mxu1 %v6940_v13 }
 0xf15   : > { %6283 = vmatmul.mubr.msk.bf16.vlgmr.msra.gmra.mrb[40].mxu1 %vm1155_vm3, %v2272_v54 }
 0xf16   : > { %6294 = vmatprep.mubr.msk.bf16.mxu1 %vm6941_vm2, %v6940_v13  ;;  %6293 = vmatpush3.bf16.msra.mxu1 %v2390_v14 }
 0xf17   : > { %6304 = vmatprep.subr.bf16.mxu1 %v6940_v13 }
 0xfe0   : > { %v2217_v57 = vpop.f32.mrb[36].mxu1 }
 0xfe1   : > { %v2223_v58 = vpack.c.bf16 %v2217_v57, %v2217_v57  ;;  %v6272_v59 = vpop.f32.mrb[37].mxu1 }
 0xfe2   : > { %v2220_v60 = vpop.f32.mrb[38].mxu1  ;;  %v1148_v59 = vld [vmem:[%s7156_s16 + $0x10] sm:$0xf] }
 0xfe3   : > { %v6273_v61 = vpop.f32.mrb[39].mxu1  ;;  %6277 = vmatmul.mubr.msk.bf16.vlgmr.msra.gmra.mrb[44].mxu0 %vm1155_vm3, %v2223_v58  ;;  %v2547_v60 = vsel %vm1383_vm6, %v1148_v59, 0  ;;  %v5877_v31 = vcombine.low %v1148_v59, %v1148_v59 }
 0xfe4   : > { %6288 = vmatprep.mubr.msk.bf16.mxu0 %vm6941_vm2, %v6940_v13 }
 0xfe5   : > { %v2705_v32 = vrot.slane %v5877_v31, 2 }
 0xfe8   : > { %v2315_v62 = vpop.f32.mrb[40].mxu1 }
 0xfe9   : > { %v6284_v63 = vpop.f32.mrb[41].mxu1  ;;  %v2321_v0 = vsel %vm1202_vm4, %v2315_v62, -inf }
 0xfea   : > { %2322 = vmax.xlane.f32.xlu0 %v2321_v0  ;;  %v2318_v1 = vpop.f32.mrb[42].mxu1 }
 0xfeb   : > { %v6285_v2 = vpop.f32.mrb[43].mxu1 }
0x1000   : > { %2333 = vrot.lane.b32.xlu0 %v7255_v21, %s6964_s9  ;;  %s6967_s9 = smov 92  }
0x1004   : > { %2433 = vrot.lane.b32.xlu0 %v7255_v21, %s6965_s29 }
0x1077   : > { %v2323_v3 = vpop.xlane.xlu0 %2322 }
0x1078   : > { %v2324_v4 = vsub.f32 %v2315_v62, %v2323_v3 }
0x107a   : > { %v2325_v5 = vmul.f32 1.442695, %v2324_v4 }
0x107b   : > { %v2334_v6 = vpop.permute.xlu0 %2333 }
0x107c   : > { %6822 = vpow2.f32 %v2325_v5  ;;  %v2339_v7 = vsel %vm1220_vm5, %v2334_v6, 0 }
0x107d   : > { %6287 = vmatpush3.bf16.msra.mxu0 %v2339_v7 }
0x107e   : > { %6298 = vmatprep.subr.bf16.mxu0 %v6940_v13 }
0x107f   : > { %v2434_v29 = vpop.permute.xlu0 %2433 }
0x1086   : > { %v6823_v8 = vpop.eup %6822 }
0x1087   : > { %v2327_v9 = vsel %vm1202_vm4, %v6823_v8, 0.0 }
0x1088   : > { %2328 = vadd.xlane.f32.xlu1 %v2327_v9 }
0x1099   : > { %2435 = vrot.lane.b32.xlu1 %v7255_v21, %s6966_s10 }
0x10b6   : > { %v2264_v16 = vpop.f32.mrb[44].mxu0 }
0x10b7   : > { %v2270_v17 = vadd.f32 %v2264_v16, %v2112_v42  ;;  %v6278_v18 = vpop.f32.mrb[45].mxu0 }
0x10b8   : > { %v2267_v20 = vpop.f32.mrb[46].mxu0 }
0x10b9   : > { %v6279_v22 = vpop.f32.mrb[47].mxu0 }
0x1115   : > { %v2329_v23 = vpop.xlane.xlu1 %2328 }
0x1116   : > { %6824 = vrcp.f32 %v2329_v23 }
0x1119   : > { %v2436_v26 = vpop.permute.xlu1 %2435 }
0x111a   : > { %v2441_v28 = vsel %vm1155_vm3, %v2436_v26, 0 }
0x1120   : > { %v6825_v24 = vpop.eup %6824 }
0x1121   : > { %v2331_v25 = vmul.f32 %v6825_v24, %v6823_v8 }
0x1123   : > { %v2332_v27 = vpack.c.bf16 %v2331_v25, %v2331_v25 }
0x1125   : > { %6289 = vmatmul.mubr.msk.bf16.vlgmr.msra.gmra.mrb[48].mxu0 %vm1202_vm4, %v2332_v27 }
0x1126   : > { %6299 = vmatpush3.bf16.xpose.msra.mxu0 %v2441_v28  ;;  %6300 = vmatprep.mubr.msk.bf16.mxu0 %vm6941_vm2, %v6940_v13 }
0x1127   : > { %6310 = vmatprep.subr.bf16.mxu0 %v6940_v13 }
0x112d   : > { %6301 = vmatmul.mubr.msk.bf16.vlgmr.msra.gmra.mrb[52].mxu0 %vm1155_vm3, %v2434_v29 }
0x112e   : > { %6312 = vmatprep.mubr.msk.bf16.mxu0 %vm6941_vm2, %v6940_v13  ;;  %6311 = vmatpush3.bf16.msra.mxu0 %v2547_v60  ;;  %v1149_v60 = vld [vmem:[%s7156_s16 + $0x14] sm:$0xf]  ;;  %s8114_s16 = sld [smem:[#allocation9_spill]] }
0x112f   : > { %6322 = vmatprep.subr.bf16.mxu0 %v6940_v13 }
0x11f8   : > { %v2375_v34 = vpop.f32.mrb[48].mxu0 }
0x11f9   : > { %v2381_v35 = vpack.c.bf16 %v2375_v34, %v2375_v34  ;;  %v6290_v36 = vpop.f32.mrb[49].mxu0  ;;  %v2710_v34 = vsel %vm1383_vm6, %v2705_v32, 0 }
0x11fa   : > { %v2378_v37 = vpop.f32.mrb[50].mxu0 }
0x11fb   : > { %v6291_v38 = vpop.f32.mrb[51].mxu0  ;;  %6295 = vmatmul.mubr.msk.bf16.vlgmr.msra.gmra.mrb[44].mxu1 %vm1155_vm3, %v2381_v35 }
0x11fc   : > { %6305 = vmatpush3.bf16.msra.mxu1 %v2500_v39  ;;  %6306 = vmatprep.mubr.msk.bf16.mxu1 %vm6941_vm2, %v6940_v13 }
0x11fd   : > { %6316 = vmatprep.subr.bf16.mxu1 %v6940_v13 }
0x1200   : > { %v2477_v12 = vpop.f32.mrb[52].mxu0 }
0x1201   : > { %v6302_v15 = vpop.f32.mrb[53].mxu0  ;;  %v2483_v19 = vsel %vm1202_vm4, %v2477_v12, -inf }
0x1202   : > { %2484 = vmax.xlane.f32.xlu1 %v2483_v19  ;;  %v2480_v40 = vpop.f32.mrb[54].mxu0 }
0x1203   : > { %v6303_v41 = vpop.f32.mrb[55].mxu0 }
0x1213   : > { %2590 = vrot.lane.b32.xlu1 %v7255_v21, %s6967_s9 }
0x128f   : > { %v2485_v42 = vpop.xlane.xlu1 %2484 }
0x1290   : > { %v2486_v43 = vsub.f32 %v2477_v12, %v2485_v42 }
0x1292   : > { %v2487_v44 = vmul.f32 1.442695, %v2486_v43 }
0x1293   : > { %v2591_v58 = vpop.permute.xlu1 %2590 }
0x1294   : > { %6826 = vpow2.f32 %v2487_v44 }
0x129e   : > { %v6827_v45 = vpop.eup %6826 }
0x129f   : > { %v2489_v46 = vsel %vm1202_vm4, %v6827_v45, 0.0 }
0x12a0   : > { %2490 = vadd.xlane.f32.xlu0 %v2489_v46 }
0x12b6   : > { %2592 = vrot.lane.b32.xlu0 %v7255_v21, %s8056_s22  ;;  %s8115_s22 = sld [smem:[#allocation19_spill]] }
0x12ce   : > { %v2426_v47 = vpop.f32.mrb[44].mxu1 }
0x12cf   : > { %v2432_v48 = vadd.f32 %v2426_v47, %v2270_v17  ;;  %v6296_v49 = vpop.f32.mrb[45].mxu1 }
0x12d0   : > { %v2429_v50 = vpop.f32.mrb[46].mxu1 }
0x12d1   : > { %v6297_v51 = vpop.f32.mrb[47].mxu1 }
0x132d   : > { %v2491_v52 = vpop.xlane.xlu0 %2490 }
0x132e   : > { %6828 = vrcp.f32 %v2491_v52 }
0x1331   : > { %v2593_v55 = vpop.permute.xlu0 %2592 }
0x1332   : > { %v2598_v57 = vsel %vm1155_vm3, %v2593_v55, 0 }
0x1338   : > { %v6829_v53 = vpop.eup %6828 }
0x1339   : > { %v2493_v54 = vmul.f32 %v6829_v53, %v6827_v45 }
0x133b   : > { %v2494_v56 = vpack.c.bf16 %v2493_v54, %v2493_v54 }
0x133d   : > { %6307 = vmatmul.mubr.msk.bf16.vlgmr.msra.gmra.mrb[48].mxu1 %vm1202_vm4, %v2494_v56 }
0x133e   : > { %6317 = vmatpush3.bf16.xpose.msra.mxu1 %v2598_v57  ;;  %6318 = vmatprep.mubr.msk.bf16.mxu1 %vm6941_vm2, %v6940_v13 }
0x133f   : > { %6328 = vmatprep.subr.bf16.mxu1 %v6940_v13 }
0x1345   : > { %6319 = vmatmul.mubr.msk.bf16.vlgmr.msra.gmra.mrb[52].mxu1 %vm1155_vm3, %v2591_v58 }
0x1346   : > { %6330 = vmatprep.mubr.msk.bf16.mxu1 %vm6941_vm2, %v6940_v13  ;;  %6329 = vmatpush3.bf16.msra.mxu1 %v2710_v34 }
0x1347   : > { %6340 = vmatprep.subr.bf16.mxu1 %v6940_v13 }
0x1410   : > { %v2536_v61 = vpop.f32.mrb[48].mxu1 }
0x1411   : > { %v2542_v62 = vpack.c.bf16 %v2536_v61, %v2536_v61  ;;  %v6308_v63 = vpop.f32.mrb[49].mxu1  ;;  %v2868_v61 = vsel %vm1383_vm6, %v1149_v60, 0 }
0x1412   : > { %v2539_v0 = vpop.f32.mrb[50].mxu1 }
0x1413   : > { %v6309_v1 = vpop.f32.mrb[51].mxu1  ;;  %6313 = vmatmul.mubr.msk.bf16.vlgmr.msra.gmra.mrb[56].mxu0 %vm1155_vm3, %v2542_v62 }
0x1414   : > { %6324 = vmatprep.mubr.msk.bf16.mxu0 %vm6941_vm2, %v6940_v13 }
0x1418   : > { %v2634_v2 = vpop.f32.mrb[52].mxu1 }
0x1419   : > { %v6320_v3 = vpop.f32.mrb[53].mxu1  ;;  %v2640_v4 = vsel %vm1202_vm4, %v2634_v2, -inf }
0x141a   : > { %2641 = vmax.xlane.f32.xlu1 %v2640_v4  ;;  %v2637_v5 = vpop.f32.mrb[54].mxu1 }
0x141b   : > { %v6321_v6 = vpop.f32.mrb[55].mxu1 }
0x142b   : > { %2755 = vrot.lane.b32.xlu1 %v7255_v21, %s8050_s15  ;;  %s8052_s15 = smov 36  }
0x142f   : > { %2753 = vrot.lane.b32.xlu1 %v7255_v21, %s8058_s14  ;;  %s8116_s14 = scalar_lea.vmem %s8115_s22, %s7124_s1  ;;  %s8118_s22 = sld [smem:[#allocation20_spill]] }
0x14a7   : > { %v2642_v7 = vpop.xlane.xlu1 %2641 }
0x14a8   : > { %v2643_v8 = vsub.f32 %v2634_v2, %v2642_v7 }
0x14aa   : > { %v2644_v9 = vmul.f32 1.442695, %v2643_v8 }
0x14ab   : > { %v2756_v27 = vpop.permute.xlu1 %2755 }
0x14ac   : > { %6830 = vpow2.f32 %v2644_v9  ;;  %v2761_v29 = vsel %vm1155_vm3, %v2756_v27, 0 }
0x14af   : > { %v2754_v30 = vpop.permute.xlu1 %2753 }
0x14b6   : > { %v6831_v10 = vpop.eup %6830 }
0x14b7   : > { %v2646_v11 = vsel %vm1202_vm4, %v6831_v10, 0.0 }
0x14b8   : > { %2647 = vadd.xlane.f32.xlu0 %v2646_v11 }
0x14ce   : > { %2653 = vrot.lane.b32.xlu0 %v7448_v33, %s6942_s5 }
0x14e6   : > { %v2583_v14 = vpop.f32.mrb[56].mxu0 }
0x14e7   : > { %v2589_v16 = vadd.f32 %v2583_v14, %v2432_v48  ;;  %v6314_v17 = vpop.f32.mrb[57].mxu0 }
0x14e8   : > { %v2586_v18 = vpop.f32.mrb[58].mxu0 }
0x14e9   : > { %v6315_v20 = vpop.f32.mrb[59].mxu0 }
0x1545   : > { %v2648_v22 = vpop.xlane.xlu0 %2647 }
0x1546   : > { %6832 = vrcp.f32 %v2648_v22 }
0x1549   : > { %v2654_v23 = vpop.permute.xlu0 %2653 }
0x154a   : > { %v2659_v24 = vsel %vm1220_vm5, %v2654_v23, 0 }
0x154b   : > { %6323 = vmatpush3.bf16.msra.mxu0 %v2659_v24 }
0x154c   : > { %6334 = vmatprep.subr.bf16.mxu0 %v6940_v13 }
0x1550   : > { %v6833_v25 = vpop.eup %6832 }
0x1551   : > { %v2650_v26 = vmul.f32 %v6833_v25, %v6831_v10 }
0x1553   : > { %v2651_v28 = vpack.c.bf16 %v2650_v26, %v2650_v26 }
0x1555   : > { %6325 = vmatmul.mubr.msk.bf16.vlgmr.msra.gmra.mrb[60].mxu0 %vm1202_vm4, %v2651_v28 }
0x1556   : > { %6335 = vmatpush3.bf16.xpose.msra.mxu0 %v2761_v29  ;;  %6336 = vmatprep.mubr.msk.bf16.mxu0 %vm6941_vm2, %v6940_v13 }
0x1557   : > { %6346 = vmatprep.subr.bf16.mxu0 %v6940_v13 }
0x155d   : > { %6337 = vmatmul.mubr.msk.bf16.vlgmr.msra.gmra.mrb[64].mxu0 %vm1155_vm3, %v2754_v30 }
0x155e   : > { %6348 = vmatprep.mubr.msk.bf16.mxu0 %vm6941_vm2, %v6940_v13  ;;  %6347 = vmatpush3.bf16.msra.mxu0 %v2868_v61 }
0x155f   : > { %6358 = vmatprep.subr.bf16.mxu0 %v6940_v13 }
0x1628   : > { %v2695_v35 = vpop.f32.mrb[60].mxu0 }
0x1629   : > { %v2701_v36 = vpack.c.bf16 %v2695_v35, %v2695_v35  ;;  %v6326_v37 = vpop.f32.mrb[61].mxu0 }
0x162a   : > { %v2698_v38 = vpop.f32.mrb[62].mxu0  ;;  %v5886_v37 = vld [vmem:[%s8116_s14] ss:$0 sm:$0xff] }
0x162b   : > { %v6327_v39 = vpop.f32.mrb[63].mxu0  ;;  %6331 = vmatmul.mubr.msk.bf16.vlgmr.msra.gmra.mrb[56].mxu1 %vm1155_vm3, %v2701_v36 }
0x162c   : > { %6342 = vmatprep.mubr.msk.bf16.mxu1 %vm6941_vm2, %v6940_v13 }
0x1630   : > { %v2797_v12 = vpop.f32.mrb[64].mxu0 }
0x1631   : > { %v6338_v15 = vpop.f32.mrb[65].mxu0  ;;  %v2803_v19 = vsel %vm1202_vm4, %v2797_v12, -inf }
0x1632   : > { %2804 = vmax.xlane.f32.xlu0 %v2803_v19  ;;  %v2800_v40 = vpop.f32.mrb[66].mxu0 }
0x1633   : > { %v6339_v41 = vpop.f32.mrb[67].mxu0 }
0x1634   : > { %v6898_v41 = vld [vmem:[#allocation2] sm:$0xff] }
0x1648   : > { %2815 = vrot.lane.b32.xlu0 %v7448_v33, %s6947_s25 }
0x164c   : > { %2911 = vrot.lane.b32.xlu0 %v7255_v21, %s8054_s6 }
0x16bf   : > { %v2805_v42 = vpop.xlane.xlu0 %2804 }
0x16c0   : > { %v2806_v43 = vsub.f32 %v2797_v12, %v2805_v42 }
0x16c2   : > { %v2807_v44 = vmul.f32 1.442695, %v2806_v43 }
0x16c3   : > { %v2816_v45 = vpop.permute.xlu0 %2815 }
0x16c4   : > { %6834 = vpow2.f32 %v2807_v44  ;;  %v2821_v46 = vsel %vm1220_vm5, %v2816_v45, 0  ;;  %v6771_v44 = vld [vmem:[%s7178_s24] sm:$0xff]   ;;  %v6772_v45 = vld [vmem:[%s7178_s24 + $0x8] sm:$0xff]  }
0x16c5   : > { %6341 = vmatpush3.bf16.msra.mxu1 %v2821_v46  ;;  %v6774_v46 = vld [vmem:[%s8114_s16] sm:$0xff]  }
0x16c6   : > { %6352 = vmatprep.subr.bf16.mxu1 %v6940_v13 }
0x16ce   : > { %v6835_v47 = vpop.eup %6834 }
0x16cf   : > { %v2809_v48 = vsel %vm1202_vm4, %v6835_v47, 0.0 }
0x16d0   : > { %2810 = vadd.xlane.f32.xlu1 %v2809_v48  ;;  %v6775_v48 = vld [vmem:[%s8114_s16 + $0x8] sm:$0xff]   ;;  %s8119_s16 = scalar_lea.vmem %s8118_s22, %s7124_s1  ;;  %s8121_s22 = sld [smem:[#allocation22_spill]] }
0x16e1   : > { %2913 = vrot.lane.b32.xlu1 %v7255_v21, %s8052_s15  ;;  %v2912_v21 = vpop.permute.xlu0 %2911 }
0x16fe   : > { %v2746_v49 = vpop.f32.mrb[56].mxu1 }
0x16ff   : > { %v2752_v50 = vadd.f32 %v2746_v49, %v2589_v16  ;;  %v6332_v51 = vpop.f32.mrb[57].mxu1  ;;  %v5884_v16 = vcombine.low %v1149_v60, %v1149_v60 }
0x1700   : > { %v2749_v52 = vpop.f32.mrb[58].mxu1 }
0x1701   : > { %v6333_v53 = vpop.f32.mrb[59].mxu1  ;;  %v3025_v17 = vrot.slane %v5884_v16, 2 }
0x1703   : > { %v3030_v18 = vsel %vm1383_vm6, %v3025_v17, 0 }
0x175d   : > { %v2811_v54 = vpop.xlane.xlu1 %2810 }
0x175e   : > { %6836 = vrcp.f32 %v2811_v54  ;;  %v6776_v54 = vld [vmem:[%s7169_s23] sm:$0xff]  }
0x1761   : > { %v2914_v57 = vpop.permute.xlu1 %2913 }
0x1762   : > { %v2919_v59 = vsel %vm1155_vm3, %v2914_v57, 0 }
0x1768   : > { %v6837_v55 = vpop.eup %6836 }
0x1769   : > { %v2813_v56 = vmul.f32 %v6837_v55, %v6835_v47  ;;  %v6773_v47 = vld [vmem:[%s7178_s24 + $0x10] sm:$0xff]   ;;  %v6777_v55 = vld [vmem:[%s7169_s23 + $0x8] sm:$0xff]   ;;  %s8117_s24 = scalar_lea.vmem %s8030_s11, %s7124_s1 }
0x176a   : > { %v5894_v57 = vld [vmem:[%s8117_s24] ss:$0 sm:$0xff]  ;;  %s8120_s24 = scalar_lea.vmem %s8026_s7, %s7124_s1 }
0x176b   : > { %v2814_v58 = vpack.c.bf16 %v2813_v56, %v2813_v56  ;;  %v6778_v56 = vld [vmem:[%s7169_s23 + $0x10] sm:$0xff]  }
0x176d   : > { %6343 = vmatmul.mubr.msk.bf16.vlgmr.msra.gmra.mrb[60].mxu1 %vm1202_vm4, %v2814_v58 }
0x176e   : > { %6353 = vmatpush3.bf16.xpose.msra.mxu1 %v2919_v59  ;;  %6354 = vmatprep.mubr.msk.bf16.mxu1 %vm6941_vm2, %v6940_v13 }
0x176f   : > { %6364 = vmatprep.subr.bf16.mxu1 %v6940_v13 }
0x1775   : > { %6355 = vmatmul.mubr.msk.bf16.vlgmr.msra.gmra.mrb[64].mxu1 %vm1155_vm3, %v2912_v21 }
0x1776   : > { %6366 = vmatprep.mubr.msk.bf16.mxu1 %vm6941_vm2, %v6940_v13  ;;  %6365 = vmatpush3.bf16.msra.mxu1 %v3030_v18 }
0x1777   : > { %6380 = vmatprep.subr.bf16.mxu1 %v6771_v44 }
0x1840   : > { %v2857_v62 = vpop.f32.mrb[60].mxu1 }
0x1841   : > { %v2863_v63 = vpack.c.bf16 %v2857_v62, %v2857_v62  ;;  %v6344_v0 = vpop.f32.mrb[61].mxu1 }
0x1842   : > { %v2860_v1 = vpop.f32.mrb[62].mxu1 }
0x1843   : > { %v6345_v2 = vpop.f32.mrb[63].mxu1  ;;  %6349 = vmatmul.mubr.msk.bf16.vlgmr.msra.gmra.mrb[68].mxu0 %vm1155_vm3, %v2863_v63 }
0x1844   : > { %6360 = vmatprep.mubr.msk.bf16.mxu0 %vm6941_vm2, %v6940_v13 }
0x1848   : > { %v2955_v3 = vpop.f32.mrb[64].mxu1 }
0x1849   : > { %v6356_v4 = vpop.f32.mrb[65].mxu1  ;;  %v2961_v5 = vsel %vm1202_vm4, %v2955_v3, -inf }
0x184a   : > { %2962 = vmax.xlane.f32.xlu1 %v2961_v5  ;;  %v2958_v6 = vpop.f32.mrb[66].mxu1 }
0x184b   : > { %v6357_v7 = vpop.f32.mrb[67].mxu1 }
0x184c   : > { %v5887_v7 = vld [vmem:[%s8119_s16] ss:$0 sm:$0xff]  ;;  %s8122_s16 = scalar_lea.vmem %s8121_s22, %s7124_s1  ;;  %s8137_s22 = sld [smem:[#allocation30_spill]] }
0x184d   : > { %v5889_v18 = vld [vmem:[%s8122_s16] ss:$0 sm:$0xff] }
0x1852   : > { %s8138_s16 = scalar_lea.vmem %s8137_s22, %s7124_s1 }
0x18d7   : > { %v2963_v8 = vpop.xlane.xlu1 %2962 }
0x18d8   : > { %v2964_v9 = vsub.f32 %v2955_v3, %v2963_v8 }
0x18da   : > { %v2965_v10 = vmul.f32 1.442695, %v2964_v9  ;;  %v5888_v9 = vld [vmem:[%s8120_s24] ss:$0 sm:$0xff]  ;;  %s8135_s24 = sld [smem:[#allocation28_spill]] }
0x18dc   : > { %6838 = vpow2.f32 %v2965_v10 }
0x18e0   : > { %s8136_s6 = scalar_lea.vmem %s8135_s24, %s7124_s1 }
0x18e6   : > { %v6839_v11 = vpop.eup %6838 }
0x18e7   : > { %v2967_v14 = vsel %vm1202_vm4, %v6839_v11, 0.0 }
0x18e8   : > { %2968 = vadd.xlane.f32.xlu0 %v2967_v14 }
0x18fe   : > { %2973 = vrot.lane.b32.xlu0 %v7448_v33, %s6950_s17 }
0x1916   : > { %v2904_v20 = vpop.f32.mrb[68].mxu0 }
0x1917   : > { %v2910_v22 = vadd.f32 %v2904_v20, %v2752_v50  ;;  %v6350_v23 = vpop.f32.mrb[69].mxu0 }
0x1918   : > { %v2907_v24 = vpop.f32.mrb[70].mxu0 }
0x1919   : > { %v6351_v25 = vpop.f32.mrb[71].mxu0 }
0x1975   : > { %v2969_v26 = vpop.xlane.xlu0 %2968 }
0x1976   : > { %6840 = vrcp.f32 %v2969_v26 }
0x1979   : > { %v2974_v27 = vpop.permute.xlu0 %2973 }
0x197a   : > { %v2979_v28 = vsel %vm1220_vm5, %v2974_v27, 0 }
0x197b   : > { %6359 = vmatpush3.bf16.msra.mxu0 %v2979_v28 }
0x197c   : > { %6370 = vmatprep.subr.bf16.mxu0 %v6940_v13 }
0x1980   : > { %v6841_v33 = vpop.eup %6840 }
0x1981   : > { %v2971_v29 = vmul.f32 %v6841_v33, %v6839_v11 }
0x1983   : > { %v2972_v30 = vpack.c.bf16 %v2971_v29, %v2971_v29 }
0x1985   : > { %6361 = vmatmul.mubr.msk.bf16.vlgmr.msra.gmra.mrb[72].mxu0 %vm1202_vm4, %v2972_v30 }
0x1986   : > { %6376 = vmatprep.mubr.msk.bf16.mxu0 %vm6941_vm2, %v6940_v13  ;;  %6371 = vmatpush3.bf16.msra.mxu0 %v6776_v54 }
0x1987   : > { %6372 = vmatprep.subr.bf16.mxu0 %v6940_v13 }
0x198a   : > { %6373 = vmatpush3.bf16.msra.mxu0 %v6777_v55 }
0x198b   : > { %6374 = vmatprep.subr.bf16.mxu0 %v6940_v13 }
0x198e   : > { %6375 = vmatpush3.bf16.msra.mxu0 %v6778_v56 }
0x198f   : > { %6390 = vmatprep.subr.bf16.mxu0 %v6940_v13 }
0x1a58   : > { %v3015_v31 = vpop.f32.mrb[72].mxu0 }
0x1a59   : > { %v3021_v32 = vpack.c.bf16 %v3015_v31, %v3015_v31  ;;  %v6362_v34 = vpop.f32.mrb[73].mxu0 }
0x1a5a   : > { %v3018_v35 = vpop.f32.mrb[74].mxu0 }
0x1a5b   : > { %v6363_v36 = vpop.f32.mrb[75].mxu0  ;;  %6367 = vmatmul.mubr.msk.bf16.vlgmr.msra.gmra.mrb[68].mxu1 %vm1155_vm3, %v3021_v32 }
0x1a5c   : > { %6381 = vmatpush3.bf16.msra.mxu1 %v6771_v44  ;;  %6386 = vmatprep.mubr.msk.bf16.mxu1 %vm1099_vm1, %v6774_v46 }
0x1a5d   : > { %6382 = vmatprep.subr.bf16.mxu1 %v6772_v45 }
0x1a60   : > { %6383 = vmatpush3.bf16.msra.mxu1 %v6772_v45 }
0x1a61   : > { %6384 = vmatprep.subr.bf16.mxu1 %v6773_v47 }
0x1a64   : > { %6385 = vmatpush3.bf16.msra.mxu1 %v6773_v47 }
0x1a65   : > { %6398 = vmatprep.subr.bf16.mxu1 %v6940_v13 }
0x1a67   : > { %6387 = vmatmul.mubr.msk.bf16.vlgmr.msra.gmra.mrb[72].mxu1 %vm1099_vm1, %v6775_v48 }
0x1a68   : > { %6402 = vmatprep.mubr.msk.bf16.mxu1 %vm6941_vm2, %v6940_v13 }
0x1b2e   : > { %v3066_v38 = vpop.f32.mrb[68].mxu1 }
0x1b2f   : > { %v3072_v39 = vadd.f32 %v3066_v38, %v2910_v22  ;;  %v6368_v12 = vpop.f32.mrb[69].mxu1 }
0x1b30   : > { %v3069_v15 = vpop.f32.mrb[70].mxu1 }
0x1b31   : > { %v3079_v19 = vadd.f32 %v5886_v37, %v3072_v39  ;;  %v6369_v40 = vpop.f32.mrb[71].mxu1 }
0x1b33   : > { %v3080_v42 = vadd.f32 %v6898_v41, %v3079_v19 }
0x1b35   : > { %v3083_v43 = vsel %vm1099_vm1, %v3080_v42, 0.0 }
0x1b36   : > { %3084 = vadd.xlane.f32.xlu1 %v3083_v43 }
0x1b3a   : > { %v6388_v58 = vpop.f32.mrb[72].mxu1 }
0x1b3b   : > { %v3276_v59 = vadd.f32 %v6388_v58, %v5894_v57  ;;  %v3267_v21 = vpop.f32.mrb[73].mxu1 }
0x1b3c   : > { %v3268_v60 = vadd.f32 %v5894_v57, %v3267_v21  ;;  %v6389_v61 = vpop.f32.mrb[74].mxu1 }
0x1b3d   : > { %v3279_v62 = vadd.f32 %v6389_v61, %v5894_v57  ;;  %v3270_v63 = vpop.f32.mrb[75].mxu1 }
0x1b3e   : > { %v3271_v0 = vadd.f32 %v5894_v57, %v3270_v63 }
0x1b3f   : > { %v7562_v1 = vpack.c.bf16 %v3279_v62, %v3276_v59 }
0x1b40   : > { %v7564_v2 = vpack.c.bf16 %v3271_v0, %v3268_v60 }
0x1b41   : > { %3358 = vrot.lane.b32.xlu0 %v7562_v1, %s6943_s2  ;;  %v3299_v17 = vsel %vm1155_vm3, %v7562_v1, 0 }
0x1b42   : > { %v3296_v16 = vsel %vm1155_vm3, %v7564_v2, 0 }
0x1b45   : > { %3409 = vrot.lane.b32.xlu0 %v7564_v2, %s6942_s5 }
0x1b49   : > { %3411 = vrot.lane.b32.xlu0 %v7562_v1, %s6942_s5 }
0x1bb3   : > { %v3359_v39 = vpop.permute.xlu0 %3358 }
0x1bb7   : > { %v3410_v40 = vpop.permute.xlu0 %3409 }
0x1bb8   : > { %v3417_v41 = vsel %vm1155_vm3, %v3410_v40, 0 }
0x1bc3   : > { %v3085_v49 = vpop.xlane.xlu1 %3084 }
0x1bc4   : > { %v3087_v50 = vmul.f32 0.020833334, %v3085_v49 }
0x1bc6   : > { %v3088_v51 = vsub.f32 %v3080_v42, %v3087_v50  ;;  %v3412_v42 = vpop.permute.xlu0 %3411 }
0x1bc7   : > { %v3420_v43 = vsel %vm1155_vm3, %v3412_v42, 0 }
0x1bc8   : > { %v3089_v52 = vmul.f32 %v3088_v51, %v3088_v51 }
0x1bca   : > { %v3090_v53 = vsel %vm1099_vm1, %v3089_v52, 0.0 }
0x1bcb   : > { %3091 = vadd.xlane.f32.xlu1 %v3090_v53 }
0x1c58   : > { %v3092_v3 = vpop.xlane.xlu1 %3091 }
0x1c59   : > { %v3093_v4 = vmul.f32 0.020833334, %v3092_v3 }
0x1c5b   : > { %v3094_v5 = vadd.f32 1e-05, %v3093_v4 }
0x1c5d   : > { %6842 = vrsqrt.f32 %v3094_v5 }
0x1c67   : > { %v6843_v6 = vpop.eup %6842 }
0x1c68   : > { %v3096_v8 = vmul.f32 %v6843_v6, %v3088_v51 }
0x1c6a   : > { %v3103_v10 = vmul.f32 %v5887_v7, %v3096_v8 }
0x1c6c   : > { %v7582_v11 = vadd.f32 %v5888_v9, %v3103_v10 }
0x1c6e   : > { %v3117_v14 = vpack.c.bf16 %v7582_v11, %v7582_v11 }
0x1c70   : > { %6377 = vmatmul.mubr.msk.bf16.vlgmr.msra.gmra.mrb[76].mxu0 %vm1099_vm1, %v3117_v14 }
0x1c71   : > { %6391 = vmatpush3.bf16.xpose.msra.mxu0 %v3296_v16  ;;  %6394 = vmatprep.mubr.msk.bf16.mxu0 %vm6941_vm2, %v6940_v13 }
0x1c72   : > { %6392 = vmatprep.subr.bf16.mxu0 %v6940_v13 }
0x1c79   : > { %6393 = vmatpush3.bf16.xpose.msra.mxu0 %v3299_v17 }
0x1c7a   : > { %6414 = vmatprep.subr.bf16.mxu0 %v6940_v13 }
0x1d43   : > { %v3180_v20 = vpop.f32.mrb[76].mxu0 }
0x1d44   : > { %v3181_v22 = vadd.f32 %v5889_v18, %v3180_v20  ;;  %v6378_v23 = vpop.f32.mrb[77].mxu0 }
0x1d45   : > { %v3183_v24 = vpop.f32.mrb[78].mxu0 }
0x1d46   : > { %v7600_v25 = vpack.c.bf16 %v3181_v22, %v3181_v22  ;;  %v6379_v26 = vpop.f32.mrb[79].mxu0 }
0x1d48   : > { %3407 = vrot.lane.b32.xlu0 %v7600_v25, %s6942_s5  ;;  %6395 = vmatmul.mubr.msk.bf16.vlgmr.msra.gmra.mrb[80].mxu0 %vm1155_vm3, %v7600_v25  ;;  %s8123_s5 = sld [smem:[#allocation12_spill]] }
0x1d49   : > { %6418 = vmatprep.mubr.msk.bf16.mxu0 %vm6941_vm2, %v6940_v13 }
0x1d4e   : > { %v3282_v45 = vld [vmem:[%s8123_s5] sm:$0xf] }
0x1d4f   : > { %v3578_v46 = vsel %vm1383_vm6, %v3282_v45, 0  ;;  %v5906_v5 = vcombine.low %v3282_v45, %v3282_v45 }
0x1d51   : > { %v3527_v7 = vrot.slane %v5906_v5, 2 }
0x1d53   : > { %v3532_v14 = vsel %vm1383_vm6, %v3527_v7, 0  ;;  %v3283_v7 = vld [vmem:[%s8123_s5 + $0x4] sm:$0xf] }
0x1dba   : > { %v3408_v44 = vpop.permute.xlu0 %3407 }
0x1e1b   : > { %v3335_v27 = vpop.f32.mrb[80].mxu0 }
0x1e1c   : > { %v6396_v28 = vpop.f32.mrb[81].mxu0  ;;  %v3342_v33 = vsel %vm3341_vm7, %v3335_v27, -inf }
0x1e1d   : > { %3343 = vmax.xlane.f32.xlu1 %v3342_v33  ;;  %v3338_v29 = vpop.f32.mrb[82].mxu0 }
0x1e1e   : > { %v6397_v30 = vpop.f32.mrb[83].mxu0 }
0x1eaa   : > { %v3344_v31 = vpop.xlane.xlu1 %3343 }
0x1eab   : > { %v3345_v32 = vsub.f32 %v3335_v27, %v3344_v31 }
0x1ead   : > { %v3346_v34 = vmul.f32 1.442695, %v3345_v32 }
0x1eaf   : > { %6844 = vpow2.f32 %v3346_v34 }
0x1eb9   : > { %v6845_v35 = vpop.eup %6844 }
0x1eba   : > { %v3348_v36 = vsel %vm3341_vm7, %v6845_v35, 0.0 }
0x1ebb   : > { %3349 = vadd.xlane.f32.xlu1 %v3348_v36 }
0x1ecc   : > { %3356 = vrot.lane.b32.xlu1 %v7564_v2, %s6943_s2  ;;  %s8124_s2 = smov 88  }
0x1f48   : > { %v3350_v37 = vpop.xlane.xlu1 %3349 }
0x1f49   : > { %6846 = vrcp.f32 %v3350_v37 }
0x1f4c   : > { %v3357_v38 = vpop.permute.xlu1 %3356 }
0x1f4d   : > { %6399 = vmatpush3.bf16.msra.mxu1 %v3357_v38 }
0x1f4e   : > { %6400 = vmatprep.subr.bf16.mxu1 %v6940_v13 }
0x1f51   : > { %6401 = vmatpush3.bf16.msra.mxu1 %v3359_v39 }
0x1f52   : > { %6406 = vmatprep.subr.bf16.mxu1 %v6940_v13 }
0x1f53   : > { %v6847_v12 = vpop.eup %6846 }
0x1f54   : > { %v3352_v15 = vmul.f32 %v6847_v12, %v6845_v35 }
0x1f56   : > { %v3353_v19 = vpack.c.bf16 %v3352_v15, %v3352_v15 }
0x1f58   : > { %6403 = vmatmul.mubr.msk.bf16.vlgmr.msra.gmra.mrb[76].mxu1 %vm3341_vm7, %v3353_v19 }
0x1f59   : > { %6410 = vmatprep.mubr.msk.bf16.mxu1 %vm6941_vm2, %v6940_v13 }
0x1f5a   : > { %6407 = vmatpush3.bf16.xpose.msra.mxu1 %v3417_v41 }
0x1f5b   : > { %6408 = vmatprep.subr.bf16.mxu1 %v6940_v13 }
0x1f62   : > { %6409 = vmatpush3.bf16.xpose.msra.mxu1 %v3420_v43 }
0x1f63   : > { %6428 = vmatprep.subr.bf16.mxu1 %v6940_v13 }
0x1f69   : > { %6411 = vmatmul.mubr.msk.bf16.vlgmr.msra.gmra.mrb[80].mxu1 %vm1155_vm3, %v3408_v44 }
0x1f6a   : > { %6430 = vmatprep.mubr.msk.bf16.mxu1 %vm6941_vm2, %v6940_v13  ;;  %6429 = vmatpush3.bf16.msra.mxu1 %v3578_v46 }
0x1f6b   : > { %6442 = vmatprep.subr.bf16.mxu1 %v6940_v13 }
0x202b   : > { %v3399_v47 = vpop.f32.mrb[76].mxu1 }
0x202c   : > { %v3405_v48 = vpack.c.bf16 %v3399_v47, %v3399_v47  ;;  %v6404_v49 = vpop.f32.mrb[77].mxu1 }
0x202d   : > { %v3402_v50 = vpop.f32.mrb[78].mxu1 }
0x202e   : > { %v6405_v51 = vpop.f32.mrb[79].mxu1  ;;  %6431 = vmatmul.mubr.msk.bf16.vlgmr.msra.gmra.mrb[84].mxu1 %vm1155_vm3, %v3405_v48 }
0x202f   : > { %6446 = vmatprep.mubr.msk.bf16.mxu1 %vm6941_vm2, %v6940_v13 }
0x203c   : > { %v3456_v52 = vpop.f32.mrb[80].mxu1 }
0x203d   : > { %v6412_v53 = vpop.f32.mrb[81].mxu1  ;;  %v3462_v54 = vsel %vm3341_vm7, %v3456_v52, -inf }
0x203e   : > { %3463 = vmax.xlane.f32.xlu1 %v3462_v54  ;;  %v3459_v55 = vpop.f32.mrb[82].mxu1 }
0x203f   : > { %v6413_v56 = vpop.f32.mrb[83].mxu1 }
0x204f   : > { %3476 = vrot.lane.b32.xlu1 %v7562_v1, %s6944_s18 }
0x2053   : > { %3622 = vrot.lane.b32.xlu1 %v7564_v2, %s6947_s25 }
0x2057   : > { %3620 = vrot.lane.b32.xlu1 %v7600_v25, %s6947_s25 }
0x205b   : > { %3788 = vrot.lane.b32.xlu1 %v7562_v1, %s6950_s17 }
0x20cb   : > { %v3464_v57 = vpop.xlane.xlu1 %3463 }
0x20cc   : > { %v3465_v58 = vsub.f32 %v3456_v52, %v3464_v57 }
0x20ce   : > { %v3466_v59 = vmul.f32 1.442695, %v3465_v58 }
0x20cf   : > { %v3477_v6 = vpop.permute.xlu1 %3476 }
0x20d0   : > { %6848 = vpow2.f32 %v3466_v59 }
0x20d3   : > { %v3623_v16 = vpop.permute.xlu1 %3622 }
0x20d4   : > { %v3630_v23 = vsel %vm1155_vm3, %v3623_v16, 0 }
0x20d7   : > { %v3621_v33 = vpop.permute.xlu1 %3620 }
0x20da   : > { %v6849_v21 = vpop.eup %6848 }
0x20db   : > { %v3468_v60 = vsel %vm3341_vm7, %v6849_v21, 0.0  ;;  %v3789_v30 = vpop.permute.xlu1 %3788 }
0x20dc   : > { %3469 = vadd.xlane.f32.xlu0 %v3468_v60  ;;  %v3797_v31 = vsel %vm1155_vm3, %v3789_v30, 0 }
0x20f2   : > { %3474 = vrot.lane.b32.xlu0 %v7564_v2, %s6944_s18  ;;  %s8125_s18 = smov 44  }
0x20f6   : > { %3624 = vrot.lane.b32.xlu0 %v7562_v1, %s6947_s25  ;;  %s8126_s25 = smov 84  }
0x20fa   : > { %3786 = vrot.lane.b32.xlu0 %v7564_v2, %s6950_s17 }
0x20fe   : > { %3784 = vrot.lane.b32.xlu0 %v7600_v25, %s6950_s17  ;;  %s8141_s17 = sld [smem:[#allocation32_spill]] }
0x2101   : > { %v3614_v61 = vpop.f32.mrb[84].mxu1 }
0x2102   : > { %v6432_v62 = vpop.f32.mrb[85].mxu1 }
0x2103   : > { %v3617_v63 = vpop.f32.mrb[86].mxu1 }
0x2104   : > { %v6433_v0 = vpop.f32.mrb[87].mxu1 }
0x2169   : > { %v3470_v3 = vpop.xlane.xlu0 %3469 }
0x216a   : > { %6850 = vrcp.f32 %v3470_v3 }
0x216d   : > { %v3475_v4 = vpop.permute.xlu0 %3474 }
0x216e   : > { %6415 = vmatpush3.bf16.msra.mxu0 %v3475_v4 }
0x216f   : > { %6416 = vmatprep.subr.bf16.mxu0 %v6940_v13 }
0x2171   : > { %v3625_v26 = vpop.permute.xlu0 %3624 }
0x2172   : > { %6417 = vmatpush3.bf16.msra.mxu0 %v3477_v6  ;;  %v3633_v27 = vsel %vm1155_vm3, %v3625_v26, 0 }
0x2173   : > { %6422 = vmatprep.subr.bf16.mxu0 %v6940_v13 }
0x2174   : > { %v6851_v8 = vpop.eup %6850 }
0x2175   : > { %v3472_v9 = vmul.f32 %v6851_v8, %v6849_v21  ;;  %v3787_v28 = vpop.permute.xlu0 %3786  ;;  %v3741_v8 = vsel %vm1383_vm6, %v3283_v7, 0 }
0x2176   : > { %v3794_v29 = vsel %vm1155_vm3, %v3787_v28, 0 }
0x2177   : > { %v3473_v10 = vpack.c.bf16 %v3472_v9, %v3472_v9 }
0x2179   : > { %6419 = vmatmul.mubr.msk.bf16.vlgmr.msra.gmra.mrb[84].mxu0 %vm3341_vm7, %v3473_v10  ;;  %v3785_v32 = vpop.permute.xlu0 %3784 }
0x217a   : > { %6423 = vmatpush3.bf16.msra.mxu0 %v3532_v14  ;;  %6424 = vmatprep.mubr.msk.bf16.mxu0 %vm6941_vm2, %v6940_v13 }
0x217b   : > { %6434 = vmatprep.subr.bf16.mxu0 %v6940_v13 }
0x224c   : > { %v3517_v17 = vpop.f32.mrb[84].mxu0 }
0x224d   : > { %v3523_v18 = vpack.c.bf16 %v3517_v17, %v3517_v17  ;;  %v6420_v20 = vpop.f32.mrb[85].mxu0 }
0x224e   : > { %v3520_v22 = vpop.f32.mrb[86].mxu0 }
0x224f   : > { %v6421_v24 = vpop.f32.mrb[87].mxu0  ;;  %6425 = vmatmul.mubr.msk.bf16.vlgmr.msra.gmra.mrb[88].mxu0 %vm1155_vm3, %v3523_v18 }
0x2250   : > { %6435 = vmatpush3.bf16.xpose.msra.mxu0 %v3630_v23  ;;  %6438 = vmatprep.mubr.msk.bf16.mxu0 %vm6941_vm2, %v6940_v13 }
0x2251   : > { %6436 = vmatprep.subr.bf16.mxu0 %v6940_v13 }
0x2258   : > { %6437 = vmatpush3.bf16.xpose.msra.mxu0 %v3633_v27 }
0x2259   : > { %6456 = vmatprep.subr.bf16.mxu0 %v6940_v13 }
0x225f   : > { %6439 = vmatmul.mubr.msk.bf16.vlgmr.msra.gmra.mrb[92].mxu0 %vm1155_vm3, %v3621_v33 }
0x2260   : > { %6457 = vmatpush3.bf16.xpose.msra.mxu0 %v3794_v29  ;;  %6460 = vmatprep.mubr.msk.bf16.mxu0 %vm6941_vm2, %v6940_v13 }
0x2261   : > { %6458 = vmatprep.subr.bf16.mxu0 %v6940_v13 }
0x2268   : > { %6459 = vmatpush3.bf16.xpose.msra.mxu0 %v3797_v31 }
0x2269   : > { %6478 = vmatprep.subr.bf16.mxu0 %v6940_v13 }
0x226f   : > { %6461 = vmatmul.mubr.msk.bf16.vlgmr.msra.gmra.mrb[96].mxu0 %vm1155_vm3, %v3785_v32 }
0x2270   : > { %6482 = vmatprep.mubr.msk.bf16.mxu0 %vm6941_vm2, %v6940_v13 }
0x2322   : > { %v3568_v34 = vpop.f32.mrb[88].mxu0 }
0x2323   : > { %v7672_v35 = vadd.f32 %v3614_v61, %v3568_v34  ;;  %v6426_v36 = vpop.f32.mrb[89].mxu0  ;;  %v5914_v34 = vcombine.low %v3283_v7, %v3283_v7 }
0x2324   : > { %v3571_v37 = vpop.f32.mrb[90].mxu0 }
0x2325   : > { %v6427_v38 = vpop.f32.mrb[91].mxu0  ;;  %v3904_v36 = vrot.slane %v5914_v34, 2 }
0x2327   : > { %v3909_v37 = vsel %vm1383_vm6, %v3904_v36, 0 }
0x2332   : > { %v3669_v39 = vpop.f32.mrb[92].mxu0 }
0x2333   : > { %v6440_v12 = vpop.f32.mrb[93].mxu0  ;;  %v3675_v15 = vsel %vm3341_vm7, %v3669_v39, -inf }
0x2334   : > { %3676 = vmax.xlane.f32.xlu1 %v3675_v15  ;;  %v3672_v19 = vpop.f32.mrb[94].mxu0 }
0x2335   : > { %v6441_v40 = vpop.f32.mrb[95].mxu0 }
0x2342   : > { %v3833_v41 = vpop.f32.mrb[96].mxu0 }
0x2343   : > { %v6462_v42 = vpop.f32.mrb[97].mxu0  ;;  %v3839_v53 = vsel %vm3341_vm7, %v3833_v41, -inf }
0x2344   : > { %v3836_v43 = vpop.f32.mrb[98].mxu0 }
0x2345   : > { %3689 = vrot.lane.b32.xlu1 %v7562_v1, %s6948_s27  ;;  %v6463_v44 = vpop.f32.mrb[99].mxu0 }
0x2349   : > { %3954 = vrot.lane.b32.xlu1 %v7564_v2, %s6953_s28 }
0x234d   : > { %3952 = vrot.lane.b32.xlu1 %v7600_v25, %s6953_s28 }
0x23c1   : > { %v3677_v45 = vpop.xlane.xlu1 %3676 }
0x23c2   : > { %v3678_v46 = vsub.f32 %v3669_v39, %v3677_v45 }
0x23c4   : > { %v3679_v47 = vmul.f32 1.442695, %v3678_v46 }
0x23c5   : > { %v3690_v48 = vpop.permute.xlu1 %3689 }
0x23c6   : > { %6852 = vpow2.f32 %v3679_v47 }
0x23c9   : > { %v3955_v49 = vpop.permute.xlu1 %3954 }
0x23ca   : > { %v3962_v50 = vsel %vm1155_vm3, %v3955_v49, 0 }
0x23cb   : > { %6479 = vmatpush3.bf16.xpose.msra.mxu0 %v3962_v50 }
0x23cc   : > { %6480 = vmatprep.subr.bf16.mxu0 %v6940_v13 }
0x23cd   : > { %v3953_v60 = vpop.permute.xlu1 %3952 }
0x23d0   : > { %v6853_v51 = vpop.eup %6852 }
0x23d1   : > { %v3681_v52 = vsel %vm3341_vm7, %v6853_v51, 0.0 }
0x23d2   : > { %3682 = vadd.xlane.f32.xlu0 %v3681_v52 }
0x23e8   : > { %3687 = vrot.lane.b32.xlu0 %v7564_v2, %s6948_s27  ;;  %s8127_s27 = smov 40  }
0x23ec   : > { %3956 = vrot.lane.b32.xlu0 %v7562_v1, %s6953_s28  ;;  %s8142_s28 = scalar_lea.vmem %s8141_s17, %s7124_s1 }
0x240b   : > { %3840 = vmax.xlane.f32.xlu0 %v3839_v53 }
0x2421   : > { %3851 = vrot.lane.b32.xlu0 %v7564_v2, %s6949_s0 }
0x2425   : > { %4118 = vrot.lane.b32.xlu0 %v7564_v2, %s6956_s12 }
0x2429   : > { %4116 = vrot.lane.b32.xlu0 %v7600_v25, %s6956_s12 }
0x245f   : > { %v3683_v54 = vpop.xlane.xlu0 %3682 }
0x2460   : > { %6854 = vrcp.f32 %v3683_v54 }
0x2463   : > { %v3688_v55 = vpop.permute.xlu0 %3687 }
0x2464   : > { %6443 = vmatpush3.bf16.msra.mxu1 %v3688_v55 }
0x2465   : > { %6444 = vmatprep.subr.bf16.mxu1 %v6940_v13 }
0x2467   : > { %v3957_v56 = vpop.permute.xlu0 %3956 }
0x2468   : > { %v3965_v57 = vsel %vm1155_vm3, %v3957_v56, 0  ;;  %6445 = vmatpush3.bf16.msra.mxu1 %v3690_v48 }
0x2469   : > { %6481 = vmatpush3.bf16.xpose.msra.mxu0 %v3965_v57  ;;  %6450 = vmatprep.subr.bf16.mxu1 %v6940_v13 }
0x246a   : > { %v6855_v58 = vpop.eup %6854  ;;  %6500 = vmatprep.subr.bf16.mxu0 %v6940_v13 }
0x246b   : > { %v3685_v59 = vmul.f32 %v6855_v58, %v6853_v51 }
0x246d   : > { %v3686_v21 = vpack.c.bf16 %v3685_v59, %v3685_v59 }
0x246f   : > { %6447 = vmatmul.mubr.msk.bf16.vlgmr.msra.gmra.mrb[88].mxu1 %vm3341_vm7, %v3686_v21 }
0x2470   : > { %6483 = vmatmul.mubr.msk.bf16.vlgmr.msra.gmra.mrb[100].mxu0 %vm1155_vm3, %v3953_v60  ;;  %6452 = vmatprep.mubr.msk.bf16.mxu1 %vm6941_vm2, %v6940_v13 }
0x2471   : > { %6504 = vmatprep.mubr.msk.bf16.mxu0 %vm6941_vm2, %v6940_v13  ;;  %6451 = vmatpush3.bf16.msra.mxu1 %v3741_v8 }
0x2472   : > { %6464 = vmatprep.subr.bf16.mxu1 %v6940_v13 }
0x2498   : > { %v3841_v61 = vpop.xlane.xlu0 %3840 }
0x2499   : > { %v3842_v62 = vsub.f32 %v3833_v41, %v3841_v61 }
0x249b   : > { %v3843_v63 = vmul.f32 1.442695, %v3842_v62 }
0x249c   : > { %v3852_v0 = vpop.permute.xlu0 %3851 }
0x249d   : > { %6856 = vpow2.f32 %v3843_v63 }
0x24a0   : > { %v4119_v3 = vpop.permute.xlu0 %4118 }
0x24a1   : > { %v4126_v4 = vsel %vm1155_vm3, %v4119_v3, 0 }
0x24a2   : > { %6501 = vmatpush3.bf16.xpose.msra.mxu0 %v4126_v4 }
0x24a3   : > { %6502 = vmatprep.subr.bf16.mxu0 %v6940_v13 }
0x24a4   : > { %v4117_v29 = vpop.permute.xlu0 %4116 }
0x24a7   : > { %v6857_v5 = vpop.eup %6856 }
0x24a8   : > { %v3845_v6 = vsel %vm3341_vm7, %v6857_v5, 0.0 }
0x24a9   : > { %3846 = vadd.xlane.f32.xlu1 %v3845_v6 }
0x24ba   : > { %3853 = vrot.lane.b32.xlu1 %v7562_v1, %s6949_s0  ;;  %s8128_s0 = smov 36  }
0x24be   : > { %4120 = vrot.lane.b32.xlu1 %v7562_v1, %s6956_s12 }
0x2536   : > { %v3847_v9 = vpop.xlane.xlu1 %3846 }
0x2537   : > { %6858 = vrcp.f32 %v3847_v9 }
0x253a   : > { %v3854_v10 = vpop.permute.xlu1 %3853 }
0x253e   : > { %v4121_v14 = vpop.permute.xlu1 %4120 }
0x253f   : > { %v4129_v16 = vsel %vm1155_vm3, %v4121_v14, 0 }
0x2540   : > { %6503 = vmatpush3.bf16.xpose.msra.mxu0 %v4129_v16 }
0x2541   : > { %6522 = vmatprep.subr.bf16.mxu0 %v6940_v13  ;;  %v6859_v23 = vpop.eup %6858 }
0x2542   : > { %v3730_v17 = vpop.f32.mrb[88].mxu1  ;;  %v3849_v31 = vmul.f32 %v6859_v23, %v6857_v5 }
0x2543   : > { %v3736_v18 = vpack.c.bf16 %v3730_v17, %v3730_v17  ;;  %v6448_v20 = vpop.f32.mrb[89].mxu1  ;;  %v4001_v22 = vpop.f32.mrb[100].mxu0 }
0x2544   : > { %v3733_v24 = vpop.f32.mrb[90].mxu1  ;;  %v6484_v26 = vpop.f32.mrb[101].mxu0  ;;  %v4007_v27 = vsel %vm3341_vm7, %v4001_v22, -inf  ;;  %v3850_v32 = vpack.c.bf16 %v3849_v31, %v3849_v31 }
0x2545   : > { %v6449_v28 = vpop.f32.mrb[91].mxu1  ;;  %6453 = vmatmul.mubr.msk.bf16.vlgmr.msra.gmra.mrb[92].mxu1 %vm1155_vm3, %v3736_v18  ;;  %4008 = vmax.xlane.f32.xlu1 %v4007_v27  ;;  %v4004_v33 = vpop.f32.mrb[102].mxu0 }
0x2546   : > { %6465 = vmatpush3.bf16.msra.mxu1 %v3852_v0  ;;  %v6485_v30 = vpop.f32.mrb[103].mxu0  ;;  %6468 = vmatprep.mubr.msk.bf16.mxu1 %vm6941_vm2, %v6940_v13 }
0x2547   : > { %6505 = vmatmul.mubr.msk.bf16.vlgmr.msra.gmra.mrb[104].mxu0 %vm1155_vm3, %v4117_v29  ;;  %6466 = vmatprep.subr.bf16.mxu1 %v6940_v13 }
0x2548   : > { %6526 = vmatprep.mubr.msk.bf16.mxu0 %vm6941_vm2, %v6940_v13 }
0x254a   : > { %6467 = vmatpush3.bf16.msra.mxu1 %v3854_v10  ;;  %v3284_v10 = vld [vmem:[%s8123_s5 + $0x8] sm:$0xf] }
0x254b   : > { %6472 = vmatprep.subr.bf16.mxu1 %v6940_v13  ;;  %v4073_v14 = vsel %vm1383_vm6, %v3284_v10, 0 }
0x254d   : > { %6469 = vmatmul.mubr.msk.bf16.vlgmr.msra.gmra.mrb[96].mxu1 %vm3341_vm7, %v3850_v32 }
0x254e   : > { %6474 = vmatprep.mubr.msk.bf16.mxu1 %vm6941_vm2, %v6940_v13  ;;  %6473 = vmatpush3.bf16.msra.mxu1 %v3909_v37 }
0x254f   : > { %6486 = vmatprep.subr.bf16.mxu1 %v6940_v13 }
0x2556   : > { %4021 = vrot.lane.b32.xlu1 %v7562_v1, %s6954_s21 }
0x255a   : > { %4286 = vrot.lane.b32.xlu1 %v7564_v2, %s6959_s8 }
0x255e   : > { %4284 = vrot.lane.b32.xlu1 %v7600_v25, %s6959_s8 }
0x25d2   : > { %v4009_v38 = vpop.xlane.xlu1 %4008 }
0x25d3   : > { %v4010_v39 = vsub.f32 %v4001_v22, %v4009_v38 }
0x25d5   : > { %v4011_v12 = vmul.f32 1.442695, %v4010_v39 }
0x25d6   : > { %v4022_v15 = vpop.permute.xlu1 %4021 }
0x25d7   : > { %6860 = vpow2.f32 %v4011_v12 }
0x25da   : > { %v4287_v19 = vpop.permute.xlu1 %4286 }
0x25db   : > { %v4294_v40 = vsel %vm1155_vm3, %v4287_v19, 0 }
0x25dc   : > { %6523 = vmatpush3.bf16.xpose.msra.mxu0 %v4294_v40  ;;  %v5921_v40 = vcombine.low %v3284_v10, %v3284_v10 }
0x25dd   : > { %6524 = vmatprep.subr.bf16.mxu0 %v6940_v13 }
0x25de   : > { %v4285_v63 = vpop.permute.xlu1 %4284 }
0x25e1   : > { %v6861_v41 = vpop.eup %6860 }
0x25e2   : > { %v4013_v42 = vsel %vm3341_vm7, %v6861_v41, 0.0 }
0x25e3   : > { %4014 = vadd.xlane.f32.xlu0 %v4013_v42 }
0x25f9   : > { %4019 = vrot.lane.b32.xlu0 %v7564_v2, %s6954_s21  ;;  %s8129_s21 = scalar_lea.vmem %s8032_s13, %s7124_s1 }
0x25fd   : > { %4288 = vrot.lane.b32.xlu0 %v7562_v1, %s6959_s8 }
0x2618   : > { %v3777_v43 = vpop.f32.mrb[92].mxu1 }
0x2619   : > { %v3783_v44 = vadd.f32 %v3777_v43, %v7672_v35  ;;  %v6454_v45 = vpop.f32.mrb[93].mxu1 }
0x261a   : > { %v3780_v46 = vpop.f32.mrb[94].mxu1  ;;  %v4165_v47 = vpop.f32.mrb[104].mxu0 }
0x261b   : > { %v6455_v48 = vpop.f32.mrb[95].mxu1  ;;  %v6506_v49 = vpop.f32.mrb[105].mxu0  ;;  %v4171_v50 = vsel %vm3341_vm7, %v4165_v47, -inf }
0x261c   : > { %4172 = vmax.xlane.f32.xlu0 %v4171_v50  ;;  %v4168_v51 = vpop.f32.mrb[106].mxu0 }
0x261d   : > { %v6507_v52 = vpop.f32.mrb[107].mxu0 }
0x2620   : > { %v3894_v53 = vpop.f32.mrb[96].mxu1 }
0x2621   : > { %v3900_v54 = vpack.c.bf16 %v3894_v53, %v3894_v53  ;;  %v6470_v55 = vpop.f32.mrb[97].mxu1 }
0x2622   : > { %v3897_v56 = vpop.f32.mrb[98].mxu1 }
0x2623   : > { %v6471_v57 = vpop.f32.mrb[99].mxu1  ;;  %6475 = vmatmul.mubr.msk.bf16.vlgmr.msra.gmra.mrb[100].mxu1 %vm1155_vm3, %v3900_v54 }
0x2624   : > { %6490 = vmatprep.mubr.msk.bf16.mxu1 %vm6941_vm2, %v6940_v13 }
0x2632   : > { %4183 = vrot.lane.b32.xlu0 %v7564_v2, %s6955_s20 }
0x2636   : > { %4450 = vrot.lane.b32.xlu0 %v7564_v2, %s6962_s30 }
0x263a   : > { %4448 = vrot.lane.b32.xlu0 %v7600_v25, %s6962_s30 }
0x2670   : > { %v4015_v35 = vpop.xlane.xlu0 %4014 }
0x2671   : > { %6862 = vrcp.f32 %v4015_v35 }
0x2674   : > { %v4020_v58 = vpop.permute.xlu0 %4019 }
0x2675   : > { %6487 = vmatpush3.bf16.msra.mxu1 %v4020_v58 }
0x2676   : > { %6488 = vmatprep.subr.bf16.mxu1 %v6940_v13 }
0x2678   : > { %v4289_v59 = vpop.permute.xlu0 %4288 }
0x2679   : > { %v4297_v21 = vsel %vm1155_vm3, %v4289_v59, 0  ;;  %6489 = vmatpush3.bf16.msra.mxu1 %v4022_v15 }
0x267a   : > { %6525 = vmatpush3.bf16.xpose.msra.mxu0 %v4297_v21  ;;  %6494 = vmatprep.subr.bf16.mxu1 %v6940_v13 }
0x267b   : > { %v6863_v60 = vpop.eup %6862  ;;  %6544 = vmatprep.subr.bf16.mxu0 %v6940_v13 }
0x267c   : > { %v4017_v61 = vmul.f32 %v6863_v60, %v6861_v41  ;;  %v4236_v41 = vrot.slane %v5921_v40, 2 }
0x267e   : > { %v4018_v62 = vpack.c.bf16 %v4017_v61, %v4017_v61  ;;  %v4241_v42 = vsel %vm1383_vm6, %v4236_v41, 0 }
0x2680   : > { %6491 = vmatmul.mubr.msk.bf16.vlgmr.msra.gmra.mrb[104].mxu1 %vm3341_vm7, %v4018_v62 }
0x2681   : > { %6527 = vmatmul.mubr.msk.bf16.vlgmr.msra.gmra.mrb[108].mxu0 %vm1155_vm3, %v4285_v63  ;;  %6496 = vmatprep.mubr.msk.bf16.mxu1 %vm6941_vm2, %v6940_v13 }
0x2682   : > { %6548 = vmatprep.mubr.msk.bf16.mxu0 %vm6941_vm2, %v6940_v13  ;;  %6495 = vmatpush3.bf16.msra.mxu1 %v4073_v14 }
0x2683   : > { %6508 = vmatprep.subr.bf16.mxu1 %v6940_v13 }
0x26a9   : > { %v4173_v0 = vpop.xlane.xlu0 %4172 }
0x26aa   : > { %v4174_v3 = vsub.f32 %v4165_v47, %v4173_v0 }
0x26ac   : > { %v4175_v4 = vmul.f32 1.442695, %v4174_v3 }
0x26ad   : > { %v4184_v5 = vpop.permute.xlu0 %4183 }
0x26ae   : > { %6864 = vpow2.f32 %v4175_v4 }
0x26b1   : > { %v4451_v6 = vpop.permute.xlu0 %4450 }
0x26b2   : > { %v4458_v7 = vsel %vm1155_vm3, %v4451_v6, 0 }
0x26b3   : > { %6545 = vmatpush3.bf16.xpose.msra.mxu0 %v4458_v7 }
0x26b4   : > { %6546 = vmatprep.subr.bf16.mxu0 %v6940_v13 }
0x26b5   : > { %v4449_v39 = vpop.permute.xlu0 %4448 }
0x26b8   : > { %v6865_v8 = vpop.eup %6864 }
0x26b9   : > { %v4177_v9 = vsel %vm3341_vm7, %v6865_v8, 0.0 }
0x26ba   : > { %4178 = vadd.xlane.f32.xlu1 %v4177_v9 }
0x26cb   : > { %4185 = vrot.lane.b32.xlu1 %v7562_v1, %s6955_s20  ;;  %s8130_s20 = sld [smem:[#allocation13_spill]] }
0x26cf   : > { %4452 = vrot.lane.b32.xlu1 %v7562_v1, %s6962_s30 }
0x26f6   : > { %v3945_v16 = vpop.f32.mrb[100].mxu1 }
0x26f7   : > { %v3951_v17 = vadd.f32 %v3945_v16, %v3783_v44  ;;  %v6476_v18 = vpop.f32.mrb[101].mxu1 }
0x26f8   : > { %v3948_v20 = vpop.f32.mrb[102].mxu1 }
0x26f9   : > { %v6477_v22 = vpop.f32.mrb[103].mxu1 }
0x2747   : > { %v4179_v23 = vpop.xlane.xlu1 %4178 }
0x2748   : > { %6866 = vrcp.f32 %v4179_v23 }
0x274b   : > { %v4186_v24 = vpop.permute.xlu1 %4185 }
0x274f   : > { %v4453_v26 = vpop.permute.xlu1 %4452 }
0x2750   : > { %v4461_v27 = vsel %vm1155_vm3, %v4453_v26, 0 }
0x2751   : > { %6547 = vmatpush3.bf16.xpose.msra.mxu0 %v4461_v27 }
0x2752   : > { %6566 = vmatprep.subr.bf16.mxu0 %v6940_v13  ;;  %v6867_v31 = vpop.eup %6866 }
0x2753   : > { %v4062_v28 = vpop.f32.mrb[104].mxu1  ;;  %v4181_v15 = vmul.f32 %v6867_v31, %v6865_v8 }
0x2754   : > { %v4068_v33 = vpack.c.bf16 %v4062_v28, %v4062_v28  ;;  %v6492_v29 = vpop.f32.mrb[105].mxu1  ;;  %v4333_v30 = vpop.f32.mrb[108].mxu0 }
0x2755   : > { %v4065_v32 = vpop.f32.mrb[106].mxu1  ;;  %v6528_v34 = vpop.f32.mrb[109].mxu0  ;;  %v4339_v36 = vsel %vm3341_vm7, %v4333_v30, -inf  ;;  %v4182_v19 = vpack.c.bf16 %v4181_v15, %v4181_v15 }
0x2756   : > { %v6493_v37 = vpop.f32.mrb[107].mxu1  ;;  %6497 = vmatmul.mubr.msk.bf16.vlgmr.msra.gmra.mrb[108].mxu1 %vm1155_vm3, %v4068_v33  ;;  %4340 = vmax.xlane.f32.xlu1 %v4339_v36  ;;  %v4336_v38 = vpop.f32.mrb[110].mxu0 }
0x2757   : > { %6509 = vmatpush3.bf16.msra.mxu1 %v4184_v5  ;;  %v6529_v12 = vpop.f32.mrb[111].mxu0  ;;  %6512 = vmatprep.mubr.msk.bf16.mxu1 %vm6941_vm2, %v6940_v13 }
0x2758   : > { %6549 = vmatmul.mubr.msk.bf16.vlgmr.msra.gmra.mrb[112].mxu0 %vm1155_vm3, %v4449_v39  ;;  %6510 = vmatprep.subr.bf16.mxu1 %v6940_v13 }
0x2759   : > { %6570 = vmatprep.mubr.msk.bf16.mxu0 %vm6941_vm2, %v6940_v13 }
0x275b   : > { %6511 = vmatpush3.bf16.msra.mxu1 %v4186_v24  ;;  %v3285_v24 = vld [vmem:[%s8123_s5 + $0xc] sm:$0xf] }
0x275c   : > { %6516 = vmatprep.subr.bf16.mxu1 %v6940_v13  ;;  %v4405_v26 = vsel %vm1383_vm6, %v3285_v24, 0 }
0x275e   : > { %6513 = vmatmul.mubr.msk.bf16.vlgmr.msra.gmra.mrb[112].mxu1 %vm3341_vm7, %v4182_v19 }
0x275f   : > { %6518 = vmatprep.mubr.msk.bf16.mxu1 %vm6941_vm2, %v6940_v13  ;;  %6517 = vmatpush3.bf16.msra.mxu1 %v4241_v42 }
0x2760   : > { %6530 = vmatprep.subr.bf16.mxu1 %v6940_v13 }
0x2767   : > { %4353 = vrot.lane.b32.xlu1 %v7562_v1, %s6960_s3 }
0x276b   : > { %4618 = vrot.lane.b32.xlu1 %v7564_v2, %s6965_s29 }
0x276f   : > { %4616 = vrot.lane.b32.xlu1 %v7600_v25, %s6965_s29 }
0x27e3   : > { %v4341_v43 = vpop.xlane.xlu1 %4340 }
0x27e4   : > { %v4342_v44 = vsub.f32 %v4333_v30, %v4341_v43 }
0x27e6   : > { %v4343_v45 = vmul.f32 1.442695, %v4342_v44 }
0x27e7   : > { %v4354_v46 = vpop.permute.xlu1 %4353 }
0x27e8   : > { %6868 = vpow2.f32 %v4343_v45 }
0x27eb   : > { %v4619_v47 = vpop.permute.xlu1 %4618 }
0x27ec   : > { %v4626_v48 = vsel %vm1155_vm3, %v4619_v47, 0 }
0x27ed   : > { %6567 = vmatpush3.bf16.xpose.msra.mxu0 %v4626_v48  ;;  %v5928_v48 = vcombine.low %v3285_v24, %v3285_v24 }
0x27ee   : > { %6568 = vmatprep.subr.bf16.mxu0 %v6940_v13 }
0x27ef   : > { %v4617_v9 = vpop.permute.xlu1 %4616 }
0x27f2   : > { %v6869_v49 = vpop.eup %6868 }
0x27f3   : > { %v4345_v50 = vsel %vm3341_vm7, %v6869_v49, 0.0 }
0x27f4   : > { %4346 = vadd.xlane.f32.xlu0 %v4345_v50 }
0x280a   : > { %4351 = vrot.lane.b32.xlu0 %v7564_v2, %s6960_s3  ;;  %s8131_s3 = sld [smem:[#allocation25_spill]] }
0x280e   : > { %4620 = vrot.lane.b32.xlu0 %v7562_v1, %s6965_s29 }
0x2829   : > { %v4109_v51 = vpop.f32.mrb[108].mxu1 }
0x282a   : > { %v4115_v52 = vadd.f32 %v4109_v51, %v3951_v17  ;;  %v6498_v53 = vpop.f32.mrb[109].mxu1 }
0x282b   : > { %v4112_v54 = vpop.f32.mrb[110].mxu1  ;;  %v4497_v55 = vpop.f32.mrb[112].mxu0 }
0x282c   : > { %v6499_v56 = vpop.f32.mrb[111].mxu1  ;;  %v6550_v57 = vpop.f32.mrb[113].mxu0  ;;  %v4503_v35 = vsel %vm3341_vm7, %v4497_v55, -inf }
0x282d   : > { %4504 = vmax.xlane.f32.xlu0 %v4503_v35  ;;  %v4500_v58 = vpop.f32.mrb[114].mxu0 }
0x282e   : > { %v6551_v59 = vpop.f32.mrb[115].mxu0 }
0x2831   : > { %v4226_v21 = vpop.f32.mrb[112].mxu1 }
0x2832   : > { %v4232_v60 = vpack.c.bf16 %v4226_v21, %v4226_v21  ;;  %v6514_v61 = vpop.f32.mrb[113].mxu1 }
0x2833   : > { %v4229_v62 = vpop.f32.mrb[114].mxu1 }
0x2834   : > { %v6515_v63 = vpop.f32.mrb[115].mxu1  ;;  %6519 = vmatmul.mubr.msk.bf16.vlgmr.msra.gmra.mrb[116].mxu1 %vm1155_vm3, %v4232_v60 }
0x2835   : > { %6534 = vmatprep.mubr.msk.bf16.mxu1 %vm6941_vm2, %v6940_v13 }
0x2843   : > { %4515 = vrot.lane.b32.xlu0 %v7564_v2, %s6961_s26 }
0x2847   : > { %4782 = vrot.lane.b32.xlu0 %v7564_v2, %s6967_s9 }
0x284b   : > { %4780 = vrot.lane.b32.xlu0 %v7600_v25, %s6967_s9 }
0x2881   : > { %v4347_v0 = vpop.xlane.xlu0 %4346 }
0x2882   : > { %6870 = vrcp.f32 %v4347_v0 }
0x2885   : > { %v4352_v3 = vpop.permute.xlu0 %4351 }
0x2886   : > { %6531 = vmatpush3.bf16.msra.mxu1 %v4352_v3 }
0x2887   : > { %6532 = vmatprep.subr.bf16.mxu1 %v6940_v13 }
0x2889   : > { %v4621_v4 = vpop.permute.xlu0 %4620 }
0x288a   : > { %v4629_v5 = vsel %vm1155_vm3, %v4621_v4, 0  ;;  %6533 = vmatpush3.bf16.msra.mxu1 %v4354_v46 }
0x288b   : > { %6569 = vmatpush3.bf16.xpose.msra.mxu0 %v4629_v5  ;;  %6538 = vmatprep.subr.bf16.mxu1 %v6940_v13 }
0x288c   : > { %v6871_v6 = vpop.eup %6870  ;;  %6588 = vmatprep.subr.bf16.mxu0 %v6940_v13 }
0x288d   : > { %v4349_v7 = vmul.f32 %v6871_v6, %v6869_v49  ;;  %v4568_v49 = vrot.slane %v5928_v48, 2 }
0x288f   : > { %v4350_v8 = vpack.c.bf16 %v4349_v7, %v4349_v7  ;;  %v4573_v50 = vsel %vm1383_vm6, %v4568_v49, 0 }
0x2891   : > { %6535 = vmatmul.mubr.msk.bf16.vlgmr.msra.gmra.mrb[120].mxu1 %vm3341_vm7, %v4350_v8 }
0x2892   : > { %6571 = vmatmul.mubr.msk.bf16.vlgmr.msra.gmra.mrb[116].mxu0 %vm1155_vm3, %v4617_v9  ;;  %6540 = vmatprep.mubr.msk.bf16.mxu1 %vm6941_vm2, %v6940_v13 }
0x2893   : > { %6592 = vmatprep.mubr.msk.bf16.mxu0 %vm6941_vm2, %v6940_v13  ;;  %6539 = vmatpush3.bf16.msra.mxu1 %v4405_v26 }
0x2894   : > { %6552 = vmatprep.subr.bf16.mxu1 %v6940_v13 }
0x28ba   : > { %v4505_v10 = vpop.xlane.xlu0 %4504 }
0x28bb   : > { %v4506_v14 = vsub.f32 %v4497_v55, %v4505_v10 }
0x28bd   : > { %v4507_v16 = vmul.f32 1.442695, %v4506_v14 }
0x28be   : > { %v4516_v17 = vpop.permute.xlu0 %4515 }
0x28bf   : > { %6872 = vpow2.f32 %v4507_v16 }
0x28c2   : > { %v4783_v18 = vpop.permute.xlu0 %4782 }
0x28c3   : > { %v4790_v20 = vsel %vm1155_vm3, %v4783_v18, 0 }
0x28c4   : > { %6589 = vmatpush3.bf16.xpose.msra.mxu0 %v4790_v20 }
0x28c5   : > { %6590 = vmatprep.subr.bf16.mxu0 %v6940_v13 }
0x28c6   : > { %v4781_v44 = vpop.permute.xlu0 %4780 }
0x28c9   : > { %v6873_v22 = vpop.eup %6872 }
0x28ca   : > { %v4509_v23 = vsel %vm3341_vm7, %v6873_v22, 0.0 }
0x28cb   : > { %4510 = vadd.xlane.f32.xlu1 %v4509_v23 }
0x28dc   : > { %4517 = vrot.lane.b32.xlu1 %v7562_v1, %s6961_s26  ;;  %s8132_s26 = scalar_lea.vmem %s8131_s3, %s7124_s1 }
0x28e0   : > { %4784 = vrot.lane.b32.xlu1 %v7562_v1, %s6967_s9 }
0x2907   : > { %v4277_v27 = vpop.f32.mrb[116].mxu1 }
0x2908   : > { %v4283_v28 = vadd.f32 %v4277_v27, %v4115_v52  ;;  %v6520_v33 = vpop.f32.mrb[117].mxu1 }
0x2909   : > { %v4280_v29 = vpop.f32.mrb[118].mxu1 }
0x290a   : > { %v6521_v30 = vpop.f32.mrb[119].mxu1 }
0x2958   : > { %v4511_v31 = vpop.xlane.xlu1 %4510 }
0x2959   : > { %6874 = vrcp.f32 %v4511_v31  ;;  %v3286_v31 = vld [vmem:[%s8123_s5 + $0x10] sm:$0xf] }
0x295c   : > { %v4518_v32 = vpop.permute.xlu1 %4517 }
0x2960   : > { %v4785_v34 = vpop.permute.xlu1 %4784 }
0x2961   : > { %v4793_v36 = vsel %vm1155_vm3, %v4785_v34, 0 }
0x2962   : > { %6591 = vmatpush3.bf16.xpose.msra.mxu0 %v4793_v36 }
0x2963   : > { %6610 = vmatprep.subr.bf16.mxu0 %v6940_v13  ;;  %v6875_v15 = vpop.eup %6874 }
0x2964   : > { %v4394_v37 = vpop.f32.mrb[120].mxu1  ;;  %v4513_v46 = vmul.f32 %v6875_v15, %v6873_v22 }
0x2965   : > { %v4400_v38 = vpack.c.bf16 %v4394_v37, %v4394_v37  ;;  %v6536_v39 = vpop.f32.mrb[121].mxu1  ;;  %v4665_v12 = vpop.f32.mrb[116].mxu0 }
0x2966   : > { %v4397_v19 = vpop.f32.mrb[122].mxu1  ;;  %v6572_v40 = vpop.f32.mrb[117].mxu0  ;;  %v4671_v41 = vsel %vm3341_vm7, %v4665_v12, -inf  ;;  %v4514_v47 = vpack.c.bf16 %v4513_v46, %v4513_v46 }
0x2967   : > { %v6537_v42 = vpop.f32.mrb[123].mxu1  ;;  %6541 = vmatmul.mubr.msk.bf16.vlgmr.msra.gmra.mrb[124].mxu1 %vm1155_vm3, %v4400_v38  ;;  %4672 = vmax.xlane.f32.xlu1 %v4671_v41  ;;  %v4668_v43 = vpop.f32.mrb[118].mxu0 }
0x2968   : > { %6553 = vmatpush3.bf16.msra.mxu1 %v4516_v17  ;;  %v6573_v45 = vpop.f32.mrb[119].mxu0  ;;  %6556 = vmatprep.mubr.msk.bf16.mxu1 %vm6941_vm2, %v6940_v13 }
0x2969   : > { %6593 = vmatmul.mubr.msk.bf16.vlgmr.msra.gmra.mrb[120].mxu0 %vm1155_vm3, %v4781_v44  ;;  %6554 = vmatprep.subr.bf16.mxu1 %v6940_v13 }
0x296a   : > { %6614 = vmatprep.mubr.msk.bf16.mxu0 %vm6941_vm2, %v6940_v13 }
0x296c   : > { %6555 = vmatpush3.bf16.msra.mxu1 %v4518_v32  ;;  %v4737_v32 = vsel %vm1383_vm6, %v3286_v31, 0 }
0x296d   : > { %6560 = vmatprep.subr.bf16.mxu1 %v6940_v13 }
0x296f   : > { %6557 = vmatmul.mubr.msk.bf16.vlgmr.msra.gmra.mrb[128].mxu1 %vm3341_vm7, %v4514_v47 }
0x2970   : > { %6562 = vmatprep.mubr.msk.bf16.mxu1 %vm6941_vm2, %v6940_v13  ;;  %6561 = vmatpush3.bf16.msra.mxu1 %v4573_v50 }
0x2971   : > { %6574 = vmatprep.subr.bf16.mxu1 %v6940_v13 }
0x2978   : > { %4685 = vrot.lane.b32.xlu1 %v7562_v1, %s6966_s10 }
0x297c   : > { %4950 = vrot.lane.b32.xlu1 %v7564_v2, %s8124_s2 }
0x2980   : > { %4948 = vrot.lane.b32.xlu1 %v7600_v25, %s8124_s2 }
0x29f4   : > { %v4673_v51 = vpop.xlane.xlu1 %4672 }
0x29f5   : > { %v4674_v52 = vsub.f32 %v4665_v12, %v4673_v51 }
0x29f7   : > { %v4675_v53 = vmul.f32 1.442695, %v4674_v52 }
0x29f8   : > { %v4686_v54 = vpop.permute.xlu1 %4685 }
0x29f9   : > { %6876 = vpow2.f32 %v4675_v53 }
0x29fc   : > { %v4951_v55 = vpop.permute.xlu1 %4950 }
0x29fd   : > { %v4958_v56 = vsel %vm1155_vm3, %v4951_v55, 0  ;;  %v5935_v55 = vcombine.low %v3286_v31, %v3286_v31 }
0x29fe   : > { %6611 = vmatpush3.bf16.xpose.msra.mxu0 %v4958_v56 }
0x29ff   : > { %6612 = vmatprep.subr.bf16.mxu0 %v6940_v13  ;;  %v4900_v56 = vrot.slane %v5935_v55, 2 }
0x2a00   : > { %v4949_v23 = vpop.permute.xlu1 %4948 }
0x2a03   : > { %v6877_v57 = vpop.eup %6876 }
0x2a04   : > { %v4677_v35 = vsel %vm3341_vm7, %v6877_v57, 0.0 }
0x2a05   : > { %4678 = vadd.xlane.f32.xlu0 %v4677_v35 }
0x2a1b   : > { %4683 = vrot.lane.b32.xlu0 %v7564_v2, %s6966_s10  ;;  %s8133_s10 = sld [smem:[#allocation26_spill]] }
0x2a1f   : > { %4952 = vrot.lane.b32.xlu0 %v7562_v1, %s8124_s2 }
0x2a21   : > { %s8134_s9 = scalar_lea.vmem %s8133_s10, %s7124_s1 }
0x2a3a   : > { %v4441_v58 = vpop.f32.mrb[124].mxu1 }
0x2a3b   : > { %v4447_v59 = vadd.f32 %v4441_v58, %v4283_v28  ;;  %v6542_v21 = vpop.f32.mrb[125].mxu1 }
0x2a3c   : > { %v4444_v60 = vpop.f32.mrb[126].mxu1  ;;  %v4829_v61 = vpop.f32.mrb[120].mxu0 }
0x2a3d   : > { %v6543_v62 = vpop.f32.mrb[127].mxu1  ;;  %v6594_v63 = vpop.f32.mrb[121].mxu0  ;;  %v4835_v0 = vsel %vm3341_vm7, %v4829_v61, -inf }
0x2a3e   : > { %4836 = vmax.xlane.f32.xlu0 %v4835_v0  ;;  %v4832_v3 = vpop.f32.mrb[122].mxu0 }
0x2a3f   : > { %v6595_v4 = vpop.f32.mrb[123].mxu0 }
0x2a42   : > { %v4558_v5 = vpop.f32.mrb[128].mxu1 }
0x2a43   : > { %v4564_v6 = vpack.c.bf16 %v4558_v5, %v4558_v5  ;;  %v6558_v7 = vpop.f32.mrb[129].mxu1 }
0x2a44   : > { %v4561_v8 = vpop.f32.mrb[130].mxu1 }
0x2a45   : > { %v6559_v9 = vpop.f32.mrb[131].mxu1  ;;  %6563 = vmatmul.mubr.msk.bf16.vlgmr.msra.gmra.mrb[132].mxu1 %vm1155_vm3, %v4564_v6 }
0x2a46   : > { %6578 = vmatprep.mubr.msk.bf16.mxu1 %vm6941_vm2, %v6940_v13 }
0x2a54   : > { %4847 = vrot.lane.b32.xlu0 %v7564_v2, %s8125_s18 }
0x2a58   : > { %5114 = vrot.lane.b32.xlu0 %v7564_v2, %s8126_s25 }
0x2a5c   : > { %5112 = vrot.lane.b32.xlu0 %v7600_v25, %s8126_s25 }
0x2a92   : > { %v4679_v10 = vpop.xlane.xlu0 %4678 }
0x2a93   : > { %6878 = vrcp.f32 %v4679_v10 }
0x2a96   : > { %v4684_v14 = vpop.permute.xlu0 %4683 }
0x2a97   : > { %6575 = vmatpush3.bf16.msra.mxu1 %v4684_v14 }
0x2a98   : > { %6576 = vmatprep.subr.bf16.mxu1 %v6940_v13 }
0x2a9a   : > { %v4953_v16 = vpop.permute.xlu0 %4952 }
0x2a9b   : > { %v4961_v17 = vsel %vm1155_vm3, %v4953_v16, 0  ;;  %6577 = vmatpush3.bf16.msra.mxu1 %v4686_v54 }
0x2a9c   : > { %6613 = vmatpush3.bf16.xpose.msra.mxu0 %v4961_v17  ;;  %6582 = vmatprep.subr.bf16.mxu1 %v6940_v13 }
0x2a9d   : > { %v6879_v18 = vpop.eup %6878  ;;  %6632 = vmatprep.subr.bf16.mxu0 %v6940_v13 }
0x2a9e   : > { %v4681_v20 = vmul.f32 %v6879_v18, %v6877_v57  ;;  %v4905_v57 = vsel %vm1383_vm6, %v4900_v56, 0 }
0x2aa0   : > { %v4682_v22 = vpack.c.bf16 %v4681_v20, %v4681_v20 }
0x2aa2   : > { %6579 = vmatmul.mubr.msk.bf16.vlgmr.msra.gmra.mrb[136].mxu1 %vm3341_vm7, %v4682_v22 }
0x2aa3   : > { %6615 = vmatmul.mubr.msk.bf16.vlgmr.msra.gmra.mrb[124].mxu0 %vm1155_vm3, %v4949_v23  ;;  %6584 = vmatprep.mubr.msk.bf16.mxu1 %vm6941_vm2, %v6940_v13 }
0x2aa4   : > { %6636 = vmatprep.mubr.msk.bf16.mxu0 %vm6941_vm2, %v6940_v13  ;;  %6583 = vmatpush3.bf16.msra.mxu1 %v4737_v32 }
0x2aa5   : > { %6596 = vmatprep.subr.bf16.mxu1 %v6940_v13 }
0x2acb   : > { %v4837_v25 = vpop.xlane.xlu0 %4836 }
0x2acc   : > { %v4838_v24 = vsub.f32 %v4829_v61, %v4837_v25 }
0x2ace   : > { %v4839_v26 = vmul.f32 1.442695, %v4838_v24 }
0x2acf   : > { %v4848_v27 = vpop.permute.xlu0 %4847 }
0x2ad0   : > { %6880 = vpow2.f32 %v4839_v26 }
0x2ad3   : > { %v5115_v28 = vpop.permute.xlu0 %5114 }
0x2ad4   : > { %v5122_v33 = vsel %vm1155_vm3, %v5115_v28, 0 }
0x2ad5   : > { %6633 = vmatpush3.bf16.xpose.msra.mxu0 %v5122_v33 }
0x2ad6   : > { %6634 = vmatprep.subr.bf16.mxu0 %v6940_v13 }
0x2ad7   : > { %v5113_v51 = vpop.permute.xlu0 %5112 }
0x2ada   : > { %v6881_v29 = vpop.eup %6880 }
0x2adb   : > { %v4841_v30 = vsel %vm3341_vm7, %v6881_v29, 0.0 }
0x2adc   : > { %4842 = vadd.xlane.f32.xlu1 %v4841_v30 }
0x2aed   : > { %4849 = vrot.lane.b32.xlu1 %v7562_v1, %s8125_s18  ;;  %s8139_s18 = sld [smem:[#allocation31_spill]] }
0x2af1   : > { %5116 = vrot.lane.b32.xlu1 %v7562_v1, %s8126_s25 }
0x2af3   : > { %s8140_s25 = scalar_lea.vmem %s8139_s18, %s7124_s1 }
0x2b18   : > { %v4609_v34 = vpop.f32.mrb[132].mxu1 }
0x2b19   : > { %v4615_v36 = vadd.f32 %v4609_v34, %v4447_v59  ;;  %v6564_v37 = vpop.f32.mrb[133].mxu1 }
0x2b1a   : > { %v4612_v38 = vpop.f32.mrb[134].mxu1 }
0x2b1b   : > { %v6565_v39 = vpop.f32.mrb[135].mxu1 }
0x2b69   : > { %v4843_v12 = vpop.xlane.xlu1 %4842 }
0x2b6a   : > { %6882 = vrcp.f32 %v4843_v12 }
0x2b6d   : > { %v4850_v15 = vpop.permute.xlu1 %4849 }
0x2b71   : > { %v5117_v19 = vpop.permute.xlu1 %5116 }
0x2b72   : > { %v5125_v40 = vsel %vm1155_vm3, %v5117_v19, 0 }
0x2b73   : > { %6635 = vmatpush3.bf16.xpose.msra.mxu0 %v5125_v40 }
0x2b74   : > { %6654 = vmatprep.subr.bf16.mxu0 %v6940_v13  ;;  %v6883_v45 = vpop.eup %6882 }
0x2b75   : > { %v4726_v41 = vpop.f32.mrb[136].mxu1  ;;  %v4845_v53 = vmul.f32 %v6883_v45, %v6881_v29  ;;  %v3287_v29 = vld [vmem:[%s8123_s5 + $0x14] sm:$0xf] }
0x2b76   : > { %v4732_v42 = vpack.c.bf16 %v4726_v41, %v4726_v41  ;;  %v6580_v43 = vpop.f32.mrb[137].mxu1  ;;  %v4997_v44 = vpop.f32.mrb[124].mxu0  ;;  %v5069_v30 = vsel %vm1383_vm6, %v3287_v29, 0  ;;  %v5942_v45 = vcombine.low %v3287_v29, %v3287_v29  ;;  %v6793_v29 = vld [vmem:[%s7213_s4 + $0x28] sm:$0xff]  }
0x2b77   : > { %v4729_v46 = vpop.f32.mrb[138].mxu1  ;;  %v6616_v47 = vpop.f32.mrb[125].mxu0  ;;  %v5003_v48 = vsel %vm3341_vm7, %v4997_v44, -inf  ;;  %v4846_v54 = vpack.c.bf16 %v4845_v53, %v4845_v53 }
0x2b78   : > { %v6581_v49 = vpop.f32.mrb[139].mxu1  ;;  %6585 = vmatmul.mubr.msk.bf16.vlgmr.msra.gmra.mrb[140].mxu1 %vm1155_vm3, %v4732_v42  ;;  %5004 = vmax.xlane.f32.xlu1 %v5003_v48  ;;  %v5000_v50 = vpop.f32.mrb[126].mxu0  ;;  %v5232_v46 = vrot.slane %v5942_v45, 2 }
0x2b79   : > { %6597 = vmatpush3.bf16.msra.mxu1 %v4848_v27  ;;  %v6617_v52 = vpop.f32.mrb[127].mxu0  ;;  %6600 = vmatprep.mubr.msk.bf16.mxu1 %vm6941_vm2, %v6940_v13 }
0x2b7a   : > { %6637 = vmatmul.mubr.msk.bf16.vlgmr.msra.gmra.mrb[128].mxu0 %vm1155_vm3, %v5113_v51  ;;  %6598 = vmatprep.subr.bf16.mxu1 %v6940_v13  ;;  %v5237_v47 = vsel %vm1383_vm6, %v5232_v46, 0 }
0x2b7b   : > { %6660 = vmatprep.mubr.msk.bf16.mxu0 %vm6941_vm2, %v6940_v13 }
0x2b7d   : > { %6599 = vmatpush3.bf16.msra.mxu1 %v4850_v15 }
0x2b7e   : > { %6604 = vmatprep.subr.bf16.mxu1 %v6940_v13 }
0x2b80   : > { %6601 = vmatmul.mubr.msk.bf16.vlgmr.msra.gmra.mrb[144].mxu1 %vm3341_vm7, %v4846_v54 }
0x2b81   : > { %6606 = vmatprep.mubr.msk.bf16.mxu1 %vm6941_vm2, %v6940_v13  ;;  %6605 = vmatpush3.bf16.msra.mxu1 %v4905_v57 }
0x2b82   : > { %6618 = vmatprep.subr.bf16.mxu1 %v6940_v13 }
0x2b89   : > { %5017 = vrot.lane.b32.xlu1 %v7562_v1, %s8127_s27 }
0x2c05   : > { %v5005_v35 = vpop.xlane.xlu1 %5004 }
0x2c06   : > { %v5006_v58 = vsub.f32 %v4997_v44, %v5005_v35  ;;  %v5944_v35 = vld [vmem:[%s8129_s21] ss:$0 sm:$0xff]  ;;  %s8143_s21 = sld [smem:[#allocation3_spill]] }
0x2c08   : > { %v5007_v59 = vmul.f32 1.442695, %v5006_v58 }
0x2c09   : > { %v5018_v22 = vpop.permute.xlu1 %5017 }
0x2c0a   : > { %6884 = vpow2.f32 %v5007_v59 }
0x2c0c   : > { %p5962_p8 = scmp.ne.s32.totalorder %s8143_s21, 1 }
0x2c0d   : > { %vm5537_vm9 = vcmask (!%p5962_p8), 388096  }
0x2c14   : > { %v6885_v21 = vpop.eup %6884 }
0x2c15   : > { %v5009_v60 = vsel %vm3341_vm7, %v6885_v21, 0.0 }
0x2c16   : > { %5010 = vadd.xlane.f32.xlu0 %v5009_v60 }
0x2c2c   : > { %5015 = vrot.lane.b32.xlu0 %v7564_v2, %s8127_s27 }
0x2c4b   : > { %v4773_v61 = vpop.f32.mrb[140].mxu1 }
0x2c4c   : > { %v4779_v62 = vadd.f32 %v4773_v61, %v4615_v36  ;;  %v6586_v63 = vpop.f32.mrb[141].mxu1 }
0x2c4d   : > { %v4776_v0 = vpop.f32.mrb[142].mxu1  ;;  %v5161_v3 = vpop.f32.mrb[128].mxu0 }
0x2c4e   : > { %v6587_v4 = vpop.f32.mrb[143].mxu1  ;;  %v6638_v5 = vpop.f32.mrb[129].mxu0  ;;  %v5167_v6 = vsel %vm3341_vm7, %v5161_v3, -inf }
0x2c4f   : > { %5168 = vmax.xlane.f32.xlu1 %v5167_v6  ;;  %v5164_v7 = vpop.f32.mrb[130].mxu0 }
0x2c50   : > { %v6639_v8 = vpop.f32.mrb[131].mxu0 }
0x2c51   : > { %v6785_v8 = vld [vmem:[%s8130_s20] sm:$0xff]  }
0x2c52   : > { %6655 = vmatpush3.bf16.msra.mxu0 %v6785_v8 }
0x2c53   : > { %v4890_v9 = vpop.f32.mrb[144].mxu1  ;;  %6656 = vmatprep.subr.bf16.mxu0 %v6940_v13 }
0x2c54   : > { %v4896_v10 = vpack.c.bf16 %v4890_v9, %v4890_v9  ;;  %v6602_v14 = vpop.f32.mrb[145].mxu1  ;;  %v6786_v9 = vld [vmem:[%s8130_s20 + $0x8] sm:$0xff]  }
0x2c55   : > { %v4893_v16 = vpop.f32.mrb[146].mxu1 }
0x2c56   : > { %v6603_v17 = vpop.f32.mrb[147].mxu1  ;;  %6607 = vmatmul.mubr.msk.bf16.vlgmr.msra.gmra.mrb[148].mxu1 %vm1155_vm3, %v4896_v10  ;;  %6657 = vmatpush3.bf16.msra.mxu0 %v6786_v9 }
0x2c57   : > { %6622 = vmatprep.mubr.msk.bf16.mxu1 %vm6941_vm2, %v6940_v13  ;;  %6658 = vmatprep.subr.bf16.mxu0 %v6940_v13 }
0x2c60   : > { %5181 = vrot.lane.b32.xlu1 %v7562_v1, %s8128_s0 }
0x2ca3   : > { %v5011_v18 = vpop.xlane.xlu0 %5010 }
0x2ca4   : > { %6886 = vrcp.f32 %v5011_v18  ;;  %v5945_v18 = vld [vmem:[%s8132_s26] ss:$0 sm:$0xff] }
0x2ca7   : > { %v5016_v20 = vpop.permute.xlu0 %5015 }
0x2ca8   : > { %6619 = vmatpush3.bf16.msra.mxu1 %v5016_v20 }
0x2ca9   : > { %6620 = vmatprep.subr.bf16.mxu1 %v6940_v13 }
0x2cac   : > { %6621 = vmatpush3.bf16.msra.mxu1 %v5018_v22  ;;  %v5946_v22 = vld [vmem:[%s8134_s9] ss:$0 sm:$0xff] }
0x2cad   : > { %6626 = vmatprep.subr.bf16.mxu1 %v6940_v13 }
0x2cae   : > { %v6887_v23 = vpop.eup %6886 }
0x2caf   : > { %v5013_v25 = vmul.f32 %v6887_v23, %v6885_v21 }
0x2cb1   : > { %v5014_v24 = vpack.c.bf16 %v5013_v25, %v5013_v25 }
0x2cb3   : > { %6623 = vmatmul.mubr.msk.bf16.vlgmr.msra.gmra.mrb[152].mxu1 %vm3341_vm7, %v5014_v24 }
0x2cb4   : > { %6628 = vmatprep.mubr.msk.bf16.mxu1 %vm6941_vm2, %v6940_v13  ;;  %6627 = vmatpush3.bf16.msra.mxu1 %v5069_v30  ;;  %v5947_v30 = vld [vmem:[%s8136_s6] ss:$0 sm:$0xff] }
0x2cb5   : > { %6640 = vmatprep.subr.bf16.mxu1 %v6940_v13 }
0x2cdc   : > { %v5169_v1 = vpop.xlane.xlu1 %5168 }
0x2cdd   : > { %v5170_v26 = vsub.f32 %v5161_v3, %v5169_v1  ;;  %v6788_v1 = vld [vmem:[%s7213_s4] sm:$0xff]  }
0x2cdf   : > { %v5171_v27 = vmul.f32 1.442695, %v5170_v26  ;;  %v6789_v26 = vld [vmem:[%s7213_s4 + $0x8] sm:$0xff]  }
0x2ce0   : > { %v5182_v43 = vpop.permute.xlu1 %5181 }
0x2ce1   : > { %6888 = vpow2.f32 %v5171_v27  ;;  %v6790_v27 = vld [vmem:[%s7213_s4 + $0x10] sm:$0xff]  }
0x2ceb   : > { %v6889_v28 = vpop.eup %6888 }
0x2cec   : > { %v5173_v33 = vsel %vm3341_vm7, %v6889_v28, 0.0 }
0x2ced   : > { %5174 = vadd.xlane.f32.xlu0 %v5173_v33  ;;  %v6792_v33 = vld [vmem:[%s7213_s4 + $0x20] sm:$0xff]  }
0x2d03   : > { %5179 = vrot.lane.b32.xlu0 %v7564_v2, %s8128_s0 }
0x2d29   : > { %v4941_v31 = vpop.f32.mrb[148].mxu1 }
0x2d2a   : > { %v4947_v32 = vadd.f32 %v4941_v31, %v4779_v62  ;;  %v6608_v34 = vpop.f32.mrb[149].mxu1 }
0x2d2b   : > { %v4944_v36 = vpop.f32.mrb[150].mxu1 }
0x2d2c   : > { %v6609_v37 = vpop.f32.mrb[151].mxu1 }
0x2d7a   : > { %v5175_v38 = vpop.xlane.xlu0 %5174 }
0x2d7b   : > { %6890 = vrcp.f32 %v5175_v38 }
0x2d7e   : > { %v5180_v41 = vpop.permute.xlu0 %5179 }
0x2d85   : > { %v6891_v19 = vpop.eup %6890 }
0x2d86   : > { %v5058_v39 = vpop.f32.mrb[152].mxu1  ;;  %v5177_v42 = vmul.f32 %v6891_v19, %v6889_v28  ;;  %v6791_v28 = vld [vmem:[%s7213_s4 + $0x18] sm:$0xff]  }
0x2d87   : > { %v5064_v12 = vpack.c.bf16 %v5058_v39, %v5058_v39  ;;  %v6624_v15 = vpop.f32.mrb[153].mxu1 }
0x2d88   : > { %v5061_v40 = vpop.f32.mrb[154].mxu1  ;;  %v5178_v44 = vpack.c.bf16 %v5177_v42, %v5177_v42 }
0x2d89   : > { %v6625_v2 = vpop.f32.mrb[155].mxu1  ;;  %6629 = vmatmul.mubr.msk.bf16.vlgmr.msra.gmra.mrb[156].mxu1 %vm1155_vm3, %v5064_v12 }
0x2d8a   : > { %6641 = vmatpush3.bf16.msra.mxu1 %v5180_v41  ;;  %6644 = vmatprep.mubr.msk.bf16.mxu1 %vm6941_vm2, %v6940_v13 }
0x2d8b   : > { %6642 = vmatprep.subr.bf16.mxu1 %v6940_v13 }
0x2d8e   : > { %6643 = vmatpush3.bf16.msra.mxu1 %v5182_v43  ;;  %v5952_v43 = vld [vmem:[%s8138_s16] ss:$0 sm:$0xff] }
0x2d8f   : > { %6648 = vmatprep.subr.bf16.mxu1 %v6940_v13 }
0x2d91   : > { %6645 = vmatmul.mubr.msk.bf16.vlgmr.msra.gmra.mrb[160].mxu1 %vm3341_vm7, %v5178_v44 }
0x2d92   : > { %6650 = vmatprep.mubr.msk.bf16.mxu1 %vm6941_vm2, %v6940_v13  ;;  %6649 = vmatpush3.bf16.msra.mxu1 %v5237_v47 }
0x2d93   : > { %6664 = vmatprep.subr.bf16.mxu1 %v6940_v13 }
0x2e5c   : > { %v5105_v48 = vpop.f32.mrb[156].mxu1 }
0x2e5d   : > { %v5111_v49 = vadd.f32 %v5105_v48, %v4947_v32  ;;  %v6630_v50 = vpop.f32.mrb[157].mxu1 }
0x2e5e   : > { %v5108_v51 = vpop.f32.mrb[158].mxu1 }
0x2e5f   : > { %v6631_v52 = vpop.f32.mrb[159].mxu1 }
0x2e64   : > { %v5222_v53 = vpop.f32.mrb[160].mxu1 }
0x2e65   : > { %v5228_v54 = vpack.c.bf16 %v5222_v53, %v5222_v53  ;;  %v6646_v55 = vpop.f32.mrb[161].mxu1 }
0x2e66   : > { %v5225_v56 = vpop.f32.mrb[162].mxu1 }
0x2e67   : > { %v6647_v57 = vpop.f32.mrb[163].mxu1  ;;  %6651 = vmatmul.mubr.msk.bf16.vlgmr.msra.gmra.mrb[164].mxu1 %vm1155_vm3, %v5228_v54 }
0x2e68   : > { %6676 = vmatprep.mubr.msk.bf16.mxu1 %vm6941_vm2, %v6940_v13  ;;  %6665 = vmatpush3.bf16.msra.mxu1 %v6788_v1 }
0x2e69   : > { %6666 = vmatprep.subr.bf16.mxu1 %v6940_v13 }
0x2e6c   : > { %6667 = vmatpush3.bf16.msra.mxu1 %v6789_v26 }
0x2e6d   : > { %6668 = vmatprep.subr.bf16.mxu1 %v6940_v13 }
0x2e70   : > { %6669 = vmatpush3.bf16.msra.mxu1 %v6790_v27 }
0x2e71   : > { %6670 = vmatprep.subr.bf16.mxu1 %v6940_v13 }
0x2e74   : > { %6671 = vmatpush3.bf16.msra.mxu1 %v6791_v28 }
0x2e75   : > { %6672 = vmatprep.subr.bf16.mxu1 %v6940_v13 }
0x2e78   : > { %6673 = vmatpush3.bf16.msra.mxu1 %v6792_v33 }
0x2e79   : > { %6674 = vmatprep.subr.bf16.mxu1 %v6940_v13 }
0x2e7c   : > { %6675 = vmatpush3.bf16.msra.mxu1 %v6793_v29 }
0x2f3a   : > { %v5273_v58 = vpop.f32.mrb[164].mxu1 }
0x2f3b   : > { %v5279_v59 = vadd.f32 %v5273_v58, %v5111_v49  ;;  %v6652_v21 = vpop.f32.mrb[165].mxu1 }
0x2f3c   : > { %v5276_v60 = vpop.f32.mrb[166].mxu1 }
0x2f3d   : > { %v5286_v61 = vadd.f32 %v5944_v35, %v5279_v59  ;;  %v6653_v62 = vpop.f32.mrb[167].mxu1  ;;  %v5960_v59 = vld [vmem:[%s8140_s25] ss:$0 sm:$0xff] }
0x2f3e   : > { %v5961_v60 = vld [vmem:[%s8142_s28] ss:$0 sm:$0xff] }
0x2f3f   : > { %v5287_v63 = vadd.f32 %v5286_v61, %v7582_v11  ;;  %v6787_v11 = vld [vmem:[%s8130_s20 + $0x10] sm:$0xff]  }
0x2f40   : > { %6659 = vmatpush3.bf16.msra.mxu0 %v6787_v11 }
0x2f41   : > { %v5290_v0 = vsel %vm1099_vm1, %v5287_v63, 0.0 }
0x2f42   : > { %5291 = vadd.xlane.f32.xlu1 %v5290_v0 }
0x2fcf   : > { %v5292_v3 = vpop.xlane.xlu1 %5291 }
0x2fd0   : > { %v5293_v4 = vmul.f32 0.020833334, %v5292_v3 }
0x2fd2   : > { %v5294_v5 = vsub.f32 %v5287_v63, %v5293_v4 }
0x2fd4   : > { %v5295_v6 = vmul.f32 %v5294_v5, %v5294_v5 }
0x2fd6   : > { %v5296_v7 = vsel %vm1099_vm1, %v5295_v6, 0.0 }
0x2fd7   : > { %5297 = vadd.xlane.f32.xlu0 %v5296_v7 }
0x3064   : > { %v5298_v10 = vpop.xlane.xlu0 %5297 }
0x3065   : > { %v5299_v14 = vmul.f32 0.020833334, %v5298_v10 }
0x3067   : > { %v5300_v16 = vadd.f32 1e-05, %v5299_v14 }
0x3069   : > { %6892 = vrsqrt.f32 %v5300_v16 }
0x3073   : > { %v6893_v17 = vpop.eup %6892 }
0x3074   : > { %v5302_v20 = vmul.f32 %v6893_v17, %v5294_v5 }
0x3076   : > { %v5309_v23 = vmul.f32 %v5945_v18, %v5302_v20 }
0x3078   : > { %v5316_v25 = vadd.f32 %v5946_v22, %v5309_v23 }
0x307a   : > { %v5323_v24 = vpack.c.bf16 %v5316_v25, %v5316_v25 }
0x307c   : > { %6661 = vmatmul.mubr.msk.bf16.vlgmr.msra.gmra.mrb[132].mxu0 %vm1099_vm1, %v5323_v24 }
0x314f   : > { %v5386_v31 = vpop.f32.mrb[132].mxu0 }
0x3150   : > { %v5387_v32 = vadd.f32 %v5947_v30, %v5386_v31  ;;  %v6662_v34 = vpop.f32.mrb[133].mxu0 }
0x3151   : > { %v5389_v36 = vpop.f32.mrb[134].mxu0 }
0x3152   : > { %v5392_v37 = vmul.f32 %v5387_v32, %v5387_v32  ;;  %v6663_v38 = vpop.f32.mrb[135].mxu0 }
0x3154   : > { %v5393_v39 = vmul.f32 %v5392_v37, %v5387_v32 }
0x3156   : > { %v5394_v12 = vmul.f32 0.044715, %v5393_v39 }
0x3158   : > { %v5395_v15 = vadd.f32 %v5394_v12, %v5387_v32 }
0x315a   : > { %v5396_v19 = vmul.f32 0.7978846, %v5395_v15 }
0x315c   : > { %6894 = vtanh.f32 %v5396_v19 }
0x3166   : > { %v6895_v13 = vpop.eup %6894 }
0x3167   : > { %v5398_v40 = vadd.f32 1.0, %v6895_v13 }
0x3169   : > { %v5399_v41 = vmul.f32 0.5, %v5398_v40 }
0x316b   : > { %v5400_v2 = vmul.f32 %v5399_v41, %v5387_v32 }
0x316d   : > { %v5413_v42 = vpack.c.bf16 %v5400_v2, %v5400_v2 }
0x316f   : > { %6677 = vmatmul.mubr.msk.bf16.vlgmr.msra.gmra.mrb[168].mxu1 %vm5457_vm8, %v5413_v42 }
0x3242   : > { %v5495_v44 = vpop.f32.mrb[168].mxu1 }
0x3243   : > { %v5496_v45 = vadd.f32 %v5952_v43, %v5495_v44  ;;  %v6678_v46 = vpop.f32.mrb[169].mxu1 }
0x3244   : > { %v5498_v47 = vpop.f32.mrb[170].mxu1 }
0x3245   : > { %v5501_v48 = vadd.f32 %v5496_v45, %v5316_v25  ;;  %v6679_v49 = vpop.f32.mrb[171].mxu1 }
0x3247   : > { %v5504_v50 = vsel %vm1099_vm1, %v5501_v48, 0.0 }
0x3248   : > { %5505 = vadd.xlane.f32.xlu0 %v5504_v50 }
0x32d5   : > { %v5506_v51 = vpop.xlane.xlu0 %5505 }
0x32d6   : > { %v5507_v52 = vmul.f32 0.020833334, %v5506_v51 }
0x32d8   : > { %v5508_v53 = vsub.f32 %v5501_v48, %v5507_v52 }
0x32da   : > { %v5509_v54 = vmul.f32 %v5508_v53, %v5508_v53 }
0x32dc   : > { %v5510_v55 = vsel %vm1099_vm1, %v5509_v54, 0.0 }
0x32dd   : > { %5511 = vadd.xlane.f32.xlu1 %v5510_v55 }
0x336a   : > { %v5512_v56 = vpop.xlane.xlu1 %5511 }
0x336b   : > { %v5513_v57 = vmul.f32 0.020833334, %v5512_v56 }
0x336d   : > { %v5514_v35 = vadd.f32 1e-05, %v5513_v57 }
0x336f   : > { %6896 = vrsqrt.f32 %v5514_v35 }
0x3379   : > { %v6897_v58 = vpop.eup %6896 }
0x337a   : > { %v5516_v21 = vmul.f32 %v6897_v58, %v5508_v53  ;;  %5535 = sbr.rel (%p5962_p8) target bundleno = 13187 (0x3383), region = 116 }
0x337c   : > { %v5523_v61 = vmul.f32 %v5960_v59, %v5516_v21 }
0x337e   : > { %v5530_v62 = vadd.f32 %v5961_v60, %v5523_v61 }
0x3380   : > { %5531 = vst.msk [vmem:[#allocation2] sm:$0xff] %vm1099_vm1, %v5530_v62  ;;  %v5536_v63 = vpack.c.bf16 (!%p5962_p8), %v5530_v62, %v5530_v62 }
0x3382   : > { %5538 = vst.msk [vmem:[%s7230_s19] sm:$0xf] %vm5537_vm9, %v5536_v63 }
0x3383 PF: > { %s8144_s20 = sld [smem:[#allocation6_spill]]  ;;  %s8145_s3 = sld [smem:[#allocation4_spill]] }
0x3384   : > { %s8146_s28 = sld [smem:[#allocation5_spill]]  ;;  %s8147_s29 = sld [smem:[#allocation7_spill]] }
0x3385   : > { %s8148_s30 = sld [smem:[#allocation8_spill]] }
0x3389   : > { %s32_s4 = sadd.s32 1, %s8144_s20  }
0x338a   : > { %p29_p9 = scmp.ge.s32.totalorder %s32_s4, 6  }
0x338c   :  { %31 = sbr.rel (!%p29_p9) target bundleno = 21 (0x15), region = 209 }

</bundles_post_ra>
